<compile_context>
chip_gen: v6e
topology: v6e:2x2x1
jax: 0.10.0
libtpu: 0.0.40
codegen_flags: <defaults>
</compile_context>

<pallas_src>
import functools

import jax
import jax.numpy as jnp
import numpy as np
from jax.experimental import pallas as pl
from jax.experimental.pallas import tpu as pltpu

EPS = 1e-5          # PyTorch BatchNorm2d default eps
LANE = 128


def _round_up(x, m):
    return (x + m - 1) // m * m


def _vmem_limit_bytes():
    # Generation-aware scoped-VMEM budget: ~3/4 of physical, capped at 96 MiB.
    try:
        cap = int(pltpu.get_tpu_info().vmem_capacity_bytes)
    except Exception:
        cap = 64 * 1024 * 1024      # conservative (v7x) fallback
    return max(32 * 1024 * 1024, min(cap * 3 // 4, 96 * 1024 * 1024))


_VMEM_LIMIT = _vmem_limit_bytes()


def _row_tile(m, target_steps=8):
    """Largest power-of-two row tile dividing m, kept >=256 rows while leaving
    a few grid steps for pipelining / megacore sharding."""
    best = 1
    for t in (4096, 2048, 1024, 512, 256, 128, 64, 32, 16, 8, 4, 2, 1):
        if m % t == 0:
            best = t
            break
    while best > 256 and m // best < target_steps:
        best //= 2
    return best


# ---------------------------------------------------------------------------
# Shared conv body: 9-tap MXU accumulation + per-image BN partial stats.
# ---------------------------------------------------------------------------
def _taps_and_stats(pad_ref, w_ref, out_ref, stats_ref, acc_ref, H, W, Cp):
    acc_ref[...] = jnp.zeros_like(acc_ref)
    for ky in range(3):                               # static unroll: 9 taps
        for kx in range(3):
            patch = pad_ref[ky:ky + H, kx:kx + W, :].reshape(H * W, Cp)
            acc_ref[...] += jnp.dot(patch, w_ref[ky * 3 + kx],
                                    preferred_element_type=jnp.float32)
    acc = acc_ref[...]                                # (H*W, Cp) f32
    out_ref[...] = acc.reshape(1, H, W, Cp).astype(out_ref.dtype)   # bf16 out
    s = jnp.sum(acc, axis=0, keepdims=True)           # (1, Cp)
    ss = jnp.sum(acc * acc, axis=0, keepdims=True)    # (1, Cp)
    stats_ref[...] = jnp.concatenate([s, ss], axis=0).reshape(1, 2, Cp)


# ---------------------------------------------------------------------------
# Kernel 1: conv1 on the raw (bf16, channel-padded) input.  Halo is zero-filled
# in a VMEM scratch (no HBM pad pass).
# ---------------------------------------------------------------------------
def _conv3x3_kernel(x_ref, w_ref, out_ref, stats_ref, pad_ref, acc_ref, *, H, W):
    Cp = out_ref.shape[-1]
    pad_ref[...] = jnp.zeros_like(pad_ref)            # safe under any iter order
    pad_ref[1:H + 1, 1:W + 1, :] = x_ref[0]
    _taps_and_stats(pad_ref, w_ref, out_ref, stats_ref, acc_ref, H, W, Cp)


def _conv1_stats(x, w, H, W, Cp):
    """x: (N, H, W, Cp) bf16; w: (9, Cp, Cp) bf16 -> (conv bf16, stats f32)."""
    N = x.shape[0]
    return pl.pallas_call(
        functools.partial(_conv3x3_kernel, H=H, W=W),
        out_shape=(jax.ShapeDtypeStruct((N, H, W, Cp), jnp.bfloat16),
                   jax.ShapeDtypeStruct((N, 2, Cp), jnp.float32)),
        grid=(N,),
        in_specs=[pl.BlockSpec((1, H, W, Cp), lambda n: (n, 0, 0, 0)),
                  pl.BlockSpec((9, Cp, Cp), lambda n: (0, 0, 0))],
        out_specs=(pl.BlockSpec((1, H, W, Cp), lambda n: (n, 0, 0, 0)),
                   pl.BlockSpec((1, 2, Cp), lambda n: (n, 0, 0))),
        scratch_shapes=[pltpu.VMEM((H + 2, W + 2, Cp), jnp.bfloat16),
                        pltpu.VMEM((H * W, Cp), jnp.float32)],
        compiler_params=pltpu.CompilerParams(
            dimension_semantics=("parallel",),
            vmem_limit_bytes=_VMEM_LIMIT),
    )(x, w)


# ---------------------------------------------------------------------------
# Kernel 2: fused [BN1 scale/shift + ReLU] prologue -> conv2 + BN2 partial
# stats.  Consumes the raw bf16 conv1 output; no intermediate y1 in HBM.
# ---------------------------------------------------------------------------
def _bn_relu_conv3x3_kernel(c1_ref, scale_ref, shift_ref, w_ref,
                            out_ref, stats_ref, pad_ref, acc_ref, *, H, W):
    Cp = out_ref.shape[-1]
    pad_ref[...] = jnp.zeros_like(pad_ref)
    y = c1_ref[0].astype(jnp.float32) * scale_ref[0] + shift_ref[0]
    y = jnp.maximum(y, 0.0)                           # stage-1 BN + ReLU
    pad_ref[1:H + 1, 1:W + 1, :] = y.astype(pad_ref.dtype)
    _taps_and_stats(pad_ref, w_ref, out_ref, stats_ref, acc_ref, H, W, Cp)


def _bn_relu_conv2_stats(c1, scale1, shift1, w, H, W, Cp):
    N = c1.shape[0]
    return pl.pallas_call(
        functools.partial(_bn_relu_conv3x3_kernel, H=H, W=W),
        out_shape=(jax.ShapeDtypeStruct((N, H, W, Cp), jnp.bfloat16),
                   jax.ShapeDtypeStruct((N, 2, Cp), jnp.float32)),
        grid=(N,),
        in_specs=[pl.BlockSpec((1, H, W, Cp), lambda n: (n, 0, 0, 0)),
                  pl.BlockSpec((1, Cp), lambda n: (0, 0)),
                  pl.BlockSpec((1, Cp), lambda n: (0, 0)),
                  pl.BlockSpec((9, Cp, Cp), lambda n: (0, 0, 0))],
        out_specs=(pl.BlockSpec((1, H, W, Cp), lambda n: (n, 0, 0, 0)),
                   pl.BlockSpec((1, 2, Cp), lambda n: (n, 0, 0))),
        scratch_shapes=[pltpu.VMEM((H + 2, W + 2, Cp), jnp.bfloat16),
                        pltpu.VMEM((H * W, Cp), jnp.float32)],
        compiler_params=pltpu.CompilerParams(
            dimension_semantics=("parallel",),
            vmem_limit_bytes=_VMEM_LIMIT),
    )(c1, scale1, shift1, w)


# ---------------------------------------------------------------------------
# Kernel 3: final BN2 scale/shift + residual add + ReLU, tiled over rows of
# the flattened (N*H*W, Cp) activation (pure HBM-bandwidth pass).
# ---------------------------------------------------------------------------
def _bn_res_relu_kernel(c_ref, scale_ref, shift_ref, res_ref, out_ref):
    y = (c_ref[...].astype(jnp.float32) * scale_ref[...] + shift_ref[...]
         + res_ref[...].astype(jnp.float32))
    out_ref[...] = jnp.maximum(y, 0.0).astype(out_ref.dtype)


def _bn_residual_relu(conv, scale, shift, residual, out_dtype=jnp.float32):
    N, H, W, Cp = conv.shape
    M = N * H * W
    TM = _row_tile(M)
    out = pl.pallas_call(
        _bn_res_relu_kernel,
        out_shape=jax.ShapeDtypeStruct((M, Cp), out_dtype),
        grid=(M // TM,),
        in_specs=[pl.BlockSpec((TM, Cp), lambda i: (i, 0)),
                  pl.BlockSpec((1, Cp), lambda i: (0, 0)),
                  pl.BlockSpec((1, Cp), lambda i: (0, 0)),
                  pl.BlockSpec((TM, Cp), lambda i: (i, 0))],
        out_specs=pl.BlockSpec((TM, Cp), lambda i: (i, 0)),
        compiler_params=pltpu.CompilerParams(
            dimension_semantics=("parallel",),
            vmem_limit_bytes=_VMEM_LIMIT),
    )(conv.reshape(M, Cp), scale, shift, residual.reshape(M, Cp))
    return out.reshape(N, H, W, Cp)


# ---------------------------------------------------------------------------
# Parameter packing / BN finalization (tiny (Cp,) vector math, plain JAX).
# ---------------------------------------------------------------------------
def _pack_weights(w_hwio, C, Cp):
    w = jnp.pad(w_hwio, ((0, 0), (0, 0), (0, Cp - C), (0, Cp - C)))
    return w.reshape(9, Cp, Cp).astype(jnp.bfloat16)      # (tap, Cin, Cout)


def _pad_vec(v, Cp):
    return jnp.pad(v.astype(jnp.float32), (0, Cp - v.shape[0]))


def _finalize_stats(stats, gamma_p, beta_p, count):
    s = jnp.sum(stats[:, 0, :], axis=0)
    ss = jnp.sum(stats[:, 1, :], axis=0)
    mean = s / count
    var = jnp.maximum(ss / count - mean * mean, 0.0)       # one-pass; clamp fp err
    inv = jax.lax.rsqrt(var + EPS)
    scale = gamma_p * inv                                  # fold gamma*inv
    shift = beta_p - mean * scale                          # fold beta - mean*scale
    return (scale.reshape(1, -1).astype(jnp.float32),
            shift.reshape(1, -1).astype(jnp.float32))


# ---------------------------------------------------------------------------
# ResidualBlock.forward (stride=1, downsample=None). NCHW in / NCHW out.
# ---------------------------------------------------------------------------
def residual_block(x_nchw, params):
    N, C, H, W = x_nchw.shape
    Cp = _round_up(C, LANE)
    x = jnp.transpose(x_nchw, (0, 2, 3, 1))                      # NCHW -> NHWC
    x_bf = jnp.pad(x, ((0, 0), (0, 0), (0, 0), (0, Cp - C))).astype(jnp.bfloat16)

    w1 = _pack_weights(params["w1"], C, Cp)
    w2 = _pack_weights(params["w2"], C, Cp)
    g1, b1 = _pad_vec(params["g1"], Cp), _pad_vec(params["b1"], Cp)
    g2, b2 = _pad_vec(params["g2"], Cp), _pad_vec(params["b2"], Cp)
    count = N * H * W

    # Stage 1: conv1 (+ BN1 partial stats).  bf16 conv output.
    c1, s1 = _conv1_stats(x_bf, w1, H, W, Cp)
    scale1, shift1 = _finalize_stats(s1, g1, b1, count)

    # Stage 2: fused BN1+ReLU prologue -> conv2 (+ BN2 partial stats).
    c2, s2 = _bn_relu_conv2_stats(c1, scale1, shift1, w2, H, W, Cp)
    scale2, shift2 = _finalize_stats(s2, g2, b2, count)

    # Stage 3: BN2 + residual (bf16 identity) + ReLU.
    out = _bn_residual_relu(c2, scale2, shift2, x_bf, out_dtype=jnp.float32)

    out = out[..., :C]                                           # drop channel pad
    return jnp.transpose(out, (0, 3, 1, 2))                      # NHWC -> NCHW


# ---------------------------------------------------------------------------
# Pure-JAX f32 reference of the same forward pass (verification only).
# ---------------------------------------------------------------------------
def _reference(x_nchw, params):
    def conv(x, w_hwio):
        return jax.lax.conv_general_dilated(
            x, w_hwio, window_strides=(1, 1), padding="SAME",
            dimension_numbers=("NHWC", "HWIO", "NHWC"))

    def bn(x, g, b):
        mean = jnp.mean(x, axis=(0, 1, 2))
        var = jnp.mean((x - mean) ** 2, axis=(0, 1, 2))
        return (x - mean) * jax.lax.rsqrt(var + EPS) * g + b

    x = jnp.transpose(x_nchw, (0, 2, 3, 1))
    out = jax.nn.relu(bn(conv(x, params["w1"]), params["g1"], params["b1"]))
    out = bn(conv(out, params["w2"]), params["g2"], params["b2"]) + x
    out = jax.nn.relu(out)
    return jnp.transpose(out, (0, 3, 1, 2))


if __name__ == "__main__":
    N, C, H, W = 2, 4, 16, 16          # in_channels == out_channels, stride=1
    key = jax.random.PRNGKey(0)
    k_x, k_w1, k_w2, k_g1, k_b1, k_g2, k_b2 = jax.random.split(key, 7)

    x = jax.random.normal(k_x, (N, C, H, W), jnp.float32)

    def conv_w(k, cout, cin):
        # deterministic init; generated in PyTorch OIHW, converted to HWIO
        w_oihw = jax.random.normal(k, (cout, cin, 3, 3), jnp.float32) * 0.1
        return jnp.transpose(w_oihw, (2, 3, 1, 0))

    params = {
        "w1": conv_w(k_w1, C, C),
        "w2": conv_w(k_w2, C, C),
        "g1": 1.0 + 0.1 * jax.random.normal(k_g1, (C,), jnp.float32),
        "b1": 0.1 * jax.random.normal(k_b1, (C,), jnp.float32),
        "g2": 1.0 + 0.1 * jax.random.normal(k_g2, (C,), jnp.float32),
        "b2": 0.1 * jax.random.normal(k_b2, (C,), jnp.float32),
    }

    out = jax.block_until_ready(jax.jit(residual_block)(x, params))
    ref = jax.block_until_ready(_reference(x, params))
    # bf16 MXU operands + bf16 intermediates/residual with f32 accumulation:
    # compare at 3e-2 against the f32 reference.
    np.testing.assert_allclose(np.asarray(out), np.asarray(ref),
                               rtol=3e-2, atol=3e-2)
    print("KERNEL_OK")
</pallas_src>

<mosaic_0001>
module attributes {stable_mosaic.version = 11 : i64} {
  func.func @_conv3x3_kernel(%arg0: i32, %arg1: memref<1x16x16x128xbf16, #tpu.memory_space<vmem>>, %arg2: memref<9x128x128xbf16, #tpu.memory_space<vmem>>, %arg3: memref<1x16x16x128xbf16, #tpu.memory_space<vmem>>, %arg4: memref<1x2x128xf32, #tpu.memory_space<vmem>>, %arg5: memref<18x18x128xbf16, #tpu.memory_space<vmem>>, %arg6: memref<256x128xf32, #tpu.memory_space<vmem>>) attributes {dimension_semantics = [#tpu.dimension_semantics<parallel>], iteration_bounds = array<i64: 2>, scalar_prefetch = 0 : i64, scratch_operands = 2 : i64, tpu.core_type = #tpu.core_type<tc>, window_params = [{transform_indices = @transform_0, window_bounds = array<i64: 1, 16, 16, 128>}, {pipeline_mode = #tpu.pipeline_mode<synchronous>, transform_indices = @transform_1, window_bounds = array<i64: 9, 128, 128>}, {transform_indices = @transform_2, window_bounds = array<i64: 1, 16, 16, 128>}, {transform_indices = @transform_3, window_bounds = array<i64: 1, 2, 128>}]} {
    %cst = arith.constant 0.000000e+00 : bf16
    %0 = vector.broadcast %cst : bf16 to vector<18x18x128xbf16>
    %c0 = arith.constant 0 : index
    %c0_0 = arith.constant 0 : index
    %c0_1 = arith.constant 0 : index
    %1 = vector.load %arg5[%c0, %c0_0, %c0_1] : memref<18x18x128xbf16, #tpu.memory_space<vmem>>, vector<18x18x128xbf16>
    tpu.vector_store %arg5[%c0, %c0_0, %c0_1], %0 {strides = array<i32>} : memref<18x18x128xbf16, #tpu.memory_space<vmem>>, vector<18x18x128xbf16>,
    %c0_2 = arith.constant 0 : index
    %c0_3 = arith.constant 0 : index
    %c0_4 = arith.constant 0 : index
    %c0_5 = arith.constant 0 : index
    %2 = vector.load %arg1[%c0_2, %c0_3, %c0_4, %c0_5] : memref<1x16x16x128xbf16, #tpu.memory_space<vmem>>, vector<1x16x16x128xbf16>
    %3 = vector.shape_cast %2 : vector<1x16x16x128xbf16> to vector<16x16x128xbf16>
    %c1 = arith.constant 1 : index
    %c1_6 = arith.constant 1 : index
    %c0_7 = arith.constant 0 : index
    %4 = vector.load %arg5[%c1, %c1_6, %c0_7] : memref<18x18x128xbf16, #tpu.memory_space<vmem>>, vector<16x16x128xbf16>
    tpu.vector_store %arg5[%c1, %c1_6, %c0_7], %3 {strides = array<i32>} : memref<18x18x128xbf16, #tpu.memory_space<vmem>>, vector<16x16x128xbf16>,
    %cst_8 = arith.constant 0.000000e+00 : f32
    %5 = vector.broadcast %cst_8 : f32 to vector<256x128xf32>
    %c0_9 = arith.constant 0 : index
    %c0_10 = arith.constant 0 : index
    %6 = vector.load %arg6[%c0_9, %c0_10] : memref<256x128xf32, #tpu.memory_space<vmem>>, vector<256x128xf32>
    tpu.vector_store %arg6[%c0_9, %c0_10], %5 {strides = array<i32>} : memref<256x128xf32, #tpu.memory_space<vmem>>, vector<256x128xf32>,
    %c0_11 = arith.constant 0 : index
    %c0_12 = arith.constant 0 : index
    %c0_13 = arith.constant 0 : index
    %7 = vector.load %arg5[%c0_11, %c0_12, %c0_13] : memref<18x18x128xbf16, #tpu.memory_space<vmem>>, vector<16x16x128xbf16>
    %8 = vector.shape_cast %7 : vector<16x16x128xbf16> to vector<256x128xbf16>
    %c0_14 = arith.constant 0 : index
    %c0_15 = arith.constant 0 : index
    %9 = vector.load %arg6[%c0_14, %c0_15] : memref<256x128xf32, #tpu.memory_space<vmem>>, vector<256x128xf32>
    %c0_16 = arith.constant 0 : index
    %c0_17 = arith.constant 0 : index
    %c0_18 = arith.constant 0 : index
    %10 = vector.load %arg2[%c0_16, %c0_17, %c0_18] : memref<9x128x128xbf16, #tpu.memory_space<vmem>>, vector<1x128x128xbf16>
    %11 = vector.shape_cast %10 : vector<1x128x128xbf16> to vector<128x128xbf16>
    %cst_19 = arith.constant dense<0.000000e+00> : vector<256x128xf32>
    %12 = tpu.matmul %8, %11, %cst_19 {dimension_numbers = #tpu.dot_dimension_numbers<[1], [0], [0], [1], [0, 0, 1, 1], [], []>} : vector<256x128xbf16>, vector<128x128xbf16>, vector<256x128xf32> -> vector<256x128xf32>
    %13 = arith.addf %9, %12 : vector<256x128xf32>
    %c0_20 = arith.constant 0 : index
    %c0_21 = arith.constant 0 : index
    %14 = vector.load %arg6[%c0_20, %c0_21] : memref<256x128xf32, #tpu.memory_space<vmem>>, vector<256x128xf32>
    tpu.vector_store %arg6[%c0_20, %c0_21], %13 {strides = array<i32>} : memref<256x128xf32, #tpu.memory_space<vmem>>, vector<256x128xf32>,
    %c0_22 = arith.constant 0 : index
    %c1_23 = arith.constant 1 : index
    %c0_24 = arith.constant 0 : index
    %15 = vector.load %arg5[%c0_22, %c1_23, %c0_24] : memref<18x18x128xbf16, #tpu.memory_space<vmem>>, vector<16x16x128xbf16>
    %16 = vector.shape_cast %15 : vector<16x16x128xbf16> to vector<256x128xbf16>
    %c0_25 = arith.constant 0 : index
    %c0_26 = arith.constant 0 : index
    %17 = vector.load %arg6[%c0_25, %c0_26] : memref<256x128xf32, #tpu.memory_space<vmem>>, vector<256x128xf32>
    %c1_27 = arith.constant 1 : index
    %c0_28 = arith.constant 0 : index
    %c0_29 = arith.constant 0 : index
    %18 = vector.load %arg2[%c1_27, %c0_28, %c0_29] : memref<9x128x128xbf16, #tpu.memory_space<vmem>>, vector<1x128x128xbf16>
    %19 = vector.shape_cast %18 : vector<1x128x128xbf16> to vector<128x128xbf16>
    %cst_30 = arith.constant dense<0.000000e+00> : vector<256x128xf32>
    %20 = tpu.matmul %16, %19, %cst_30 {dimension_numbers = #tpu.dot_dimension_numbers<[1], [0], [0], [1], [0, 0, 1, 1], [], []>} : vector<256x128xbf16>, vector<128x128xbf16>, vector<256x128xf32> -> vector<256x128xf32>
    %21 = arith.addf %17, %20 : vector<256x128xf32>
    %c0_31 = arith.constant 0 : index
    %c0_32 = arith.constant 0 : index
    %22 = vector.load %arg6[%c0_31, %c0_32] : memref<256x128xf32, #tpu.memory_space<vmem>>, vector<256x128xf32>
    tpu.vector_store %arg6[%c0_31, %c0_32], %21 {strides = array<i32>} : memref<256x128xf32, #tpu.memory_space<vmem>>, vector<256x128xf32>,
    %c0_33 = arith.constant 0 : index
    %c2 = arith.constant 2 : index
    %c0_34 = arith.constant 0 : index
    %23 = vector.load %arg5[%c0_33, %c2, %c0_34] : memref<18x18x128xbf16, #tpu.memory_space<vmem>>, vector<16x16x128xbf16>
    %24 = vector.shape_cast %23 : vector<16x16x128xbf16> to vector<256x128xbf16>
    %c0_35 = arith.constant 0 : index
    %c0_36 = arith.constant 0 : index
    %25 = vector.load %arg6[%c0_35, %c0_36] : memref<256x128xf32, #tpu.memory_space<vmem>>, vector<256x128xf32>
    %c2_37 = arith.constant 2 : index
    %c0_38 = arith.constant 0 : index
    %c0_39 = arith.constant 0 : index
    %26 = vector.load %arg2[%c2_37, %c0_38, %c0_39] : memref<9x128x128xbf16, #tpu.memory_space<vmem>>, vector<1x128x128xbf16>
    %27 = vector.shape_cast %26 : vector<1x128x128xbf16> to vector<128x128xbf16>
    %cst_40 = arith.constant dense<0.000000e+00> : vector<256x128xf32>
    %28 = tpu.matmul %24, %27, %cst_40 {dimension_numbers = #tpu.dot_dimension_numbers<[1], [0], [0], [1], [0, 0, 1, 1], [], []>} : vector<256x128xbf16>, vector<128x128xbf16>, vector<256x128xf32> -> vector<256x128xf32>
    %29 = arith.addf %25, %28 : vector<256x128xf32>
    %c0_41 = arith.constant 0 : index
    %c0_42 = arith.constant 0 : index
    %30 = vector.load %arg6[%c0_41, %c0_42] : memref<256x128xf32, #tpu.memory_space<vmem>>, vector<256x128xf32>
    tpu.vector_store %arg6[%c0_41, %c0_42], %29 {strides = array<i32>} : memref<256x128xf32, #tpu.memory_space<vmem>>, vector<256x128xf32>,
    %c1_43 = arith.constant 1 : index
    %c0_44 = arith.constant 0 : index
    %c0_45 = arith.constant 0 : index
    %31 = vector.load %arg5[%c1_43, %c0_44, %c0_45] : memref<18x18x128xbf16, #tpu.memory_space<vmem>>, vector<16x16x128xbf16>
    %32 = vector.shape_cast %31 : vector<16x16x128xbf16> to vector<256x128xbf16>
    %c0_46 = arith.constant 0 : index
    %c0_47 = arith.constant 0 : index
    %33 = vector.load %arg6[%c0_46, %c0_47] : memref<256x128xf32, #tpu.memory_space<vmem>>, vector<256x128xf32>
    %c3 = arith.constant 3 : index
    %c0_48 = arith.constant 0 : index
    %c0_49 = arith.constant 0 : index
    %34 = vector.load %arg2[%c3, %c0_48, %c0_49] : memref<9x128x128xbf16, #tpu.memory_space<vmem>>, vector<1x128x128xbf16>
    %35 = vector.shape_cast %34 : vector<1x128x128xbf16> to vector<128x128xbf16>
    %cst_50 = arith.constant dense<0.000000e+00> : vector<256x128xf32>
    %36 = tpu.matmul %32, %35, %cst_50 {dimension_numbers = #tpu.dot_dimension_numbers<[1], [0], [0], [1], [0, 0, 1, 1], [], []>} : vector<256x128xbf16>, vector<128x128xbf16>, vector<256x128xf32> -> vector<256x128xf32>
    %37 = arith.addf %33, %36 : vector<256x128xf32>
    %c0_51 = arith.constant 0 : index
    %c0_52 = arith.constant 0 : index
    %38 = vector.load %arg6[%c0_51, %c0_52] : memref<256x128xf32, #tpu.memory_space<vmem>>, vector<256x128xf32>
    tpu.vector_store %arg6[%c0_51, %c0_52], %37 {strides = array<i32>} : memref<256x128xf32, #tpu.memory_space<vmem>>, vector<256x128xf32>,
    %c1_53 = arith.constant 1 : index
    %c1_54 = arith.constant 1 : index
    %c0_55 = arith.constant 0 : index
    %39 = vector.load %arg5[%c1_53, %c1_54, %c0_55] : memref<18x18x128xbf16, #tpu.memory_space<vmem>>, vector<16x16x128xbf16>
    %40 = vector.shape_cast %39 : vector<16x16x128xbf16> to vector<256x128xbf16>
    %c0_56 = arith.constant 0 : index
    %c0_57 = arith.constant 0 : index
    %41 = vector.load %arg6[%c0_56, %c0_57] : memref<256x128xf32, #tpu.memory_space<vmem>>, vector<256x128xf32>
    %c4 = arith.constant 4 : index
    %c0_58 = arith.constant 0 : index
    %c0_59 = arith.constant 0 : index
    %42 = vector.load %arg2[%c4, %c0_58, %c0_59] : memref<9x128x128xbf16, #tpu.memory_space<vmem>>, vector<1x128x128xbf16>
    %43 = vector.shape_cast %42 : vector<1x128x128xbf16> to vector<128x128xbf16>
    %cst_60 = arith.constant dense<0.000000e+00> : vector<256x128xf32>
    %44 = tpu.matmul %40, %43, %cst_60 {dimension_numbers = #tpu.dot_dimension_numbers<[1], [0], [0], [1], [0, 0, 1, 1], [], []>} : vector<256x128xbf16>, vector<128x128xbf16>, vector<256x128xf32> -> vector<256x128xf32>
    %45 = arith.addf %41, %44 : vector<256x128xf32>
    %c0_61 = arith.constant 0 : index
    %c0_62 = arith.constant 0 : index
    %46 = vector.load %arg6[%c0_61, %c0_62] : memref<256x128xf32, #tpu.memory_space<vmem>>, vector<256x128xf32>
    tpu.vector_store %arg6[%c0_61, %c0_62], %45 {strides = array<i32>} : memref<256x128xf32, #tpu.memory_space<vmem>>, vector<256x128xf32>,
    %c1_63 = arith.constant 1 : index
    %c2_64 = arith.constant 2 : index
    %c0_65 = arith.constant 0 : index
    %47 = vector.load %arg5[%c1_63, %c2_64, %c0_65] : memref<18x18x128xbf16, #tpu.memory_space<vmem>>, vector<16x16x128xbf16>
    %48 = vector.shape_cast %47 : vector<16x16x128xbf16> to vector<256x128xbf16>
    %c0_66 = arith.constant 0 : index
    %c0_67 = arith.constant 0 : index
    %49 = vector.load %arg6[%c0_66, %c0_67] : memref<256x128xf32, #tpu.memory_space<vmem>>, vector<256x128xf32>
    %c5 = arith.constant 5 : index
    %c0_68 = arith.constant 0 : index
    %c0_69 = arith.constant 0 : index
    %50 = vector.load %arg2[%c5, %c0_68, %c0_69] : memref<9x128x128xbf16, #tpu.memory_space<vmem>>, vector<1x128x128xbf16>
    %51 = vector.shape_cast %50 : vector<1x128x128xbf16> to vector<128x128xbf16>
    %cst_70 = arith.constant dense<0.000000e+00> : vector<256x128xf32>
    %52 = tpu.matmul %48, %51, %cst_70 {dimension_numbers = #tpu.dot_dimension_numbers<[1], [0], [0], [1], [0, 0, 1, 1], [], []>} : vector<256x128xbf16>, vector<128x128xbf16>, vector<256x128xf32> -> vector<256x128xf32>
    %53 = arith.addf %49, %52 : vector<256x128xf32>
    %c0_71 = arith.constant 0 : index
    %c0_72 = arith.constant 0 : index
    %54 = vector.load %arg6[%c0_71, %c0_72] : memref<256x128xf32, #tpu.memory_space<vmem>>, vector<256x128xf32>
    tpu.vector_store %arg6[%c0_71, %c0_72], %53 {strides = array<i32>} : memref<256x128xf32, #tpu.memory_space<vmem>>, vector<256x128xf32>,
    %c2_73 = arith.constant 2 : index
    %c0_74 = arith.constant 0 : index
    %c0_75 = arith.constant 0 : index
    %55 = vector.load %arg5[%c2_73, %c0_74, %c0_75] : memref<18x18x128xbf16, #tpu.memory_space<vmem>>, vector<16x16x128xbf16>
    %56 = vector.shape_cast %55 : vector<16x16x128xbf16> to vector<256x128xbf16>
    %c0_76 = arith.constant 0 : index
    %c0_77 = arith.constant 0 : index
    %57 = vector.load %arg6[%c0_76, %c0_77] : memref<256x128xf32, #tpu.memory_space<vmem>>, vector<256x128xf32>
    %c6 = arith.constant 6 : index
    %c0_78 = arith.constant 0 : index
    %c0_79 = arith.constant 0 : index
    %58 = vector.load %arg2[%c6, %c0_78, %c0_79] : memref<9x128x128xbf16, #tpu.memory_space<vmem>>, vector<1x128x128xbf16>
    %59 = vector.shape_cast %58 : vector<1x128x128xbf16> to vector<128x128xbf16>
    %cst_80 = arith.constant dense<0.000000e+00> : vector<256x128xf32>
    %60 = tpu.matmul %56, %59, %cst_80 {dimension_numbers = #tpu.dot_dimension_numbers<[1], [0], [0], [1], [0, 0, 1, 1], [], []>} : vector<256x128xbf16>, vector<128x128xbf16>, vector<256x128xf32> -> vector<256x128xf32>
    %61 = arith.addf %57, %60 : vector<256x128xf32>
    %c0_81 = arith.constant 0 : index
    %c0_82 = arith.constant 0 : index
    %62 = vector.load %arg6[%c0_81, %c0_82] : memref<256x128xf32, #tpu.memory_space<vmem>>, vector<256x128xf32>
    tpu.vector_store %arg6[%c0_81, %c0_82], %61 {strides = array<i32>} : memref<256x128xf32, #tpu.memory_space<vmem>>, vector<256x128xf32>,
    %c2_83 = arith.constant 2 : index
    %c1_84 = arith.constant 1 : index
    %c0_85 = arith.constant 0 : index
    %63 = vector.load %arg5[%c2_83, %c1_84, %c0_85] : memref<18x18x128xbf16, #tpu.memory_space<vmem>>, vector<16x16x128xbf16>
    %64 = vector.shape_cast %63 : vector<16x16x128xbf16> to vector<256x128xbf16>
    %c0_86 = arith.constant 0 : index
    %c0_87 = arith.constant 0 : index
    %65 = vector.load %arg6[%c0_86, %c0_87] : memref<256x128xf32, #tpu.memory_space<vmem>>, vector<256x128xf32>
    %c7 = arith.constant 7 : index
    %c0_88 = arith.constant 0 : index
    %c0_89 = arith.constant 0 : index
    %66 = vector.load %arg2[%c7, %c0_88, %c0_89] : memref<9x128x128xbf16, #tpu.memory_space<vmem>>, vector<1x128x128xbf16>
    %67 = vector.shape_cast %66 : vector<1x128x128xbf16> to vector<128x128xbf16>
    %cst_90 = arith.constant dense<0.000000e+00> : vector<256x128xf32>
    %68 = tpu.matmul %64, %67, %cst_90 {dimension_numbers = #tpu.dot_dimension_numbers<[1], [0], [0], [1], [0, 0, 1, 1], [], []>} : vector<256x128xbf16>, vector<128x128xbf16>, vector<256x128xf32> -> vector<256x128xf32>
    %69 = arith.addf %65, %68 : vector<256x128xf32>
    %c0_91 = arith.constant 0 : index
    %c0_92 = arith.constant 0 : index
    %70 = vector.load %arg6[%c0_91, %c0_92] : memref<256x128xf32, #tpu.memory_space<vmem>>, vector<256x128xf32>
    tpu.vector_store %arg6[%c0_91, %c0_92], %69 {strides = array<i32>} : memref<256x128xf32, #tpu.memory_space<vmem>>, vector<256x128xf32>,
    %c2_93 = arith.constant 2 : index
    %c2_94 = arith.constant 2 : index
    %c0_95 = arith.constant 0 : index
    %71 = vector.load %arg5[%c2_93, %c2_94, %c0_95] : memref<18x18x128xbf16, #tpu.memory_space<vmem>>, vector<16x16x128xbf16>
    %72 = vector.shape_cast %71 : vector<16x16x128xbf16> to vector<256x128xbf16>
    %c0_96 = arith.constant 0 : index
    %c0_97 = arith.constant 0 : index
    %73 = vector.load %arg6[%c0_96, %c0_97] : memref<256x128xf32, #tpu.memory_space<vmem>>, vector<256x128xf32>
    %c8 = arith.constant 8 : index
    %c0_98 = arith.constant 0 : index
    %c0_99 = arith.constant 0 : index
    %74 = vector.load %arg2[%c8, %c0_98, %c0_99] : memref<9x128x128xbf16, #tpu.memory_space<vmem>>, vector<1x128x128xbf16>
    %75 = vector.shape_cast %74 : vector<1x128x128xbf16> to vector<128x128xbf16>
    %cst_100 = arith.constant dense<0.000000e+00> : vector<256x128xf32>
    %76 = tpu.matmul %72, %75, %cst_100 {dimension_numbers = #tpu.dot_dimension_numbers<[1], [0], [0], [1], [0, 0, 1, 1], [], []>} : vector<256x128xbf16>, vector<128x128xbf16>, vector<256x128xf32> -> vector<256x128xf32>
    %77 = arith.addf %73, %76 : vector<256x128xf32>
    %c0_101 = arith.constant 0 : index
    %c0_102 = arith.constant 0 : index
    %78 = vector.load %arg6[%c0_101, %c0_102] : memref<256x128xf32, #tpu.memory_space<vmem>>, vector<256x128xf32>
    tpu.vector_store %arg6[%c0_101, %c0_102], %77 {strides = array<i32>} : memref<256x128xf32, #tpu.memory_space<vmem>>, vector<256x128xf32>,
    %c0_103 = arith.constant 0 : index
    %c0_104 = arith.constant 0 : index
    %79 = vector.load %arg6[%c0_103, %c0_104] : memref<256x128xf32, #tpu.memory_space<vmem>>, vector<256x128xf32>
    %80 = vector.shape_cast %79 : vector<256x128xf32> to vector<1x16x16x128xf32>
    %81 = arith.truncf %80 : vector<1x16x16x128xf32> to vector<1x16x16x128xbf16>
    %c0_105 = arith.constant 0 : index
    %c0_106 = arith.constant 0 : index
    %c0_107 = arith.constant 0 : index
    %c0_108 = arith.constant 0 : index
    %82 = vector.load %arg3[%c0_105, %c0_106, %c0_107, %c0_108] : memref<1x16x16x128xbf16, #tpu.memory_space<vmem>>, vector<1x16x16x128xbf16>
    tpu.vector_store %arg3[%c0_105, %c0_106, %c0_107, %c0_108], %81 {strides = array<i32>} : memref<1x16x16x128xbf16, #tpu.memory_space<vmem>>, vector<1x16x16x128xbf16>,
    %cst_109 = arith.constant dense<0.000000e+00> : vector<128xf32>
    %83 = vector.multi_reduction <add>, %79, %cst_109 [0] : vector<256x128xf32> to vector<128xf32>
    %84 = vector.shape_cast %83 : vector<128xf32> to vector<1x128xf32>
    %85 = arith.mulf %79, %79 : vector<256x128xf32>
    %cst_110 = arith.constant dense<0.000000e+00> : vector<128xf32>
    %86 = vector.multi_reduction <add>, %85, %cst_110 [0] : vector<256x128xf32> to vector<128xf32>
    %87 = vector.shape_cast %86 : vector<128xf32> to vector<1x128xf32>
    %88 = tpu.concatenate %84, %87 in 0 : vector<1x128xf32>, vector<1x128xf32> -> vector<2x128xf32>
    %89 = vector.shape_cast %88 : vector<2x128xf32> to vector<1x2x128xf32>
    %c0_111 = arith.constant 0 : index
    %c0_112 = arith.constant 0 : index
    %c0_113 = arith.constant 0 : index
    %90 = vector.load %arg4[%c0_111, %c0_112, %c0_113] : memref<1x2x128xf32, #tpu.memory_space<vmem>>, vector<1x2x128xf32>
    tpu.vector_store %arg4[%c0_111, %c0_112, %c0_113], %89 {strides = array<i32>} : memref<1x2x128xf32, #tpu.memory_space<vmem>>, vector<1x2x128xf32>,
    return
  }
  func.func @transform_0(%arg0: i32) -> (i32, i32, i32, i32) {
    %c0_i32 = arith.constant 0 : i32
    %c0_i32_0 = arith.constant 0 : i32
    %c0_i32_1 = arith.constant 0 : i32
    %c0_i32_2 = arith.constant 0 : i32
    return %arg0, %c0_i32, %c0_i32_0, %c0_i32_1 : i32, i32, i32, i32
  }
  func.func @transform_1(%arg0: i32) -> (i32, i32, i32) {
    %c0_i32 = arith.constant 0 : i32
    %c0_i32_0 = arith.constant 0 : i32
    %c0_i32_1 = arith.constant 0 : i32
    %c0_i32_2 = arith.constant 0 : i32
    return %c0_i32, %c0_i32_0, %c0_i32_1 : i32, i32, i32
  }
  func.func @transform_2(%arg0: i32) -> (i32, i32, i32, i32) {
    %c0_i32 = arith.constant 0 : i32
    %c0_i32_0 = arith.constant 0 : i32
    %c0_i32_1 = arith.constant 0 : i32
    %c0_i32_2 = arith.constant 0 : i32
    return %arg0, %c0_i32, %c0_i32_0, %c0_i32_1 : i32, i32, i32, i32
  }
  func.func @transform_3(%arg0: i32) -> (i32, i32, i32) {
    %c0_i32 = arith.constant 0 : i32
    %c0_i32_0 = arith.constant 0 : i32
    %c0_i32_1 = arith.constant 0 : i32
    return %arg0, %c0_i32, %c0_i32_0 : i32, i32, i32
  }
}

module attributes {stable_mosaic.version = 11 : i64} {
  func.func @_bn_res_relu_kernel(%arg0: i32, %arg1: memref<256x128xbf16, #tpu.memory_space<vmem>>, %arg2: memref<1x128xf32, #tpu.memory_space<vmem>>, %arg3: memref<1x128xf32, #tpu.memory_space<vmem>>, %arg4: memref<256x128xbf16, #tpu.memory_space<vmem>>, %arg5: memref<256x128xf32, #tpu.memory_space<vmem>>) attributes {dimension_semantics = [#tpu.dimension_semantics<parallel>], iteration_bounds = array<i64: 2>, scalar_prefetch = 0 : i64, scratch_operands = 0 : i64, tpu.core_type = #tpu.core_type<tc>, window_params = [{transform_indices = @transform_0, window_bounds = array<i64: 256, 128>}, {pipeline_mode = #tpu.pipeline_mode<synchronous>, transform_indices = @transform_1, window_bounds = array<i64: 1, 128>}, {pipeline_mode = #tpu.pipeline_mode<synchronous>, transform_indices = @transform_2, window_bounds = array<i64: 1, 128>}, {transform_indices = @transform_3, window_bounds = array<i64: 256, 128>}, {transform_indices = @transform_4, window_bounds = array<i64: 256, 128>}]} {
    %c0 = arith.constant 0 : index
    %c0_0 = arith.constant 0 : index
    %0 = vector.load %arg1[%c0, %c0_0] : memref<256x128xbf16, #tpu.memory_space<vmem>>, vector<256x128xbf16>
    %1 = arith.extf %0 : vector<256x128xbf16> to vector<256x128xf32>
    %c0_1 = arith.constant 0 : index
    %c0_2 = arith.constant 0 : index
    %2 = vector.load %arg2[%c0_1, %c0_2] : memref<1x128xf32, #tpu.memory_space<vmem>>, vector<1x128xf32>
    %3 = vector.broadcast %2 : vector<1x128xf32> to vector<256x128xf32>
    %4 = arith.mulf %1, %3 : vector<256x128xf32>
    %c0_3 = arith.constant 0 : index
    %c0_4 = arith.constant 0 : index
    %5 = vector.load %arg3[%c0_3, %c0_4] : memref<1x128xf32, #tpu.memory_space<vmem>>, vector<1x128xf32>
    %6 = vector.broadcast %5 : vector<1x128xf32> to vector<256x128xf32>
    %7 = arith.addf %4, %6 : vector<256x128xf32>
    %c0_5 = arith.constant 0 : index
    %c0_6 = arith.constant 0 : index
    %8 = vector.load %arg4[%c0_5, %c0_6] : memref<256x128xbf16, #tpu.memory_space<vmem>>, vector<256x128xbf16>
    %9 = arith.extf %8 : vector<256x128xbf16> to vector<256x128xf32>
    %10 = arith.addf %7, %9 : vector<256x128xf32>
    %cst = arith.constant 0.000000e+00 : f32
    %11 = vector.broadcast %cst : f32 to vector<256x128xf32>
    %12 = arith.maximumf %10, %11 : vector<256x128xf32>
    %c0_7 = arith.constant 0 : index
    %c0_8 = arith.constant 0 : index
    %13 = vector.load %arg5[%c0_7, %c0_8] : memref<256x128xf32, #tpu.memory_space<vmem>>, vector<256x128xf32>
    tpu.vector_store %arg5[%c0_7, %c0_8], %12 {strides = array<i32>} : memref<256x128xf32, #tpu.memory_space<vmem>>, vector<256x128xf32>,
    return
  }
  func.func @transform_0(%arg0: i32) -> (i32, i32) {
    %c0_i32 = arith.constant 0 : i32
    %c0_i32_0 = arith.constant 0 : i32
    return %arg0, %c0_i32 : i32, i32
  }
  func.func @transform_1(%arg0: i32) -> (i32, i32) {
    %c0_i32 = arith.constant 0 : i32
    %c0_i32_0 = arith.constant 0 : i32
    %c0_i32_1 = arith.constant 0 : i32
    return %c0_i32, %c0_i32_0 : i32, i32
  }
  func.func @transform_2(%arg0: i32) -> (i32, i32) {
    %c0_i32 = arith.constant 0 : i32
    %c0_i32_0 = arith.constant 0 : i32
    %c0_i32_1 = arith.constant 0 : i32
    return %c0_i32, %c0_i32_0 : i32, i32
  }
  func.func @transform_3(%arg0: i32) -> (i32, i32) {
    %c0_i32 = arith.constant 0 : i32
    %c0_i32_0 = arith.constant 0 : i32
    return %arg0, %c0_i32 : i32, i32
  }
  func.func @transform_4(%arg0: i32) -> (i32, i32) {
    %c0_i32 = arith.constant 0 : i32
    %c0_i32_0 = arith.constant 0 : i32
    return %arg0, %c0_i32 : i32, i32
  }
}

module attributes {stable_mosaic.version = 11 : i64} {
  func.func @_bn_relu_conv3x3_kernel(%arg0: i32, %arg1: memref<1x16x16x128xbf16, #tpu.memory_space<vmem>>, %arg2: memref<1x128xf32, #tpu.memory_space<vmem>>, %arg3: memref<1x128xf32, #tpu.memory_space<vmem>>, %arg4: memref<9x128x128xbf16, #tpu.memory_space<vmem>>, %arg5: memref<1x16x16x128xbf16, #tpu.memory_space<vmem>>, %arg6: memref<1x2x128xf32, #tpu.memory_space<vmem>>, %arg7: memref<18x18x128xbf16, #tpu.memory_space<vmem>>, %arg8: memref<256x128xf32, #tpu.memory_space<vmem>>) attributes {dimension_semantics = [#tpu.dimension_semantics<parallel>], iteration_bounds = array<i64: 2>, scalar_prefetch = 0 : i64, scratch_operands = 2 : i64, tpu.core_type = #tpu.core_type<tc>, window_params = [{transform_indices = @transform_0, window_bounds = array<i64: 1, 16, 16, 128>}, {pipeline_mode = #tpu.pipeline_mode<synchronous>, transform_indices = @transform_1, window_bounds = array<i64: 1, 128>}, {pipeline_mode = #tpu.pipeline_mode<synchronous>, transform_indices = @transform_2, window_bounds = array<i64: 1, 128>}, {pipeline_mode = #tpu.pipeline_mode<synchronous>, transform_indices = @transform_3, window_bounds = array<i64: 9, 128, 128>}, {transform_indices = @transform_4, window_bounds = array<i64: 1, 16, 16, 128>}, {transform_indices = @transform_5, window_bounds = array<i64: 1, 2, 128>}]} {
    %cst = arith.constant 0.000000e+00 : bf16
    %0 = vector.broadcast %cst : bf16 to vector<18x18x128xbf16>
    %c0 = arith.constant 0 : index
    %c0_0 = arith.constant 0 : index
    %c0_1 = arith.constant 0 : index
    %1 = vector.load %arg7[%c0, %c0_0, %c0_1] : memref<18x18x128xbf16, #tpu.memory_space<vmem>>, vector<18x18x128xbf16>
    tpu.vector_store %arg7[%c0, %c0_0, %c0_1], %0 {strides = array<i32>} : memref<18x18x128xbf16, #tpu.memory_space<vmem>>, vector<18x18x128xbf16>,
    %c0_2 = arith.constant 0 : index
    %c0_3 = arith.constant 0 : index
    %c0_4 = arith.constant 0 : index
    %c0_5 = arith.constant 0 : index
    %2 = vector.load %arg1[%c0_2, %c0_3, %c0_4, %c0_5] : memref<1x16x16x128xbf16, #tpu.memory_space<vmem>>, vector<1x16x16x128xbf16>
    %3 = vector.shape_cast %2 : vector<1x16x16x128xbf16> to vector<16x16x128xbf16>
    %4 = arith.extf %3 : vector<16x16x128xbf16> to vector<16x16x128xf32>
    %c0_6 = arith.constant 0 : index
    %c0_7 = arith.constant 0 : index
    %5 = vector.load %arg2[%c0_6, %c0_7] : memref<1x128xf32, #tpu.memory_space<vmem>>, vector<1x128xf32>
    %6 = vector.shape_cast %5 : vector<1x128xf32> to vector<128xf32>
    %7 = vector.shape_cast %6 : vector<128xf32> to vector<1x1x128xf32>
    %8 = vector.broadcast %7 : vector<1x1x128xf32> to vector<16x16x128xf32>
    %9 = arith.mulf %4, %8 : vector<16x16x128xf32>
    %c0_8 = arith.constant 0 : index
    %c0_9 = arith.constant 0 : index
    %10 = vector.load %arg3[%c0_8, %c0_9] : memref<1x128xf32, #tpu.memory_space<vmem>>, vector<1x128xf32>
    %11 = vector.shape_cast %10 : vector<1x128xf32> to vector<128xf32>
    %12 = vector.shape_cast %11 : vector<128xf32> to vector<1x1x128xf32>
    %13 = vector.broadcast %12 : vector<1x1x128xf32> to vector<16x16x128xf32>
    %14 = arith.addf %9, %13 : vector<16x16x128xf32>
    %cst_10 = arith.constant 0.000000e+00 : f32
    %15 = vector.broadcast %cst_10 : f32 to vector<16x16x128xf32>
    %16 = arith.maximumf %14, %15 : vector<16x16x128xf32>
    %17 = arith.truncf %16 : vector<16x16x128xf32> to vector<16x16x128xbf16>
    %c1 = arith.constant 1 : index
    %c1_11 = arith.constant 1 : index
    %c0_12 = arith.constant 0 : index
    %18 = vector.load %arg7[%c1, %c1_11, %c0_12] : memref<18x18x128xbf16, #tpu.memory_space<vmem>>, vector<16x16x128xbf16>
    tpu.vector_store %arg7[%c1, %c1_11, %c0_12], %17 {strides = array<i32>} : memref<18x18x128xbf16, #tpu.memory_space<vmem>>, vector<16x16x128xbf16>,
    %cst_13 = arith.constant 0.000000e+00 : f32
    %19 = vector.broadcast %cst_13 : f32 to vector<256x128xf32>
    %c0_14 = arith.constant 0 : index
    %c0_15 = arith.constant 0 : index
    %20 = vector.load %arg8[%c0_14, %c0_15] : memref<256x128xf32, #tpu.memory_space<vmem>>, vector<256x128xf32>
    tpu.vector_store %arg8[%c0_14, %c0_15], %19 {strides = array<i32>} : memref<256x128xf32, #tpu.memory_space<vmem>>, vector<256x128xf32>,
    %c0_16 = arith.constant 0 : index
    %c0_17 = arith.constant 0 : index
    %c0_18 = arith.constant 0 : index
    %21 = vector.load %arg7[%c0_16, %c0_17, %c0_18] : memref<18x18x128xbf16, #tpu.memory_space<vmem>>, vector<16x16x128xbf16>
    %22 = vector.shape_cast %21 : vector<16x16x128xbf16> to vector<256x128xbf16>
    %c0_19 = arith.constant 0 : index
    %c0_20 = arith.constant 0 : index
    %23 = vector.load %arg8[%c0_19, %c0_20] : memref<256x128xf32, #tpu.memory_space<vmem>>, vector<256x128xf32>
    %c0_21 = arith.constant 0 : index
    %c0_22 = arith.constant 0 : index
    %c0_23 = arith.constant 0 : index
    %24 = vector.load %arg4[%c0_21, %c0_22, %c0_23] : memref<9x128x128xbf16, #tpu.memory_space<vmem>>, vector<1x128x128xbf16>
    %25 = vector.shape_cast %24 : vector<1x128x128xbf16> to vector<128x128xbf16>
    %cst_24 = arith.constant dense<0.000000e+00> : vector<256x128xf32>
    %26 = tpu.matmul %22, %25, %cst_24 {dimension_numbers = #tpu.dot_dimension_numbers<[1], [0], [0], [1], [0, 0, 1, 1], [], []>} : vector<256x128xbf16>, vector<128x128xbf16>, vector<256x128xf32> -> vector<256x128xf32>
    %27 = arith.addf %23, %26 : vector<256x128xf32>
    %c0_25 = arith.constant 0 : index
    %c0_26 = arith.constant 0 : index
    %28 = vector.load %arg8[%c0_25, %c0_26] : memref<256x128xf32, #tpu.memory_space<vmem>>, vector<256x128xf32>
    tpu.vector_store %arg8[%c0_25, %c0_26], %27 {strides = array<i32>} : memref<256x128xf32, #tpu.memory_space<vmem>>, vector<256x128xf32>,
    %c0_27 = arith.constant 0 : index
    %c1_28 = arith.constant 1 : index
    %c0_29 = arith.constant 0 : index
    %29 = vector.load %arg7[%c0_27, %c1_28, %c0_29] : memref<18x18x128xbf16, #tpu.memory_space<vmem>>, vector<16x16x128xbf16>
    %30 = vector.shape_cast %29 : vector<16x16x128xbf16> to vector<256x128xbf16>
    %c0_30 = arith.constant 0 : index
    %c0_31 = arith.constant 0 : index
    %31 = vector.load %arg8[%c0_30, %c0_31] : memref<256x128xf32, #tpu.memory_space<vmem>>, vector<256x128xf32>
    %c1_32 = arith.constant 1 : index
    %c0_33 = arith.constant 0 : index
    %c0_34 = arith.constant 0 : index
    %32 = vector.load %arg4[%c1_32, %c0_33, %c0_34] : memref<9x128x128xbf16, #tpu.memory_space<vmem>>, vector<1x128x128xbf16>
    %33 = vector.shape_cast %32 : vector<1x128x128xbf16> to vector<128x128xbf16>
    %cst_35 = arith.constant dense<0.000000e+00> : vector<256x128xf32>
    %34 = tpu.matmul %30, %33, %cst_35 {dimension_numbers = #tpu.dot_dimension_numbers<[1], [0], [0], [1], [0, 0, 1, 1], [], []>} : vector<256x128xbf16>, vector<128x128xbf16>, vector<256x128xf32> -> vector<256x128xf32>
    %35 = arith.addf %31, %34 : vector<256x128xf32>
    %c0_36 = arith.constant 0 : index
    %c0_37 = arith.constant 0 : index
    %36 = vector.load %arg8[%c0_36, %c0_37] : memref<256x128xf32, #tpu.memory_space<vmem>>, vector<256x128xf32>
    tpu.vector_store %arg8[%c0_36, %c0_37], %35 {strides = array<i32>} : memref<256x128xf32, #tpu.memory_space<vmem>>, vector<256x128xf32>,
    %c0_38 = arith.constant 0 : index
    %c2 = arith.constant 2 : index
    %c0_39 = arith.constant 0 : index
    %37 = vector.load %arg7[%c0_38, %c2, %c0_39] : memref<18x18x128xbf16, #tpu.memory_space<vmem>>, vector<16x16x128xbf16>
    %38 = vector.shape_cast %37 : vector<16x16x128xbf16> to vector<256x128xbf16>
    %c0_40 = arith.constant 0 : index
    %c0_41 = arith.constant 0 : index
    %39 = vector.load %arg8[%c0_40, %c0_41] : memref<256x128xf32, #tpu.memory_space<vmem>>, vector<256x128xf32>
    %c2_42 = arith.constant 2 : index
    %c0_43 = arith.constant 0 : index
    %c0_44 = arith.constant 0 : index
    %40 = vector.load %arg4[%c2_42, %c0_43, %c0_44] : memref<9x128x128xbf16, #tpu.memory_space<vmem>>, vector<1x128x128xbf16>
    %41 = vector.shape_cast %40 : vector<1x128x128xbf16> to vector<128x128xbf16>
    %cst_45 = arith.constant dense<0.000000e+00> : vector<256x128xf32>
    %42 = tpu.matmul %38, %41, %cst_45 {dimension_numbers = #tpu.dot_dimension_numbers<[1], [0], [0], [1], [0, 0, 1, 1], [], []>} : vector<256x128xbf16>, vector<128x128xbf16>, vector<256x128xf32> -> vector<256x128xf32>
    %43 = arith.addf %39, %42 : vector<256x128xf32>
    %c0_46 = arith.constant 0 : index
    %c0_47 = arith.constant 0 : index
    %44 = vector.load %arg8[%c0_46, %c0_47] : memref<256x128xf32, #tpu.memory_space<vmem>>, vector<256x128xf32>
    tpu.vector_store %arg8[%c0_46, %c0_47], %43 {strides = array<i32>} : memref<256x128xf32, #tpu.memory_space<vmem>>, vector<256x128xf32>,
    %c1_48 = arith.constant 1 : index
    %c0_49 = arith.constant 0 : index
    %c0_50 = arith.constant 0 : index
    %45 = vector.load %arg7[%c1_48, %c0_49, %c0_50] : memref<18x18x128xbf16, #tpu.memory_space<vmem>>, vector<16x16x128xbf16>
    %46 = vector.shape_cast %45 : vector<16x16x128xbf16> to vector<256x128xbf16>
    %c0_51 = arith.constant 0 : index
    %c0_52 = arith.constant 0 : index
    %47 = vector.load %arg8[%c0_51, %c0_52] : memref<256x128xf32, #tpu.memory_space<vmem>>, vector<256x128xf32>
    %c3 = arith.constant 3 : index
    %c0_53 = arith.constant 0 : index
    %c0_54 = arith.constant 0 : index
    %48 = vector.load %arg4[%c3, %c0_53, %c0_54] : memref<9x128x128xbf16, #tpu.memory_space<vmem>>, vector<1x128x128xbf16>
    %49 = vector.shape_cast %48 : vector<1x128x128xbf16> to vector<128x128xbf16>
    %cst_55 = arith.constant dense<0.000000e+00> : vector<256x128xf32>
    %50 = tpu.matmul %46, %49, %cst_55 {dimension_numbers = #tpu.dot_dimension_numbers<[1], [0], [0], [1], [0, 0, 1, 1], [], []>} : vector<256x128xbf16>, vector<128x128xbf16>, vector<256x128xf32> -> vector<256x128xf32>
    %51 = arith.addf %47, %50 : vector<256x128xf32>
    %c0_56 = arith.constant 0 : index
    %c0_57 = arith.constant 0 : index
    %52 = vector.load %arg8[%c0_56, %c0_57] : memref<256x128xf32, #tpu.memory_space<vmem>>, vector<256x128xf32>
    tpu.vector_store %arg8[%c0_56, %c0_57], %51 {strides = array<i32>} : memref<256x128xf32, #tpu.memory_space<vmem>>, vector<256x128xf32>,
    %c1_58 = arith.constant 1 : index
    %c1_59 = arith.constant 1 : index
    %c0_60 = arith.constant 0 : index
    %53 = vector.load %arg7[%c1_58, %c1_59, %c0_60] : memref<18x18x128xbf16, #tpu.memory_space<vmem>>, vector<16x16x128xbf16>
    %54 = vector.shape_cast %53 : vector<16x16x128xbf16> to vector<256x128xbf16>
    %c0_61 = arith.constant 0 : index
    %c0_62 = arith.constant 0 : index
    %55 = vector.load %arg8[%c0_61, %c0_62] : memref<256x128xf32, #tpu.memory_space<vmem>>, vector<256x128xf32>
    %c4 = arith.constant 4 : index
    %c0_63 = arith.constant 0 : index
    %c0_64 = arith.constant 0 : index
    %56 = vector.load %arg4[%c4, %c0_63, %c0_64] : memref<9x128x128xbf16, #tpu.memory_space<vmem>>, vector<1x128x128xbf16>
    %57 = vector.shape_cast %56 : vector<1x128x128xbf16> to vector<128x128xbf16>
    %cst_65 = arith.constant dense<0.000000e+00> : vector<256x128xf32>
    %58 = tpu.matmul %54, %57, %cst_65 {dimension_numbers = #tpu.dot_dimension_numbers<[1], [0], [0], [1], [0, 0, 1, 1], [], []>} : vector<256x128xbf16>, vector<128x128xbf16>, vector<256x128xf32> -> vector<256x128xf32>
    %59 = arith.addf %55, %58 : vector<256x128xf32>
    %c0_66 = arith.constant 0 : index
    %c0_67 = arith.constant 0 : index
    %60 = vector.load %arg8[%c0_66, %c0_67] : memref<256x128xf32, #tpu.memory_space<vmem>>, vector<256x128xf32>
    tpu.vector_store %arg8[%c0_66, %c0_67], %59 {strides = array<i32>} : memref<256x128xf32, #tpu.memory_space<vmem>>, vector<256x128xf32>,
    %c1_68 = arith.constant 1 : index
    %c2_69 = arith.constant 2 : index
    %c0_70 = arith.constant 0 : index
    %61 = vector.load %arg7[%c1_68, %c2_69, %c0_70] : memref<18x18x128xbf16, #tpu.memory_space<vmem>>, vector<16x16x128xbf16>
    %62 = vector.shape_cast %61 : vector<16x16x128xbf16> to vector<256x128xbf16>
    %c0_71 = arith.constant 0 : index
    %c0_72 = arith.constant 0 : index
    %63 = vector.load %arg8[%c0_71, %c0_72] : memref<256x128xf32, #tpu.memory_space<vmem>>, vector<256x128xf32>
    %c5 = arith.constant 5 : index
    %c0_73 = arith.constant 0 : index
    %c0_74 = arith.constant 0 : index
    %64 = vector.load %arg4[%c5, %c0_73, %c0_74] : memref<9x128x128xbf16, #tpu.memory_space<vmem>>, vector<1x128x128xbf16>
    %65 = vector.shape_cast %64 : vector<1x128x128xbf16> to vector<128x128xbf16>
    %cst_75 = arith.constant dense<0.000000e+00> : vector<256x128xf32>
    %66 = tpu.matmul %62, %65, %cst_75 {dimension_numbers = #tpu.dot_dimension_numbers<[1], [0], [0], [1], [0, 0, 1, 1], [], []>} : vector<256x128xbf16>, vector<128x128xbf16>, vector<256x128xf32> -> vector<256x128xf32>
    %67 = arith.addf %63, %66 : vector<256x128xf32>
    %c0_76 = arith.constant 0 : index
    %c0_77 = arith.constant 0 : index
    %68 = vector.load %arg8[%c0_76, %c0_77] : memref<256x128xf32, #tpu.memory_space<vmem>>, vector<256x128xf32>
    tpu.vector_store %arg8[%c0_76, %c0_77], %67 {strides = array<i32>} : memref<256x128xf32, #tpu.memory_space<vmem>>, vector<256x128xf32>,
    %c2_78 = arith.constant 2 : index
    %c0_79 = arith.constant 0 : index
    %c0_80 = arith.constant 0 : index
    %69 = vector.load %arg7[%c2_78, %c0_79, %c0_80] : memref<18x18x128xbf16, #tpu.memory_space<vmem>>, vector<16x16x128xbf16>
    %70 = vector.shape_cast %69 : vector<16x16x128xbf16> to vector<256x128xbf16>
    %c0_81 = arith.constant 0 : index
    %c0_82 = arith.constant 0 : index
    %71 = vector.load %arg8[%c0_81, %c0_82] : memref<256x128xf32, #tpu.memory_space<vmem>>, vector<256x128xf32>
    %c6 = arith.constant 6 : index
    %c0_83 = arith.constant 0 : index
    %c0_84 = arith.constant 0 : index
    %72 = vector.load %arg4[%c6, %c0_83, %c0_84] : memref<9x128x128xbf16, #tpu.memory_space<vmem>>, vector<1x128x128xbf16>
    %73 = vector.shape_cast %72 : vector<1x128x128xbf16> to vector<128x128xbf16>
    %cst_85 = arith.constant dense<0.000000e+00> : vector<256x128xf32>
    %74 = tpu.matmul %70, %73, %cst_85 {dimension_numbers = #tpu.dot_dimension_numbers<[1], [0], [0], [1], [0, 0, 1, 1], [], []>} : vector<256x128xbf16>, vector<128x128xbf16>, vector<256x128xf32> -> vector<256x128xf32>
    %75 = arith.addf %71, %74 : vector<256x128xf32>
    %c0_86 = arith.constant 0 : index
    %c0_87 = arith.constant 0 : index
    %76 = vector.load %arg8[%c0_86, %c0_87] : memref<256x128xf32, #tpu.memory_space<vmem>>, vector<256x128xf32>
    tpu.vector_store %arg8[%c0_86, %c0_87], %75 {strides = array<i32>} : memref<256x128xf32, #tpu.memory_space<vmem>>, vector<256x128xf32>,
    %c2_88 = arith.constant 2 : index
    %c1_89 = arith.constant 1 : index
    %c0_90 = arith.constant 0 : index
    %77 = vector.load %arg7[%c2_88, %c1_89, %c0_90] : memref<18x18x128xbf16, #tpu.memory_space<vmem>>, vector<16x16x128xbf16>
    %78 = vector.shape_cast %77 : vector<16x16x128xbf16> to vector<256x128xbf16>
    %c0_91 = arith.constant 0 : index
    %c0_92 = arith.constant 0 : index
    %79 = vector.load %arg8[%c0_91, %c0_92] : memref<256x128xf32, #tpu.memory_space<vmem>>, vector<256x128xf32>
    %c7 = arith.constant 7 : index
    %c0_93 = arith.constant 0 : index
    %c0_94 = arith.constant 0 : index
    %80 = vector.load %arg4[%c7, %c0_93, %c0_94] : memref<9x128x128xbf16, #tpu.memory_space<vmem>>, vector<1x128x128xbf16>
    %81 = vector.shape_cast %80 : vector<1x128x128xbf16> to vector<128x128xbf16>
    %cst_95 = arith.constant dense<0.000000e+00> : vector<256x128xf32>
    %82 = tpu.matmul %78, %81, %cst_95 {dimension_numbers = #tpu.dot_dimension_numbers<[1], [0], [0], [1], [0, 0, 1, 1], [], []>} : vector<256x128xbf16>, vector<128x128xbf16>, vector<256x128xf32> -> vector<256x128xf32>
    %83 = arith.addf %79, %82 : vector<256x128xf32>
    %c0_96 = arith.constant 0 : index
    %c0_97 = arith.constant 0 : index
    %84 = vector.load %arg8[%c0_96, %c0_97] : memref<256x128xf32, #tpu.memory_space<vmem>>, vector<256x128xf32>
    tpu.vector_store %arg8[%c0_96, %c0_97], %83 {strides = array<i32>} : memref<256x128xf32, #tpu.memory_space<vmem>>, vector<256x128xf32>,
    %c2_98 = arith.constant 2 : index
    %c2_99 = arith.constant 2 : index
    %c0_100 = arith.constant 0 : index
    %85 = vector.load %arg7[%c2_98, %c2_99, %c0_100] : memref<18x18x128xbf16, #tpu.memory_space<vmem>>, vector<16x16x128xbf16>
    %86 = vector.shape_cast %85 : vector<16x16x128xbf16> to vector<256x128xbf16>
    %c0_101 = arith.constant 0 : index
    %c0_102 = arith.constant 0 : index
    %87 = vector.load %arg8[%c0_101, %c0_102] : memref<256x128xf32, #tpu.memory_space<vmem>>, vector<256x128xf32>
    %c8 = arith.constant 8 : index
    %c0_103 = arith.constant 0 : index
    %c0_104 = arith.constant 0 : index
    %88 = vector.load %arg4[%c8, %c0_103, %c0_104] : memref<9x128x128xbf16, #tpu.memory_space<vmem>>, vector<1x128x128xbf16>
    %89 = vector.shape_cast %88 : vector<1x128x128xbf16> to vector<128x128xbf16>
    %cst_105 = arith.constant dense<0.000000e+00> : vector<256x128xf32>
    %90 = tpu.matmul %86, %89, %cst_105 {dimension_numbers = #tpu.dot_dimension_numbers<[1], [0], [0], [1], [0, 0, 1, 1], [], []>} : vector<256x128xbf16>, vector<128x128xbf16>, vector<256x128xf32> -> vector<256x128xf32>
    %91 = arith.addf %87, %90 : vector<256x128xf32>
    %c0_106 = arith.constant 0 : index
    %c0_107 = arith.constant 0 : index
    %92 = vector.load %arg8[%c0_106, %c0_107] : memref<256x128xf32, #tpu.memory_space<vmem>>, vector<256x128xf32>
    tpu.vector_store %arg8[%c0_106, %c0_107], %91 {strides = array<i32>} : memref<256x128xf32, #tpu.memory_space<vmem>>, vector<256x128xf32>,
    %c0_108 = arith.constant 0 : index
    %c0_109 = arith.constant 0 : index
    %93 = vector.load %arg8[%c0_108, %c0_109] : memref<256x128xf32, #tpu.memory_space<vmem>>, vector<256x128xf32>
    %94 = vector.shape_cast %93 : vector<256x128xf32> to vector<1x16x16x128xf32>
    %95 = arith.truncf %94 : vector<1x16x16x128xf32> to vector<1x16x16x128xbf16>
    %c0_110 = arith.constant 0 : index
    %c0_111 = arith.constant 0 : index
    %c0_112 = arith.constant 0 : index
    %c0_113 = arith.constant 0 : index
    %96 = vector.load %arg5[%c0_110, %c0_111, %c0_112, %c0_113] : memref<1x16x16x128xbf16, #tpu.memory_space<vmem>>, vector<1x16x16x128xbf16>
    tpu.vector_store %arg5[%c0_110, %c0_111, %c0_112, %c0_113], %95 {strides = array<i32>} : memref<1x16x16x128xbf16, #tpu.memory_space<vmem>>, vector<1x16x16x128xbf16>,
    %cst_114 = arith.constant dense<0.000000e+00> : vector<128xf32>
    %97 = vector.multi_reduction <add>, %93, %cst_114 [0] : vector<256x128xf32> to vector<128xf32>
    %98 = vector.shape_cast %97 : vector<128xf32> to vector<1x128xf32>
    %99 = arith.mulf %93, %93 : vector<256x128xf32>
    %cst_115 = arith.constant dense<0.000000e+00> : vector<128xf32>
    %100 = vector.multi_reduction <add>, %99, %cst_115 [0] : vector<256x128xf32> to vector<128xf32>
    %101 = vector.shape_cast %100 : vector<128xf32> to vector<1x128xf32>
    %102 = tpu.concatenate %98, %101 in 0 : vector<1x128xf32>, vector<1x128xf32> -> vector<2x128xf32>
    %103 = vector.shape_cast %102 : vector<2x128xf32> to vector<1x2x128xf32>
    %c0_116 = arith.constant 0 : index
    %c0_117 = arith.constant 0 : index
    %c0_118 = arith.constant 0 : index
    %104 = vector.load %arg6[%c0_116, %c0_117, %c0_118] : memref<1x2x128xf32, #tpu.memory_space<vmem>>, vector<1x2x128xf32>
    tpu.vector_store %arg6[%c0_116, %c0_117, %c0_118], %103 {strides = array<i32>} : memref<1x2x128xf32, #tpu.memory_space<vmem>>, vector<1x2x128xf32>,
    return
  }
  func.func @transform_0(%arg0: i32) -> (i32, i32, i32, i32) {
    %c0_i32 = arith.constant 0 : i32
    %c0_i32_0 = arith.constant 0 : i32
    %c0_i32_1 = arith.constant 0 : i32
    %c0_i32_2 = arith.constant 0 : i32
    return %arg0, %c0_i32, %c0_i32_0, %c0_i32_1 : i32, i32, i32, i32
  }
  func.func @transform_1(%arg0: i32) -> (i32, i32) {
    %c0_i32 = arith.constant 0 : i32
    %c0_i32_0 = arith.constant 0 : i32
    %c0_i32_1 = arith.constant 0 : i32
    return %c0_i32, %c0_i32_0 : i32, i32
  }
  func.func @transform_2(%arg0: i32) -> (i32, i32) {
    %c0_i32 = arith.constant 0 : i32
    %c0_i32_0 = arith.constant 0 : i32
    %c0_i32_1 = arith.constant 0 : i32
    return %c0_i32, %c0_i32_0 : i32, i32
  }
  func.func @transform_3(%arg0: i32) -> (i32, i32, i32) {
    %c0_i32 = arith.constant 0 : i32
    %c0_i32_0 = arith.constant 0 : i32
    %c0_i32_1 = arith.constant 0 : i32
    %c0_i32_2 = arith.constant 0 : i32
    return %c0_i32, %c0_i32_0, %c0_i32_1 : i32, i32, i32
  }
  func.func @transform_4(%arg0: i32) -> (i32, i32, i32, i32) {
    %c0_i32 = arith.constant 0 : i32
    %c0_i32_0 = arith.constant 0 : i32
    %c0_i32_1 = arith.constant 0 : i32
    %c0_i32_2 = arith.constant 0 : i32
    return %arg0, %c0_i32, %c0_i32_0, %c0_i32_1 : i32, i32, i32, i32
  }
  func.func @transform_5(%arg0: i32) -> (i32, i32, i32) {
    %c0_i32 = arith.constant 0 : i32
    %c0_i32_0 = arith.constant 0 : i32
    %c0_i32_1 = arith.constant 0 : i32
    return %arg0, %c0_i32, %c0_i32_0 : i32, i32, i32
  }
}

</mosaic_0001>

<bundles_post_ra>
// kernel: residual_block.5
= control target key start
LH: loop header
LB: loop body
LE: loop exit
PB: predicated region body
PF: predicated region fallthrough
CT: control target
= control target key end

     0   :  { %s807_s15 = smov 0   ;;  %s975_s0 = inlined_call_operand.vmem [shape: bf16[512,128], index: 0, kind: input, shape index: {}]   ;;  %s976_s1 = inlined_call_operand.vmem [shape: f32[1,128], index: 1, kind: input, shape index: {}]   ;;  %s977_s2 = inlined_call_operand.vmem [shape: f32[1,128], index: 2, kind: input, shape index: {}]   ;;  %s978_s3 = inlined_call_operand.vmem [shape: bf16[512,128], index: 3, kind: input, shape index: {}]   ;;  %s979_s4 = inlined_call_operand.vmem [shape: f32[512,128], index: 4, kind: output, shape index: {}]  }
   0x1 LB: > { %s593_s16 = sadd.s32 4294967295, %s780_s15   ;;  %p597_p0 = scmp.ge.s32.totalorder %s780_s15, 1  ;;  %s780_s15 = sphi %s807_s15, %s14_s15  }
   0x2   : > { %p174_p1 = scmp.lt.s32.totalorder %s780_s15, 3 }
   0x4   : > { %p175_p2 = pnand %p597_p0, %p174_p1 }
   0x5   : > { %s598_s17 = sshll.u32 (!%p175_p2), %s593_s16, 5 }
   0x6   : > { %178 = sbr.rel (%p175_p2) target bundleno = 69 (0x45), region = 36  ;;  %p206_p3 = scmp.lt.s32.totalorder (!%p175_p2), %s598_s17, 63 }
   0xb   : > { %s981_s17 = smov (!%p206_p3, %s598_s17), 63  ;;  %v831_v0 = vld [vmem:[%s976_s1] ss:$0 sm:$0xff] }
   0xc   : > { %s599_s18 = sshll.u32 %s981_s17, 2  ;;  %v842_v11 = vld [vmem:[%s977_s2] ss:$0 sm:$0xff]  ;;  %s603_s29 = sshll.u32 %s981_s17, 3 }
   0xd   : > { %s821_s21 = scalar_lea.vmem %s975_s0, %s599_s18  ;;  %s826_s24 = scalar_lea.vmem %s978_s3, %s599_s18 }
   0xe   : > { %v609_v1 = vld [vmem:[%s821_s21] sm:$0xff]   ;;  %v736_v3 = vld [vmem:[%s821_s21 + $0x8] sm:$0xff]   ;;  %v737_v9 = vld [vmem:[%s821_s21 + $0x10] sm:$0xff]   ;;  %s862_s6 = scalar_lea.vmem %s979_s4, %s603_s29 }
   0xf   : > { %v673_v2 = vld [vmem:[%s826_s24] sm:$0xff]   ;;  %v610_v4 = vunpack.c.l.bf16 %v609_v1  ;;  %v611_v6 = vunpack.c.h.bf16 %v609_v1  ;;  %v751_v8 = vld [vmem:[%s826_s24 + $0x8] sm:$0xff]   ;;  %v752_v10 = vld [vmem:[%s826_s24 + $0x10] sm:$0xff]   ;;  %v614_v12 = vunpack.c.l.bf16 %v736_v3  ;;  %v615_v14 = vunpack.c.h.bf16 %v736_v3 }
  0x10   : > { %v674_v5 = vunpack.c.l.bf16 %v673_v2  ;;  %v675_v7 = vunpack.c.h.bf16 %v673_v2  ;;  %v678_v13 = vunpack.c.l.bf16 %v751_v8  ;;  %v679_v15 = vunpack.c.h.bf16 %v751_v8  ;;  %v738_v16 = vld [vmem:[%s821_s21 + $0x18] sm:$0xff]   ;;  %v739_v42 = vld [vmem:[%s821_s21 + $0x20] sm:$0xff]   ;;  %v740_v52 = vld [vmem:[%s821_s21 + $0x28] sm:$0xff]  }
  0x11   : > { %v294_v17 = vmul.f32 %v610_v4, %v831_v0  ;;  %v295_v18 = vmul.f32 %v611_v6, %v831_v0  ;;  %v618_v19 = vunpack.c.l.bf16 %v737_v9  ;;  %v682_v20 = vunpack.c.l.bf16 %v752_v10  ;;  %v753_v21 = vld [vmem:[%s826_s24 + $0x18] sm:$0xff]   ;;  %v754_v47 = vld [vmem:[%s826_s24 + $0x20] sm:$0xff]   ;;  %v755_v57 = vld [vmem:[%s826_s24 + $0x28] sm:$0xff]  }
  0x12   : > { %v296_v22 = vmul.f32 %v614_v12, %v831_v0  ;;  %v297_v23 = vmul.f32 %v615_v14, %v831_v0  ;;  %v619_v24 = vunpack.c.h.bf16 %v737_v9  ;;  %v683_v25 = vunpack.c.h.bf16 %v752_v10  ;;  %v741_v62 = vld [vmem:[%s821_s21 + $0x30] sm:$0xff]   ;;  %v742_v14 = vld [vmem:[%s821_s21 + $0x38] sm:$0xff]  }
  0x13   : > { %v333_v26 = vadd.f32 %v842_v11, %v294_v17  ;;  %v334_v27 = vadd.f32 %v842_v11, %v295_v18  ;;  %v298_v28 = vmul.f32 %v618_v19, %v831_v0  ;;  %v622_v29 = vunpack.c.l.bf16 %v738_v16  ;;  %v756_v4 = vld [vmem:[%s826_s24 + $0x30] sm:$0xff]  }
  0x14   : > { %v335_v30 = vadd.f32 %v842_v11, %v296_v22  ;;  %v336_v31 = vadd.f32 %v842_v11, %v297_v23  ;;  %v299_v32 = vmul.f32 %v619_v24, %v831_v0  ;;  %v686_v33 = vunpack.c.l.bf16 %v753_v21  ;;  %v757_v23 = vld [vmem:[%s826_s24 + $0x38] sm:$0xff]  }
  0x15   : > { %v429_v34 = vadd.f32 %v674_v5, %v333_v26  ;;  %v430_v35 = vadd.f32 %v675_v7, %v334_v27  ;;  %v337_v36 = vadd.f32 %v842_v11, %v298_v28  ;;  %v300_v37 = vmul.f32 %v622_v29, %v831_v0 }
  0x16   : > { %v431_v38 = vadd.f32 %v678_v13, %v335_v30  ;;  %v432_v39 = vadd.f32 %v679_v15, %v336_v31  ;;  %v338_v40 = vadd.f32 %v842_v11, %v299_v32  ;;  %v623_v41 = vunpack.c.h.bf16 %v738_v16  ;;  %v743_v32 = vld [vmem:[%s821_s21 + $0x40] sm:$0xff]  }
  0x17   : > { %v461_v43 = vmax.f32 %v429_v34, 0.0  ;;  %v462_v44 = vmax.f32 %v430_v35, 0.0  ;;  %v433_v45 = vadd.f32 %v682_v20, %v337_v36  ;;  %v339_v46 = vadd.f32 %v842_v11, %v300_v37  ;;  %v758_v37 = vld [vmem:[%s826_s24 + $0x40] sm:$0xff]  }
  0x18   : > { %v463_v48 = vmax.f32 %v431_v38, 0.0  ;;  %v464_v49 = vmax.f32 %v432_v39, 0.0  ;;  %v434_v50 = vadd.f32 %v683_v25, %v338_v40  ;;  %v301_v51 = vmul.f32 %v623_v41, %v831_v0 }
  0x19   : > { %493 = vst [vmem:[%s862_s6] sm:$0xff] %v461_v43  ;;  %494 = vst [vmem:[%s862_s6 + $0x8] sm:$0xff] %v462_v44  ;;  %v465_v53 = vmax.f32 %v433_v45, 0.0  ;;  %v435_v54 = vadd.f32 %v686_v33, %v339_v46  ;;  %v687_v55 = vunpack.c.h.bf16 %v753_v21  ;;  %v626_v56 = vunpack.c.l.bf16 %v739_v42  ;;  %v744_v46 = vld [vmem:[%s821_s21 + $0x48] sm:$0xff]  }
  0x1a   : > { %495 = vst [vmem:[%s862_s6 + $0x10] sm:$0xff] %v463_v48  ;;  %496 = vst [vmem:[%s862_s6 + $0x18] sm:$0xff] %v464_v49  ;;  %v466_v58 = vmax.f32 %v434_v50, 0.0  ;;  %v340_v59 = vadd.f32 %v842_v11, %v301_v51  ;;  %v690_v60 = vunpack.c.l.bf16 %v754_v47  ;;  %v627_v61 = vunpack.c.h.bf16 %v739_v42 }
  0x1b   : > { %497 = vst [vmem:[%s862_s6 + $0x20] sm:$0xff] %v465_v53  ;;  %v467_v63 = vmax.f32 %v435_v54, 0.0  ;;  %v302_v1 = vmul.f32 %v626_v56, %v831_v0  ;;  %v691_v2 = vunpack.c.h.bf16 %v754_v47  ;;  %v630_v3 = vunpack.c.l.bf16 %v740_v52  ;;  %v759_v47 = vld [vmem:[%s826_s24 + $0x48] sm:$0xff]   ;;  %v745_v56 = vld [vmem:[%s821_s21 + $0x50] sm:$0xff]  }
  0x1c   : > { %498 = vst [vmem:[%s862_s6 + $0x28] sm:$0xff] %v466_v58  ;;  %v436_v5 = vadd.f32 %v687_v55, %v340_v59  ;;  %v303_v6 = vmul.f32 %v627_v61, %v831_v0  ;;  %v694_v7 = vunpack.c.l.bf16 %v755_v57  ;;  %v631_v8 = vunpack.c.h.bf16 %v740_v52  ;;  %v760_v61 = vld [vmem:[%s826_s24 + $0x50] sm:$0xff]  }
  0x1d   : > { %499 = vst [vmem:[%s862_s6 + $0x30] sm:$0xff] %v467_v63  ;;  %v341_v9 = vadd.f32 %v842_v11, %v302_v1  ;;  %v304_v10 = vmul.f32 %v630_v3, %v831_v0  ;;  %v695_v12 = vunpack.c.h.bf16 %v755_v57  ;;  %v634_v13 = vunpack.c.l.bf16 %v741_v62 }
  0x1e   : > { %v468_v15 = vmax.f32 %v436_v5, 0.0  ;;  %v342_v16 = vadd.f32 %v842_v11, %v303_v6  ;;  %v305_v17 = vmul.f32 %v631_v8, %v831_v0  ;;  %v698_v18 = vunpack.c.l.bf16 %v756_v4 }
  0x1f   : > { %v437_v19 = vadd.f32 %v690_v60, %v341_v9  ;;  %v343_v20 = vadd.f32 %v842_v11, %v304_v10  ;;  %v306_v21 = vmul.f32 %v634_v13, %v831_v0  ;;  %v635_v22 = vunpack.c.h.bf16 %v741_v62 }
  0x20   : > { %500 = vst [vmem:[%s862_s6 + $0x38] sm:$0xff] %v468_v15  ;;  %v438_v24 = vadd.f32 %v691_v2, %v342_v16  ;;  %v344_v25 = vadd.f32 %v842_v11, %v305_v17  ;;  %v699_v26 = vunpack.c.h.bf16 %v756_v4  ;;  %v638_v27 = vunpack.c.l.bf16 %v742_v14  ;;  %v761_v17 = vld [vmem:[%s826_s24 + $0x58] sm:$0xff]  }
  0x21   : > { %v469_v28 = vmax.f32 %v437_v19, 0.0  ;;  %v439_v29 = vadd.f32 %v694_v7, %v343_v20  ;;  %v345_v30 = vadd.f32 %v842_v11, %v306_v21  ;;  %v307_v31 = vmul.f32 %v635_v22, %v831_v0 }
  0x22   : > { %v470_v33 = vmax.f32 %v438_v24, 0.0  ;;  %v440_v34 = vadd.f32 %v695_v12, %v344_v25  ;;  %v308_v35 = vmul.f32 %v638_v27, %v831_v0  ;;  %v702_v36 = vunpack.c.l.bf16 %v757_v23  ;;  %v746_v12 = vld [vmem:[%s821_s21 + $0x58] sm:$0xff]  }
  0x23   : > { %501 = vst [vmem:[%s862_s6 + $0x40] sm:$0xff] %v469_v28  ;;  %v471_v38 = vmax.f32 %v439_v29, 0.0  ;;  %v441_v39 = vadd.f32 %v698_v18, %v345_v30  ;;  %v346_v40 = vadd.f32 %v842_v11, %v307_v31  ;;  %v639_v41 = vunpack.c.h.bf16 %v742_v14  ;;  %v762_v31 = vld [vmem:[%s826_s24 + $0x60] sm:$0xff]  }
  0x24   : > { %502 = vst [vmem:[%s862_s6 + $0x48] sm:$0xff] %v470_v33  ;;  %v472_v42 = vmax.f32 %v440_v34, 0.0  ;;  %v347_v43 = vadd.f32 %v842_v11, %v308_v35  ;;  %v703_v44 = vunpack.c.h.bf16 %v757_v23  ;;  %v642_v45 = vunpack.c.l.bf16 %v743_v32 }
  0x25   : > { %503 = vst [vmem:[%s862_s6 + $0x50] sm:$0xff] %v471_v38  ;;  %v473_v48 = vmax.f32 %v441_v39, 0.0  ;;  %v442_v49 = vadd.f32 %v699_v26, %v346_v40  ;;  %v309_v50 = vmul.f32 %v639_v41, %v831_v0  ;;  %v706_v51 = vunpack.c.l.bf16 %v758_v37  ;;  %v747_v26 = vld [vmem:[%s821_s21 + $0x60] sm:$0xff]   ;;  %v748_v40 = vld [vmem:[%s821_s21 + $0x68] sm:$0xff]  }
  0x26   : > { %504 = vst [vmem:[%s862_s6 + $0x58] sm:$0xff] %v472_v42  ;;  %v443_v52 = vadd.f32 %v702_v36, %v347_v43  ;;  %v310_v53 = vmul.f32 %v642_v45, %v831_v0  ;;  %v643_v54 = vunpack.c.h.bf16 %v743_v32  ;;  %v707_v55 = vunpack.c.h.bf16 %v758_v37  ;;  %v763_v41 = vld [vmem:[%s826_s24 + $0x68] sm:$0xff]  }
  0x27   : > { %505 = vst [vmem:[%s862_s6 + $0x60] sm:$0xff] %v473_v48  ;;  %v474_v57 = vmax.f32 %v442_v49, 0.0  ;;  %v348_v58 = vadd.f32 %v842_v11, %v309_v50  ;;  %v646_v59 = vunpack.c.l.bf16 %v744_v46  ;;  %v710_v60 = vunpack.c.l.bf16 %v759_v47  ;;  %v749_v50 = vld [vmem:[%s821_s21 + $0x70] sm:$0xff]  }
  0x28   : > { %v475_v62 = vmax.f32 %v443_v52, 0.0  ;;  %v349_v63 = vadd.f32 %v842_v11, %v310_v53  ;;  %v311_v1 = vmul.f32 %v643_v54, %v831_v0  ;;  %v647_v2 = vunpack.c.h.bf16 %v744_v46 }
  0x29   : > { %506 = vst [vmem:[%s862_s6 + $0x68] sm:$0xff] %v474_v57  ;;  %v444_v3 = vadd.f32 %v703_v44, %v348_v58  ;;  %v312_v4 = vmul.f32 %v646_v59, %v831_v0  ;;  %v711_v5 = vunpack.c.h.bf16 %v759_v47  ;;  %v650_v6 = vunpack.c.l.bf16 %v745_v56  ;;  %v764_v59 = vld [vmem:[%s826_s24 + $0x70] sm:$0xff]  }
  0x2a   : > { %507 = vst [vmem:[%s862_s6 + $0x70] sm:$0xff] %v475_v62  ;;  %v445_v7 = vadd.f32 %v706_v51, %v349_v63  ;;  %v350_v8 = vadd.f32 %v842_v11, %v311_v1  ;;  %v313_v9 = vmul.f32 %v647_v2, %v831_v0  ;;  %v714_v10 = vunpack.c.l.bf16 %v760_v61 }
  0x2b   : > { %v476_v13 = vmax.f32 %v444_v3, 0.0  ;;  %v351_v14 = vadd.f32 %v842_v11, %v312_v4  ;;  %v314_v15 = vmul.f32 %v650_v6, %v831_v0  ;;  %v651_v16 = vunpack.c.h.bf16 %v745_v56 }
  0x2c   : > { %v477_v18 = vmax.f32 %v445_v7, 0.0  ;;  %v446_v19 = vadd.f32 %v707_v55, %v350_v8  ;;  %v352_v20 = vadd.f32 %v842_v11, %v313_v9  ;;  %v715_v21 = vunpack.c.h.bf16 %v760_v61 }
  0x2d   : > { %508 = vst [vmem:[%s862_s6 + $0x78] sm:$0xff] %v476_v13  ;;  %v447_v22 = vadd.f32 %v710_v60, %v351_v14  ;;  %v353_v23 = vadd.f32 %v842_v11, %v314_v15  ;;  %v315_v24 = vmul.f32 %v651_v16, %v831_v0  ;;  %v654_v25 = vunpack.c.l.bf16 %v746_v12 }
  0x2e   : > { %509 = vst [vmem:[%s862_s6 + $0x80] sm:$0xff] %v477_v18  ;;  %v478_v27 = vmax.f32 %v446_v19, 0.0  ;;  %v448_v28 = vadd.f32 %v711_v5, %v352_v20  ;;  %v718_v29 = vunpack.c.l.bf16 %v761_v17  ;;  %v655_v30 = vunpack.c.h.bf16 %v746_v12  ;;  %v750_v5 = vld [vmem:[%s821_s21 + $0x78] sm:$0xff]  }
  0x2f   : > { %v479_v32 = vmax.f32 %v447_v22, 0.0  ;;  %v449_v33 = vadd.f32 %v714_v10, %v353_v23  ;;  %v354_v34 = vadd.f32 %v842_v11, %v315_v24  ;;  %v316_v35 = vmul.f32 %v654_v25, %v831_v0  ;;  %v765_v10 = vld [vmem:[%s826_s24 + $0x78] sm:$0xff]  }
  0x30   : > { %510 = vst [vmem:[%s862_s6 + $0x88] sm:$0xff] %v478_v27  ;;  %v480_v36 = vmax.f32 %v448_v28, 0.0  ;;  %v317_v37 = vmul.f32 %v655_v30, %v831_v0  ;;  %v719_v38 = vunpack.c.h.bf16 %v761_v17  ;;  %v658_v39 = vunpack.c.l.bf16 %v747_v26 }
  0x31   : > { %511 = vst [vmem:[%s862_s6 + $0x90] sm:$0xff] %v479_v32  ;;  %v481_v42 = vmax.f32 %v449_v33, 0.0  ;;  %v450_v43 = vadd.f32 %v715_v21, %v354_v34  ;;  %v355_v44 = vadd.f32 %v842_v11, %v316_v35  ;;  %v722_v45 = vunpack.c.l.bf16 %v762_v31 }
  0x32   : > { %512 = vst [vmem:[%s862_s6 + $0x98] sm:$0xff] %v480_v36  ;;  %v356_v46 = vadd.f32 %v842_v11, %v317_v37  ;;  %v318_v47 = vmul.f32 %v658_v39, %v831_v0  ;;  %v659_v48 = vunpack.c.h.bf16 %v747_v26  ;;  %v723_v49 = vunpack.c.h.bf16 %v762_v31 }
  0x33   : > { %513 = vst [vmem:[%s862_s6 + $0xa0] sm:$0xff] %v481_v42  ;;  %v482_v51 = vmax.f32 %v450_v43, 0.0  ;;  %v451_v52 = vadd.f32 %v718_v29, %v355_v44  ;;  %v662_v53 = vunpack.c.l.bf16 %v748_v40  ;;  %v726_v54 = vunpack.c.l.bf16 %v763_v41 }
  0x34   : > { %v452_v55 = vadd.f32 %v719_v38, %v356_v46  ;;  %v357_v56 = vadd.f32 %v842_v11, %v318_v47  ;;  %v319_v57 = vmul.f32 %v659_v48, %v831_v0  ;;  %v663_v58 = vunpack.c.h.bf16 %v748_v40 }
  0x35   : > { %514 = vst [vmem:[%s862_s6 + $0xa8] sm:$0xff] %v482_v51  ;;  %v483_v60 = vmax.f32 %v451_v52, 0.0  ;;  %v320_v61 = vmul.f32 %v662_v53, %v831_v0  ;;  %v727_v62 = vunpack.c.h.bf16 %v763_v41  ;;  %v666_v63 = vunpack.c.l.bf16 %v749_v50 }
  0x36   : > { %v484_v1 = vmax.f32 %v452_v55, 0.0  ;;  %v453_v2 = vadd.f32 %v722_v45, %v357_v56  ;;  %v358_v3 = vadd.f32 %v842_v11, %v319_v57  ;;  %v321_v4 = vmul.f32 %v663_v58, %v831_v0 }
  0x37   : > { %515 = vst [vmem:[%s862_s6 + $0xb0] sm:$0xff] %v483_v60  ;;  %v359_v6 = vadd.f32 %v842_v11, %v320_v61  ;;  %v322_v7 = vmul.f32 %v666_v63, %v831_v0  ;;  %v730_v8 = vunpack.c.l.bf16 %v764_v59  ;;  %v667_v9 = vunpack.c.h.bf16 %v749_v50 }
  0x38   : > { %516 = vst [vmem:[%s862_s6 + $0xb8] sm:$0xff] %v484_v1  ;;  %v485_v12 = vmax.f32 %v453_v2, 0.0  ;;  %v454_v13 = vadd.f32 %v723_v49, %v358_v3  ;;  %v360_v14 = vadd.f32 %v842_v11, %v321_v4  ;;  %v731_v15 = vunpack.c.h.bf16 %v764_v59 }
  0x39   : > { %v455_v16 = vadd.f32 %v726_v54, %v359_v6  ;;  %v361_v17 = vadd.f32 %v842_v11, %v322_v7  ;;  %v323_v18 = vmul.f32 %v667_v9, %v831_v0  ;;  %v670_v19 = vunpack.c.l.bf16 %v750_v5 }
  0x3a   : > { %517 = vst [vmem:[%s862_s6 + $0xc0] sm:$0xff] %v485_v12  ;;  %v486_v20 = vmax.f32 %v454_v13, 0.0  ;;  %v456_v21 = vadd.f32 %v727_v62, %v360_v14  ;;  %v734_v22 = vunpack.c.l.bf16 %v765_v10  ;;  %v671_v23 = vunpack.c.h.bf16 %v750_v5 }
  0x3b   : > { %v487_v24 = vmax.f32 %v455_v16, 0.0  ;;  %v457_v25 = vadd.f32 %v730_v8, %v361_v17  ;;  %v362_v26 = vadd.f32 %v842_v11, %v323_v18  ;;  %v324_v27 = vmul.f32 %v670_v19, %v831_v0 }
  0x3c   : > { %518 = vst [vmem:[%s862_s6 + $0xc8] sm:$0xff] %v486_v20  ;;  %v488_v28 = vmax.f32 %v456_v21, 0.0  ;;  %v325_v29 = vmul.f32 %v671_v23, %v831_v0  ;;  %v735_v30 = vunpack.c.h.bf16 %v765_v10 }
  0x3d   : > { %519 = vst [vmem:[%s862_s6 + $0xd0] sm:$0xff] %v487_v24  ;;  %v489_v31 = vmax.f32 %v457_v25, 0.0  ;;  %v458_v32 = vadd.f32 %v731_v15, %v362_v26  ;;  %v363_v33 = vadd.f32 %v842_v11, %v324_v27 }
  0x3e   : > { %520 = vst [vmem:[%s862_s6 + $0xd8] sm:$0xff] %v488_v28  ;;  %v364_v34 = vadd.f32 %v842_v11, %v325_v29 }
  0x3f   : > { %521 = vst [vmem:[%s862_s6 + $0xe0] sm:$0xff] %v489_v31  ;;  %v490_v35 = vmax.f32 %v458_v32, 0.0  ;;  %v459_v36 = vadd.f32 %v734_v22, %v363_v33 }
  0x40   : > { %v460_v37 = vadd.f32 %v735_v30, %v364_v34 }
  0x41   : > { %522 = vst [vmem:[%s862_s6 + $0xe8] sm:$0xff] %v490_v35  ;;  %v491_v38 = vmax.f32 %v459_v36, 0.0 }
  0x42   : > { %v492_v39 = vmax.f32 %v460_v37, 0.0 }
  0x43   : > { %523 = vst [vmem:[%s862_s6 + $0xf0] sm:$0xff] %v491_v38 }
  0x44   : > { %524 = vst [vmem:[%s862_s6 + $0xf8] sm:$0xff] %v492_v39 }
  0x45 PF: > { %s14_s15 = sadd.s32 1, %s780_s15  }
  0x46   : > { %p11_p4 = scmp.ge.s32.totalorder %s14_s15, 4  }
  0x48   :  { %13 = sbr.rel (!%p11_p4) target bundleno = 1 (0x1), region = 69 }

// kernel: residual_block.3
= control target key start
LH: loop header
LB: loop body
LE: loop exit
PB: predicated region body
PF: predicated region fallthrough
CT: control target
= control target key end

     0   :  { %s8108_s12 = smov 0   ;;  %s9854_s0 = inlined_call_operand.vmem [shape: bf16[2,16,16,128], index: 0, kind: input, shape index: {}]   ;;  %s9855_s1 = inlined_call_operand.vmem [shape: bf16[9,128,128], index: 1, kind: input, shape index: {}]   ;;  %s9856_s2 = inlined_call_operand.vmem [shape: bf16[2,16,16,128], index: 2, kind: output, shape index: {0}]   ;;  %s9857_s3 = inlined_call_operand.vmem [shape: f32[2,2,128], index: 3, kind: output, shape index: {1}]  }
   0x1 LB: > { %s6721_s13 = sadd.s32 4294967295, %s8085_s12   ;;  %p6725_p0 = scmp.ge.s32.totalorder %s8085_s12, 1  ;;  %s8085_s12 = sphi %s8108_s12, %s14_s12  }
   0x2   : > { %p140_p1 = scmp.lt.s32.totalorder %s8085_s12, 3 }
   0x4   : > { %p141_p2 = pnand %p6725_p0, %p140_p1 }
   0x6   : > { %144 = sbr.rel (%p141_p2) target bundleno = 649 (0x289), region = 28 }
   0xb   : > { %v7959_v0 = vld [vmem:[%s9855_s1 + $0x38] sm:$0xff]   ;;  %v8122_v1 = vld [vmem:[%s9855_s1 + $0x30] sm:$0xff]   ;;  %v8087_v2 = vmov 0   ;;  %p168_p3 = scmp.lt.s32.totalorder %s6721_s13, 1  ;;  %v7961_v3 = vld [vmem:[%s9855_s1 + $0x28] sm:$0xff]   ;;  %vm593_vm0 = vcmask 1043456  }
   0xc   : > { %183 = vst [vmem:[#allocation2] sm:$0xf] %v8087_v2  ;;  %184 = vst [vmem:[#allocation2 + $0x4] sm:$0xf] %v8087_v2  ;;  %7502 = vmatprep.subr.bf16.mxu0 %v7959_v0  ;;  %7934 = vmatprep.subr.bf16.mxu1 %v7959_v0  ;;  %v7962_v4 = vld [vmem:[%s9855_s1 + $0x20] sm:$0xff]   ;;  %v7963_v11 = vld [vmem:[%s9855_s1 + $0x18] sm:$0xff]  }
   0xd   : > { %185 = vst [vmem:[#allocation2 + $0x8] sm:$0x1] %v8087_v2  ;;  %186 = vst [vmem:[#allocation2 + $0xc] sm:$0xf] %v8087_v2  ;;  %7503 = vmatpush3.bf16.msra.mxu0 %v7959_v0  ;;  %7942 = vmatpush3.bf16.msra.mxu1 %v7959_v0  ;;  %s9969_s13 = smov (!%p168_p3, %s6721_s13), 1  ;;  %vm600_vm4 = vcmask 1040384  }
   0xe   : > { %187 = vst [vmem:[#allocation2 + $0x10] sm:$0xf] %v8087_v2  ;;  %188 = vst [vmem:[#allocation2 + $0x14] sm:$0x1] %v8087_v2  ;;  %7504 = vmatprep.subr.bf16.mxu0 %v8122_v1  ;;  %7935 = vmatprep.subr.bf16.mxu1 %v8122_v1  ;;  %s7157_s20 = sshll.u32 %s9969_s13, 7  ;;  %v7964_v24 = vld [vmem:[%s9855_s1 + $0x10] sm:$0xff]  }
   0xf   : > { %189 = vst [vmem:[#allocation2 + $0x18] sm:$0xf] %v8087_v2  ;;  %190 = vst [vmem:[#allocation2 + $0x1c] sm:$0xf] %v8087_v2  ;;  %s8141_s23 = scalar_lea.vmem %s9854_s0, %s7157_s20  ;;  %vm269_vm1 = vsmask.f32 256  ;;  %s9789_s24 = scalar_lea.vmem %s9856_s2, %s7157_s20 }
  0x10   : > { %191 = vst [vmem:[#allocation2 + $0x20] sm:$0x1] %v8087_v2  ;;  %192 = vst [vmem:[#allocation2 + $0x24] sm:$0xf] %v8087_v2  ;;  %v251_v6 = vld [vmem:[%s8141_s23 + $0x38] sm:$0xf] }
  0x11   : > { %193 = vst [vmem:[#allocation2 + $0x28] sm:$0xf] %v8087_v2  ;;  %194 = vst [vmem:[#allocation2 + $0x2c] sm:$0x1] %v8087_v2  ;;  %7505 = vmatpush3.bf16.msra.mxu0 %v8122_v1  ;;  %7943 = vmatpush3.bf16.msra.mxu1 %v8122_v1  ;;  %v252_v7 = vld [vmem:[%s8141_s23 + $0x3c] sm:$0xf] }
  0x12   : > { %195 = vst [vmem:[#allocation2 + $0x30] sm:$0xf] %v8087_v2  ;;  %196 = vst [vmem:[#allocation2 + $0x34] sm:$0xf] %v8087_v2  ;;  %7506 = vmatprep.subr.bf16.mxu0 %v7961_v3  ;;  %7936 = vmatprep.subr.bf16.mxu1 %v7961_v3  ;;  %vm270_vm2 = vsmask.f32 4368 }
  0x13   : > { %197 = vst [vmem:[#allocation2 + $0x38] sm:$0x1] %v8087_v2  ;;  %198 = vst [vmem:[#allocation2 + $0x3c] sm:$0xf] %v8087_v2  ;;  %v7967_v5 = vld [vmem:[#allocation2] sm:$0xff]   ;;  %v392_v8 = vshrl.u32 %v251_v6, 16 }
  0x14   : > { %199 = vst [vmem:[#allocation2 + $0x40] sm:$0xf] %v8087_v2  ;;  %200 = vst [vmem:[#allocation2 + $0x44] sm:$0x1] %v8087_v2  ;;  %7518 = vmatprep.mubr.bf16.mxu0 %v7967_v5  ;;  %v395_v9 = vshll.u32 %v251_v6, 16  ;;  %v400_v10 = vshrl.u32 %v252_v7, 16 }
  0x15   : > { %201 = vst [vmem:[#allocation2 + $0x48] sm:$0xf] %v8087_v2  ;;  %202 = vst [vmem:[#allocation2 + $0x4c] sm:$0xf] %v8087_v2  ;;  %7507 = vmatpush3.bf16.msra.mxu0 %v7961_v3  ;;  %7944 = vmatpush3.bf16.msra.mxu1 %v7961_v3  ;;  %v403_v12 = vshll.u32 %v252_v7, 16  ;;  %v394_v14 = vrot.slane %v392_v8, 7 }
  0x16   : > { %203 = vst [vmem:[#allocation2 + $0x50] sm:$0x1] %v8087_v2  ;;  %204 = vst [vmem:[#allocation2 + $0x54] sm:$0xf] %v8087_v2  ;;  %vm594_vm3 = vsmask.f32 7938  ;;  %7508 = vmatprep.subr.bf16.mxu0 %v7962_v4  ;;  %7937 = vmatprep.subr.bf16.mxu1 %v7962_v4 }
  0x17   : > { %205 = vst [vmem:[#allocation2 + $0x58] sm:$0xf] %v8087_v2  ;;  %206 = vst [vmem:[#allocation2 + $0x5c] sm:$0x1] %v8087_v2  ;;  %v8158_v15 = vrot.slane %v400_v10, 7  ;;  %v397_v25 = vor.u32 %v395_v9, %v394_v14  ;;  %v398_v26 = vrot.slane %v394_v14, 4 }
  0x18   : > { %207 = vst [vmem:[#allocation2 + $0x60] sm:$0xf] %v8087_v2  ;;  %208 = vst [vmem:[#allocation2 + $0x64] sm:$0xf] %v8087_v2  ;;  %v237_v16 = vld [vmem:[%s8141_s23] sm:$0xf] }
  0x19   : > { %209 = vst [vmem:[#allocation2 + $0x68] sm:$0x1] %v8087_v2  ;;  %210 = vst [vmem:[#allocation2 + $0x6c] sm:$0xf] %v8087_v2  ;;  %v238_v17 = vld [vmem:[%s8141_s23 + $0x4] sm:$0xf]  ;;  %v405_v27 = vor.u32 %v403_v12, %v8158_v15  ;;  %7509 = vmatpush3.bf16.msra.mxu0 %v7962_v4  ;;  %7945 = vmatpush3.bf16.msra.mxu1 %v7962_v4 }
  0x1a   : > { %211 = vst [vmem:[#allocation2 + $0x70] sm:$0xf] %v8087_v2  ;;  %212 = vst [vmem:[#allocation2 + $0x74] sm:$0x1] %v8087_v2  ;;  %v273_v20 = vshrl.u32 %v237_v16, 16  ;;  %v276_v21 = vshll.u32 %v237_v16, 16  ;;  %7510 = vmatprep.subr.bf16.mxu0 %v7963_v11  ;;  %7938 = vmatprep.subr.bf16.mxu1 %v7963_v11 }
  0x1b   : > { %213 = vst [vmem:[#allocation2 + $0x78] sm:$0xf] %v8087_v2  ;;  %214 = vst [vmem:[#allocation2 + $0x7c] sm:$0xf] %v8087_v2  ;;  %v281_v22 = vshrl.u32 %v238_v17, 16  ;;  %v284_v23 = vshll.u32 %v238_v17, 16 }
  0x1c   : > { %215 = vst [vmem:[#allocation2 + $0x80] sm:$0x1] %v8087_v2  ;;  %216 = vst [vmem:[#allocation2 + $0x84] sm:$0xf] %v8087_v2  ;;  %v596_v28 = vld [vmem:[#allocation2 + $0xc] sm:$0xf] }
  0x1d   : > { %217 = vst [vmem:[#allocation2 + $0x88] sm:$0xf] %v8087_v2  ;;  %218 = vst [vmem:[#allocation2 + $0x8c] sm:$0x1] %v8087_v2  ;;  %v253_v29 = vld [vmem:[%s8141_s23 + $0x40] sm:$0xf]  ;;  %7511 = vmatpush3.bf16.msra.mxu0 %v7963_v11  ;;  %7946 = vmatpush3.bf16.msra.mxu1 %v7963_v11 }
  0x1e   : > { %219 = vst [vmem:[#allocation2 + $0x90] sm:$0xf] %v8087_v2  ;;  %220 = vst [vmem:[#allocation2 + $0x94] sm:$0xf] %v8087_v2  ;;  %v275_v30 = vrot.slane %v273_v20, 7  ;;  %v283_v31 = vrot.slane %v281_v22, 7  ;;  %7512 = vmatprep.subr.bf16.mxu0 %v7964_v24  ;;  %7939 = vmatprep.subr.bf16.mxu1 %v7964_v24 }
  0x1f   : > { %221 = vst [vmem:[#allocation2 + $0x98] sm:$0x1] %v8087_v2  ;;  %222 = vst [vmem:[#allocation2 + $0x9c] sm:$0xf] %v8087_v2  ;;  %v647_v19 = vld [vmem:[#allocation2 + $0x60] sm:$0xf] }
  0x20   : > { %223 = vst [vmem:[#allocation2 + $0xa0] sm:$0xf] %v8087_v2  ;;  %224 = vst [vmem:[#allocation2 + $0xa4] sm:$0x1] %v8087_v2  ;;  %v254_v32 = vld [vmem:[%s8141_s23 + $0x44] sm:$0xf]  ;;  %v278_v41 = vor.u32 %v276_v21, %v275_v30  ;;  %v286_v43 = vor.u32 %v284_v23, %v283_v31 }
  0x21   : > { %225 = vst [vmem:[#allocation2 + $0xa8] sm:$0xf] %v8087_v2  ;;  %226 = vst [vmem:[#allocation2 + $0xac] sm:$0xf] %v8087_v2  ;;  %v409_v33 = vshrl.u32 %v253_v29, 16  ;;  %v412_v34 = vshll.u32 %v253_v29, 16  ;;  %7513 = vmatpush3.bf16.msra.mxu0 %v7964_v24  ;;  %7947 = vmatpush3.bf16.msra.mxu1 %v7964_v24 }
  0x22   : > { %227 = vst [vmem:[#allocation2 + $0xb0] sm:$0x1] %v8087_v2  ;;  %228 = vst [vmem:[#allocation2 + $0xb4] sm:$0xf] %v8087_v2  ;;  %v602_v38 = vld [vmem:[#allocation2 + $0x14] sm:$0x1] }
  0x23   : > { %229 = vst [vmem:[#allocation2 + $0xb8] sm:$0xf] %v8087_v2  ;;  %230 = vst [vmem:[#allocation2 + $0xbc] sm:$0x1] %v8087_v2  ;;  %v417_v39 = vshrl.u32 %v254_v32, 16  ;;  %v420_v40 = vshll.u32 %v254_v32, 16 }
  0x24   : > { %231 = vst [vmem:[#allocation2 + $0xc0] sm:$0xf] %v8087_v2  ;;  %232 = vst [vmem:[#allocation2 + $0xc4] sm:$0xf] %v8087_v2  ;;  %v279_v42 = vrot.slane %v275_v30, 4  ;;  %v288_v44 = vrot.slane %v283_v31, 4 }
  0x25   : > { %233 = vst [vmem:[#allocation2 + $0xc8] sm:$0x1] %v8087_v2  ;;  %234 = vst [vmem:[#allocation2 + $0xcc] sm:$0xf] %v8087_v2  ;;  %v411_v45 = vrot.slane %v409_v33, 7  ;;  %v8183_v46 = vrot.slane %v417_v39, 7 }
  0x26   : > { %235 = vst [vmem:[#allocation2 + $0xd0] sm:$0xf] %v8087_v2  ;;  %236 = vst [vmem:[#allocation2 + $0xd4] sm:$0x1] %v8087_v2  ;;  %v654_v50 = vld [vmem:[#allocation2 + $0x6c] sm:$0xf] }
  0x27   : > { %vm8154_vm5 = vmor %vm269_vm1, %vm270_vm2  ;;  %v7965_v51 = vld [vmem:[%s9855_s1 + $0x8] sm:$0xff]   ;;  %v414_v52 = vor.u32 %v412_v34, %v411_v45  ;;  %v415_v53 = vrot.slane %v411_v45, 4  ;;  %v422_v54 = vor.u32 %v420_v40, %v8183_v46  ;;  %v7966_v57 = vld [vmem:[%s9855_s1] sm:$0xff]   ;;  %vm2108_vm8 = vcmask 1042432   ;;  %s6730_s20 = sshll.u32 %s9969_s13, 1 }
  0x28   : > { %vm8163_vm6 = vmand %vm593_vm0, %vm594_vm3  ;;  %v406_v35 = vsel %vm8154_vm5, %v398_v26, %v405_v27  ;;  %v287_v47 = vsel %vm8154_vm5, %v279_v42, %v286_v43  ;;  %v239_v55 = vld [vmem:[%s8141_s23 + $0x8] sm:$0xf]  ;;  %v240_v56 = vld [vmem:[%s8141_s23 + $0xc] sm:$0xf]  ;;  %7514 = vmatprep.subr.bf16.mxu0 %v7965_v51  ;;  %7940 = vmatprep.subr.bf16.mxu1 %v7965_v51  ;;  %vm2109_vm9 = vcmask 1046532   ;;  %s181_s27 = scalar_lea.vmem %s9857_s3, %s6730_s20 }
  0x29   : > { %vm8177_vm7 = vmand %vm600_vm4, %vm269_vm1  ;;  %v648_v37 = vsel %vm8163_vm6, %v397_v25, %v647_v19  ;;  %650 = vst [vmem:[#allocation2 + $0x64] sm:$0xf] %v406_v35  ;;  %v597_v48 = vsel %vm8163_vm6, %v278_v41, %v596_v28  ;;  %v423_v58 = vsel %vm8154_vm5, %v415_v53, %v422_v54  ;;  %v655_v59 = vsel %vm8163_vm6, %v414_v52, %v654_v50  ;;  %v255_v62 = vld [vmem:[%s8141_s23 + $0x48] sm:$0xf]  ;;  %v256_v63 = vld [vmem:[%s8141_s23 + $0x4c] sm:$0xf] }
  0x2a   : > { %649 = vst [vmem:[#allocation2 + $0x60] sm:$0xf] %v648_v37  ;;  %v603_v49 = vsel %vm8177_vm7, %v288_v44, %v602_v38  ;;  %598 = vst [vmem:[#allocation2 + $0xc] sm:$0xf] %v597_v48  ;;  %v290_v60 = vshrl.u32 %v239_v55, 16  ;;  %v293_v61 = vshll.u32 %v239_v55, 16  ;;  %7515 = vmatpush3.bf16.msra.mxu0 %v7965_v51  ;;  %7948 = vmatpush3.bf16.msra.mxu1 %v7965_v51 }
  0x2b   : > { %599 = vst [vmem:[#allocation2 + $0x10] sm:$0xf] %v287_v47  ;;  %604 = vst [vmem:[#allocation2 + $0x14] sm:$0x1] %v603_v49  ;;  %v298_v0 = vshrl.u32 %v240_v56, 16  ;;  %v301_v1 = vshll.u32 %v240_v56, 16  ;;  %7516 = vmatprep.subr.bf16.mxu0 %v7966_v57  ;;  %7941 = vmatprep.subr.bf16.mxu1 %v7966_v57 }
  0x2c   : > { %656 = vst [vmem:[#allocation2 + $0x6c] sm:$0xf] %v655_v59  ;;  %657 = vst [vmem:[#allocation2 + $0x70] sm:$0xf] %v423_v58  ;;  %v605_v2 = vld [vmem:[#allocation2 + $0x18] sm:$0xf] }
  0x2d   : > { %v426_v3 = vshrl.u32 %v255_v62, 16  ;;  %v429_v4 = vshll.u32 %v255_v62, 16  ;;  %v292_v6 = vrot.slane %v290_v60, 7  ;;  %v661_v7 = vld [vmem:[#allocation2 + $0x78] sm:$0xf]  ;;  %v8206_v8 = vrot.slane %v298_v0, 7  ;;  %vm8384_vm12 = vmor %vm2108_vm8, %vm2109_vm9 }
  0x2e   : > { %v434_v10 = vshrl.u32 %v256_v63, 16  ;;  %v437_v11 = vshll.u32 %v256_v63, 16  ;;  %v241_v12 = vld [vmem:[%s8141_s23 + $0x10] sm:$0xf]  ;;  %v7971_v14 = vld [vmem:[%s9855_s1 + $0x78] sm:$0xff]   ;;  %7517 = vmatpush3.bf16.msra.mxu0 %v7966_v57  ;;  %7949 = vmatpush3.bf16.msra.mxu1 %v7966_v57  ;;  %v7979_v59 = vld [vmem:[%s9855_s1 + $0x68] sm:$0xff]  }
  0x2f   : > { %v428_v9 = vrot.slane %v426_v3, 7  ;;  %v295_v16 = vor.u32 %v293_v61, %v292_v6  ;;  %v296_v17 = vrot.slane %v292_v6, 4  ;;  %v242_v19 = vld [vmem:[%s8141_s23 + $0x14] sm:$0xf]  ;;  %v307_v20 = vshrl.u32 %v241_v12, 16  ;;  %v7972_v22 = vld [vmem:[%s9855_s1 + $0xb8] sm:$0xff]   ;;  %7550 = vmatprep.subr.bf16.mxu1 %v7971_v14 }
  0x30   : > { %v310_v21 = vshll.u32 %v241_v12, 16  ;;  %v303_v23 = vor.u32 %v301_v1, %v8206_v8  ;;  %v8219_v28 = vrot.slane %v434_v10, 7  ;;  %v612_v30 = vld [vmem:[#allocation2 + $0x24] sm:$0xf]  ;;  %v315_v33 = vshrl.u32 %v242_v19, 16  ;;  %v7973_v41 = vld [vmem:[%s9855_s1 + $0x70] sm:$0xff]   ;;  %7598 = vmatprep.subr.bf16.mxu0 %v7972_v22 }
  0x31   : > { %v7968_v5 = vld [vmem:[#allocation2 + $0x60] sm:$0xff]   ;;  %v431_v24 = vor.u32 %v429_v4, %v428_v9  ;;  %v606_v26 = vsel %vm8163_vm6, %v295_v16, %v605_v2  ;;  %v432_v27 = vrot.slane %v428_v9, 4  ;;  %v309_v29 = vrot.slane %v307_v20, 7  ;;  %v257_v35 = vld [vmem:[%s8141_s23 + $0x50] sm:$0xf]  ;;  %v7980_v62 = vld [vmem:[%s9855_s1 + $0xa8] sm:$0xff]  }
  0x32   : > { %7534 = vmatprep.mubr.bf16.mxu1 %v7968_v5  ;;  %v7969_v25 = vld [vmem:[#allocation2 + $0xc] sm:$0xff]   ;;  %v304_v31 = vsel %vm8154_vm5, %v296_v17, %v303_v23  ;;  %607 = vst [vmem:[#allocation2 + $0x18] sm:$0xf] %v606_v26  ;;  %v318_v34 = vshll.u32 %v242_v19, 16  ;;  %v258_v37 = vld [vmem:[%s8141_s23 + $0x54] sm:$0xf]  ;;  %v439_v39 = vor.u32 %v437_v11, %v8219_v28 }
  0x33   : > { %v662_v32 = vsel %vm8163_vm6, %v431_v24, %v661_v7  ;;  %v7970_v38 = vld [vmem:[#allocation2 + $0x6c] sm:$0xff]   ;;  %608 = vst [vmem:[#allocation2 + $0x1c] sm:$0xf] %v304_v31  ;;  %v312_v40 = vor.u32 %v310_v21, %v309_v29  ;;  %v313_v43 = vrot.slane %v309_v29, 4  ;;  %v8234_v44 = vrot.slane %v315_v33, 7  ;;  %7519 = vmatmul.mubr.bf16.vlgmr.msra.gmra.mxu0 %v7969_v25  ;;  %v7981_v4 = vld [vmem:[%s9855_s1 + $0x60] sm:$0xff]  }
  0x34   : > { %663 = vst [vmem:[#allocation2 + $0x78] sm:$0xf] %v662_v32  ;;  %v7974_v42 = vld [vmem:[%s9855_s1 + $0xb0] sm:$0xff]   ;;  %v443_v45 = vshrl.u32 %v257_v35, 16  ;;  %v446_v47 = vshll.u32 %v257_v35, 16  ;;  %v440_v48 = vsel %vm8154_vm5, %v432_v27, %v439_v39  ;;  %v451_v50 = vshrl.u32 %v258_v37, 16  ;;  %7535 = vmatmul.mubr.bf16.vlgmr.msra.gmra.mxu1 %v7970_v38  ;;  %7599 = vmatpush3.bf16.msra.mxu0 %v7972_v22 }
  0x35   : > { %v613_v49 = vsel %vm8163_vm6, %v312_v40, %v612_v30  ;;  %v454_v51 = vshll.u32 %v258_v37, 16  ;;  %v668_v52 = vld [vmem:[#allocation2 + $0x84] sm:$0xf]  ;;  %664 = vst [vmem:[#allocation2 + $0x7c] sm:$0xf] %v440_v48  ;;  %v320_v53 = vor.u32 %v318_v34, %v8234_v44  ;;  %7551 = vmatpush3.bf16.msra.mxu1 %v7971_v14  ;;  %v407_v60 = vrot.slane %v8158_v15, 4  ;;  %7600 = vmatprep.subr.bf16.mxu0 %v7974_v42 }
  0x36   : > { %614 = vst [vmem:[#allocation2 + $0x24] sm:$0xf] %v613_v49  ;;  %v445_v54 = vrot.slane %v443_v45, 7  ;;  %v8241_v55 = vrot.slane %v451_v50, 7  ;;  %7552 = vmatprep.subr.bf16.mxu1 %v7973_v41  ;;  %v243_v63 = vld [vmem:[%s8141_s23 + $0x18] sm:$0xf] }
  0x37   : > { %v321_v56 = vsel %vm8154_vm5, %v313_v43, %v320_v53  ;;  %v324_v2 = vshrl.u32 %v243_v63, 16  ;;  %v244_v5 = vld [vmem:[%s8141_s23 + $0x1c] sm:$0xf]  ;;  %v327_v6 = vshll.u32 %v243_v63, 16  ;;  %v619_v7 = vld [vmem:[#allocation2 + $0x30] sm:$0xf] }
  0x38   : > { %v448_v57 = vor.u32 %v446_v47, %v445_v54  ;;  %v449_v58 = vrot.slane %v445_v54, 4  ;;  %615 = vst [vmem:[#allocation2 + $0x28] sm:$0xf] %v321_v56  ;;  %v456_v61 = vor.u32 %v454_v51, %v8241_v55  ;;  %7601 = vmatpush3.bf16.msra.mxu0 %v7974_v42  ;;  %v7982_v9 = vld [vmem:[%s9855_s1 + $0xa0] sm:$0xff]   ;;  %v332_v11 = vshrl.u32 %v244_v5, 16  ;;  %v7988_v48 = vld [vmem:[%s9855_s1 + $0x98] sm:$0xff]  }
  0x39   : > { %7553 = vmatpush3.bf16.msra.mxu1 %v7973_v41  ;;  %v326_v10 = vrot.slane %v324_v2, 7  ;;  %v335_v12 = vshll.u32 %v244_v5, 16  ;;  %v259_v14 = vld [vmem:[%s8141_s23 + $0x58] sm:$0xf]  ;;  %7602 = vmatprep.subr.bf16.mxu0 %v7980_v62  ;;  %v260_v22 = vld [vmem:[%s8141_s23 + $0x5c] sm:$0xf] }
  0x3a   : > { %v7975_v0 = vld [vmem:[#allocation2 + $0x18] sm:$0xff]   ;;  %v669_v1 = vsel %vm8163_vm6, %v448_v57, %v668_v52  ;;  %v457_v3 = vsel %vm8154_vm5, %v449_v58, %v456_v61  ;;  %7554 = vmatprep.subr.bf16.mxu1 %v7979_v59  ;;  %v460_v17 = vshrl.u32 %v259_v14, 16  ;;  %v8266_v21 = vrot.slane %v332_v11, 7  ;;  %v675_v29 = vld [vmem:[#allocation2 + $0x90] sm:$0xf] }
  0x3b   : > { %670 = vst [vmem:[#allocation2 + $0x84] sm:$0xf] %v669_v1  ;;  %671 = vst [vmem:[#allocation2 + $0x88] sm:$0xf] %v457_v3  ;;  %7522 = vmatprep.mubr.bf16.mxu0 %v7975_v0  ;;  %v329_v19 = vor.u32 %v327_v6, %v326_v10  ;;  %v330_v20 = vrot.slane %v326_v10, 4  ;;  %v463_v23 = vshll.u32 %v259_v14, 16 }
  0x3c   : > { %v7976_v16 = vld [vmem:[#allocation2 + $0x78] sm:$0xff]   ;;  %v424_v24 = vrot.slane %v8183_v46, 4  ;;  %v462_v25 = vrot.slane %v460_v17, 7  ;;  %v468_v26 = vshrl.u32 %v260_v22, 16  ;;  %v471_v27 = vshll.u32 %v260_v22, 16  ;;  %7603 = vmatpush3.bf16.msra.mxu0 %v7980_v62  ;;  %v7989_v1 = vld [vmem:[%s9855_s1 + $0x50] sm:$0xff]  }
  0x3d   : > { %7538 = vmatprep.mubr.bf16.mxu1 %v7976_v16  ;;  %v305_v30 = vrot.slane %v8206_v8, 4  ;;  %7555 = vmatpush3.bf16.msra.mxu1 %v7979_v59  ;;  %v337_v32 = vor.u32 %v335_v12, %v8266_v21  ;;  %v620_v33 = vsel %vm8163_vm6, %v329_v19, %v619_v7  ;;  %v245_v34 = vld [vmem:[%s8141_s23 + $0x20] sm:$0xf]  ;;  %v246_v39 = vld [vmem:[%s8141_s23 + $0x24] sm:$0xf]  ;;  %v7987_v41 = vld [vmem:[%s9855_s1 + $0x58] sm:$0xff]  }
  0x3e   : > { %7556 = vmatprep.subr.bf16.mxu1 %v7981_v4  ;;  %7604 = vmatprep.subr.bf16.mxu0 %v7982_v9  ;;  %621 = vst [vmem:[#allocation2 + $0x30] sm:$0xf] %v620_v33  ;;  %v465_v35 = vor.u32 %v463_v23, %v462_v25  ;;  %v466_v37 = vrot.slane %v462_v25, 4  ;;  %v8275_v38 = vrot.slane %v468_v26, 7  ;;  %v341_v40 = vshrl.u32 %v245_v34, 16  ;;  %v7990_v2 = vld [vmem:[%s9855_s1 + $0x90] sm:$0xff]  }
  0x3f   : > { %v7977_v31 = vld [vmem:[#allocation2 + $0x24] sm:$0xff]   ;;  %v338_v42 = vsel %vm8154_vm5, %v330_v20, %v337_v32  ;;  %v344_v43 = vshll.u32 %v245_v34, 16  ;;  %v349_v45 = vshrl.u32 %v246_v39, 16  ;;  %v352_v47 = vshll.u32 %v246_v39, 16  ;;  %v626_v57 = vld [vmem:[#allocation2 + $0x3c] sm:$0xf] }
  0x40   : > { %7523 = vmatmul.mubr.bf16.gmra.mxu0 %v7977_v31  ;;  %v441_v49 = vrot.slane %v8219_v28, 4  ;;  %622 = vst [vmem:[#allocation2 + $0x34] sm:$0xf] %v338_v42  ;;  %v473_v51 = vor.u32 %v471_v27, %v8275_v38  ;;  %v676_v52 = vsel %vm8163_vm6, %v465_v35, %v675_v29  ;;  %v343_v53 = vrot.slane %v341_v40, 7  ;;  %v261_v58 = vld [vmem:[%s8141_s23 + $0x60] sm:$0xf] }
  0x41   : > { %v322_v54 = vrot.slane %v8234_v44, 4  ;;  %7557 = vmatpush3.bf16.msra.mxu1 %v7981_v4  ;;  %7605 = vmatpush3.bf16.msra.mxu0 %v7982_v9  ;;  %677 = vst [vmem:[#allocation2 + $0x90] sm:$0xf] %v676_v52  ;;  %v8291_v56 = vrot.slane %v349_v45, 7  ;;  %v262_v63 = vld [vmem:[%s8141_s23 + $0x64] sm:$0xf] }
  0x42   : > { %v7978_v50 = vld [vmem:[#allocation2 + $0x84] sm:$0xff]   ;;  %v474_v59 = vsel %vm8154_vm5, %v466_v37, %v473_v51  ;;  %v346_v61 = vor.u32 %v344_v43, %v343_v53  ;;  %v347_v62 = vrot.slane %v343_v53, 4  ;;  %v477_v0 = vshrl.u32 %v261_v58, 16  ;;  %7558 = vmatprep.subr.bf16.mxu1 %v7987_v41  ;;  %v682_v6 = vld [vmem:[#allocation2 + $0x9c] sm:$0xf]  ;;  %7606 = vmatprep.subr.bf16.mxu0 %v7988_v48 }
  0x43   : > { %7539 = vmatmul.mubr.bf16.gmra.mxu1 %v7978_v50  ;;  %678 = vst [vmem:[#allocation2 + $0x94] sm:$0xf] %v474_v59  ;;  %v354_v3 = vor.u32 %v352_v47, %v8291_v56  ;;  %v480_v4 = vshll.u32 %v261_v58, 16  ;;  %v485_v5 = vshrl.u32 %v262_v63, 16  ;;  %v488_v10 = vshll.u32 %v262_v63, 16  ;;  %v7995_v14 = vld [vmem:[%s9855_s1 + $0x48] sm:$0xff]  }
  0x44   : > { %v627_v7 = vsel %vm8163_vm6, %v346_v61, %v626_v57  ;;  %v479_v9 = vrot.slane %v477_v0, 7  ;;  %v7996_v19 = vld [vmem:[%s9855_s1 + $0x88] sm:$0xff]   ;;  %v458_v20 = vrot.slane %v8241_v55, 4  ;;  %v339_v27 = vrot.slane %v8266_v21, 4  ;;  %v7997_v40 = vld [vmem:[%s9855_s1 + $0x40] sm:$0xff]  }
  0x45   : > { %v355_v11 = vsel %vm8154_vm5, %v347_v62, %v354_v3  ;;  %628 = vst [vmem:[#allocation2 + $0x3c] sm:$0xf] %v627_v7  ;;  %v8308_v12 = vrot.slane %v485_v5, 7  ;;  %7559 = vmatpush3.bf16.msra.mxu1 %v7987_v41  ;;  %7607 = vmatpush3.bf16.msra.mxu0 %v7988_v48  ;;  %v247_v26 = vld [vmem:[%s8141_s23 + $0x28] sm:$0xf]  ;;  %v7998_v45 = vld [vmem:[%s9855_s1 + $0x80] sm:$0xff]  }
  0x46   : > { %629 = vst [vmem:[#allocation2 + $0x40] sm:$0xf] %v355_v11  ;;  %v482_v16 = vor.u32 %v480_v4, %v479_v9  ;;  %v483_v17 = vrot.slane %v479_v9, 4  ;;  %7560 = vmatprep.subr.bf16.mxu1 %v7989_v1  ;;  %7608 = vmatprep.subr.bf16.mxu0 %v7990_v2  ;;  %v248_v31 = vld [vmem:[%s8141_s23 + $0x2c] sm:$0xf]  ;;  %v358_v32 = vshrl.u32 %v247_v26, 16 }
  0x47   : > { %v7983_v22 = vld [vmem:[#allocation2 + $0x30] sm:$0xff]   ;;  %v490_v23 = vor.u32 %v488_v10, %v8308_v12  ;;  %v361_v33 = vshll.u32 %v247_v26, 16  ;;  %v366_v35 = vshrl.u32 %v248_v31, 16  ;;  %v369_v37 = vshll.u32 %v248_v31, 16  ;;  %v633_v39 = vld [vmem:[#allocation2 + $0x48] sm:$0xf] }
  0x48   : > { %v683_v25 = vsel %vm8163_vm6, %v482_v16, %v682_v6  ;;  %7526 = vmatprep.mubr.bf16.mxu0 %v7983_v22  ;;  %v360_v41 = vrot.slane %v358_v32, 7  ;;  %v263_v42 = vld [vmem:[%s8141_s23 + $0x68] sm:$0xf]  ;;  %v264_v43 = vld [vmem:[%s8141_s23 + $0x6c] sm:$0xf]  ;;  %v475_v52 = vrot.slane %v8275_v38, 4 }
  0x49   : > { %v491_v29 = vsel %vm8154_vm5, %v483_v17, %v490_v23  ;;  %684 = vst [vmem:[#allocation2 + $0x9c] sm:$0xf] %v683_v25  ;;  %7561 = vmatpush3.bf16.msra.mxu1 %v7989_v1  ;;  %7609 = vmatpush3.bf16.msra.mxu0 %v7990_v2  ;;  %v8333_v47 = vrot.slane %v366_v35, 7  ;;  %v494_v48 = vshrl.u32 %v263_v42, 16  ;;  %v497_v50 = vshll.u32 %v263_v42, 16  ;;  %v8343_v1 = vld [vmem:[%s9855_s1 + $0xf8] sm:$0xff]  }
  0x4a   : > { %v7984_v34 = vld [vmem:[#allocation2 + $0x90] sm:$0xff]   ;;  %685 = vst [vmem:[#allocation2 + $0xa0] sm:$0xf] %v491_v29  ;;  %7562 = vmatprep.subr.bf16.mxu1 %v7995_v14  ;;  %7610 = vmatprep.subr.bf16.mxu0 %v7996_v19  ;;  %v502_v51 = vshrl.u32 %v264_v43, 16  ;;  %v363_v57 = vor.u32 %v361_v33, %v360_v41  ;;  %v364_v58 = vrot.slane %v360_v41, 4  ;;  %v505_v59 = vshll.u32 %v264_v43, 16 }
  0x4b   : > { %7542 = vmatprep.mubr.bf16.mxu1 %v7984_v34  ;;  %v356_v61 = vrot.slane %v8291_v56, 4  ;;  %v371_v62 = vor.u32 %v369_v37, %v8333_v47  ;;  %v496_v63 = vrot.slane %v494_v48, 7  ;;  %v8348_v2 = vld [vmem:[%s9855_s1 + $0x138] sm:$0xff]   ;;  %v689_v4 = vld [vmem:[#allocation2 + $0xa8] sm:$0xf]  ;;  %v492_v16 = vrot.slane %v8308_v12, 4 }
  0x4c   : > { %v8338_v0 = vrot.slane %v502_v51, 7  ;;  %v634_v3 = vsel %vm8163_vm6, %v363_v57, %v633_v39  ;;  %v249_v5 = vld [vmem:[%s8141_s23 + $0x30] sm:$0xf]  ;;  %v250_v6 = vld [vmem:[%s8141_s23 + $0x34] sm:$0xf]  ;;  %v8004_v44 = vld [vmem:[%s9855_s1 + $0x128] sm:$0xff]  }
  0x4d   : > { %v7985_v53 = vld [vmem:[#allocation2 + $0x3c] sm:$0xff]   ;;  %7563 = vmatpush3.bf16.msra.mxu1 %v7995_v14  ;;  %7611 = vmatpush3.bf16.msra.mxu0 %v7996_v19  ;;  %v372_v7 = vsel %vm8154_vm5, %v364_v58, %v371_v62  ;;  %635 = vst [vmem:[#allocation2 + $0x48] sm:$0xf] %v634_v3  ;;  %v499_v9 = vor.u32 %v497_v50, %v496_v63  ;;  %v500_v10 = vrot.slane %v496_v63, 4  ;;  %v265_v14 = vld [vmem:[%s8141_s23 + $0x70] sm:$0xf] }
  0x4e   : > { %7564 = vmatprep.subr.bf16.mxu1 %v7997_v40  ;;  %7527 = vmatmul.mubr.bf16.gmra.mxu0 %v7985_v53  ;;  %v507_v11 = vor.u32 %v505_v59, %v8338_v0  ;;  %636 = vst [vmem:[#allocation2 + $0x4c] sm:$0xf] %v372_v7  ;;  %v375_v19 = vshrl.u32 %v249_v5, 16  ;;  %v378_v22 = vshll.u32 %v249_v5, 16  ;;  %v383_v26 = vshrl.u32 %v250_v6, 16 }
  0x4f   : > { %7612 = vmatprep.subr.bf16.mxu0 %v7998_v45  ;;  %v690_v25 = vsel %vm8163_vm6, %v499_v9, %v689_v4  ;;  %v386_v29 = vshll.u32 %v250_v6, 16  ;;  %v640_v31 = vld [vmem:[#allocation2 + $0x54] sm:$0xf]  ;;  %v511_v34 = vshrl.u32 %v265_v14, 16  ;;  %v514_v35 = vshll.u32 %v265_v14, 16 }
  0x50   : > { %v508_v23 = vsel %vm8154_vm5, %v500_v10, %v507_v11  ;;  %v266_v32 = vld [vmem:[%s8141_s23 + $0x74] sm:$0xf]  ;;  %691 = vst [vmem:[#allocation2 + $0xa8] sm:$0xf] %v690_v25  ;;  %v377_v33 = vrot.slane %v375_v19, 7  ;;  %v8366_v39 = vrot.slane %v383_v26, 7 }
  0x51   : > { %v7986_v17 = vld [vmem:[#allocation2 + $0x9c] sm:$0xff]   ;;  %7565 = vmatpush3.bf16.msra.mxu1 %v7997_v40  ;;  %7613 = vmatpush3.bf16.msra.mxu0 %v7998_v45  ;;  %692 = vst [vmem:[#allocation2 + $0xac] sm:$0xf] %v508_v23  ;;  %v519_v37 = vshrl.u32 %v266_v32, 16  ;;  %v522_v40 = vshll.u32 %v266_v32, 16  ;;  %v513_v43 = vrot.slane %v511_v34, 7 }
  0x52   : > { %7646 = vmatprep.subr.bf16.mxu1 %v8343_v1  ;;  %7543 = vmatmul.mubr.bf16.gmra.mxu1 %v7986_v17  ;;  %v380_v41 = vor.u32 %v378_v22, %v377_v33  ;;  %v381_v42 = vrot.slane %v377_v33, 4  ;;  %v388_v48 = vor.u32 %v386_v29, %v8366_v39  ;;  %v696_v50 = vld [vmem:[#allocation2 + $0xb4] sm:$0xf]  ;;  %v373_v59 = vrot.slane %v8333_v47, 4  ;;  %v1191_v5 = vld [vmem:[#allocation2] sm:$0xf] }
  0x53   : > { %7694 = vmatprep.subr.bf16.mxu0 %v8348_v2  ;;  %v8368_v45 = vrot.slane %v519_v37, 7  ;;  %v516_v53 = vor.u32 %v514_v35, %v513_v43  ;;  %v517_v57 = vrot.slane %v513_v43, 4  ;;  %v1192_v6 = vld [vmem:[#allocation2 + $0x4] sm:$0xf]  ;;  %v1193_v7 = vld [vmem:[#allocation2 + $0x8] sm:$0x1] }
  0x54   : > { %v641_v51 = vsel %vm8163_vm6, %v380_v41, %v640_v31  ;;  %v389_v63 = vsel %vm8154_vm5, %v381_v42, %v388_v48  ;;  %v1243_v10 = vshrl.u32 %v1191_v5, 16  ;;  %vm1239_vm10 = vsmask.f32 3328  ;;  %v2012_v25 = vld [vmem:[#allocation2] sm:$0xe]  ;;  %v8012_v47 = vld [vmem:[%s9855_s1 + $0x108] sm:$0xff]  }
  0x55   : > { %v524_v58 = vor.u32 %v522_v40, %v8368_v45  ;;  %v7991_v62 = vld [vmem:[#allocation2 + $0x48] sm:$0xff]   ;;  %642 = vst [vmem:[#allocation2 + $0x54] sm:$0xf] %v641_v51  ;;  %643 = vst [vmem:[#allocation2 + $0x58] sm:$0xf] %v389_v63  ;;  %v697_v4 = vsel %vm8163_vm6, %v516_v53, %v696_v50  ;;  %v1246_v11 = vshll.u32 %v1191_v5, 16 }
  0x56   : > { %7530 = vmatprep.mubr.bf16.mxu0 %v7991_v62  ;;  %698 = vst [vmem:[#allocation2 + $0xb4] sm:$0xf] %v697_v4  ;;  %vm1240_vm11 = vsmask.f32 7440  ;;  %v1252_v14 = vshll.u32 %v1192_v6, 16  ;;  %v509_v17 = vrot.slane %v8338_v0, 4 }
  0x57   : > { %v525_v3 = vsel %vm8154_vm5, %v517_v57, %v524_v58  ;;  %v1245_v19 = vrot.slane %v1243_v10, 4  ;;  %v1256_v22 = vshrl.u32 %v1192_v6, 16  ;;  %v1262_v23 = vshll.u32 %v1193_v7, 16  ;;  %v2013_v31 = vld [vmem:[#allocation2 + $0x4] sm:$0xf]  ;;  %vm8390_vm13 = vmor %vm1239_vm10, %vm1240_vm11 }
  0x58   : > { %v7992_v9 = vld [vmem:[#allocation2 + $0xa8] sm:$0xff]   ;;  %699 = vst [vmem:[#allocation2 + $0xb8] sm:$0xf] %v525_v3  ;;  %v1248_v26 = vrot.slane %v1246_v11, 5  ;;  %v1254_v29 = vrot.slane %v1252_v14, 5  ;;  %v6795_v37 = vrot.slane %v2012_v25, 9 }
  0x59   : > { %7546 = vmatprep.mubr.bf16.mxu1 %v7992_v9  ;;  %v2014_v32 = vld [vmem:[#allocation2 + $0x8] sm:$0x1]  ;;  %v1258_v34 = vrot.slane %v1256_v22, 4  ;;  %v1264_v35 = vrot.slane %v1262_v23, 5  ;;  %v2113_v40 = vrot.slane %v2013_v31, 5 }
  0x5a   : > { %v1194_v41 = vld [vmem:[#allocation2 + $0xc] sm:$0xf]  ;;  %v1249_v43 = vor.u32 %v1248_v26, %v1245_v19  ;;  %v2116_v48 = vrot.slane %v2014_v32, 5  ;;  %v1195_v50 = vld [vmem:[#allocation2 + $0x10] sm:$0xf] }
  0x5b   : > { %v1267_v51 = vshrl.u32 %v1194_v41, 16  ;;  %v1259_v57 = vor.u32 %v1258_v34, %v1254_v29  ;;  %v2114_v58 = vsel %vm8384_vm12, %v6795_v37, %v2113_v40  ;;  %v2115_v62 = vrot.slane %v2113_v40, 4  ;;  %v1196_v63 = vld [vmem:[#allocation2 + $0x14] sm:$0x1]  ;;  %v2015_v10 = vld [vmem:[#allocation2 + $0xc] sm:$0xe] }
  0x5c   : > { %v7993_v53 = vld [vmem:[#allocation2 + $0x54] sm:$0xff]   ;;  %v1250_v4 = vrot.slane %v1249_v43, 4  ;;  %v1270_v9 = vshll.u32 %v1194_v41, 16  ;;  %v1276_v19 = vshll.u32 %v1195_v50, 16  ;;  %v1280_v22 = vshrl.u32 %v1195_v50, 16 }
  0x5d   : > { %7531 = vmatmul.mubr.bf16.gmra.mxu0 %v7993_v53  ;;  %v1260_v5 = vrot.slane %v1259_v57, 4  ;;  %v2117_v6 = vsel %vm8384_vm12, %v2115_v62, %v2116_v48  ;;  %v1269_v7 = vrot.slane %v1267_v51, 4  ;;  %v2016_v23 = vld [vmem:[#allocation2 + $0x10] sm:$0xf]  ;;  %v2017_v25 = vld [vmem:[#allocation2 + $0x14] sm:$0x1] }
  0x5e   : > { %v1255_v11 = vsel %vm8390_vm13, %v1250_v4, %v1254_v29  ;;  %v6827_v14 = vcombine.low %v2114_v58, %v2117_v6  ;;  %v1272_v31 = vrot.slane %v1270_v9, 5  ;;  %v1286_v32 = vshll.u32 %v1196_v63, 16  ;;  %v1197_v62 = vld [vmem:[#allocation2 + $0x18] sm:$0xf]  ;;  %v1198_v4 = vld [vmem:[#allocation2 + $0x1c] sm:$0xf] }
  0x5f   : > { %v7994_v3 = vld [vmem:[#allocation2 + $0xb4] sm:$0xff]   ;;  %v1265_v26 = vsel %vm8390_vm13, %v1260_v5, %v1264_v35  ;;  %v6796_v34 = vrot.slane %v2015_v10, 9  ;;  %v1278_v40 = vrot.slane %v1276_v19, 5  ;;  %v1282_v41 = vrot.slane %v1280_v22, 4  ;;  %v609_v35 = vld [vmem:[#allocation2 + $0x20] sm:$0x1] }
  0x60   : > { %7547 = vmatmul.mubr.bf16.gmra.mxu1 %v7994_v3  ;;  %v6771_v37 = vcombine.low %v1255_v11, %v1265_v26  ;;  %7614 = vmatprep.mubr.bf16.mxu0 %v6827_v14  ;;  %v2120_v43 = vrot.slane %v2016_v23, 5  ;;  %v390_v48 = vrot.slane %v8366_v39, 4  ;;  %v1273_v51 = vor.u32 %v1272_v31, %v1269_v7  ;;  %v2018_v14 = vld [vmem:[#allocation2 + $0x18] sm:$0xe]  ;;  %v8002_v19 = vld [vmem:[%s9855_s1 + $0x130] sm:$0xff]  }
  0x61   : > { %v2123_v29 = vrot.slane %v2017_v25, 5  ;;  %v1283_v53 = vor.u32 %v1282_v41, %v1278_v40  ;;  %v1288_v50 = vrot.slane %v1286_v32, 5  ;;  %v610_v3 = vsel %vm8177_vm7, %v305_v30, %v609_v35  ;;  %v2019_v25 = vld [vmem:[#allocation2 + $0x1c] sm:$0xf]  ;;  %v616_v26 = vld [vmem:[#allocation2 + $0x2c] sm:$0x1] }
  0x62   : > { %7566 = vmatprep.mubr.bf16.mxu1 %v6771_v37  ;;  %v2121_v57 = vsel %vm8384_vm12, %v6796_v34, %v2120_v43  ;;  %v2122_v58 = vrot.slane %v2120_v43, 4  ;;  %v1274_v63 = vrot.slane %v1273_v51, 4  ;;  %v1291_v5 = vshrl.u32 %v1197_v62, 16  ;;  %611 = vst [vmem:[#allocation2 + $0x20] sm:$0x1] %v610_v3 }
  0x63   : > { %v1294_v6 = vshll.u32 %v1197_v62, 16  ;;  %v1284_v7 = vrot.slane %v1283_v53, 4  ;;  %v1300_v10 = vshll.u32 %v1198_v4, 16  ;;  %v1304_v11 = vshrl.u32 %v1198_v4, 16  ;;  %v1200_v41 = vld [vmem:[#allocation2 + $0x24] sm:$0xf] }
  0x64   : > { %v2124_v9 = vsel %vm8384_vm12, %v2122_v58, %v2123_v29  ;;  %v1279_v8 = vsel %vm8390_vm13, %v1274_v63, %v1278_v40  ;;  %v1293_v30 = vrot.slane %v1291_v5, 4  ;;  %v6797_v37 = vrot.slane %v2018_v14, 9  ;;  %v1201_v53 = vld [vmem:[#allocation2 + $0x28] sm:$0xf] }
  0x65   : > { %v6828_v22 = vcombine.low %v2121_v57, %v2124_v9  ;;  %v1296_v23 = vrot.slane %v1294_v6, 5  ;;  %v1289_v31 = vsel %vm8390_vm13, %v1284_v7, %v1288_v50  ;;  %v8418_v32 = vrot.slane %v1300_v10, 5  ;;  %v2021_v57 = vld [vmem:[#allocation2 + $0x24] sm:$0xe]  ;;  %v8001_v50 = vld [vmem:[%s9855_s1 + $0xf0] sm:$0xff]  }
  0x66   : > { %v1306_v34 = vrot.slane %v1304_v11, 4  ;;  %v6772_v43 = vcombine.low %v1279_v8, %v1289_v31  ;;  %v2127_v29 = vrot.slane %v2019_v25, 5  ;;  %v617_v40 = vsel %vm8177_vm7, %v322_v54, %v616_v26  ;;  %v2022_v3 = vld [vmem:[#allocation2 + $0x28] sm:$0xf] }
  0x67   : > { %7615 = vmatmul.mubr.bf16.vlgmr.msra.gmra.mxu0 %v6828_v22  ;;  %v1297_v51 = vor.u32 %v1296_v23, %v1293_v30  ;;  %618 = vst [vmem:[#allocation2 + $0x2c] sm:$0x1] %v617_v40  ;;  %v1315_v35 = vshrl.u32 %v1200_v41, 16  ;;  %v1318_v62 = vshll.u32 %v1200_v41, 16  ;;  %v1324_v63 = vshll.u32 %v1201_v53, 16 }
  0x68   : > { %7695 = vmatpush3.bf16.msra.mxu0 %v8348_v2  ;;  %v1307_v58 = vor.u32 %v1306_v34, %v8418_v32  ;;  %v526_v54 = vrot.slane %v8368_v45, 4  ;;  %7567 = vmatmul.mubr.bf16.vlgmr.msra.gmra.mxu1 %v6772_v43  ;;  %v2129_v5 = vrot.slane %v2127_v29, 4  ;;  %v1328_v6 = vshrl.u32 %v1201_v53, 16  ;;  %v8003_v2 = vld [vmem:[%s9855_s1 + $0xe8] sm:$0xff]  }
  0x69   : > { %v1298_v4 = vrot.slane %v1297_v51, 4  ;;  %7696 = vmatprep.subr.bf16.mxu0 %v8002_v19  ;;  %7647 = vmatpush3.bf16.msra.mxu1 %v8343_v1  ;;  %v1317_v9 = vrot.slane %v1315_v35, 4  ;;  %v1320_v10 = vrot.slane %v1318_v62, 5  ;;  %v8437_v11 = vrot.slane %v1324_v63, 5  ;;  %v1199_v14 = vld [vmem:[#allocation2 + $0x20] sm:$0x1] }
  0x6a   : > { %v1308_v7 = vrot.slane %v1307_v58, 4  ;;  %v2020_v8 = vld [vmem:[#allocation2 + $0x20] sm:$0x1]  ;;  %v2128_v22 = vsel %vm8384_vm12, %v6797_v37, %v2127_v29  ;;  %v1330_v30 = vrot.slane %v1328_v6, 4  ;;  %v6798_v23 = vrot.slane %v2021_v57, 9  ;;  %7648 = vmatprep.subr.bf16.mxu1 %v8001_v50 }
  0x6b   : > { %v1310_v25 = vshll.u32 %v1199_v14, 16  ;;  %v2130_v26 = vrot.slane %v2020_v8, 5  ;;  %v1321_v31 = vor.u32 %v1320_v10, %v1317_v9  ;;  %v2134_v34 = vrot.slane %v2022_v3, 5  ;;  %v8006_v1 = vld [vmem:[%s9855_s1 + $0x120] sm:$0xff]   ;;  %v623_v51 = vld [vmem:[#allocation2 + $0x38] sm:$0x1] }
  0x6c   : > { %7697 = vmatpush3.bf16.msra.mxu0 %v8002_v19  ;;  %v1303_v41 = vsel %vm8390_vm13, %v1298_v4, %v8418_v32  ;;  %v1331_v43 = vor.u32 %v1330_v30, %v8437_v11  ;;  %v1203_v37 = vld [vmem:[#allocation2 + $0x30] sm:$0xf]  ;;  %v8451_v29 = vld [vmem:[%s9855_s1 + $0xe0] sm:$0xff]   ;;  %v1204_v32 = vld [vmem:[#allocation2 + $0x34] sm:$0xf]  ;;  %v624_v6 = vsel %vm8177_vm7, %v339_v27, %v623_v51 }
  0x6d   : > { %7698 = vmatprep.subr.bf16.mxu0 %v8004_v44  ;;  %v1312_v40 = vrot.slane %v1310_v25, 5  ;;  %v2131_v19 = vsel %vm8384_vm12, %v2129_v5, %v2130_v26  ;;  %v1322_v53 = vrot.slane %v1321_v31, 4  ;;  %v2135_v57 = vsel %vm8384_vm12, %v6798_v23, %v2134_v34  ;;  %7649 = vmatpush3.bf16.msra.mxu1 %v8001_v50  ;;  %v8457_v58 = vld [vmem:[#allocation2 + $0x30] sm:$0xe]  ;;  %625 = vst [vmem:[#allocation2 + $0x38] sm:$0x1] %v624_v6 }
  0x6e   : > { %v6829_v35 = vcombine.low %v2128_v22, %v2131_v19  ;;  %v1202_v62 = vld [vmem:[#allocation2 + $0x2c] sm:$0x1]  ;;  %v1332_v63 = vrot.slane %v1331_v43, 4  ;;  %v2136_v4 = vrot.slane %v2134_v34, 4  ;;  %7650 = vmatprep.subr.bf16.mxu1 %v8003_v2  ;;  %v2025_v14 = vld [vmem:[#allocation2 + $0x34] sm:$0xf] }
  0x6f   : > { %v2023_v3 = vld [vmem:[#allocation2 + $0x2c] sm:$0x1]  ;;  %v1313_v5 = vsel %vm8390_vm13, %v1308_v7, %v1312_v40  ;;  %v1327_v50 = vsel %vm8390_vm13, %v1322_v53, %v8437_v11  ;;  %v1334_v9 = vshll.u32 %v1202_v62, 16  ;;  %v1339_v22 = vshrl.u32 %v1203_v37, 16  ;;  %v630_v23 = vld [vmem:[#allocation2 + $0x44] sm:$0x1] }
  0x70   : > { %v2137_v10 = vrot.slane %v2023_v3, 5  ;;  %7699 = vmatpush3.bf16.msra.mxu0 %v8004_v44  ;;  %v6773_v8 = vcombine.low %v1303_v41, %v1313_v5  ;;  %7618 = vmatprep.mubr.bf16.mxu0 %v6829_v35  ;;  %v1342_v21 = vshll.u32 %v1203_v37, 16  ;;  %v1348_v30 = vshll.u32 %v1204_v32, 16  ;;  %v8008_v27 = vld [vmem:[%s9855_s1 + $0x118] sm:$0xff]   ;;  %v1207_v37 = vld [vmem:[#allocation2 + $0x40] sm:$0xf] }
  0x71   : > { %7700 = vmatprep.subr.bf16.mxu0 %v8006_v1  ;;  %v1336_v7 = vrot.slane %v1334_v9, 5  ;;  %v1352_v25 = vshrl.u32 %v1204_v32, 16  ;;  %v6799_v26 = vrot.slane %v8457_v58, 9  ;;  %v1206_v31 = vld [vmem:[#allocation2 + $0x3c] sm:$0xf]  ;;  %7651 = vmatpush3.bf16.msra.mxu1 %v8003_v2  ;;  %v1341_v41 = vrot.slane %v1339_v22, 4 }
  0x72   : > { %v2138_v11 = vsel %vm8384_vm12, %v2136_v4, %v2137_v10  ;;  %v8007_v44 = vld [vmem:[%s9855_s1 + $0xd8] sm:$0xff]   ;;  %7570 = vmatprep.mubr.bf16.mxu1 %v6773_v8  ;;  %v1344_v43 = vrot.slane %v1342_v21, 5  ;;  %v8477_v51 = vrot.slane %v1348_v30, 5  ;;  %7652 = vmatprep.subr.bf16.mxu1 %v8451_v29  ;;  %v8010_v40 = vld [vmem:[%s9855_s1 + $0x110] sm:$0xff]   ;;  %v2141_v53 = vrot.slane %v2025_v14, 5 }
  0x73   : > { %v6830_v34 = vcombine.low %v2135_v57, %v2138_v11  ;;  %v1337_v2 = vsel %vm8390_vm13, %v1332_v63, %v1336_v7  ;;  %v1354_v19 = vrot.slane %v1352_v25, 4  ;;  %v631_v57 = vsel %vm8177_vm7, %v356_v61, %v630_v23  ;;  %v2027_v32 = vld [vmem:[#allocation2 + $0x3c] sm:$0xe]  ;;  %v2028_v4 = vld [vmem:[#allocation2 + $0x40] sm:$0xf]  ;;  %v8009_v63 = vld [vmem:[%s9855_s1 + $0xd0] sm:$0xff]  }
  0x74   : > { %7701 = vmatpush3.bf16.msra.mxu0 %v8006_v1  ;;  %v6774_v58 = vcombine.low %v1327_v50, %v1337_v2  ;;  %v1345_v35 = vor.u32 %v1344_v43, %v1341_v41  ;;  %632 = vst [vmem:[#allocation2 + $0x44] sm:$0x1] %v631_v57  ;;  %v1363_v62 = vshrl.u32 %v1206_v31, 16  ;;  %v1366_v3 = vshll.u32 %v1206_v31, 16  ;;  %v637_v9 = vld [vmem:[#allocation2 + $0x50] sm:$0x1] }
  0x75   : > { %7619 = vmatmul.mubr.bf16.gmra.mxu0 %v6830_v34  ;;  %7702 = vmatprep.subr.bf16.mxu0 %v8008_v27  ;;  %v1355_v6 = vor.u32 %v1354_v19, %v8477_v51  ;;  %v2143_v56 = vrot.slane %v2141_v53, 4  ;;  %v1372_v5 = vshll.u32 %v1207_v37, 16  ;;  %v1205_v61 = vld [vmem:[#allocation2 + $0x38] sm:$0x1]  ;;  %v2142_v10 = vsel %vm8384_vm12, %v6799_v26, %v2141_v53  ;;  %v8516_v53 = vld [vmem:[%s9855_s1 + $0x100] sm:$0xff]  }
  0x76   : > { %7653 = vmatpush3.bf16.msra.mxu1 %v8451_v29  ;;  %v1346_v1 = vrot.slane %v1345_v35, 4  ;;  %v2026_v50 = vld [vmem:[#allocation2 + $0x38] sm:$0x1]  ;;  %v1365_v14 = vrot.slane %v1363_v62, 4  ;;  %v638_v8 = vsel %vm8177_vm7, %v373_v59, %v637_v9  ;;  %v1358_v21 = vshll.u32 %v1205_v61, 16 }
  0x77   : > { %7571 = vmatmul.mubr.bf16.gmra.mxu1 %v6774_v58  ;;  %7654 = vmatprep.subr.bf16.mxu1 %v8007_v44  ;;  %v1356_v22 = vrot.slane %v1355_v6, 4  ;;  %v2144_v30 = vrot.slane %v2026_v50, 5  ;;  %v1368_v23 = vrot.slane %v1366_v3, 5  ;;  %639 = vst [vmem:[#allocation2 + $0x50] sm:$0x1] %v638_v8  ;;  %v8503_v11 = vrot.slane %v1372_v5, 5 }
  0x78   : > { %v1209_v29 = vld [vmem:[#allocation2 + $0x48] sm:$0xf]  ;;  %7703 = vmatpush3.bf16.msra.mxu0 %v8008_v27  ;;  %v1351_v7 = vsel %vm8390_vm13, %v1346_v1, %v8477_v51  ;;  %v1376_v25 = vshrl.u32 %v1207_v37, 16  ;;  %v6800_v26 = vrot.slane %v2027_v32, 9  ;;  %v1360_v59 = vrot.slane %v1358_v21, 5 }
  0x79   : > { %7704 = vmatprep.subr.bf16.mxu0 %v8010_v40  ;;  %v2145_v31 = vsel %vm8384_vm12, %v2143_v56, %v2144_v30  ;;  %v1369_v34 = vor.u32 %v1368_v23, %v1365_v14  ;;  %v2148_v41 = vrot.slane %v2028_v4, 5  ;;  %v8011_v27 = vld [vmem:[%s9855_s1 + $0xc8] sm:$0xff]   ;;  %v1387_v2 = vshrl.u32 %v1209_v29, 16  ;;  %v644_v14 = vld [vmem:[#allocation2 + $0x5c] sm:$0x1] }
  0x7a   : > { %7655 = vmatpush3.bf16.msra.mxu1 %v8007_v44  ;;  %v6831_v43 = vcombine.low %v2142_v10, %v2145_v31  ;;  %v1378_v51 = vrot.slane %v1376_v25, 4  ;;  %v1210_v37 = vld [vmem:[#allocation2 + $0x4c] sm:$0xf]  ;;  %v1390_v19 = vshll.u32 %v1209_v29, 16  ;;  %v1361_v57 = vsel %vm8390_vm13, %v1356_v22, %v1360_v59  ;;  %v2030_v5 = vld [vmem:[#allocation2 + $0x48] sm:$0xe] }
  0x7b   : > { %7656 = vmatprep.subr.bf16.mxu1 %v8009_v63  ;;  %v1208_v32 = vld [vmem:[#allocation2 + $0x44] sm:$0x1]  ;;  %v1370_v44 = vrot.slane %v1369_v34, 4  ;;  %v2149_v35 = vsel %vm8384_vm12, %v6800_v26, %v2148_v41  ;;  %v2150_v62 = vrot.slane %v2148_v41, 4  ;;  %v6775_v3 = vcombine.low %v1351_v7, %v1361_v57  ;;  %v2031_v9 = vld [vmem:[#allocation2 + $0x4c] sm:$0xf] }
  0x7c   : > { %v2029_v58 = vld [vmem:[#allocation2 + $0x44] sm:$0x1]  ;;  %7705 = vmatpush3.bf16.msra.mxu0 %v8010_v40  ;;  %7622 = vmatprep.mubr.bf16.mxu0 %v6831_v43  ;;  %v1379_v4 = vor.u32 %v1378_v51, %v8503_v11  ;;  %v1382_v6 = vshll.u32 %v1208_v32, 16  ;;  %v1389_v1 = vrot.slane %v1387_v2, 4  ;;  %v1392_v50 = vrot.slane %v1390_v19, 5 }
  0x7d   : > { %v2151_v56 = vrot.slane %v2029_v58, 5  ;;  %7706 = vmatprep.subr.bf16.mxu0 %v8012_v47  ;;  %v1375_v61 = vsel %vm8390_vm13, %v1370_v44, %v8503_v11  ;;  %v1396_v10 = vshll.u32 %v1210_v37, 16  ;;  %7574 = vmatprep.mubr.bf16.mxu1 %v6775_v3  ;;  %v1400_v30 = vshrl.u32 %v1210_v37, 16  ;;  %v1212_v23 = vld [vmem:[#allocation2 + $0x54] sm:$0xf]  ;;  %v8013_v7 = vld [vmem:[%s9855_s1 + $0xc0] sm:$0xff]  }
  0x7e   : > { %7657 = vmatpush3.bf16.msra.mxu1 %v8009_v63  ;;  %v1380_v40 = vrot.slane %v1379_v4, 4  ;;  %v1384_v8 = vrot.slane %v1382_v6, 5  ;;  %v1211_v21 = vld [vmem:[#allocation2 + $0x50] sm:$0x1]  ;;  %v1213_v29 = vld [vmem:[#allocation2 + $0x58] sm:$0xf]  ;;  %v1393_v25 = vor.u32 %v1392_v50, %v1389_v1 }
  0x7f   : > { %v2152_v22 = vsel %vm8384_vm12, %v2150_v62, %v2151_v56  ;;  %7658 = vmatprep.subr.bf16.mxu1 %v8011_v27  ;;  %v1398_v26 = vrot.slane %v1396_v10, 5  ;;  %v1406_v59 = vshll.u32 %v1211_v21, 16  ;;  %v2032_v63 = vld [vmem:[#allocation2 + $0x50] sm:$0x1]  ;;  %v8531_v31 = vld [vmem:[#allocation2 + $0x54] sm:$0xe]  ;;  %v645_v62 = vsel %vm8177_vm7, %v390_v48, %v644_v14 }
  0x80   : > { %v6832_v11 = vcombine.low %v2149_v35, %v2152_v22  ;;  %7707 = vmatpush3.bf16.msra.mxu0 %v8012_v47  ;;  %v1385_v34 = vsel %vm8390_vm13, %v1380_v40, %v1384_v8  ;;  %v1402_v41 = vrot.slane %v1400_v30, 4  ;;  %v6801_v43 = vrot.slane %v2030_v5, 9  ;;  %v8539_v37 = vld [vmem:[%s9855_s1 + $0x1b8] sm:$0xff]   ;;  %646 = vst [vmem:[#allocation2 + $0x5c] sm:$0x1] %v645_v62 }
  0x81   : > { %v2155_v51 = vrot.slane %v2031_v9, 5  ;;  %7708 = vmatprep.subr.bf16.mxu0 %v8516_v53  ;;  %v6776_v2 = vcombine.low %v1375_v61, %v1385_v34  ;;  %v1394_v19 = vrot.slane %v1393_v25, 4  ;;  %v1408_v57 = vrot.slane %v1406_v59, 5  ;;  %v2034_v44 = vld [vmem:[#allocation2 + $0x58] sm:$0xf] }
  0x82   : > { %7623 = vmatmul.mubr.bf16.gmra.mxu0 %v6832_v11  ;;  %v2158_v32 = vrot.slane %v2032_v63, 5  ;;  %7659 = vmatpush3.bf16.msra.mxu1 %v8011_v27  ;;  %v1403_v47 = vor.u32 %v1402_v41, %v1398_v26  ;;  %v8550_v3 = vld [vmem:[%s9855_s1 + $0x178] sm:$0xff]   ;;  %v1411_v4 = vshrl.u32 %v1212_v23, 16  ;;  %v1414_v6 = vshll.u32 %v1212_v23, 16  ;;  %v651_v5 = vld [vmem:[#allocation2 + $0x68] sm:$0x1] }
  0x83   : > { %v2156_v58 = vsel %vm8384_vm12, %v6801_v43, %v2155_v51  ;;  %v2157_v35 = vrot.slane %v2155_v51, 4  ;;  %7660 = vmatprep.subr.bf16.mxu1 %v8013_v7  ;;  %7575 = vmatmul.mubr.bf16.gmra.mxu1 %v6776_v2  ;;  %v1399_v27 = vsel %vm8390_vm13, %v1394_v19, %v1398_v26  ;;  %v1420_v56 = vshll.u32 %v1213_v29, 16  ;;  %v1215_v1 = vld [vmem:[#allocation2 + $0x60] sm:$0xf]  ;;  %v1216_v8 = vld [vmem:[#allocation2 + $0x64] sm:$0xf] }
  0x84   : > { %7709 = vmatpush3.bf16.msra.mxu0 %v8516_v53  ;;  %v1404_v39 = vrot.slane %v1403_v47, 4  ;;  %v1424_v9 = vshrl.u32 %v1213_v29, 16  ;;  %v6802_v61 = vrot.slane %v8531_v31, 9  ;;  %v1413_v10 = vrot.slane %v1411_v4, 4  ;;  %v658_v26 = vld [vmem:[#allocation2 + $0x74] sm:$0x1] }
  0x85   : > { %v2159_v48 = vsel %vm8384_vm12, %v2157_v35, %v2158_v32  ;;  %7790 = vmatprep.subr.bf16.mxu0 %v8539_v37  ;;  %v1416_v14 = vrot.slane %v1414_v6, 5  ;;  %v1422_v40 = vrot.slane %v1420_v56, 5  ;;  %v2162_v21 = vrot.slane %v2034_v44, 5  ;;  %v2036_v31 = vld [vmem:[#allocation2 + $0x60] sm:$0xe] }
  0x86   : > { %v6833_v50 = vcombine.low %v2156_v58, %v2159_v48  ;;  %7661 = vmatpush3.bf16.msra.mxu1 %v8013_v7  ;;  %v1409_v22 = vsel %vm8390_vm13, %v1404_v39, %v1408_v57  ;;  %v1426_v53 = vrot.slane %v1424_v9, 4  ;;  %v652_v30 = vsel %vm8177_vm7, %v407_v60, %v651_v5  ;;  %v2037_v34 = vld [vmem:[#allocation2 + $0x64] sm:$0xf]  ;;  %v1218_v60 = vld [vmem:[#allocation2 + $0x6c] sm:$0xf] }
  0x87   : > { %7742 = vmatprep.subr.bf16.mxu1 %v8550_v3  ;;  %v6777_v23 = vcombine.low %v1399_v27, %v1409_v22  ;;  %v1417_v29 = vor.u32 %v1416_v14, %v1413_v10  ;;  %653 = vst [vmem:[#allocation2 + $0x68] sm:$0x1] %v652_v30  ;;  %v1435_v11 = vshrl.u32 %v1215_v1, 16  ;;  %v1438_v25 = vshll.u32 %v1215_v1, 16  ;;  %v1214_v2 = vld [vmem:[#allocation2 + $0x5c] sm:$0x1] }
  0x88   : > { %7626 = vmatprep.mubr.bf16.mxu0 %v6833_v50  ;;  %v1427_v7 = vor.u32 %v1426_v53, %v1422_v40  ;;  %v2164_v59 = vrot.slane %v2162_v21, 4  ;;  %v1444_v63 = vshll.u32 %v1216_v8, 16  ;;  %v1448_v51 = vshrl.u32 %v1216_v8, 16  ;;  %v2035_v57 = vld [vmem:[#allocation2 + $0x5c] sm:$0x1] }
  0x89   : > { %7578 = vmatprep.mubr.bf16.mxu1 %v6777_v23  ;;  %v1418_v41 = vrot.slane %v1417_v29, 4  ;;  %v1437_v15 = vrot.slane %v1435_v11, 4  ;;  %v1440_v43 = vrot.slane %v1438_v25, 5  ;;  %v2163_v32 = vsel %vm8384_vm12, %v6802_v61, %v2162_v21  ;;  %v1219_v5 = vld [vmem:[#allocation2 + $0x70] sm:$0xf] }
  0x8a   : > { %v1428_v19 = vrot.slane %v1427_v7, 4  ;;  %v1446_v44 = vrot.slane %v1444_v63, 5  ;;  %v659_v47 = vsel %vm8177_vm7, %v424_v24, %v658_v26  ;;  %v1430_v35 = vshll.u32 %v1214_v2, 16  ;;  %v2039_v30 = vld [vmem:[#allocation2 + $0x6c] sm:$0xe] }
  0x8b   : > { %v1423_v58 = vsel %vm8390_vm13, %v1418_v41, %v1422_v40  ;;  %v2165_v62 = vrot.slane %v2035_v57, 5  ;;  %v1441_v27 = vor.u32 %v1440_v43, %v1437_v15  ;;  %660 = vst [vmem:[#allocation2 + $0x74] sm:$0x1] %v659_v47  ;;  %v1450_v4 = vrot.slane %v1448_v51, 4  ;;  %v2040_v23 = vld [vmem:[#allocation2 + $0x70] sm:$0xf] }
  0x8c   : > { %v6803_v6 = vrot.slane %v2036_v31, 9  ;;  %v2169_v56 = vrot.slane %v2037_v34, 5  ;;  %v1459_v39 = vshrl.u32 %v1218_v60, 16  ;;  %v1432_v48 = vrot.slane %v1430_v35, 5  ;;  %v665_v7 = vld [vmem:[#allocation2 + $0x80] sm:$0x1] }
  0x8d   : > { %v2166_v9 = vsel %vm8384_vm12, %v2164_v59, %v2165_v62  ;;  %v1442_v46 = vrot.slane %v1441_v27, 4  ;;  %v1462_v61 = vshll.u32 %v1218_v60, 16  ;;  %v1451_v50 = vor.u32 %v1450_v4, %v1446_v44  ;;  %v1221_v41 = vld [vmem:[#allocation2 + $0x78] sm:$0xf]  ;;  %v1233_v12 = vld [vmem:[#allocation2 + $0xa8] sm:$0xf] }
  0x8e   : > { %v6834_v1 = vcombine.low %v2163_v32, %v2166_v9  ;;  %v1217_v24 = vld [vmem:[#allocation2 + $0x68] sm:$0x1]  ;;  %v2170_v14 = vsel %vm8384_vm12, %v6803_v6, %v2169_v56  ;;  %v2171_v40 = vrot.slane %v2169_v56, 4  ;;  %v1433_v8 = vsel %vm8390_vm13, %v1428_v19, %v1432_v48  ;;  %v2042_v6 = vld [vmem:[#allocation2 + $0x78] sm:$0xe] }
  0x8f   : > { %v2038_v10 = vld [vmem:[#allocation2 + $0x68] sm:$0x1]  ;;  %v1447_v22 = vsel %vm8390_vm13, %v1442_v46, %v1446_v44  ;;  %v1454_v53 = vshll.u32 %v1217_v24, 16  ;;  %v6778_v29 = vcombine.low %v1423_v58, %v1433_v8  ;;  %v1452_v11 = vrot.slane %v1451_v50, 4  ;;  %v1222_v58 = vld [vmem:[#allocation2 + $0x7c] sm:$0xf] }
  0x90   : > { %v2172_v21 = vrot.slane %v2038_v10, 5  ;;  %7627 = vmatmul.mubr.bf16.gmra.mxu0 %v6834_v1  ;;  %v1461_v25 = vrot.slane %v1459_v39, 4  ;;  %v1464_v26 = vrot.slane %v1462_v61, 5  ;;  %v1468_v31 = vshll.u32 %v1219_v5, 16  ;;  %v2043_v56 = vld [vmem:[#allocation2 + $0x7c] sm:$0xf] }
  0x91   : > { %v1456_v59 = vrot.slane %v1454_v53, 5  ;;  %v1472_v34 = vshrl.u32 %v1219_v5, 16  ;;  %7579 = vmatmul.mubr.bf16.gmra.mxu1 %v6778_v29  ;;  %v6804_v2 = vrot.slane %v2039_v30, 9  ;;  %v2176_v19 = vrot.slane %v2040_v23, 5  ;;  %v672_v46 = vld [vmem:[#allocation2 + $0x8c] sm:$0x1] }
  0x92   : > { %v2173_v63 = vsel %vm8384_vm12, %v2171_v40, %v2172_v21  ;;  %v1220_v43 = vld [vmem:[#allocation2 + $0x74] sm:$0x1]  ;;  %v1465_v51 = vor.u32 %v1464_v26, %v1461_v25  ;;  %v1470_v32 = vrot.slane %v1468_v31, 5  ;;  %v666_v9 = vsel %vm8177_vm7, %v441_v49, %v665_v7  ;;  %v1224_v61 = vld [vmem:[#allocation2 + $0x84] sm:$0xf] }
  0x93   : > { %v6835_v15 = vcombine.low %v2170_v14, %v2173_v63  ;;  %v2041_v60 = vld [vmem:[#allocation2 + $0x74] sm:$0x1]  ;;  %v1457_v57 = vsel %vm8390_vm13, %v1452_v11, %v1456_v59  ;;  %v1474_v44 = vrot.slane %v1472_v34, 4  ;;  %v1478_v47 = vshll.u32 %v1220_v43, 16  ;;  %667 = vst [vmem:[#allocation2 + $0x80] sm:$0x1] %v666_v9 }
  0x94   : > { %v6779_v35 = vcombine.low %v1447_v22, %v1457_v57  ;;  %v1466_v62 = vrot.slane %v1465_v51, 4  ;;  %v2177_v27 = vsel %vm8384_vm12, %v6804_v2, %v2176_v19  ;;  %v2178_v4 = vrot.slane %v2176_v19, 4  ;;  %v1225_v14 = vld [vmem:[#allocation2 + $0x88] sm:$0xf]  ;;  %v679_v31 = vld [vmem:[#allocation2 + $0x98] sm:$0x1] }
  0x95   : > { %7630 = vmatprep.mubr.bf16.mxu0 %v6835_v15  ;;  %v1475_v5 = vor.u32 %v1474_v44, %v1470_v32  ;;  %v1480_v39 = vrot.slane %v1478_v47, 5  ;;  %v2179_v48 = vrot.slane %v2041_v60, 5  ;;  %v1483_v24 = vshrl.u32 %v1221_v41, 16  ;;  %v2045_v43 = vld [vmem:[#allocation2 + $0x84] sm:$0xe] }
  0x96   : > { %7582 = vmatprep.mubr.bf16.mxu1 %v6779_v35  ;;  %v1471_v1 = vsel %vm8390_vm13, %v1466_v62, %v1470_v32  ;;  %v1486_v50 = vshll.u32 %v1221_v41, 16  ;;  %v1492_v10 = vshll.u32 %v1222_v58, 16  ;;  %v1496_v22 = vshrl.u32 %v1222_v58, 16  ;;  %v2046_v51 = vld [vmem:[#allocation2 + $0x88] sm:$0xf] }
  0x97   : > { %v1476_v40 = vrot.slane %v1475_v5, 4  ;;  %v2180_v8 = vsel %vm8384_vm12, %v2178_v4, %v2179_v48  ;;  %v6805_v28 = vrot.slane %v2042_v6, 9  ;;  %v1485_v21 = vrot.slane %v1483_v24, 4  ;;  %v1227_v57 = vld [vmem:[#allocation2 + $0x90] sm:$0xf] }
  0x98   : > { %v6836_v53 = vcombine.low %v2177_v27, %v2180_v8  ;;  %v1488_v49 = vrot.slane %v1486_v50, 5  ;;  %v1494_v30 = vrot.slane %v1492_v10, 5  ;;  %v1498_v29 = vrot.slane %v1496_v22, 4  ;;  %v1228_v48 = vld [vmem:[#allocation2 + $0x94] sm:$0xf] }
  0x99   : > { %v1481_v23 = vsel %vm8390_vm13, %v1476_v40, %v1480_v39  ;;  %v2183_v11 = vrot.slane %v2043_v56, 5  ;;  %v673_v25 = vsel %vm8177_vm7, %v458_v20, %v672_v46  ;;  %v1507_v59 = vshrl.u32 %v1224_v61, 16  ;;  %v2048_v24 = vld [vmem:[#allocation2 + $0x90] sm:$0xe]  ;;  %v3882_v18 = vld [vmem:[#allocation2 + $0x20] sm:$0x1] }
  0x9a   : > { %v6780_v26 = vcombine.low %v1471_v1, %v1481_v23  ;;  %7631 = vmatmul.mubr.bf16.gmra.mxu0 %v6836_v53  ;;  %v1489_v7 = vor.u32 %v1488_v49, %v1485_v21  ;;  %674 = vst [vmem:[#allocation2 + $0x8c] sm:$0x1] %v673_v25  ;;  %v1510_v63 = vshll.u32 %v1224_v61, 16  ;;  %v1499_v34 = vor.u32 %v1498_v29, %v1494_v30  ;;  %v1223_v32 = vld [vmem:[#allocation2 + $0x80] sm:$0x1] }
  0x9b   : > { %v2185_v41 = vrot.slane %v2183_v11, 4  ;;  %v1516_v15 = vshll.u32 %v1225_v14, 16  ;;  %v1509_v2 = vrot.slane %v1507_v59, 4  ;;  %v1520_v55 = vshrl.u32 %v1225_v14, 16  ;;  %v2044_v44 = vld [vmem:[#allocation2 + $0x80] sm:$0x1] }
  0x9c   : > { %7583 = vmatmul.mubr.bf16.gmra.mxu1 %v6780_v26  ;;  %v1490_v60 = vrot.slane %v1489_v7, 4  ;;  %v1512_v19 = vrot.slane %v1510_v63, 5  ;;  %v1500_v20 = vrot.slane %v1499_v34, 4  ;;  %v2184_v47 = vsel %vm8384_vm12, %v6805_v28, %v2183_v11  ;;  %v2049_v49 = vld [vmem:[#allocation2 + $0x94] sm:$0xf] }
  0x9d   : > { %v1518_v58 = vrot.slane %v1516_v15, 5  ;;  %v680_v35 = vsel %vm8177_vm7, %v475_v52, %v679_v31  ;;  %v1502_v27 = vshll.u32 %v1223_v32, 16  ;;  %v2186_v4 = vrot.slane %v2044_v44, 5  ;;  %v686_v25 = vld [vmem:[#allocation2 + $0xa4] sm:$0x1] }
  0x9e   : > { %v1495_v62 = vsel %vm8390_vm13, %v1490_v60, %v1494_v30  ;;  %v1513_v6 = vor.u32 %v1512_v19, %v1509_v2  ;;  %681 = vst [vmem:[#allocation2 + $0x98] sm:$0x1] %v680_v35  ;;  %v1522_v56 = vrot.slane %v1520_v55, 4  ;;  %v6806_v5 = vrot.slane %v2045_v43, 9  ;;  %v1230_v31 = vld [vmem:[#allocation2 + $0x9c] sm:$0xf] }
  0x9f   : > { %v2190_v39 = vrot.slane %v2046_v51, 5  ;;  %v1531_v9 = vshrl.u32 %v1227_v57, 16  ;;  %v1504_v46 = vrot.slane %v1502_v27, 5  ;;  %v2187_v61 = vsel %vm8384_vm12, %v2185_v41, %v2186_v4  ;;  %v1231_v34 = vld [vmem:[#allocation2 + $0xa0] sm:$0xf] }
  0xa0   : > { %v1514_v38 = vrot.slane %v1513_v6, 4  ;;  %v1534_v1 = vshll.u32 %v1227_v57, 16  ;;  %v6837_v52 = vcombine.low %v2184_v47, %v2187_v61  ;;  %v1523_v10 = vor.u32 %v1522_v56, %v1518_v58  ;;  %v2051_v35 = vld [vmem:[#allocation2 + $0x9c] sm:$0xe]  ;;  %v2052_v56 = vld [vmem:[#allocation2 + $0xa0] sm:$0xf] }
  0xa1   : > { %v1226_v50 = vld [vmem:[#allocation2 + $0x8c] sm:$0x1]  ;;  %v2191_v40 = vsel %vm8384_vm12, %v6806_v5, %v2190_v39  ;;  %v2192_v8 = vrot.slane %v2190_v39, 4  ;;  %v1505_v22 = vsel %vm8390_vm13, %v1500_v20, %v1504_v46  ;;  %v1533_v29 = vrot.slane %v1531_v9, 4  ;;  %v693_v46 = vld [vmem:[#allocation2 + $0xb0] sm:$0x1] }
  0xa2   : > { %v2047_v14 = vld [vmem:[#allocation2 + $0x8c] sm:$0x1]  ;;  %v1519_v28 = vsel %vm8390_vm13, %v1514_v38, %v1518_v58  ;;  %v1526_v53 = vshll.u32 %v1226_v50, 16  ;;  %v6781_v30 = vcombine.low %v1495_v62, %v1505_v22  ;;  %7634 = vmatprep.mubr.bf16.mxu0 %v6837_v52  ;;  %v1524_v23 = vrot.slane %v1523_v10, 4 }
  0xa3   : > { %v2193_v21 = vrot.slane %v2047_v14, 5  ;;  %v1536_v11 = vrot.slane %v1534_v1, 5  ;;  %v1540_v59 = vshll.u32 %v1228_v48, 16  ;;  %v1544_v63 = vshrl.u32 %v1228_v48, 16  ;;  %v1234_v14 = vld [vmem:[#allocation2 + $0xac] sm:$0xf] }
  0xa4   : > { %v1528_v26 = vrot.slane %v1526_v53, 5  ;;  %7586 = vmatprep.mubr.bf16.mxu1 %v6781_v30  ;;  %v6807_v60 = vrot.slane %v2048_v24, 9  ;;  %v2197_v2 = vrot.slane %v2049_v49, 5  ;;  %v687_v6 = vsel %vm8177_vm7, %v492_v16, %v686_v25  ;;  %v700_v53 = vld [vmem:[#allocation2 + $0xbc] sm:$0x1] }
  0xa5   : > { %v2194_v7 = vsel %vm8384_vm12, %v2192_v8, %v2193_v21  ;;  %v1229_v15 = vld [vmem:[#allocation2 + $0x98] sm:$0x1]  ;;  %v1537_v43 = vor.u32 %v1536_v11, %v1533_v29  ;;  %v1542_v55 = vrot.slane %v1540_v59, 5  ;;  %v1546_v57 = vrot.slane %v1544_v63, 4  ;;  %688 = vst [vmem:[#allocation2 + $0xa4] sm:$0x1] %v687_v6 }
  0xa6   : > { %v6838_v41 = vcombine.low %v2191_v40, %v2194_v7  ;;  %v2050_v51 = vld [vmem:[#allocation2 + $0x98] sm:$0x1]  ;;  %v1529_v19 = vsel %vm8390_vm13, %v1524_v23, %v1528_v26  ;;  %v1550_v32 = vshll.u32 %v1229_v15, 16  ;;  %v2198_v47 = vsel %vm8384_vm12, %v6807_v60, %v2197_v2  ;;  %v2054_v29 = vld [vmem:[#allocation2 + $0xa8] sm:$0xe] }
  0xa7   : > { %v6782_v20 = vcombine.low %v1519_v28, %v1529_v19  ;;  %v1538_v44 = vrot.slane %v1537_v43, 4  ;;  %v2199_v58 = vrot.slane %v2197_v2, 4  ;;  %v1547_v62 = vor.u32 %v1546_v57, %v1542_v55  ;;  %v2055_v11 = vld [vmem:[#allocation2 + $0xac] sm:$0xf]  ;;  %v1236_v25 = vld [vmem:[#allocation2 + $0xb4] sm:$0xf] }
  0xa8   : > { %7635 = vmatmul.mubr.bf16.gmra.mxu0 %v6838_v41  ;;  %v1552_v27 = vrot.slane %v1550_v32, 5  ;;  %v2200_v4 = vrot.slane %v2050_v51, 5  ;;  %v1555_v39 = vshrl.u32 %v1230_v31, 16  ;;  %v1558_v48 = vshll.u32 %v1230_v31, 16 }
  0xa9   : > { %7587 = vmatmul.mubr.bf16.gmra.mxu1 %v6782_v20  ;;  %v1543_v5 = vsel %vm8390_vm13, %v1538_v44, %v1542_v55  ;;  %v1564_v9 = vshll.u32 %v1231_v34, 16  ;;  %v1548_v61 = vrot.slane %v1547_v62, 4  ;;  %v1568_v1 = vshrl.u32 %v1231_v34, 16 }
  0xaa   : > { %v2201_v38 = vsel %vm8384_vm12, %v2199_v58, %v2200_v4  ;;  %v6808_v24 = vrot.slane %v2051_v35, 9  ;;  %v1557_v50 = vrot.slane %v1555_v39, 4  ;;  %v1560_v16 = vrot.slane %v1558_v48, 5  ;;  %v2057_v4 = vld [vmem:[#allocation2 + $0xb4] sm:$0xe] }
  0xab   : > { %v6839_v52 = vcombine.low %v2198_v47, %v2201_v38  ;;  %v1566_v10 = vrot.slane %v1564_v9, 5  ;;  %v1553_v40 = vsel %vm8390_vm13, %v1548_v61, %v1552_v27  ;;  %v1570_v8 = vrot.slane %v1568_v1, 4  ;;  %v1237_v47 = vld [vmem:[#allocation2 + $0xb8] sm:$0xf] }
  0xac   : > { %v2204_v22 = vrot.slane %v2052_v56, 5  ;;  %v694_v28 = vsel %vm8177_vm7, %v509_v17, %v693_v46  ;;  %v6783_v21 = vcombine.low %v1543_v5, %v1553_v40  ;;  %v1561_v49 = vor.u32 %v1560_v16, %v1557_v50  ;;  %v1232_v41 = vld [vmem:[#allocation2 + $0xa4] sm:$0x1]  ;;  %v2058_v1 = vld [vmem:[#allocation2 + $0xb8] sm:$0xf] }
  0xad   : > { %7638 = vmatprep.mubr.bf16.mxu0 %v6839_v52  ;;  %695 = vst [vmem:[#allocation2 + $0xb0] sm:$0x1] %v694_v28  ;;  %v1579_v30 = vshrl.u32 %v1233_v12, 16  ;;  %v1582_v23 = vshll.u32 %v1233_v12, 16  ;;  %v1571_v26 = vor.u32 %v1570_v8, %v1566_v10  ;;  %v1588_v59 = vshll.u32 %v1234_v14, 16 }
  0xae   : > { %v2206_v7 = vrot.slane %v2204_v22, 4  ;;  %7590 = vmatprep.mubr.bf16.mxu1 %v6783_v21  ;;  %v1562_v63 = vrot.slane %v1561_v49, 4  ;;  %v1592_v34 = vshrl.u32 %v1234_v14, 16  ;;  %v2053_v15 = vld [vmem:[#allocation2 + $0xa4] sm:$0x1]  ;;  %v2205_v43 = vsel %vm8384_vm12, %v6808_v24, %v2204_v22 }
  0xaf   : > { %v1581_v31 = vrot.slane %v1579_v30, 4  ;;  %v1584_v0 = vrot.slane %v1582_v23, 5  ;;  %v1572_v17 = vrot.slane %v1571_v26, 4  ;;  %v1590_v51 = vrot.slane %v1588_v59, 5  ;;  %v3059_v16 = vld [vmem:[#allocation2 + $0xc] sm:$0xf] }
  0xb0   : > { %v701_v60 = vsel %vm8177_vm7, %v526_v54, %v700_v53  ;;  %v1567_v2 = vsel %vm8390_vm13, %v1562_v63, %v1566_v10  ;;  %v1574_v19 = vshll.u32 %v1232_v41, 16  ;;  %v2207_v55 = vrot.slane %v2053_v15, 5  ;;  %v3060_v22 = vld [vmem:[#allocation2 + $0x10] sm:$0xf] }
  0xb1   : > { %v1585_v57 = vor.u32 %v1584_v0, %v1581_v31  ;;  %702 = vst [vmem:[#allocation2 + $0xbc] sm:$0x1] %v701_v60  ;;  %v1594_v32 = vrot.slane %v1592_v34, 4  ;;  %v6809_v20 = vrot.slane %v2054_v29, 9  ;;  %v2211_v44 = vrot.slane %v2055_v11, 5 }
  0xb2   : > { %v1603_v58 = vshrl.u32 %v1236_v25, 16  ;;  %v1576_v35 = vrot.slane %v1574_v19, 5  ;;  %v2208_v62 = vsel %vm8384_vm12, %v2206_v7, %v2207_v55  ;;  %v1606_v27 = vshll.u32 %v1236_v25, 16  ;;  %v3061_v7 = vld [vmem:[#allocation2 + $0x14] sm:$0x1] }
  0xb3   : > { %v1586_v45 = vrot.slane %v1585_v57, 4  ;;  %v6840_v54 = vcombine.low %v2205_v43, %v2208_v62  ;;  %v1595_v56 = vor.u32 %v1594_v32, %v1590_v51  ;;  %v2212_v39 = vsel %vm8384_vm12, %v6809_v20, %v2211_v44  ;;  %v3062_v34 = vld [vmem:[#allocation2 + $0x18] sm:$0xf]  ;;  %v3064_v57 = vld [vmem:[#allocation2 + $0x20] sm:$0x1] }
  0xb4   : > { %v1235_v6 = vld [vmem:[#allocation2 + $0xb0] sm:$0x1]  ;;  %v2213_v48 = vrot.slane %v2211_v44, 4  ;;  %v1577_v9 = vsel %vm8390_vm13, %v1572_v17, %v1576_v35  ;;  %v1605_v52 = vrot.slane %v1603_v58, 4  ;;  %v1608_v50 = vrot.slane %v1606_v27, 5 }
  0xb5   : > { %v2056_v5 = vld [vmem:[#allocation2 + $0xb0] sm:$0x1]  ;;  %v1591_v46 = vsel %vm8390_vm13, %v1586_v45, %v1590_v51  ;;  %v1598_v61 = vshll.u32 %v1235_v6, 16  ;;  %v6784_v24 = vcombine.low %v1567_v2, %v1577_v9  ;;  %7639 = vmatmul.mubr.bf16.gmra.mxu0 %v6840_v54  ;;  %v1596_v12 = vrot.slane %v1595_v56, 4  ;;  %v3063_v51 = vld [vmem:[#allocation2 + $0x1c] sm:$0xf] }
  0xb6   : > { %v2214_v38 = vrot.slane %v2056_v5, 5  ;;  %v1612_v40 = vshll.u32 %v1237_v47, 16  ;;  %v1616_v8 = vshrl.u32 %v1237_v47, 16  ;;  %v1609_v21 = vor.u32 %v1608_v50, %v1605_v52  ;;  %v3067_v52 = vld [vmem:[#allocation2 + $0x2c] sm:$0x1] }
  0xb7   : > { %v1600_v10 = vrot.slane %v1598_v61, 5  ;;  %7591 = vmatmul.mubr.bf16.gmra.mxu1 %v6784_v24  ;;  %v6810_v30 = vrot.slane %v2057_v4, 9  ;;  %v2218_v23 = vrot.slane %v2058_v1, 5  ;;  %v3108_v43 = vshrl.u32 %v3059_v16, 16  ;;  %v8015_v4 = vld [vmem:[#allocation2 + $0xc] sm:$0xff]  }
  0xb8   : > { %v2215_v14 = vsel %vm8384_vm12, %v2213_v48, %v2214_v38  ;;  %v1238_v53 = vld [vmem:[#allocation2 + $0xbc] sm:$0x1]  ;;  %v1614_v11 = vrot.slane %v1612_v40, 5  ;;  %v1618_v25 = vrot.slane %v1616_v8, 4  ;;  %v1610_v63 = vrot.slane %v1609_v21, 4 }
  0xb9   : > { %v6841_v28 = vcombine.low %v2212_v39, %v2215_v14  ;;  %v2059_v49 = vld [vmem:[#allocation2 + $0xbc] sm:$0x1]  ;;  %v1601_v29 = vsel %vm8390_vm13, %v1596_v12, %v1600_v10  ;;  %v1622_v26 = vshll.u32 %v1238_v53, 16  ;;  %v2219_v31 = vsel %vm8384_vm12, %v6810_v30, %v2218_v23  ;;  %v3066_v61 = vld [vmem:[#allocation2 + $0x28] sm:$0xf] }
  0xba   : > { %v6785_v59 = vcombine.low %v1591_v46, %v1601_v29  ;;  %v2220_v0 = vrot.slane %v2218_v23, 4  ;;  %v1619_v41 = vor.u32 %v1618_v25, %v1614_v11  ;;  %v2221_v15 = vrot.slane %v2059_v49, 5  ;;  %v3065_v46 = vld [vmem:[#allocation2 + $0x24] sm:$0xf]  ;;  %v8016_v49 = vld [vmem:[#allocation2 + $0x18] sm:$0xff]  }
  0xbb   : > { %7642 = vmatprep.mubr.bf16.mxu0 %v6841_v28  ;;  %v1624_v17 = vrot.slane %v1622_v26, 5  ;;  %v1615_v60 = vsel %vm8390_vm13, %v1610_v63, %v1614_v11  ;;  %v3111_v2 = vshll.u32 %v3059_v16, 16  ;;  %v3117_v19 = vshll.u32 %v3060_v22, 16  ;;  %v3068_v29 = vld [vmem:[#allocation2 + $0x30] sm:$0xf] }
  0xbc   : > { %7594 = vmatprep.mubr.bf16.mxu1 %v6785_v59  ;;  %v3121_v55 = vshrl.u32 %v3060_v22, 16  ;;  %v1620_v32 = vrot.slane %v1619_v41, 4  ;;  %v2222_v20 = vsel %vm8384_vm12, %v2220_v0, %v2221_v15  ;;  %v3110_v44 = vrot.slane %v3108_v43, 4  ;;  %v3069_v11 = vld [vmem:[#allocation2 + $0x34] sm:$0xf]  ;;  %v8019_v59 = vld [vmem:[#allocation2 + $0x24] sm:$0xff]  }
  0xbd   : > { %v3127_v47 = vshll.u32 %v3061_v7, 16  ;;  %v6842_v58 = vcombine.low %v2219_v31, %v2222_v20  ;;  %v3113_v35 = vrot.slane %v3111_v2, 5  ;;  %v3119_v62 = vrot.slane %v3117_v19, 5  ;;  %v3070_v31 = vld [vmem:[#allocation2 + $0x38] sm:$0x1]  ;;  %v8021_v15 = vld [vmem:[%s9855_s1 + $0x170] sm:$0xff]  }
  0xbe   : > { %v3123_v45 = vrot.slane %v3121_v55, 4  ;;  %v1625_v27 = vsel %vm8390_vm13, %v1620_v32, %v1624_v17  ;;  %v3132_v6 = vshrl.u32 %v3062_v34, 16  ;;  %v3135_v56 = vshll.u32 %v3062_v34, 16 }
  0xbf   : > { %v3129_v54 = vrot.slane %v3127_v47, 5  ;;  %v6786_v5 = vcombine.low %v1615_v60, %v1625_v27  ;;  %7643 = vmatmul.mubr.bf16.gmra.mxu0 %v6842_v58  ;;  %v3114_v39 = vor.u32 %v3113_v35, %v3110_v44  ;;  %v3141_v9 = vshll.u32 %v3063_v51, 16  ;;  %v8022_v35 = vld [vmem:[%s9855_s1 + $0x1b0] sm:$0xff]  }
  0xc0   : > { %v3124_v48 = vor.u32 %v3123_v45, %v3119_v62  ;;  %v3134_v38 = vrot.slane %v3132_v6, 4  ;;  %v3137_v1 = vrot.slane %v3135_v56, 5  ;;  %v3145_v24 = vshrl.u32 %v3063_v51, 16  ;;  %v3072_v6 = vld [vmem:[#allocation2 + $0x40] sm:$0xf]  ;;  %v8025_v56 = vld [vmem:[%s9855_s1 + $0x168] sm:$0xff]  }
  0xc1   : > { %v3151_v12 = vshll.u32 %v3064_v57, 16  ;;  %7595 = vmatmul.mubr.bf16.gmra.mxu1 %v6786_v5  ;;  %v3115_v50 = vrot.slane %v3114_v39, 4  ;;  %v3143_v10 = vrot.slane %v3141_v9, 5  ;;  %v3156_v14 = vshrl.u32 %v3065_v46, 16  ;;  %v3073_v9 = vld [vmem:[#allocation2 + $0x44] sm:$0x1] }
  0xc2   : > { %v3125_v16 = vrot.slane %v3124_v48, 4  ;;  %7662 = vmatprep.mubr.bf16.mxu1 %v8015_v4  ;;  %v3138_v40 = vor.u32 %v3137_v1, %v3134_v38  ;;  %v3147_v8 = vrot.slane %v3145_v24, 4  ;;  %v3159_v28 = vshll.u32 %v3065_v46, 16  ;;  %v8020_v38 = vld [vmem:[#allocation2 + $0x30] sm:$0xff]  }
  0xc3   : > { %v3153_v22 = vrot.slane %v3151_v12, 5  ;;  %v3120_v53 = vsel %vm8390_vm13, %v3115_v50, %v3119_v62  ;;  %v3158_v30 = vrot.slane %v3156_v14, 4  ;;  %v3165_v23 = vshll.u32 %v3066_v61, 16  ;;  %v3074_v14 = vld [vmem:[#allocation2 + $0x48] sm:$0xf] }
  0xc4   : > { %v3130_v21 = vsel %vm8390_vm13, %v3125_v16, %v3129_v54  ;;  %v3139_v26 = vrot.slane %v3138_v40, 4  ;;  %v3148_v7 = vor.u32 %v3147_v8, %v3143_v10  ;;  %v3161_v63 = vrot.slane %v3159_v28, 5  ;;  %v3071_v54 = vld [vmem:[#allocation2 + $0x3c] sm:$0xf]  ;;  %v8026_v40 = vld [vmem:[%s9855_s1 + $0x1a8] sm:$0xff]  }
  0xc5   : > { %v6907_v25 = vcombine.low %v3120_v53, %v3130_v21  ;;  %v3167_v0 = vrot.slane %v3165_v23, 5  ;;  %v3169_v34 = vshrl.u32 %v3066_v61, 16  ;;  %v3175_v41 = vshll.u32 %v3067_v52, 16  ;;  %v3075_v21 = vld [vmem:[#allocation2 + $0x4c] sm:$0xf] }
  0xc6   : > { %v3180_v17 = vshrl.u32 %v3068_v29, 16  ;;  %v3144_v43 = vsel %vm8390_vm13, %v3139_v26, %v3143_v10  ;;  %v3149_v51 = vrot.slane %v3148_v7, 4  ;;  %v3162_v60 = vor.u32 %v3161_v63, %v3158_v30  ;;  %v8030_v63 = vld [vmem:[%s9855_s1 + $0x1a0] sm:$0xff]  }
  0xc7   : > { %7710 = vmatprep.mubr.bf16.mxu0 %v6907_v25  ;;  %v3183_v2 = vshll.u32 %v3068_v29, 16  ;;  %v3171_v19 = vrot.slane %v3169_v34, 4  ;;  %v3177_v55 = vrot.slane %v3175_v41, 5  ;;  %v3189_v32 = vshll.u32 %v3069_v11, 16 }
  0xc8   : > { %v3182_v57 = vrot.slane %v3180_v17, 4  ;;  %v3154_v20 = vsel %vm8390_vm13, %v3149_v51, %v3153_v22  ;;  %v3163_v44 = vrot.slane %v3162_v60, 4  ;;  %v3193_v58 = vshrl.u32 %v3069_v11, 16  ;;  %v3076_v11 = vld [vmem:[#allocation2 + $0x50] sm:$0x1]  ;;  %v8033_v60 = vld [vmem:[%s9855_s1 + $0x158] sm:$0xff]  }
  0xc9   : > { %v3185_v47 = vrot.slane %v3183_v2, 5  ;;  %7663 = vmatmul.mubr.bf16.vlgmr.msra.gmra.mxu1 %v8016_v49  ;;  %v6908_v62 = vcombine.low %v3144_v43, %v3154_v20  ;;  %v3172_v45 = vor.u32 %v3171_v19, %v3167_v0  ;;  %v3191_v27 = vrot.slane %v3189_v32, 5  ;;  %v8024_v20 = vld [vmem:[#allocation2 + $0x48] sm:$0xff]  }
  0xca   : > { %v3199_v4 = vshll.u32 %v3070_v31, 16  ;;  %7743 = vmatpush3.bf16.msra.mxu1 %v8550_v3  ;;  %7666 = vmatprep.mubr.bf16.mxu1 %v8019_v59  ;;  %v3168_v5 = vsel %vm8390_vm13, %v3163_v44, %v3167_v0  ;;  %v3195_v48 = vrot.slane %v3193_v58, 4  ;;  %v3204_v46 = vshrl.u32 %v3071_v54, 16  ;;  %v8023_v3 = vld [vmem:[#allocation2 + $0x3c] sm:$0xff]   ;;  %v3078_v58 = vld [vmem:[#allocation2 + $0x58] sm:$0xf] }
  0xcb   : > { %v3186_v39 = vor.u32 %v3185_v47, %v3182_v57  ;;  %7711 = vmatmul.mubr.bf16.vlgmr.msra.gmra.mxu0 %v6908_v62  ;;  %v3173_v61 = vrot.slane %v3172_v45, 4  ;;  %7744 = vmatprep.subr.bf16.mxu1 %v8021_v15  ;;  %v3207_v24 = vshll.u32 %v3071_v54, 16  ;;  %v3213_v12 = vshll.u32 %v3072_v6, 16  ;;  %v3077_v47 = vld [vmem:[#allocation2 + $0x54] sm:$0xf] }
  0xcc   : > { %v3201_v1 = vrot.slane %v3199_v4, 5  ;;  %7791 = vmatpush3.bf16.msra.mxu0 %v8539_v37  ;;  %v3196_v50 = vor.u32 %v3195_v48, %v3191_v27  ;;  %v3206_v16 = vrot.slane %v3204_v46, 4  ;;  %v3217_v10 = vshrl.u32 %v3072_v6, 16  ;;  %v8029_v37 = vld [vmem:[%s9855_s1 + $0x160] sm:$0xff]   ;;  %v8027_v4 = vld [vmem:[#allocation2 + $0x54] sm:$0xff]  }
  0xcd   : > { %v3187_v52 = vrot.slane %v3186_v39, 4  ;;  %v3178_v8 = vsel %vm8390_vm13, %v3173_v61, %v3177_v55  ;;  %7792 = vmatprep.subr.bf16.mxu0 %v8022_v35  ;;  %v3209_v22 = vrot.slane %v3207_v24, 5  ;;  %v3215_v28 = vrot.slane %v3213_v12, 5  ;;  %v3080_v48 = vld [vmem:[#allocation2 + $0x60] sm:$0xf] }
  0xce   : > { %v3223_v53 = vshll.u32 %v3073_v9, 16  ;;  %v6909_v49 = vcombine.low %v3168_v5, %v3178_v8  ;;  %v3197_v23 = vrot.slane %v3196_v50, 4  ;;  %7745 = vmatpush3.bf16.msra.mxu1 %v8021_v15  ;;  %v3219_v29 = vrot.slane %v3217_v10, 4  ;;  %v8034_v9 = vld [vmem:[%s9855_s1 + $0x198] sm:$0xff]   ;;  %v3081_v24 = vld [vmem:[#allocation2 + $0x64] sm:$0xf] }
  0xcf   : > { %v3192_v30 = vsel %vm8390_vm13, %v3187_v52, %v3191_v27  ;;  %v3210_v25 = vor.u32 %v3209_v22, %v3206_v16  ;;  %v3228_v7 = vshrl.u32 %v3074_v14, 16  ;;  %v3231_v59 = vshll.u32 %v3074_v14, 16  ;;  %7746 = vmatprep.subr.bf16.mxu1 %v8025_v56  ;;  %v8037_v10 = vld [vmem:[%s9855_s1 + $0x150] sm:$0xff]  }
  0xd0   : > { %v3225_v26 = vrot.slane %v3223_v53, 5  ;;  %7714 = vmatprep.mubr.bf16.mxu0 %v6909_v49  ;;  %v3202_v31 = vsel %vm8390_vm13, %v3197_v23, %v3201_v1  ;;  %7793 = vmatpush3.bf16.msra.mxu0 %v8022_v35  ;;  %v3220_v0 = vor.u32 %v3219_v29, %v3215_v28  ;;  %v3237_v34 = vshll.u32 %v3075_v21, 16  ;;  %v3079_v35 = vld [vmem:[#allocation2 + $0x5c] sm:$0x1] }
  0xd1   : > { %v3241_v41 = vshrl.u32 %v3075_v21, 16  ;;  %7667 = vmatmul.mubr.bf16.gmra.mxu1 %v8020_v38  ;;  %v6910_v17 = vcombine.low %v3192_v30, %v3202_v31  ;;  %v3211_v15 = vrot.slane %v3210_v25, 4  ;;  %v3230_v43 = vrot.slane %v3228_v7, 4  ;;  %7794 = vmatprep.subr.bf16.mxu0 %v8026_v40  ;;  %v8041_v25 = vld [vmem:[%s9855_s1 + $0x148] sm:$0xff]   ;;  %v8028_v7 = vld [vmem:[#allocation2 + $0x60] sm:$0xff]  }
  0xd2   : > { %v3233_v51 = vrot.slane %v3231_v59, 5  ;;  %7670 = vmatprep.mubr.bf16.mxu1 %v8023_v3  ;;  %v3221_v2 = vrot.slane %v3220_v0, 4  ;;  %v3239_v19 = vrot.slane %v3237_v34, 5  ;;  %v3247_v57 = vshll.u32 %v3076_v11, 16  ;;  %7747 = vmatpush3.bf16.msra.mxu1 %v8025_v56  ;;  %v3082_v3 = vld [vmem:[#allocation2 + $0x68] sm:$0x1] }
  0xd3   : > { %v3243_v55 = vrot.slane %v3241_v41, 4  ;;  %7715 = vmatmul.mubr.bf16.gmra.mxu0 %v6910_v17  ;;  %v3216_v32 = vsel %vm8390_vm13, %v3211_v15, %v3215_v28  ;;  %7748 = vmatprep.subr.bf16.mxu1 %v8029_v37  ;;  %v3252_v54 = vshrl.u32 %v3077_v47, 16  ;;  %v3255_v5 = vshll.u32 %v3077_v47, 16  ;;  %v8038_v28 = vld [vmem:[%s9855_s1 + $0x190] sm:$0xff]   ;;  %v3083_v17 = vld [vmem:[#allocation2 + $0x6c] sm:$0xf] }
  0xd4   : > { %v3234_v44 = vor.u32 %v3233_v51, %v3230_v43  ;;  %v3226_v62 = vsel %vm8390_vm13, %v3221_v2, %v3225_v26  ;;  %v3249_v27 = vrot.slane %v3247_v57, 5  ;;  %7795 = vmatpush3.bf16.msra.mxu0 %v8026_v40  ;;  %v3261_v39 = vshll.u32 %v3078_v58, 16  ;;  %v8031_v41 = vld [vmem:[#allocation2 + $0x6c] sm:$0xff]   ;;  %v3085_v51 = vld [vmem:[#allocation2 + $0x74] sm:$0x1] }
  0xd5   : > { %v3244_v45 = vor.u32 %v3243_v55, %v3239_v19  ;;  %v6911_v6 = vcombine.low %v3216_v32, %v3226_v62  ;;  %7796 = vmatprep.subr.bf16.mxu0 %v8030_v63  ;;  %v3254_v61 = vrot.slane %v3252_v54, 4  ;;  %v3265_v38 = vshrl.u32 %v3078_v58, 16  ;;  %v3084_v43 = vld [vmem:[#allocation2 + $0x70] sm:$0xf]  ;;  %v3086_v62 = vld [vmem:[#allocation2 + $0x78] sm:$0xf] }
  0xd6   : > { %v3235_v56 = vrot.slane %v3234_v44, 4  ;;  %v3271_v1 = vshll.u32 %v3079_v35, 16  ;;  %7749 = vmatpush3.bf16.msra.mxu1 %v8029_v37  ;;  %v3257_v52 = vrot.slane %v3255_v5, 5  ;;  %v3263_v50 = vrot.slane %v3261_v39, 5 }
  0xd7   : > { %v3245_v46 = vrot.slane %v3244_v45, 4  ;;  %7718 = vmatprep.mubr.bf16.mxu0 %v6911_v6  ;;  %v3276_v16 = vshrl.u32 %v3080_v48, 16  ;;  %7750 = vmatprep.subr.bf16.mxu1 %v8033_v60  ;;  %v3267_v40 = vrot.slane %v3265_v38, 4  ;;  %v3279_v22 = vshll.u32 %v3080_v48, 16  ;;  %v8045_v45 = vld [vmem:[%s9855_s1 + $0x140] sm:$0xff]  }
  0xd8   : > { %v3240_v12 = vsel %vm8390_vm13, %v3235_v56, %v3239_v19  ;;  %v3273_v8 = vrot.slane %v3271_v1, 5  ;;  %7797 = vmatpush3.bf16.msra.mxu0 %v8030_v63  ;;  %v3258_v21 = vor.u32 %v3257_v52, %v3254_v61  ;;  %v3285_v49 = vshll.u32 %v3081_v24, 16  ;;  %v8042_v19 = vld [vmem:[%s9855_s1 + $0x188] sm:$0xff]   ;;  %v3087_v56 = vld [vmem:[#allocation2 + $0x7c] sm:$0xf]  ;;  %v8046_v61 = vld [vmem:[%s9855_s1 + $0x180] sm:$0xff]  }
  0xd9   : > { %v3250_v14 = vsel %vm8390_vm13, %v3245_v46, %v3249_v27  ;;  %7671 = vmatmul.mubr.bf16.gmra.mxu1 %v8024_v20  ;;  %v3278_v37 = vrot.slane %v3276_v16, 4  ;;  %7798 = vmatprep.subr.bf16.mxu0 %v8034_v9  ;;  %v3268_v30 = vor.u32 %v3267_v40, %v3263_v50  ;;  %v3281_v23 = vrot.slane %v3279_v22, 5  ;;  %v3088_v48 = vld [vmem:[#allocation2 + $0x80] sm:$0x1]  ;;  %v8745_v52 = vld [vmem:[%s9855_s1 + $0x1f8] sm:$0xff]  }
  0xda   : > { %v6912_v53 = vcombine.low %v3240_v12, %v3250_v14  ;;  %7674 = vmatprep.mubr.bf16.mxu1 %v8027_v4  ;;  %v3289_v29 = vshrl.u32 %v3081_v24, 16  ;;  %v3295_v11 = vshll.u32 %v3082_v3, 16  ;;  %7751 = vmatpush3.bf16.msra.mxu1 %v8033_v60  ;;  %v3259_v26 = vrot.slane %v3258_v21, 4 }
  0xdb   : > { %v3287_v59 = vrot.slane %v3285_v49, 5  ;;  %7752 = vmatprep.subr.bf16.mxu1 %v8037_v10  ;;  %v3269_v63 = vrot.slane %v3268_v30, 4  ;;  %v3282_v31 = vor.u32 %v3281_v23, %v3278_v37  ;;  %v3300_v60 = vshrl.u32 %v3083_v17, 16  ;;  %v8752_v37 = vld [vmem:[%s9855_s1 + $0x238] sm:$0xff]  }
  0xdc   : > { %7719 = vmatmul.mubr.bf16.gmra.mxu0 %v6912_v53  ;;  %v3291_v0 = vrot.slane %v3289_v29, 4  ;;  %v3297_v34 = vrot.slane %v3295_v11, 5  ;;  %v3264_v15 = vsel %vm8390_vm13, %v3259_v26, %v3263_v50  ;;  %v3303_v2 = vshll.u32 %v3083_v17, 16  ;;  %v8035_v29 = vld [vmem:[#allocation2 + $0x84] sm:$0xff]  }
  0xdd   : > { %7799 = vmatpush3.bf16.msra.mxu0 %v8034_v9  ;;  %v3274_v55 = vsel %vm8390_vm13, %v3269_v63, %v3273_v8  ;;  %v3283_v57 = vrot.slane %v3282_v31, 4  ;;  %v3309_v20 = vshll.u32 %v3084_v43, 16  ;;  %v3302_v47 = vrot.slane %v3300_v60, 4  ;;  %v3089_v11 = vld [vmem:[#allocation2 + $0x84] sm:$0xf] }
  0xde   : > { %7800 = vmatprep.subr.bf16.mxu0 %v8038_v28  ;;  %v3292_v32 = vor.u32 %v3291_v0, %v3287_v59  ;;  %7753 = vmatpush3.bf16.msra.mxu1 %v8037_v10  ;;  %v6913_v44 = vcombine.low %v3264_v15, %v3274_v55  ;;  %v3305_v58 = vrot.slane %v3303_v2, 5  ;;  %v3313_v35 = vshrl.u32 %v3084_v43, 16  ;;  %v8032_v10 = vld [vmem:[#allocation2 + $0x78] sm:$0xff]  }
  0xdf   : > { %7754 = vmatprep.subr.bf16.mxu1 %v8041_v25  ;;  %v3288_v27 = vsel %vm8390_vm13, %v3283_v57, %v3287_v59  ;;  %v3311_v54 = vrot.slane %v3309_v20, 5  ;;  %v3319_v6 = vshll.u32 %v3085_v51, 16  ;;  %v3324_v9 = vshrl.u32 %v3086_v62, 16  ;;  %v3092_v57 = vld [vmem:[#allocation2 + $0x90] sm:$0xf] }
  0xe0   : > { %v3293_v4 = vrot.slane %v3292_v32, 4  ;;  %7722 = vmatprep.mubr.bf16.mxu0 %v6913_v44  ;;  %v3306_v5 = vor.u32 %v3305_v58, %v3302_v47  ;;  %v3315_v39 = vrot.slane %v3313_v35, 4  ;;  %v3327_v46 = vshll.u32 %v3086_v62, 16  ;;  %v3093_v32 = vld [vmem:[#allocation2 + $0x94] sm:$0xf] }
  0xe1   : > { %7801 = vmatpush3.bf16.msra.mxu0 %v8038_v28  ;;  %7675 = vmatmul.mubr.bf16.gmra.mxu1 %v8028_v7  ;;  %v3321_v1 = vrot.slane %v3319_v6, 5  ;;  %v3333_v24 = vshll.u32 %v3087_v56, 16  ;;  %v3337_v12 = vshrl.u32 %v3087_v56, 16  ;;  %v3326_v14 = vrot.slane %v3324_v9, 4  ;;  %v3091_v7 = vld [vmem:[#allocation2 + $0x8c] sm:$0x1] }
  0xe2   : > { %v3298_v38 = vsel %vm8390_vm13, %v3293_v4, %v3297_v34  ;;  %7678 = vmatprep.mubr.bf16.mxu1 %v8031_v41  ;;  %7755 = vmatpush3.bf16.msra.mxu1 %v8041_v25  ;;  %v3307_v3 = vrot.slane %v3306_v5, 4  ;;  %v3316_v16 = vor.u32 %v3315_v39, %v3311_v54  ;;  %v3329_v40 = vrot.slane %v3327_v46, 5  ;;  %v3090_v25 = vld [vmem:[#allocation2 + $0x88] sm:$0xf]  ;;  %v3094_v58 = vld [vmem:[#allocation2 + $0x98] sm:$0x1] }
  0xe3   : > { %v6914_v50 = vcombine.low %v3288_v27, %v3298_v38  ;;  %7802 = vmatprep.subr.bf16.mxu0 %v8042_v19  ;;  %7756 = vmatprep.subr.bf16.mxu1 %v8045_v45  ;;  %v3335_v8 = vrot.slane %v3333_v24, 5  ;;  %v3339_v22 = vrot.slane %v3337_v12, 4  ;;  %v3343_v28 = vshll.u32 %v3088_v48, 16  ;;  %v8039_v39 = vld [vmem:[#allocation2 + $0x9c] sm:$0xff]  }
  0xe4   : > { %v3312_v53 = vsel %vm8390_vm13, %v3307_v3, %v3311_v54  ;;  %v3317_v21 = vrot.slane %v3316_v16, 4  ;;  %v3330_v49 = vor.u32 %v3329_v40, %v3326_v14  ;;  %v3348_v59 = vshrl.u32 %v3089_v11, 16  ;;  %v3095_v14 = vld [vmem:[#allocation2 + $0x9c] sm:$0xf]  ;;  %v3096_v40 = vld [vmem:[#allocation2 + $0xa0] sm:$0xf] }
  0xe5   : > { %7803 = vmatpush3.bf16.msra.mxu0 %v8042_v19  ;;  %v3340_v30 = vor.u32 %v3339_v22, %v3335_v8  ;;  %v3345_v23 = vrot.slane %v3343_v28, 5  ;;  %v3351_v63 = vshll.u32 %v3089_v11, 16  ;;  %v3357_v31 = vshll.u32 %v3090_v25, 16 }
  0xe6   : > { %7723 = vmatmul.mubr.bf16.gmra.mxu0 %v6914_v50  ;;  %7804 = vmatprep.subr.bf16.mxu0 %v8046_v61  ;;  %v3322_v26 = vsel %vm8390_vm13, %v3317_v21, %v3321_v1  ;;  %v3331_v34 = vrot.slane %v3330_v49, 4  ;;  %v3361_v17 = vshrl.u32 %v3090_v25, 16  ;;  %v3350_v15 = vrot.slane %v3348_v59, 4  ;;  %v8040_v59 = vld [vmem:[#allocation2 + $0xa8] sm:$0xff]  }
  0xe7   : > { %7757 = vmatpush3.bf16.msra.mxu1 %v8045_v45  ;;  %v6915_v0 = vcombine.low %v3312_v53, %v3322_v26  ;;  %v3341_v41 = vrot.slane %v3340_v30, 4  ;;  %v3353_v43 = vrot.slane %v3351_v63, 5  ;;  %v3359_v51 = vrot.slane %v3357_v31, 5  ;;  %v8036_v45 = vld [vmem:[#allocation2 + $0x90] sm:$0xff]   ;;  %v3098_v63 = vld [vmem:[#allocation2 + $0xa8] sm:$0xf] }
  0xe8   : > { %7838 = vmatprep.subr.bf16.mxu1 %v8745_v52  ;;  %v3367_v60 = vshll.u32 %v3091_v7, 16  ;;  %v3336_v2 = vsel %vm8390_vm13, %v3331_v34, %v3335_v8  ;;  %v3363_v55 = vrot.slane %v3361_v17, 4  ;;  %v3372_v35 = vshrl.u32 %v3092_v57, 16  ;;  %v3097_v8 = vld [vmem:[#allocation2 + $0xa4] sm:$0x1] }
  0xe9   : > { %7805 = vmatpush3.bf16.msra.mxu0 %v8046_v61  ;;  %7679 = vmatmul.mubr.bf16.gmra.mxu1 %v8032_v10  ;;  %v3346_v19 = vsel %vm8390_vm13, %v3341_v41, %v3345_v23  ;;  %v3354_v44 = vor.u32 %v3353_v43, %v3350_v15  ;;  %v3375_v27 = vshll.u32 %v3092_v57, 16  ;;  %v3381_v4 = vshll.u32 %v3093_v32, 16  ;;  %v3099_v15 = vld [vmem:[#allocation2 + $0xac] sm:$0xf]  ;;  %v3100_v43 = vld [vmem:[#allocation2 + $0xb0] sm:$0x1] }
  0xea   : > { %7886 = vmatprep.subr.bf16.mxu0 %v8752_v37  ;;  %7726 = vmatprep.mubr.bf16.mxu0 %v6915_v0  ;;  %v6916_v20 = vcombine.low %v3336_v2, %v3346_v19  ;;  %v3369_v47 = vrot.slane %v3367_v60, 5  ;;  %v3364_v62 = vor.u32 %v3363_v55, %v3359_v51  ;;  %v3385_v54 = vshrl.u32 %v3093_v32, 16 }
  0xeb   : > { %7682 = vmatprep.mubr.bf16.mxu1 %v8035_v29  ;;  %v3355_v6 = vrot.slane %v3354_v44, 4  ;;  %v3374_v56 = vrot.slane %v3372_v35, 4  ;;  %v3391_v5 = vshll.u32 %v3094_v58, 16  ;;  %v3377_v61 = vrot.slane %v3375_v27, 5 }
  0xec   : > { %v3365_v46 = vrot.slane %v3364_v62, 4  ;;  %v3383_v38 = vrot.slane %v3381_v4, 5  ;;  %v3387_v1 = vrot.slane %v3385_v54, 4  ;;  %v3396_v53 = vshrl.u32 %v3095_v14, 16 }
  0xed   : > { %v3360_v24 = vsel %vm8390_vm13, %v3355_v6, %v3359_v51  ;;  %v3393_v12 = vrot.slane %v3391_v5, 5  ;;  %v3378_v16 = vor.u32 %v3377_v61, %v3374_v56  ;;  %v3399_v21 = vshll.u32 %v3095_v14, 16  ;;  %v3102_v61 = vld [vmem:[#allocation2 + $0xb8] sm:$0xf] }
  0xee   : > { %7727 = vmatmul.mubr.bf16.gmra.mxu0 %v6916_v20  ;;  %v3370_v3 = vsel %vm8390_vm13, %v3365_v46, %v3369_v47  ;;  %v3388_v10 = vor.u32 %v3387_v1, %v3383_v38  ;;  %v3405_v49 = vshll.u32 %v3096_v40, 16  ;;  %v3409_v29 = vshrl.u32 %v3096_v40, 16  ;;  %v8043_v47 = vld [vmem:[#allocation2 + $0xb4] sm:$0xff]  }
  0xef   : > { %v6917_v28 = vcombine.low %v3360_v24, %v3370_v3  ;;  %v3379_v30 = vrot.slane %v3378_v16, 4  ;;  %v3415_v11 = vshll.u32 %v3097_v8, 16  ;;  %v3398_v25 = vrot.slane %v3396_v53, 4  ;;  %v3101_v46 = vld [vmem:[#allocation2 + $0xb4] sm:$0xf] }
  0xf0   : > { %v3389_v23 = vrot.slane %v3388_v10, 4  ;;  %v3401_v26 = vrot.slane %v3399_v21, 5  ;;  %v3407_v7 = vrot.slane %v3405_v49, 5  ;;  %v3411_v41 = vrot.slane %v3409_v29, 4  ;;  %v3103_v24 = vld [vmem:[#allocation2 + $0xbc] sm:$0x1] }
  0xf1   : > { %7683 = vmatmul.mubr.bf16.gmra.mxu1 %v8036_v45  ;;  %7730 = vmatprep.mubr.bf16.mxu0 %v6917_v28  ;;  %v3384_v0 = vsel %vm8390_vm13, %v3379_v30, %v3383_v38  ;;  %v3417_v17 = vrot.slane %v3415_v11, 5  ;;  %v3420_v19 = vshrl.u32 %v3098_v63, 16  ;;  %v3423_v55 = vshll.u32 %v3098_v63, 16  ;;  %v267_v16 = vld [vmem:[%s8141_s23 + $0x78] sm:$0xf] }
  0xf2   : > { %7686 = vmatprep.mubr.bf16.mxu1 %v8039_v39  ;;  %v3394_v34 = vsel %vm8390_vm13, %v3389_v23, %v3393_v12  ;;  %v3402_v2 = vor.u32 %v3401_v26, %v3398_v25  ;;  %v3412_v57 = vor.u32 %v3411_v41, %v3407_v7  ;;  %v3429_v32 = vshll.u32 %v3099_v15, 16  ;;  %v268_v23 = vld [vmem:[%s8141_s23 + $0x7c] sm:$0xf]  ;;  %v703_v41 = vld [vmem:[#allocation2 + $0xc0] sm:$0xf] }
  0xf3   : > { %v8762_v48 = vpop.f32.mrf.mxu0  ;;  %v6918_v60 = vcombine.low %v3384_v0, %v3394_v34  ;;  %v3433_v20 = vshrl.u32 %v3099_v15, 16  ;;  %v3439_v44 = vshll.u32 %v3100_v43, 16  ;;  %v3422_v35 = vrot.slane %v3420_v19, 4 }
  0xf4   : > { %v8764_v9 = vpop.f32.mrf.mxu1  ;;  %v3403_v58 = vrot.slane %v3402_v2, 4  ;;  %v3425_v62 = vrot.slane %v3423_v55, 5  ;;  %v3413_v27 = vrot.slane %v3412_v57, 4  ;;  %v3431_v4 = vrot.slane %v3429_v32, 5  ;;  %v3877_v57 = vld [vmem:[#allocation2 + $0xc] sm:$0xe] }
  0xf5   : > { %v8768_v50 = vpop.f32.mrf.mxu0  ;;  %v3435_v54 = vrot.slane %v3433_v20, 4  ;;  %v3441_v6 = vrot.slane %v3439_v44, 5  ;;  %v3444_v12 = vshrl.u32 %v3101_v46, 16  ;;  %v3447_v3 = vshll.u32 %v3101_v46, 16  ;;  %v3878_v32 = vld [vmem:[#allocation2 + $0x10] sm:$0xf] }
  0xf6   : > { %v8772_v22 = vpop.f32.mrf.mxu1  ;;  %7731 = vmatmul.mubr.bf16.gmra.mxu0 %v6918_v60  ;;  %v3408_v5 = vsel %vm8390_vm13, %v3403_v58, %v3407_v7  ;;  %v3426_v39 = vor.u32 %v3425_v62, %v3422_v35  ;;  %v3418_v38 = vsel %vm8390_vm13, %v3413_v27, %v3417_v17  ;;  %v3453_v40 = vshll.u32 %v3102_v61, 16  ;;  %v3879_v62 = vld [vmem:[#allocation2 + $0x14] sm:$0x1] }
  0xf7   : > { %v8774_v31 = vpop.f32.mrf.mxu0  ;;  %v3436_v1 = vor.u32 %v3435_v54, %v3431_v4  ;;  %v6919_v10 = vcombine.low %v3408_v5, %v3418_v38  ;;  %v3457_v8 = vshrl.u32 %v3102_v61, 16  ;;  %v3446_v21 = vrot.slane %v3444_v12, 4  ;;  %v3880_v12 = vld [vmem:[#allocation2 + $0x18] sm:$0xe] }
  0xf8   : > { %v8780_v51 = vpop.f32.mrf.mxu1  ;;  %v3427_v14 = vrot.slane %v3426_v39, 4  ;;  %v3449_v49 = vrot.slane %v3447_v3, 5  ;;  %v3463_v30 = vshll.u32 %v3103_v24, 16  ;;  %v3455_v25 = vrot.slane %v3453_v40, 5  ;;  %v3881_v3 = vld [vmem:[#allocation2 + $0x1c] sm:$0xf] }
  0xf9   : > { %v8782_v45 = vpop.f32.mrf.mxu0  ;;  %7687 = vmatmul.mubr.bf16.gmra.mxu1 %v8040_v59  ;;  %v3437_v53 = vrot.slane %v3436_v1, 4  ;;  %7734 = vmatprep.mubr.bf16.mxu0 %v6919_v10  ;;  %v3459_v26 = vrot.slane %v3457_v8, 4  ;;  %v528_v7 = vshrl.u32 %v267_v16, 16  ;;  %v531_v34 = vshll.u32 %v267_v16, 16 }
  0xfa   : > { %v8784_v56 = vpop.f32.mrf.mxu1  ;;  %7690 = vmatprep.mubr.bf16.mxu1 %v8043_v47  ;;  %v3432_v11 = vsel %vm8390_vm13, %v3427_v14, %v3431_v4  ;;  %v3450_v63 = vor.u32 %v3449_v49, %v3446_v21  ;;  %v3465_v0 = vrot.slane %v3463_v30, 5  ;;  %v536_v60 = vshrl.u32 %v268_v23, 16  ;;  %v707_v4 = vld [vmem:[#allocation2 + $0xc8] sm:$0x1]  ;;  %v3885_v30 = vld [vmem:[#allocation2 + $0x2c] sm:$0x1] }
  0xfb   : > { %v3442_v59 = vsel %vm8390_vm13, %v3437_v53, %v3441_v6  ;;  %v3460_v15 = vor.u32 %v3459_v26, %v3455_v25  ;;  %v530_v43 = vrot.slane %v528_v7, 7  ;;  %v539_v55 = vshll.u32 %v268_v23, 16  ;;  %v3883_v53 = vld [vmem:[#allocation2 + $0x24] sm:$0xe]  ;;  %v3884_v49 = vld [vmem:[#allocation2 + $0x28] sm:$0xf] }
  0xfc   : > { %v6920_v17 = vcombine.low %v3432_v11, %v3442_v59  ;;  %v3451_v19 = vrot.slane %v3450_v63, 4  ;;  %v538_v35 = vrot.slane %v536_v60, 7  ;;  %v3975_v54 = vrot.slane %v3878_v32, 5  ;;  %v3886_v60 = vld [vmem:[#allocation2 + $0x30] sm:$0xe] }
  0xfd   : > { %v3461_v44 = vrot.slane %v3460_v15, 4  ;;  %v533_v47 = vor.u32 %v531_v34, %v530_v43  ;;  %v534_v58 = vrot.slane %v530_v43, 4  ;;  %v6931_v1 = vrot.slane %v3877_v57, 9  ;;  %v3887_v34 = vld [vmem:[#allocation2 + $0x34] sm:$0xf] }
  0xfe   : > { %7735 = vmatmul.mubr.bf16.gmra.mxu0 %v6920_v17  ;;  %v3456_v27 = vsel %vm8390_vm13, %v3451_v19, %v3455_v25  ;;  %v541_v5 = vor.u32 %v539_v55, %v538_v35  ;;  %v543_v39 = vrot.slane %v538_v35, 4  ;;  %v3978_v24 = vrot.slane %v3879_v62, 5  ;;  %v3888_v19 = vld [vmem:[#allocation2 + $0x38] sm:$0x1] }
  0xff   : > { %v3466_v6 = vsel %vm8390_vm13, %v3461_v44, %v3465_v0  ;;  %v704_v46 = vsel %vm8163_vm6, %v533_v47, %v703_v41  ;;  %v3977_v40 = vrot.slane %v3975_v54, 4  ;;  %v3982_v8 = vrot.slane %v3881_v3, 5 }
 0x100   : > { %v8791_v28 = vpop.f32.mrf.mxu0  ;;  %v6921_v38 = vcombine.low %v3456_v27, %v3466_v6  ;;  %705 = vst [vmem:[#allocation2 + $0xc0] sm:$0xf] %v704_v46  ;;  %v542_v10 = vsel %vm8154_vm5, %v534_v58, %v541_v5  ;;  %v708_v14 = vsel %vm8177_vm7, %v543_v39, %v707_v4  ;;  %v3976_v13 = vsel %vm8384_vm12, %v6931_v1, %v3975_v54 }
 0x101   : > { %706 = vst [vmem:[#allocation2 + $0xc4] sm:$0xf] %v542_v10  ;;  %709 = vst [vmem:[#allocation2 + $0xc8] sm:$0x1] %v708_v14  ;;  %v3979_v36 = vsel %vm8384_vm12, %v3977_v40, %v3978_v24  ;;  %v6932_v11 = vrot.slane %v3880_v12, 9  ;;  %v3989_v25 = vrot.slane %v3884_v49, 5 }
 0x102   : > { %v8800_v2 = vpop.f32.mrf.mxu0  ;;  %7738 = vmatprep.mubr.bf16.mxu0 %v6921_v38  ;;  %v3984_v26 = vrot.slane %v3982_v8, 4  ;;  %v3985_v7 = vrot.slane %v3882_v18, 5  ;;  %v6933_v59 = vrot.slane %v3883_v53, 9  ;;  %v3992_v63 = vrot.slane %v3885_v30, 5  ;;  %v3889_v40 = vld [vmem:[#allocation2 + $0x3c] sm:$0xe] }
 0x103   : > { %v8794_v29 = vpop.f32.mrf.mxu1  ;;  %v6963_v43 = vcombine.low %v3976_v13, %v3979_v36  ;;  %v3991_v44 = vrot.slane %v3989_v25, 4  ;;  %v3983_v54 = vsel %vm8384_vm12, %v6932_v11, %v3982_v8  ;;  %v3996_v6 = vrot.slane %v3887_v34, 5  ;;  %v3890_v49 = vld [vmem:[#allocation2 + $0x40] sm:$0xf]  ;;  %v3891_v30 = vld [vmem:[#allocation2 + $0x44] sm:$0x1] }
 0x104   : > { %v8810_v61 = vpop.f32.mrf.mxu0  ;;  %v3986_v1 = vsel %vm8384_vm12, %v3984_v26, %v3985_v7  ;;  %v3990_v12 = vsel %vm8384_vm12, %v6933_v59, %v3989_v25  ;;  %v6934_v10 = vrot.slane %v3886_v60, 9  ;;  %v3999_v14 = vrot.slane %v3888_v19, 5  ;;  %v8047_v34 = vld [vmem:[#allocation2 + $0x18] sm:$0xff]  }
 0x105   : > { %v8802_v20 = vpop.f32.mrf.mxu1  ;;  %v3993_v3 = vsel %vm8384_vm12, %v3991_v44, %v3992_v63  ;;  %v6964_v13 = vcombine.low %v3983_v54, %v3986_v1  ;;  %v3998_v36 = vrot.slane %v3996_v6, 4  ;;  %v4003_v11 = vrot.slane %v3890_v49, 5  ;;  %v8051_v49 = vld [vmem:[#allocation2 + $0x30] sm:$0xff]  }
 0x106   : > { %9869 = vst [vmem:[#allocation4_spill] sm:$0xff] %v8802_v20  ;;  %v8818_v21 = vpop.f32.mrf.mxu0  ;;  %v6965_v59 = vcombine.low %v3990_v12, %v3993_v3  ;;  %v4006_v60 = vrot.slane %v3891_v30, 5  ;;  %v8048_v12 = vld [vmem:[#allocation2 + $0x24] sm:$0xff]  }
 0x107   : > { %v8812_v16 = vpop.f32.mrf.mxu1  ;;  %v3104_v0 = vld [vmem:[#allocation2 + $0xc0] sm:$0xf] }
 0x108   : > { %9870 = vst [vmem:[#allocation5_spill] sm:$0xff] %v8812_v16  ;;  %v3468_v17 = vshrl.u32 %v3104_v0, 16  ;;  %v3471_v15 = vshll.u32 %v3104_v0, 16  ;;  %v8044_v57 = vld [vmem:[#allocation2 + $0xc0] sm:$0xff]   ;;  %v3106_v47 = vld [vmem:[#allocation2 + $0xc8] sm:$0x1] }
 0x109   : > { %v8820_v23 = vpop.f32.mrf.mxu1  ;;  %v3105_v32 = vld [vmem:[#allocation2 + $0xc4] sm:$0xf]  ;;  %7691 = vmatmul.mubr.bf16.gmra.mxu1 %v8044_v57  ;;  %v3487_v4 = vshll.u32 %v3106_v47, 16  ;;  %v3893_v0 = vld [vmem:[#allocation2 + $0x4c] sm:$0xf]  ;;  %v3997_v47 = vsel %vm8384_vm12, %v6934_v10, %v3996_v6 }
 0x10a   : > { %9871 = vst [vmem:[#allocation6_spill] sm:$0xff] %v8820_v23  ;;  %v3470_v58 = vrot.slane %v3468_v17, 4  ;;  %v3473_v35 = vrot.slane %v3471_v15, 5  ;;  %v3477_v62 = vshll.u32 %v3105_v32, 16  ;;  %v3481_v27 = vshrl.u32 %v3105_v32, 16  ;;  %7758 = vmatprep.mubr.bf16.mxu1 %v6963_v43  ;;  %v8053_v17 = vld [vmem:[%s9855_s1 + $0x1f0] sm:$0xff]  }
 0x10b   : > { %v3489_v53 = vrot.slane %v3487_v4, 5  ;;  %v6935_v15 = vrot.slane %v3889_v40, 9  ;;  %v4005_v43 = vrot.slane %v4003_v11, 4  ;;  %v3892_v57 = vld [vmem:[#allocation2 + $0x48] sm:$0xe] }
 0x10c   : > { %v3474_v39 = vor.u32 %v3473_v35, %v3470_v58  ;;  %v3479_v46 = vrot.slane %v3477_v62, 5  ;;  %v3483_v38 = vrot.slane %v3481_v27, 4  ;;  %v3894_v32 = vld [vmem:[#allocation2 + $0x50] sm:$0x1]  ;;  %v4000_v58 = vsel %vm8384_vm12, %v3998_v36, %v3999_v14  ;;  %v3895_v27 = vld [vmem:[#allocation2 + $0x54] sm:$0xe] }
 0x10d   : > { %v4010_v35 = vrot.slane %v3893_v0, 5  ;;  %v4004_v54 = vsel %vm8384_vm12, %v6935_v15, %v4003_v11  ;;  %v4007_v6 = vsel %vm8384_vm12, %v4005_v43, %v4006_v60  ;;  %v6936_v3 = vrot.slane %v3892_v57, 9  ;;  %v8876_v36 = vld [vmem:[#allocation2 + $0x68] sm:$0x1]  ;;  %v8054_v0 = vld [vmem:[%s9855_s1 + $0x230] sm:$0xff]  }
 0x10e   : > { %v8826_v41 = vpop.f32.mrf.mxu0  ;;  %v3475_v8 = vrot.slane %v3474_v39, 4  ;;  %v3484_v18 = vor.u32 %v3483_v38, %v3479_v46  ;;  %v8057_v39 = vld [vmem:[%s9855_s1 + $0x1e8] sm:$0xff]   ;;  %v3897_v38 = vld [vmem:[#allocation2 + $0x5c] sm:$0x1]  ;;  %v4013_v14 = vrot.slane %v3894_v32, 5  ;;  %v6937_v40 = vrot.slane %v3895_v27, 9 }
 0x10f   : > { %v4012_v10 = vrot.slane %v4010_v35, 4  ;;  %v6967_v30 = vcombine.low %v4004_v54, %v4007_v6  ;;  %v3902_v43 = vld [vmem:[#allocation2 + $0x70] sm:$0xf]  ;;  %v4027_v54 = vrot.slane %v8876_v36, 5  ;;  %v3903_v6 = vld [vmem:[#allocation2 + $0x74] sm:$0x1] }
 0x110   : > { %v8832_v5 = vpop.f32.mrf.mxu0  ;;  %v3480_v7 = vsel %vm8390_vm13, %v3475_v8, %v3479_v46  ;;  %v3485_v25 = vrot.slane %v3484_v18, 4  ;;  %v3896_v46 = vld [vmem:[#allocation2 + $0x58] sm:$0xf]  ;;  %v8869_v8 = vld [vmem:[#allocation2 + $0x64] sm:$0xf]  ;;  %v4034_v36 = vrot.slane %v3903_v6, 5 }
 0x111   : > { %7759 = vmatmul.mubr.bf16.vlgmr.msra.gmra.mxu1 %v6964_v13  ;;  %v4017_v1 = vrot.slane %v3896_v46, 5  ;;  %v8061_v18 = vld [vmem:[%s9855_s1 + $0x1e0] sm:$0xff]   ;;  %v4014_v57 = vsel %vm8384_vm12, %v4012_v10, %v4013_v14  ;;  %v4935_v16 = vld [vmem:[#allocation2 + $0x4c] sm:$0xf] }
 0x112   : > { %v8828_v55 = vpop.f32.mrf.mxu1  ;;  %v8842_v26 = vpop.f32.mrf.mxu0  ;;  %v3490_v19 = vsel %vm8390_vm13, %v3485_v25, %v3489_v53  ;;  %7839 = vmatpush3.bf16.msra.mxu1 %v8745_v52  ;;  %7762 = vmatprep.mubr.bf16.mxu1 %v6965_v59  ;;  %v6966_v52 = vcombine.low %v3997_v47, %v4000_v58  ;;  %v3898_v13 = vld [vmem:[#allocation2 + $0x60] sm:$0xe]  ;;  %v4020_v25 = vrot.slane %v3897_v38, 5  ;;  %v8058_v58 = vld [vmem:[%s9855_s1 + $0x228] sm:$0xff]   ;;  %v8914_v14 = vld [vmem:[#allocation2 + $0x80] sm:$0x1] }
 0x113   : > { %9872 = vst [vmem:[#allocation7_spill] sm:$0xff] %v8828_v55  ;;  %v6922_v44 = vcombine.low %v3480_v7, %v3490_v19  ;;  %7840 = vmatprep.subr.bf16.mxu1 %v8053_v17  ;;  %v4019_v7 = vrot.slane %v4017_v1, 4  ;;  %v4011_v19 = vsel %vm8384_vm12, %v6936_v3, %v4010_v35  ;;  %v6938_v32 = vrot.slane %v3898_v13, 9  ;;  %v8912_v3 = vld [vmem:[#allocation2 + $0x7c] sm:$0xf] }
 0x114   : > { %v8836_v24 = vpop.f32.mrf.mxu1  ;;  %v8857_v62 = vpop.f32.mrf.mxu0  ;;  %v4018_v27 = vsel %vm8384_vm12, %v6937_v40, %v4017_v1  ;;  %v8052_v1 = vld [vmem:[#allocation2 + $0x3c] sm:$0xff]   ;;  %v6968_v10 = vcombine.low %v4011_v19, %v4014_v57  ;;  %v8069_v40 = vld [vmem:[%s9855_s1 + $0x1d0] sm:$0xff]   ;;  %v8928_v19 = vld [vmem:[#allocation2 + $0x88] sm:$0xf] }
 0x115   : > { %9873 = vst [vmem:[#allocation8_spill] sm:$0xff] %v8836_v24  ;;  %7739 = vmatmul.mubr.bf16.gmra.mxu0 %v6922_v44  ;;  %v8065_v44 = vld [vmem:[%s9855_s1 + $0x1d8] sm:$0xff]   ;;  %v4021_v35 = vsel %vm8384_vm12, %v4019_v7, %v4020_v25  ;;  %v8930_v57 = vld [vmem:[#allocation2 + $0x8c] sm:$0x1] }
 0x116   : > { %v8846_v63 = vpop.f32.mrf.mxu1  ;;  %7806 = vmatprep.mubr.bf16.mxu0 %v8047_v34  ;;  %7841 = vmatpush3.bf16.msra.mxu1 %v8053_v17  ;;  %v4024_v34 = vrot.slane %v8869_v8, 5  ;;  %v3901_v17 = vld [vmem:[#allocation2 + $0x6c] sm:$0xe] }
 0x117   : > { %9874 = vst [vmem:[#allocation9_spill] sm:$0xff] %v8846_v63  ;;  %7842 = vmatprep.subr.bf16.mxu1 %v8057_v39  ;;  %v4931_v63 = vld [vmem:[#allocation2 + $0x3c] sm:$0xf] }
 0x118   : > { %v8860_v4 = vpop.f32.mrf.mxu1  ;;  %v4026_v38 = vrot.slane %v4024_v34, 4  ;;  %v5046_v55 = vshll.u32 %v4931_v63, 16 }
 0x119   : > { %9875 = vst [vmem:[#allocation10_spill] sm:$0xff] %v8860_v4  ;;  %7763 = vmatmul.mubr.bf16.gmra.mxu1 %v6966_v52  ;;  %v6939_v52 = vrot.slane %v3901_v17, 9  ;;  %v3916_v4 = vld [vmem:[#allocation2 + $0xa8] sm:$0xe] }
 0x11a   : > { %7766 = vmatprep.mubr.bf16.mxu1 %v6967_v30  ;;  %7843 = vmatpush3.bf16.msra.mxu1 %v8057_v39  ;;  %v4031_v39 = vrot.slane %v3902_v43, 5  ;;  %v8055_v30 = vld [vmem:[#allocation2 + $0x48] sm:$0xff]   ;;  %v8926_v43 = vld [vmem:[#allocation2 + $0x84] sm:$0xe] }
 0x11b   : > { %7844 = vmatprep.subr.bf16.mxu1 %v8061_v18 }
 0x11c   : > { %v4033_v13 = vrot.slane %v4031_v39, 4  ;;  %v4032_v25 = vsel %vm8384_vm12, %v6939_v52, %v4031_v39 }
 0x11d   : > { %v8874_v53 = vpop.f32.mrf.mxu0  ;;  %7807 = vmatmul.mubr.bf16.vlgmr.msra.gmra.mxu0 %v8048_v12  ;;  %v8910_v12 = vld [vmem:[#allocation2 + $0x78] sm:$0xe] }
 0x11e   : > { %7887 = vmatpush3.bf16.msra.mxu0 %v8752_v37  ;;  %7810 = vmatprep.mubr.bf16.mxu0 %v8051_v49  ;;  %v6969_v37 = vcombine.low %v4018_v27, %v4021_v35  ;;  %v8062_v49 = vld [vmem:[%s9855_s1 + $0x220] sm:$0xff]   ;;  %v4041_v27 = vrot.slane %v8914_v14, 5  ;;  %v9858_v35 = vrot.slane %v8928_v19, 5  ;;  %v9880_v14 = vrot.slane %v8912_v3, 5 }
 0x11f   : > { %v8880_v59 = vpop.f32.mrf.mxu0  ;;  %7888 = vmatprep.subr.bf16.mxu0 %v8054_v0  ;;  %7845 = vmatpush3.bf16.msra.mxu1 %v8061_v18  ;;  %v4025_v18 = vsel %vm8384_vm12, %v6938_v32, %v4024_v34  ;;  %v4035_v32 = vsel %vm8384_vm12, %v4033_v13, %v4034_v36 }
 0x120   : > { %v8878_v11 = vpop.f32.mrf.mxu1  ;;  %7846 = vmatprep.subr.bf16.mxu1 %v8065_v44  ;;  %v4047_v52 = vrot.slane %v9858_v35, 4  ;;  %v8059_v35 = vld [vmem:[#allocation2 + $0x60] sm:$0xff]  }
 0x121   : > { %9876 = vst [vmem:[#allocation11_spill] sm:$0xff] %v8878_v11  ;;  %v8888_v60 = vpop.f32.mrf.mxu0  ;;  %7767 = vmatmul.mubr.bf16.gmra.mxu1 %v6968_v10  ;;  %v8942_v10 = vld [vmem:[#allocation2 + $0x94] sm:$0xf]  ;;  %v6971_v11 = vcombine.low %v4032_v25, %v4035_v32  ;;  %v3918_v32 = vld [vmem:[#allocation2 + $0xb0] sm:$0x1] }
 0x122   : > { %v8886_v15 = vpop.f32.mrf.mxu1  ;;  %7889 = vmatpush3.bf16.msra.mxu0 %v8054_v0  ;;  %7770 = vmatprep.mubr.bf16.mxu1 %v6969_v37  ;;  %v4028_v0 = vsel %vm8384_vm12, %v4026_v38, %v4027_v54  ;;  %v4040_v37 = vrot.slane %v9880_v14, 4  ;;  %v8066_v54 = vld [vmem:[%s9855_s1 + $0x218] sm:$0xff]   ;;  %v4052_v39 = vrot.slane %v8942_v10, 5 }
 0x123   : > { %9877 = vst [vmem:[#allocation12_spill] sm:$0xff] %v8886_v15  ;;  %v8907_v46 = vpop.f32.mrf.mxu0  ;;  %7890 = vmatprep.subr.bf16.mxu0 %v8058_v58  ;;  %7847 = vmatpush3.bf16.msra.mxu1 %v8065_v44  ;;  %v6941_v44 = vrot.slane %v8926_v43, 9  ;;  %v8056_v43 = vld [vmem:[#allocation2 + $0x54] sm:$0xff]  }
 0x124   : > { %v8897_v47 = vpop.f32.mrf.mxu1  ;;  %7848 = vmatprep.subr.bf16.mxu1 %v8069_v40 }
 0x125   : > { %9878 = vst [vmem:[#allocation13_spill] sm:$0xff] %v8897_v47  ;;  %v8944_v47 = vld [vmem:[#allocation2 + $0x98] sm:$0x1]  ;;  %7811 = vmatmul.mubr.bf16.gmra.mxu0 %v8052_v1  ;;  %v4048_v1 = vrot.slane %v8930_v57, 5  ;;  %v3914_v57 = vld [vmem:[#allocation2 + $0xa0] sm:$0xf] }
 0x126   : > { %v8919_v8 = vpop.f32.mrf.mxu1  ;;  %7814 = vmatprep.mubr.bf16.mxu0 %v8055_v30  ;;  %7891 = vmatpush3.bf16.msra.mxu0 %v8058_v58  ;;  %v4055_v14 = vrot.slane %v8944_v47, 5  ;;  %v8077_v58 = vld [vmem:[%s9855_s1 + $0x1c0] sm:$0xff]   ;;  %v8070_v47 = vld [vmem:[%s9855_s1 + $0x210] sm:$0xff]  }
 0x127   : > { %9879 = vst [vmem:[#allocation14_spill] sm:$0xff] %v8919_v8  ;;  %v7616_v17 = vpop.f32.mrf.mxu0  ;;  %v8940_v8 = vld [vmem:[#allocation2 + $0x90] sm:$0xe]  ;;  %7892 = vmatprep.subr.bf16.mxu0 %v8062_v49  ;;  %7849 = vmatpush3.bf16.msra.mxu1 %v8069_v40 }
 0x128   : > { %v7568_v6 = vpop.f32.mrf.mxu1  ;;  %v6942_v10 = vrot.slane %v8940_v8, 9  ;;  %v3915_v8 = vld [vmem:[#allocation2 + $0xa4] sm:$0x1] }
 0x129   : > { %v2418_v7 = vpop.f32.mrf.mxu0  ;;  %v1950_v34 = vadd.f32 %v7568_v6, %v8762_v48  ;;  %v8073_v48 = vld [vmem:[%s9855_s1 + $0x1c8] sm:$0xff]   ;;  %v6970_v6 = vcombine.low %v4025_v18, %v4028_v0  ;;  %v4054_v18 = vrot.slane %v4052_v39, 4  ;;  %v4059_v0 = vrot.slane %v3914_v57, 5 }
 0x12a   : > { %v1821_v38 = vpop.f32.mrf.mxu1  ;;  %7850 = vmatprep.subr.bf16.mxu1 %v8073_v48  ;;  %7893 = vmatpush3.bf16.msra.mxu0 %v8062_v49  ;;  %v4069_v57 = vrot.slane %v3918_v32, 5 }
 0x12b   : > { %v8962_v13 = vadd.f32 %v7616_v17, %v1950_v34  ;;  %v1948_v36 = vadd.f32 %v1821_v38, %v8768_v50  ;;  %v7617_v15 = vpop.f32.mrf.mxu0  ;;  %v3913_v17 = vld [vmem:[#allocation2 + $0x9c] sm:$0xe]  ;;  %7771 = vmatmul.mubr.bf16.gmra.mxu1 %v6970_v6  ;;  %7894 = vmatprep.subr.bf16.mxu0 %v8066_v54  ;;  %v4061_v40 = vrot.slane %v4059_v0, 4 }
 0x12c   : > { %v7569_v30 = vpop.f32.mrf.mxu1  ;;  %v6943_v38 = vrot.slane %v3913_v17, 9  ;;  %7774 = vmatprep.mubr.bf16.mxu1 %v6971_v11  ;;  %v4042_v17 = vsel %vm8384_vm12, %v4040_v37, %v4041_v27  ;;  %7851 = vmatpush3.bf16.msra.mxu1 %v8073_v48  ;;  %v4049_v11 = vsel %vm8384_vm12, %v4047_v52, %v4048_v1  ;;  %v8994_v37 = vsel %vm8384_vm12, %v6942_v10, %v4052_v39  ;;  %v3921_v48 = vld [vmem:[#allocation2 + $0xbc] sm:$0x1] }
 0x12d   : > { %9881 = vst [vmem:[#allocation15_spill] sm:$0xff] %v8962_v13  ;;  %v8970_v34 = vadd.f32 %v2418_v7, %v1948_v36  ;;  %v1951_v50 = vadd.f32 %v7569_v30, %v8774_v31  ;;  %v4062_v13 = vrot.slane %v3915_v8, 5  ;;  %v3917_v7 = vld [vmem:[#allocation2 + $0xac] sm:$0xf]  ;;  %v6944_v31 = vrot.slane %v3916_v4, 9  ;;  %v2421_v36 = vpop.f32.mrf.mxu0  ;;  %7815 = vmatmul.mubr.bf16.gmra.mxu0 %v8056_v43  ;;  %7852 = vmatprep.subr.bf16.mxu1 %v8077_v58 }
 0x12e   : > { %v9884_v30 = vrot.slane %v8912_v3, 5  ;;  %v1824_v6 = vpop.f32.mrf.mxu1  ;;  %7818 = vmatprep.mubr.bf16.mxu0 %v8059_v35  ;;  %7895 = vmatpush3.bf16.msra.mxu0 %v8066_v54  ;;  %v3919_v3 = vld [vmem:[#allocation2 + $0xb4] sm:$0xe]  ;;  %v9002_v1 = vsel %vm8384_vm12, %v4054_v18, %v4055_v14  ;;  %v9006_v39 = vsel %vm8384_vm12, %v6943_v38, %v4059_v0  ;;  %v3922_v14 = vld [vmem:[#allocation2 + $0xc0] sm:$0xe] }
 0x12f   : > { %9882 = vst [vmem:[#allocation16_spill] sm:$0xff] %v8970_v34  ;;  %v8976_v25 = vadd.f32 %v7617_v15, %v1951_v50  ;;  %v9885_v34 = vrot.slane %v8910_v12, 9  ;;  %v4066_v15 = vrot.slane %v3917_v7, 5  ;;  %v9886_v50 = vrot.slane %v8928_v19, 5  ;;  %7896 = vmatprep.subr.bf16.mxu0 %v8070_v47  ;;  %v8074_v19 = vld [vmem:[%s9855_s1 + $0x208] sm:$0xff]  }
 0x130   : > { %v6945_v43 = vrot.slane %v3919_v3, 9  ;;  %v1949_v52 = vadd.f32 %v1824_v6, %v8782_v45  ;;  %v4076_v7 = vrot.slane %v3921_v48, 5  ;;  %7853 = vmatpush3.bf16.msra.mxu1 %v8077_v58  ;;  %v9010_v10 = vsel %vm8384_vm12, %v4061_v40, %v4062_v13  ;;  %v3923_v18 = vld [vmem:[#allocation2 + $0xc4] sm:$0xf]  ;;  %v4923_v48 = vld [vmem:[#allocation2 + $0x1c] sm:$0xf] }
 0x131   : > { %9883 = vst [vmem:[#allocation17_spill] sm:$0xff] %v8976_v25  ;;  %v4039_v49 = vsel %vm8384_vm12, %v9885_v34, %v9884_v30  ;;  %v4046_v4 = vsel %vm8384_vm12, %v6941_v44, %v9886_v50  ;;  %v4068_v12 = vrot.slane %v4066_v15, 4  ;;  %v8060_v34 = vld [vmem:[#allocation2 + $0x6c] sm:$0xff]   ;;  %v3920_v44 = vld [vmem:[#allocation2 + $0xb8] sm:$0xf]  ;;  %v9014_v45 = vsel %vm8384_vm12, %v6944_v31, %v4066_v15 }
 0x132   : > { %v6972_v27 = vcombine.low %v4039_v49, %v4042_v17  ;;  %v6973_v54 = vcombine.low %v4046_v4, %v4049_v11  ;;  %v4073_v8 = vrot.slane %v3920_v44, 5  ;;  %v3924_v30 = vld [vmem:[#allocation2 + $0xc8] sm:$0x1]  ;;  %v8063_v17 = vld [vmem:[#allocation2 + $0x78] sm:$0xff]   ;;  %7897 = vmatpush3.bf16.msra.mxu0 %v8070_v47  ;;  %v6946_v38 = vrot.slane %v3922_v14, 9 }
 0x133   : > { %v9018_v32 = vsel %vm8384_vm12, %v4068_v12, %v4069_v57  ;;  %v4080_v40 = vrot.slane %v3923_v18, 5  ;;  %v6974_v31 = vcombine.low %v8994_v37, %v9002_v1  ;;  %7898 = vmatprep.subr.bf16.mxu0 %v8074_v19  ;;  %v4083_v15 = vrot.slane %v3924_v30, 5  ;;  %v8078_v57 = vld [vmem:[%s9855_s1 + $0x200] sm:$0xff]   ;;  %v4922_v44 = vld [vmem:[#allocation2 + $0x18] sm:$0xf] }
 0x134   : > { %v9022_v0 = vsel %vm8384_vm12, %v6945_v43, %v4073_v8  ;;  %v4075_v13 = vrot.slane %v4073_v8, 4  ;;  %7775 = vmatmul.mubr.bf16.gmra.mxu1 %v6972_v27  ;;  %v9029_v6 = vadd.f32 %v2421_v36, %v1949_v52  ;;  %v6975_v36 = vcombine.low %v9006_v39, %v9010_v10  ;;  %v5741_v18 = vld [vmem:[#allocation2 + $0x1c] sm:$0xf]  ;;  %v4925_v39 = vld [vmem:[#allocation2 + $0x24] sm:$0xf] }
 0x135   : > { %v7620_v35 = vpop.f32.mrf.mxu0  ;;  %7778 = vmatprep.mubr.bf16.mxu1 %v6973_v54  ;;  %v9038_v11 = vsel %vm8384_vm12, %v6946_v38, %v4080_v40  ;;  %v4082_v12 = vrot.slane %v4080_v40, 4  ;;  %7819 = vmatmul.mubr.bf16.gmra.mxu0 %v8060_v34  ;;  %v4924_v34 = vld [vmem:[#allocation2 + $0x20] sm:$0x1]  ;;  %v4971_v52 = vshrl.u32 %v4922_v44, 16  ;;  %v4974_v54 = vshll.u32 %v4922_v44, 16 }
 0x136   : > { %9887 = vst [vmem:[#allocation18_spill] sm:$0xff] %v9029_v6  ;;  %v9034_v4 = vsel %vm8384_vm12, %v4075_v13, %v4076_v7  ;;  %7822 = vmatprep.mubr.bf16.mxu0 %v8063_v17  ;;  %7899 = vmatpush3.bf16.msra.mxu0 %v8074_v19  ;;  %v4980_v1 = vshll.u32 %v4923_v48, 16  ;;  %v8064_v7 = vld [vmem:[#allocation2 + $0x84] sm:$0xff]   ;;  %v4984_v10 = vshrl.u32 %v4923_v48, 16  ;;  %v4990_v14 = vshll.u32 %v4924_v34, 16  ;;  %v8067_v19 = vld [vmem:[#allocation2 + $0x90] sm:$0xff]  }
 0x137   : > { %v7572_v58 = vpop.f32.mrf.mxu1  ;;  %v2434_v49 = vpop.f32.mrf.mxu0  ;;  %7900 = vmatprep.subr.bf16.mxu0 %v8078_v57  ;;  %v4976_v17 = vrot.slane %v4974_v54, 5  ;;  %v5742_v38 = vld [vmem:[#allocation2 + $0x20] sm:$0x1]  ;;  %v4926_v34 = vld [vmem:[#allocation2 + $0x28] sm:$0xf]  ;;  %v9890_v6 = vcombine.low %v9014_v45, %v9018_v32 }
 0x138   : > { %v1954_v47 = vadd.f32 %v7572_v58, %v8791_v28  ;;  %v4973_v58 = vrot.slane %v4971_v52, 4  ;;  %v4982_v13 = vrot.slane %v4980_v1, 5  ;;  %v5841_v44 = vrot.slane %v5742_v38, 5  ;;  %v4927_v37 = vld [vmem:[#allocation2 + $0x2c] sm:$0x1] }
 0x139   : > { %v1837_v50 = vpop.f32.mrf.mxu1  ;;  %v9041_v27 = vpop.f32.mrf.mxu0  ;;  %v4995_v28 = vshrl.u32 %v4925_v39, 16 }
 0x13a   : > { %v1952_v3 = vadd.f32 %v1837_v50, %v8800_v2  ;;  %v9049_v43 = vadd.f32 %v7620_v35, %v1954_v47  ;;  %v9053_v2 = vsel %vm8384_vm12, %v4082_v12, %v4083_v15  ;;  %v5740_v35 = vld [vmem:[#allocation2 + $0x18] sm:$0xe]  ;;  %v4986_v47 = vrot.slane %v4984_v10, 4  ;;  %7901 = vmatpush3.bf16.msra.mxu0 %v8078_v57 }
 0x13b   : > { %v7573_v8 = vpop.f32.mrf.mxu1  ;;  %v7067_v40 = vrot.slane %v5740_v35, 9  ;;  %v9059_v15 = vpop.f32.mrf.mxu0  ;;  %v4992_v50 = vrot.slane %v4990_v14, 5  ;;  %v5838_v12 = vrot.slane %v5741_v18, 5  ;;  %v4977_v48 = vor.u32 %v4976_v17, %v4973_v58  ;;  %v5743_v35 = vld [vmem:[#allocation2 + $0x24] sm:$0xe] }
 0x13c   : > { %9888 = vst [vmem:[#allocation19_spill] sm:$0xff] %v9049_v43  ;;  %v9057_v30 = vadd.f32 %v2434_v49, %v1952_v3  ;;  %v4998_v49 = vshll.u32 %v4925_v39, 16  ;;  %v9062_v3 = vadd.f32 %v7573_v8, %v8810_v61  ;;  %7779 = vmatmul.mubr.bf16.gmra.mxu1 %v6974_v31  ;;  %v4987_v54 = vor.u32 %v4986_v47, %v4982_v13  ;;  %v5744_v39 = vld [vmem:[#allocation2 + $0x28] sm:$0xf]  ;;  %v5745_v47 = vld [vmem:[#allocation2 + $0x2c] sm:$0x1] }
 0x13d   : > { %v9064_v52 = vpop.f32.mrf.mxu1  ;;  %v9068_v1 = vsel %vm8384_vm12, %v7067_v40, %v5838_v12  ;;  %v5840_v10 = vrot.slane %v5838_v12, 4  ;;  %v5004_v14 = vshll.u32 %v4926_v34, 16  ;;  %7782 = vmatprep.mubr.bf16.mxu1 %v6975_v36  ;;  %v4978_v57 = vrot.slane %v4977_v48, 4  ;;  %7823 = vmatmul.mubr.bf16.gmra.mxu0 %v8064_v7 }
 0x13e   : > { %9889 = vst [vmem:[#allocation20_spill] sm:$0xff] %v9057_v30  ;;  %v4997_v18 = vrot.slane %v4995_v28, 4  ;;  %v5000_v58 = vrot.slane %v4998_v49, 5  ;;  %v5008_v17 = vshrl.u32 %v4926_v34, 16  ;;  %v4988_v61 = vrot.slane %v4987_v54, 4  ;;  %7826 = vmatprep.mubr.bf16.mxu0 %v8067_v19 }
 0x13f   : > { %v9074_v31 = vsel %vm8384_vm12, %v5840_v10, %v5841_v44  ;;  %v5006_v8 = vrot.slane %v5004_v14, 5  ;;  %v5014_v40 = vshll.u32 %v4927_v37, 16  ;;  %v4983_v36 = vsel %vm8390_vm13, %v4978_v57, %v4982_v13  ;;  %v4928_v34 = vld [vmem:[#allocation2 + $0x30] sm:$0xf]  ;;  %v4929_v37 = vld [vmem:[#allocation2 + $0x34] sm:$0xf] }
 0x140   : > { %v5001_v12 = vor.u32 %v5000_v58, %v4997_v18  ;;  %v5010_v48 = vrot.slane %v5008_v17, 4  ;;  %v4993_v7 = vsel %vm8390_vm13, %v4988_v61, %v4992_v50  ;;  %v7068_v54 = vrot.slane %v5743_v35, 9  ;;  %v4930_v28 = vld [vmem:[#allocation2 + $0x38] sm:$0x1]  ;;  %v5746_v18 = vld [vmem:[#allocation2 + $0x30] sm:$0xe] }
 0x141   : > { %v5016_v44 = vrot.slane %v5014_v40, 5  ;;  %v5845_v10 = vrot.slane %v5744_v39, 5  ;;  %v9086_v19 = vcombine.low %v4983_v36, %v4993_v7  ;;  %v5848_v30 = vrot.slane %v5745_v47, 5  ;;  %v8068_v58 = vld [vmem:[#allocation2 + $0x9c] sm:$0xff]   ;;  %v5747_v35 = vld [vmem:[#allocation2 + $0x34] sm:$0xf] }
 0x142   : > { %v9070_v38 = vpop.f32.mrf.mxu0  ;;  %v5002_v13 = vrot.slane %v5001_v12, 4  ;;  %v5011_v57 = vor.u32 %v5010_v48, %v5006_v8  ;;  %v5019_v50 = vshrl.u32 %v4928_v34, 16  ;;  %v5022_v61 = vshll.u32 %v4928_v34, 16  ;;  %v8071_v40 = vld [vmem:[#allocation2 + $0xa8] sm:$0xff]   ;;  %v5748_v7 = vld [vmem:[#allocation2 + $0x38] sm:$0x1] }
 0x143   : > { %v9080_v49 = vpop.f32.mrf.mxu1  ;;  %v9090_v17 = vsel %vm8384_vm12, %v7068_v54, %v5845_v10  ;;  %v5847_v43 = vrot.slane %v5845_v10, 4  ;;  %v5028_v48 = vshll.u32 %v4929_v37, 16  ;;  %v5032_v47 = vshrl.u32 %v4929_v37, 16 }
 0x144   : > { %v9084_v14 = vpop.f32.mrf.mxu0  ;;  %v5007_v36 = vsel %vm8390_vm13, %v5002_v13, %v5006_v8  ;;  %v5012_v12 = vrot.slane %v5011_v57, 4  ;;  %7783 = vmatmul.mubr.bf16.gmra.mxu1 %v9890_v6  ;;  %v5021_v34 = vrot.slane %v5019_v50, 4  ;;  %v5024_v10 = vrot.slane %v5022_v61, 5 }
 0x145   : > { %v9092_v39 = vpop.f32.mrf.mxu1  ;;  %v9101_v54 = vsel %vm8384_vm12, %v5847_v43, %v5848_v30  ;;  %v5038_v25 = vshll.u32 %v4930_v28, 16  ;;  %v9891_v8 = vcombine.low %v9022_v0, %v9034_v4  ;;  %v5030_v32 = vrot.slane %v5028_v48, 5  ;;  %v4932_v43 = vld [vmem:[#allocation2 + $0x40] sm:$0xf]  ;;  %7827 = vmatmul.mubr.bf16.gmra.mxu0 %v8068_v58 }
 0x146   : > { %v9103_v24 = vpop.f32.mrf.mxu0  ;;  %v5017_v37 = vsel %vm8390_vm13, %v5012_v12, %v5016_v44  ;;  %v5034_v6 = vrot.slane %v5032_v47, 4  ;;  %v5025_v28 = vor.u32 %v5024_v10, %v5021_v34  ;;  %v7069_v57 = vrot.slane %v5746_v18, 9  ;;  %7830 = vmatprep.mubr.bf16.mxu0 %v8071_v40  ;;  %v5749_v47 = vld [vmem:[#allocation2 + $0x3c] sm:$0xe]  ;;  %v5750_v40 = vld [vmem:[#allocation2 + $0x40] sm:$0xf] }
 0x147   : > { %7786 = vmatprep.mubr.bf16.mxu1 %v9891_v8  ;;  %v9112_v30 = vcombine.low %v5007_v36, %v5017_v37  ;;  %v5040_v13 = vrot.slane %v5038_v25, 5  ;;  %v9114_v50 = vpop.f32.mrf.mxu1  ;;  %v5852_v4 = vrot.slane %v5747_v35, 5  ;;  %v5855_v61 = vrot.slane %v5748_v7, 5  ;;  %v4933_v8 = vld [vmem:[#allocation2 + $0x44] sm:$0x1]  ;;  %v8072_v34 = vld [vmem:[#allocation2 + $0xb4] sm:$0xff]  }
 0x148   : > { %v5035_v0 = vor.u32 %v5034_v6, %v5030_v32  ;;  %v5043_v44 = vshrl.u32 %v4931_v63, 16  ;;  %v5026_v12 = vrot.slane %v5025_v28, 4  ;;  %v5052_v45 = vshll.u32 %v4932_v43, 16  ;;  %v9116_v23 = vpop.f32.mrf.mxu0  ;;  %v5751_v37 = vld [vmem:[#allocation2 + $0x44] sm:$0x1] }
 0x149   : > { %v5056_v48 = vshrl.u32 %v4932_v43, 16  ;;  %v9120_v25 = vsel %vm8384_vm12, %v7069_v57, %v5852_v4  ;;  %v5854_v18 = vrot.slane %v5852_v4, 4  ;;  %v5048_v7 = vrot.slane %v5046_v55, 5  ;;  %v9124_v6 = vpop.f32.mrf.mxu1  ;;  %v8075_v43 = vld [vmem:[#allocation2 + $0xc0] sm:$0xff]  }
 0x14a   : > { %v5036_v58 = vrot.slane %v5035_v0, 4  ;;  %v5045_v36 = vrot.slane %v5043_v44, 4  ;;  %v5031_v35 = vsel %vm8390_vm13, %v5026_v12, %v5030_v32  ;;  %v5054_v10 = vrot.slane %v5052_v45, 5  ;;  %v4934_v44 = vld [vmem:[#allocation2 + $0x48] sm:$0xf] }
 0x14b   : > { %v5058_v63 = vrot.slane %v5056_v48, 4  ;;  %v9130_v57 = vsel %vm8384_vm12, %v5854_v18, %v5855_v61  ;;  %v5062_v0 = vshll.u32 %v4933_v8, 16  ;;  %v7070_v4 = vrot.slane %v5749_v47, 9  ;;  %v4936_v18 = vld [vmem:[#allocation2 + $0x50] sm:$0x1] }
 0x14c   : > { %v5041_v28 = vsel %vm8390_vm13, %v5036_v58, %v5040_v13  ;;  %v9892_v32 = vcombine.low %v9038_v11, %v9053_v2  ;;  %v5049_v12 = vor.u32 %v5048_v7, %v5045_v36  ;;  %v5859_v61 = vrot.slane %v5750_v40, 5 }
 0x14d   : > { %v7045_v55 = vcombine.low %v5031_v35, %v5041_v28  ;;  %v5059_v48 = vor.u32 %v5058_v63, %v5054_v10  ;;  %v5064_v13 = vrot.slane %v5062_v0, 5  ;;  %v5862_v8 = vrot.slane %v5751_v37, 5  ;;  %7831 = vmatmul.mubr.bf16.gmra.mxu0 %v8072_v34  ;;  %v5752_v34 = vld [vmem:[#allocation2 + $0x48] sm:$0xe]  ;;  %v5753_v28 = vld [vmem:[#allocation2 + $0x4c] sm:$0xf] }
 0x14e   : > { %7787 = vmatmul.mubr.bf16.gmra.mxu1 %v9892_v32  ;;  %v9142_v47 = vadd.f32 %v9041_v27, %v9062_v3  ;;  %v5050_v11 = vrot.slane %v5049_v12, 4  ;;  %v1953_v58 = vadd.f32 %v9064_v52, %v8818_v21  ;;  %v5067_v36 = vshrl.u32 %v4934_v44, 16  ;;  %7834 = vmatprep.mubr.bf16.mxu0 %v8075_v43  ;;  %v5754_v43 = vld [vmem:[#allocation2 + $0x50] sm:$0x1] }
 0x14f   : > { %7854 = vmatprep.mubr.bf16.mxu1 %v9086_v19  ;;  %v5060_v2 = vrot.slane %v5059_v48, 4  ;;  %v9152_v19 = vsel %vm8384_vm12, %v7070_v4, %v5859_v61  ;;  %v5861_v40 = vrot.slane %v5859_v61, 4  ;;  %v5070_v27 = vshll.u32 %v4934_v44, 16  ;;  %v4937_v48 = vld [vmem:[#allocation2 + $0x54] sm:$0xf] }
 0x150   : > { %v9137_v20 = vpop.f32.mrf.mxu0  ;;  %v5076_v3 = vshll.u32 %v4935_v16, 16  ;;  %v5055_v63 = vsel %vm8390_vm13, %v5050_v11, %v5054_v10  ;;  %v9159_v52 = vadd.f32 %v9059_v15, %v1953_v58  ;;  %v5069_v37 = vrot.slane %v5067_v36, 4 }
 0x151   : > { %v9146_v35 = vpop.f32.mrf.mxu1  ;;  %v5065_v21 = vsel %vm8390_vm13, %v5060_v2, %v5064_v13  ;;  %v9169_v44 = vsel %vm8384_vm12, %v5861_v40, %v5862_v8  ;;  %v5072_v10 = vrot.slane %v5070_v27, 5  ;;  %v8076_v13 = vld [vmem:[#allocation2 + $0xcc] sm:$0xff]   ;;  %v5080_v61 = vshrl.u32 %v4935_v16, 16  ;;  %v4938_v40 = vld [vmem:[#allocation2 + $0x58] sm:$0xf] }
 0x152   : > { %v9148_v7 = vpop.f32.mrf.mxu0  ;;  %9893 = vst [vmem:[#allocation21_spill] sm:$0xff] %v9159_v52  ;;  %v9165_v32 = vcombine.low %v5055_v63, %v5065_v21  ;;  %v5078_v12 = vrot.slane %v5076_v3, 5  ;;  %v5086_v11 = vshll.u32 %v4936_v18, 16  ;;  %v7071_v2 = vrot.slane %v5752_v34, 9  ;;  %v4939_v52 = vld [vmem:[#allocation2 + $0x5c] sm:$0x1] }
 0x153   : > { %v9161_v0 = vpop.f32.mrf.mxu1  ;;  %v5073_v63 = vor.u32 %v5072_v10, %v5069_v37  ;;  %v5866_v21 = vrot.slane %v5753_v28, 5  ;;  %v5869_v45 = vrot.slane %v5754_v43, 5  ;;  %v1958_v8 = vadd.f32 %v9080_v49, %v8826_v41  ;;  %v5755_v41 = vld [vmem:[#allocation2 + $0x54] sm:$0xe] }
 0x154   : > { %v9163_v4 = vpop.f32.mrf.mxu0  ;;  %v5082_v27 = vrot.slane %v5080_v61, 4  ;;  %v5088_v3 = vrot.slane %v5086_v11, 5  ;;  %v5091_v15 = vshrl.u32 %v4937_v48, 16  ;;  %v5094_v16 = vshll.u32 %v4937_v48, 16  ;;  %v5756_v11 = vld [vmem:[#allocation2 + $0x58] sm:$0xf] }
 0x155   : > { %v9173_v58 = vpop.f32.mrf.mxu1  ;;  %v5074_v34 = vrot.slane %v5073_v63, 4  ;;  %v9184_v37 = vsel %vm8384_vm12, %v7071_v2, %v5866_v21  ;;  %v5868_v28 = vrot.slane %v5866_v21, 4  ;;  %v9187_v43 = vadd.f32 %v9070_v38, %v1958_v8  ;;  %7835 = vmatmul.mubr.bf16.gmra.mxu0 %v8076_v13  ;;  %v5757_v21 = vld [vmem:[#allocation2 + $0x5c] sm:$0x1] }
 0x156   : > { %v9175_v36 = vpop.f32.mrf.mxu0  ;;  %7855 = vmatmul.mubr.bf16.vlgmr.msra.gmra.mxu1 %v9112_v30  ;;  %v5083_v49 = vor.u32 %v5082_v27, %v5078_v12  ;;  %v5093_v30 = vrot.slane %v5091_v15, 4  ;;  %v5096_v10 = vrot.slane %v5094_v16, 5  ;;  %v5100_v61 = vshll.u32 %v4938_v40, 16 }
 0x157   : > { %v9180_v18 = vpop.f32.mrf.mxu1  ;;  %7858 = vmatprep.mubr.bf16.mxu1 %v7045_v55  ;;  %9894 = vst [vmem:[#allocation22_spill] sm:$0xff] %v9187_v43  ;;  %v9895_v55 = vcombine.low %v9068_v1, %v9074_v31  ;;  %v5079_v2 = vsel %vm8390_vm13, %v5074_v34, %v5078_v12  ;;  %v9198_v38 = vsel %vm8384_vm12, %v5868_v28, %v5869_v45  ;;  %v5104_v63 = vshrl.u32 %v4938_v40, 16 }
 0x158   : > { %v5110_v13 = vshll.u32 %v4939_v52, 16  ;;  %v5084_v15 = vrot.slane %v5083_v49, 4  ;;  %v5097_v27 = vor.u32 %v5096_v10, %v5093_v30  ;;  %v5102_v16 = vrot.slane %v5100_v61, 5  ;;  %v4940_v49 = vld [vmem:[#allocation2 + $0x60] sm:$0xf] }
 0x159   : > { %7902 = vmatprep.mubr.bf16.mxu0 %v9895_v55  ;;  %v5106_v31 = vrot.slane %v5104_v63, 4  ;;  %v7072_v12 = vrot.slane %v5755_v41, 9  ;;  %v5873_v34 = vrot.slane %v5756_v11, 5  ;;  %v5876_v52 = vrot.slane %v5757_v21, 5  ;;  %v4941_v41 = vld [vmem:[#allocation2 + $0x64] sm:$0xf] }
 0x15a   : > { %v9189_v48 = vpop.f32.mrf.mxu0  ;;  %v5112_v55 = vrot.slane %v5110_v13, 5  ;;  %v5089_v45 = vsel %vm8390_vm13, %v5084_v15, %v5088_v3  ;;  %v5098_v40 = vrot.slane %v5097_v27, 4  ;;  %v1956_v28 = vadd.f32 %v9092_v39, %v8832_v5  ;;  %v4942_v13 = vld [vmem:[#allocation2 + $0x68] sm:$0x1] }
 0x15b   : > { %v7047_v30 = vcombine.low %v5079_v2, %v5089_v45  ;;  %v5107_v10 = vor.u32 %v5106_v31, %v5102_v16  ;;  %v9214_v61 = vsel %vm8384_vm12, %v7072_v12, %v5873_v34  ;;  %v5875_v63 = vrot.slane %v5873_v34, 4  ;;  %v5758_v31 = vld [vmem:[#allocation2 + $0x60] sm:$0xe]  ;;  %v5759_v12 = vld [vmem:[#allocation2 + $0x64] sm:$0xf] }
 0x15c   : > { %v9202_v43 = vpop.f32.mrf.mxu1  ;;  %v9204_v1 = vpop.f32.mrf.mxu0  ;;  %v5103_v3 = vsel %vm8390_vm13, %v5098_v40, %v5102_v16  ;;  %v9222_v5 = vadd.f32 %v9084_v14, %v1956_v28  ;;  %v1959_v39 = vadd.f32 %v9114_v50, %v8842_v26  ;;  %v1957_v2 = vadd.f32 %v9124_v6, %v8857_v62  ;;  %v5760_v34 = vld [vmem:[#allocation2 + $0x68] sm:$0x1]  ;;  %v4943_v28 = vld [vmem:[#allocation2 + $0x6c] sm:$0xf]  ;;  %v4944_v26 = vld [vmem:[#allocation2 + $0x70] sm:$0xf] }
 0x15d   : > { %v5108_v21 = vrot.slane %v5107_v10, 4  ;;  %v9230_v15 = vsel %vm8384_vm12, %v5875_v63, %v5876_v52  ;;  %v5118_v27 = vshll.u32 %v4940_v49, 16  ;;  %v9896_v14 = vcombine.low %v9090_v17, %v9101_v54 }
 0x15e   : > { %v9210_v8 = vpop.f32.mrf.mxu1  ;;  %v9216_v11 = vpop.f32.mrf.mxu0  ;;  %7859 = vmatmul.mubr.bf16.gmra.mxu1 %v9165_v32  ;;  %v5115_v32 = vshrl.u32 %v4940_v49, 16  ;;  %v9240_v62 = vadd.f32 %v9103_v24, %v1959_v39  ;;  %v9243_v50 = vadd.f32 %v9116_v23, %v1957_v2  ;;  %v5124_v6 = vshll.u32 %v4941_v41, 16 }
 0x15f   : > { %7862 = vmatprep.mubr.bf16.mxu1 %v7047_v30  ;;  %7903 = vmatmul.mubr.bf16.vlgmr.msra.gmra.mxu0 %v9896_v14  ;;  %v9897_v45 = vcombine.low %v9120_v25, %v9130_v57  ;;  %v5113_v17 = vsel %vm8390_vm13, %v5108_v21, %v5112_v55  ;;  %v5120_v40 = vrot.slane %v5118_v27, 5  ;;  %v5128_v52 = vshrl.u32 %v4941_v41, 16 }
 0x160   : > { %v9232_v16 = vpop.f32.mrf.mxu1  ;;  %v5117_v54 = vrot.slane %v5115_v32, 4  ;;  %v9250_v49 = vpop.f32.mrf.mxu0  ;;  %v7048_v24 = vcombine.low %v5103_v3, %v5113_v17  ;;  %v5126_v30 = vrot.slane %v5124_v6, 5  ;;  %v5134_v23 = vshll.u32 %v4942_v13, 16  ;;  %v5761_v6 = vld [vmem:[#allocation2 + $0x6c] sm:$0xe] }
 0x161   : > { %7906 = vmatprep.mubr.bf16.mxu0 %v9897_v45  ;;  %v7073_v10 = vrot.slane %v5758_v31, 9  ;;  %v5130_v39 = vrot.slane %v5128_v52, 4  ;;  %v5880_v2 = vrot.slane %v5759_v12, 5  ;;  %v5883_v14 = vrot.slane %v5760_v34, 5  ;;  %v4945_v31 = vld [vmem:[#allocation2 + $0x74] sm:$0x1] }
 0x162   : > { %v5121_v63 = vor.u32 %v5120_v40, %v5117_v54  ;;  %v9252_v25 = vpop.f32.mrf.mxu1  ;;  %v5136_v57 = vrot.slane %v5134_v23, 5  ;;  %v1962_v55 = vadd.f32 %v9146_v35, %v8874_v53  ;;  %v5139_v21 = vshrl.u32 %v4943_v28, 16  ;;  %v5762_v35 = vld [vmem:[#allocation2 + $0x70] sm:$0xf]  ;;  %v5763_v23 = vld [vmem:[#allocation2 + $0x74] sm:$0x1] }
 0x163   : > { %v5142_v41 = vshll.u32 %v4943_v28, 16  ;;  %v5131_v27 = vor.u32 %v5130_v39, %v5126_v30  ;;  %v9258_v3 = vsel %vm8384_vm12, %v7073_v10, %v5880_v2  ;;  %v5882_v13 = vrot.slane %v5880_v2, 4 }
 0x164   : > { %v5122_v32 = vrot.slane %v5121_v63, 4  ;;  %v9263_v34 = vadd.f32 %v9137_v20, %v1962_v55  ;;  %v5141_v45 = vrot.slane %v5139_v21, 4  ;;  %v5148_v53 = vshll.u32 %v4944_v26, 16 }
 0x165   : > { %v5144_v17 = vrot.slane %v5142_v41, 5  ;;  %v5132_v40 = vrot.slane %v5131_v27, 4  ;;  %v5884_v52 = vsel %vm8384_vm12, %v5882_v13, %v5883_v14  ;;  %v5152_v28 = vshrl.u32 %v4944_v26, 16 }
 0x166   : > { %7863 = vmatmul.mubr.bf16.gmra.mxu1 %v7048_v24  ;;  %9898 = vst [vmem:[#allocation23_spill] sm:$0xff] %v9263_v34  ;;  %v5127_v54 = vsel %vm8390_vm13, %v5122_v32, %v5126_v30  ;;  %v9899_v24 = vcombine.low %v9152_v19, %v9169_v44  ;;  %v7105_v20 = vcombine.low %v9258_v3, %v5884_v52  ;;  %v5150_v39 = vrot.slane %v5148_v53, 5  ;;  %v4946_v32 = vld [vmem:[#allocation2 + $0x78] sm:$0xf]  ;;  %v4947_v53 = vld [vmem:[#allocation2 + $0x7c] sm:$0xf] }
 0x167   : > { %v5145_v63 = vor.u32 %v5144_v17, %v5141_v45  ;;  %v5158_v2 = vshll.u32 %v4945_v31, 16  ;;  %v9900_v30 = vcombine.low %v9184_v37, %v9198_v38  ;;  %v5137_v26 = vsel %vm8390_vm13, %v5132_v40, %v5136_v57 }
 0x168   : > { %v9260_v12 = vpop.f32.mrf.mxu0  ;;  %7907 = vmatmul.mubr.bf16.gmra.mxu0 %v9899_v24  ;;  %v5154_v14 = vrot.slane %v5152_v28, 4  ;;  %v7074_v21 = vrot.slane %v5761_v6, 9  ;;  %v5887_v41 = vrot.slane %v5762_v35, 5  ;;  %v7049_v19 = vcombine.low %v5127_v54, %v5137_v26  ;;  %v4948_v35 = vld [vmem:[#allocation2 + $0x80] sm:$0x1] }
 0x169   : > { %v9269_v10 = vpop.f32.mrf.mxu1  ;;  %7910 = vmatprep.mubr.bf16.mxu0 %v9900_v30  ;;  %v5146_v44 = vrot.slane %v5145_v63, 4  ;;  %v5160_v27 = vrot.slane %v5158_v2, 5  ;;  %v5890_v3 = vrot.slane %v5763_v23, 5  ;;  %v1960_v38 = vadd.f32 %v9161_v0, %v8880_v59  ;;  %v5764_v23 = vld [vmem:[#allocation2 + $0x78] sm:$0xe] }
 0x16a   : > { %v9275_v55 = vpop.f32.mrf.mxu0  ;;  %v5155_v31 = vor.u32 %v5154_v14, %v5150_v39  ;;  %v9286_v45 = vsel %vm8384_vm12, %v7074_v21, %v5887_v41  ;;  %v5889_v37 = vrot.slane %v5887_v41, 4  ;;  %7866 = vmatprep.mubr.bf16.mxu1 %v7049_v19  ;;  %v1963_v6 = vadd.f32 %v9173_v58, %v8888_v60  ;;  %v5765_v24 = vld [vmem:[#allocation2 + $0x7c] sm:$0xf]  ;;  %v5766_v63 = vld [vmem:[#allocation2 + $0x80] sm:$0x1] }
 0x16b   : > { %v9282_v13 = vpop.f32.mrf.mxu1  ;;  %v5151_v57 = vsel %vm8390_vm13, %v5146_v44, %v5150_v39  ;;  %v1961_v17 = vadd.f32 %v9180_v18, %v8907_v46  ;;  %v5163_v54 = vshrl.u32 %v4946_v32, 16  ;;  %v9301_v59 = vadd.f32 %v9148_v7, %v1960_v38 }
 0x16c   : > { %v9296_v40 = vpop.f32.mrf.mxu0  ;;  %v5156_v52 = vrot.slane %v5155_v31, 4  ;;  %v5891_v28 = vsel %vm8384_vm12, %v5889_v37, %v5890_v3  ;;  %v5166_v0 = vshll.u32 %v4946_v32, 16  ;;  %v9305_v58 = vadd.f32 %v9163_v4, %v1963_v6 }
 0x16d   : > { %9901 = vst [vmem:[#allocation24_spill] sm:$0xff] %v9301_v59  ;;  %v7106_v60 = vcombine.low %v9286_v45, %v5891_v28  ;;  %v9308_v46 = vadd.f32 %v9175_v36, %v1961_v17  ;;  %v5165_v18 = vrot.slane %v5163_v54, 4  ;;  %v9310_v39 = vpop.f32.mrf.mxu1  ;;  %v5172_v30 = vshll.u32 %v4947_v53, 16  ;;  %v4949_v36 = vld [vmem:[#allocation2 + $0x84] sm:$0xf] }
 0x16e   : > { %9902 = vst [vmem:[#allocation25_spill] sm:$0xff] %v9305_v58  ;;  %v5161_v2 = vsel %vm8390_vm13, %v5156_v52, %v5160_v27  ;;  %v5168_v7 = vrot.slane %v5166_v0, 5  ;;  %v5176_v26 = vshrl.u32 %v4947_v53, 16  ;;  %v9904_v14 = vcombine.low %v9214_v61, %v9230_v15  ;;  %v9317_v19 = vpop.f32.mrf.mxu0  ;;  %v4950_v27 = vld [vmem:[#allocation2 + $0x88] sm:$0xf] }
 0x16f   : > { %9903 = vst [vmem:[#allocation26_spill] sm:$0xff] %v9308_v46  ;;  %v7050_v21 = vcombine.low %v5151_v57, %v5161_v2  ;;  %v5182_v4 = vshll.u32 %v4948_v35, 16  ;;  %v7075_v41 = vrot.slane %v5764_v23, 9  ;;  %v5894_v32 = vrot.slane %v5765_v24, 5  ;;  %v4951_v57 = vld [vmem:[#allocation2 + $0x8c] sm:$0x1]  ;;  %v9323_v6 = vpop.f32.mrf.mxu1 }
 0x170   : > { %7911 = vmatmul.mubr.bf16.gmra.mxu0 %v9904_v14  ;;  %v5169_v44 = vor.u32 %v5168_v7, %v5165_v18  ;;  %v5174_v3 = vrot.slane %v5172_v30, 5  ;;  %v5178_v31 = vrot.slane %v5176_v26, 4  ;;  %v5897_v45 = vrot.slane %v5766_v63, 5  ;;  %v5767_v54 = vld [vmem:[#allocation2 + $0x84] sm:$0xe] }
 0x171   : > { %7914 = vmatprep.mubr.bf16.mxu0 %v7105_v20  ;;  %7867 = vmatmul.mubr.bf16.gmra.mxu1 %v7050_v21  ;;  %v5184_v37 = vrot.slane %v5182_v4, 5  ;;  %v5895_v38 = vsel %vm8384_vm12, %v7075_v41, %v5894_v32  ;;  %v5896_v61 = vrot.slane %v5894_v32, 4  ;;  %v1966_v15 = vadd.f32 %v9202_v43, %v8764_v9  ;;  %v5768_v24 = vld [vmem:[#allocation2 + $0x88] sm:$0xf]  ;;  %v5769_v18 = vld [vmem:[#allocation2 + $0x8c] sm:$0x1] }
 0x172   : > { %v5170_v17 = vrot.slane %v5169_v44, 4  ;;  %v5179_v53 = vor.u32 %v5178_v31, %v5174_v3  ;;  %v5187_v20 = vshrl.u32 %v4949_v36, 16  ;;  %v5190_v35 = vshll.u32 %v4949_v36, 16  ;;  %v4952_v31 = vld [vmem:[#allocation2 + $0x90] sm:$0xf] }
 0x173   : > { %v5898_v52 = vsel %vm8384_vm12, %v5896_v61, %v5897_v45  ;;  %v9328_v28 = vadd.f32 %v9189_v48, %v1966_v15  ;;  %v5196_v0 = vshll.u32 %v4950_v27, 16  ;;  %v5200_v23 = vshrl.u32 %v4950_v27, 16 }
 0x174   : > { %v5175_v9 = vsel %vm8390_vm13, %v5170_v17, %v5174_v3  ;;  %v5180_v43 = vrot.slane %v5179_v53, 4  ;;  %v7107_v2 = vcombine.low %v5895_v38, %v5898_v52  ;;  %v5189_v7 = vrot.slane %v5187_v20, 4  ;;  %v4954_v52 = vld [vmem:[#allocation2 + $0x98] sm:$0x1] }
 0x175   : > { %9905 = vst [vmem:[#allocation27_spill] sm:$0xff] %v9328_v28  ;;  %v9330_v63 = vpop.f32.mrf.mxu0  ;;  %v5192_v30 = vrot.slane %v5190_v35, 5  ;;  %v5198_v26 = vrot.slane %v5196_v0, 5  ;;  %v5202_v14 = vrot.slane %v5200_v23, 4  ;;  %v5206_v21 = vshll.u32 %v4951_v57, 16 }
 0x176   : > { %v5185_v41 = vsel %vm8390_vm13, %v5180_v43, %v5184_v37  ;;  %v7076_v32 = vrot.slane %v5767_v54, 9  ;;  %v5901_v36 = vrot.slane %v5768_v24, 5  ;;  %v5904_v44 = vrot.slane %v5769_v18, 5 }
 0x177   : > { %v9334_v4 = vpop.f32.mrf.mxu1  ;;  %v9336_v48 = vpop.f32.mrf.mxu0  ;;  %v7051_v3 = vcombine.low %v5175_v9, %v5185_v41  ;;  %v5193_v45 = vor.u32 %v5192_v30, %v5189_v7  ;;  %v5203_v27 = vor.u32 %v5202_v14, %v5198_v26  ;;  %v5208_v38 = vrot.slane %v5206_v21, 5  ;;  %v5771_v9 = vld [vmem:[#allocation2 + $0x94] sm:$0xf]  ;;  %v5772_v7 = vld [vmem:[#allocation2 + $0x98] sm:$0x1] }
 0x178   : > { %7915 = vmatmul.mubr.bf16.gmra.mxu0 %v7106_v60  ;;  %v5902_v57 = vsel %vm8384_vm12, %v7076_v32, %v5901_v36  ;;  %v5903_v17 = vrot.slane %v5901_v36, 4  ;;  %v1964_v37 = vadd.f32 %v9210_v8, %v8772_v22  ;;  %v1967_v53 = vadd.f32 %v9232_v16, %v8780_v51  ;;  %v4953_v60 = vld [vmem:[#allocation2 + $0x94] sm:$0xf]  ;;  %v5770_v16 = vld [vmem:[#allocation2 + $0x90] sm:$0xe] }
 0x179   : > { %v9340_v61 = vpop.f32.mrf.mxu1  ;;  %v9342_v15 = vpop.f32.mrf.mxu0  ;;  %7918 = vmatprep.mubr.bf16.mxu0 %v7107_v2  ;;  %7870 = vmatprep.mubr.bf16.mxu1 %v7051_v3  ;;  %v5194_v20 = vrot.slane %v5193_v45, 4  ;;  %v5204_v35 = vrot.slane %v5203_v27, 4  ;;  %v1965_v54 = vadd.f32 %v9252_v25, %v8784_v56  ;;  %v5211_v0 = vshrl.u32 %v4952_v31, 16 }
 0x17a   : > { %v5905_v18 = vsel %vm8384_vm12, %v5903_v17, %v5904_v44  ;;  %v9359_v22 = vadd.f32 %v9204_v1, %v1964_v37  ;;  %v9362_v51 = vadd.f32 %v9216_v11, %v1967_v53  ;;  %v5214_v8 = vshll.u32 %v4952_v31, 16  ;;  %v4955_v31 = vld [vmem:[#allocation2 + $0x9c] sm:$0xf] }
 0x17b   : > { %v9352_v23 = vpop.f32.mrf.mxu1  ;;  %v9354_v24 = vpop.f32.mrf.mxu0  ;;  %v5199_v56 = vsel %vm8390_vm13, %v5194_v20, %v5198_v26  ;;  %v5209_v25 = vsel %vm8390_vm13, %v5204_v35, %v5208_v38  ;;  %v7108_v43 = vcombine.low %v5902_v57, %v5905_v18  ;;  %v9369_v2 = vadd.f32 %v9250_v49, %v1965_v54  ;;  %v4956_v38 = vld [vmem:[#allocation2 + $0xa0] sm:$0xf] }
 0x17c   : > { %9906 = vst [vmem:[#allocation28_spill] sm:$0xff] %v9359_v22  ;;  %9907 = vst [vmem:[#allocation29_spill] sm:$0xff] %v9362_v51  ;;  %v7052_v1 = vcombine.low %v5199_v56, %v5209_v25  ;;  %v5213_v14 = vrot.slane %v5211_v0, 4  ;;  %v5216_v11 = vrot.slane %v5214_v8, 5  ;;  %v5220_v21 = vshll.u32 %v4953_v60, 16 }
 0x17d   : > { %9908 = vst [vmem:[#allocation30_spill] sm:$0xff] %v9369_v2  ;;  %v9371_v30 = vpop.f32.mrf.mxu1  ;;  %v5224_v41 = vshrl.u32 %v4953_v60, 16  ;;  %v5230_v32 = vshll.u32 %v4954_v52, 16  ;;  %v7077_v36 = vrot.slane %v5770_v16, 9  ;;  %v5908_v44 = vrot.slane %v5771_v9, 5 }
 0x17e   : > { %7871 = vmatmul.mubr.bf16.gmra.mxu1 %v7052_v1  ;;  %v5217_v3 = vor.u32 %v5216_v11, %v5213_v14  ;;  %v5222_v45 = vrot.slane %v5220_v21, 5  ;;  %v5911_v27 = vrot.slane %v5772_v7, 5  ;;  %v1970_v49 = vadd.f32 %v9269_v10, %v8794_v29  ;;  %v4957_v60 = vld [vmem:[#allocation2 + $0xa4] sm:$0x1]  ;;  %v5773_v29 = vld [vmem:[#allocation2 + $0x9c] sm:$0xe] }
 0x17f   : > { %v9373_v26 = vpop.f32.mrf.mxu0  ;;  %v5226_v57 = vrot.slane %v5224_v41, 4  ;;  %v5232_v17 = vrot.slane %v5230_v32, 5  ;;  %v5909_v37 = vsel %vm8384_vm12, %v7077_v36, %v5908_v44  ;;  %v5910_v53 = vrot.slane %v5908_v44, 4  ;;  %v5774_v56 = vld [vmem:[#allocation2 + $0xa0] sm:$0xf] }
 0x180   : > { %7919 = vmatmul.mubr.bf16.gmra.mxu0 %v7108_v43  ;;  %v5218_v54 = vrot.slane %v5217_v3, 4  ;;  %v9384_v52 = vadd.f32 %v9260_v12, %v1970_v49  ;;  %v5235_v0 = vshrl.u32 %v4955_v31, 16  ;;  %v5238_v18 = vshll.u32 %v4955_v31, 16  ;;  %v5775_v25 = vld [vmem:[#allocation2 + $0xa4] sm:$0x1] }
 0x181   : > { %v9379_v20 = vpop.f32.mrf.mxu1  ;;  %v9381_v35 = vpop.f32.mrf.mxu0  ;;  %v5227_v10 = vor.u32 %v5226_v57, %v5222_v45  ;;  %v5912_v8 = vsel %vm8384_vm12, %v5910_v53, %v5911_v27  ;;  %v5244_v16 = vshll.u32 %v4956_v38, 16  ;;  %v5248_v9 = vshrl.u32 %v4956_v38, 16 }
 0x182   : > { %9909 = vst [vmem:[#allocation31_spill] sm:$0xff] %v9384_v52  ;;  %v5223_v1 = vsel %vm8390_vm13, %v5218_v54, %v5222_v45  ;;  %v7109_v12 = vcombine.low %v5909_v37, %v5912_v8  ;;  %v5237_v14 = vrot.slane %v5235_v0, 4  ;;  %v5240_v11 = vrot.slane %v5238_v18, 5  ;;  %v9910_v45 = vld [vmem:[#allocation4_spill] sm:$0xff]  ;;  %v4958_v54 = vld [vmem:[#allocation2 + $0xa8] sm:$0xf] }
 0x183   : > { %v9388_v43 = vpop.f32.mrf.mxu1  ;;  %v9390_v7 = vpop.f32.mrf.mxu0  ;;  %v5228_v21 = vrot.slane %v5227_v10, 4  ;;  %v5246_v41 = vrot.slane %v5244_v16, 5  ;;  %v5250_v32 = vrot.slane %v5248_v9, 4  ;;  %v5254_v36 = vshll.u32 %v4957_v60, 16 }
 0x184   : > { %7922 = vmatprep.mubr.bf16.mxu0 %v7109_v12  ;;  %v5241_v31 = vor.u32 %v5240_v11, %v5237_v14  ;;  %v7078_v3 = vrot.slane %v5773_v29, 9  ;;  %v5915_v27 = vrot.slane %v5774_v56, 5  ;;  %v5918_v49 = vrot.slane %v5775_v25, 5  ;;  %v9913_v25 = vld [vmem:[#allocation6_spill] sm:$0xff]  ;;  %v4960_v14 = vld [vmem:[#allocation2 + $0xb0] sm:$0x1] }
 0x185   : > { %v9394_v44 = vpop.f32.mrf.mxu1  ;;  %v5233_v38 = vsel %vm8390_vm13, %v5228_v21, %v5232_v17  ;;  %v5251_v57 = vor.u32 %v5250_v32, %v5246_v41  ;;  %v5256_v53 = vrot.slane %v5254_v36, 5  ;;  %v1968_v37 = vadd.f32 %v9282_v13, %v9910_v45  ;;  %v9402_v18 = vpop.f32.mrf.mxu0  ;;  %v9912_v17 = vld [vmem:[#allocation5_spill] sm:$0xff]  ;;  %v4959_v12 = vld [vmem:[#allocation2 + $0xac] sm:$0xf]  ;;  %v5776_v36 = vld [vmem:[#allocation2 + $0xa8] sm:$0xe] }
 0x186   : > { %v7053_v60 = vcombine.low %v5223_v1, %v5233_v38  ;;  %v5242_v10 = vrot.slane %v5241_v31, 4  ;;  %v5916_v29 = vsel %vm8384_vm12, %v7078_v3, %v5915_v27  ;;  %v5917_v8 = vrot.slane %v5915_v27, 4  ;;  %v5777_v31 = vld [vmem:[#allocation2 + $0xac] sm:$0xf]  ;;  %v5778_v38 = vld [vmem:[#allocation2 + $0xb0] sm:$0x1] }
 0x187   : > { %v9400_v0 = vpop.f32.mrf.mxu1  ;;  %v5252_v16 = vrot.slane %v5251_v57, 4  ;;  %v9407_v9 = vadd.f32 %v9275_v55, %v1968_v37  ;;  %v1971_v56 = vadd.f32 %v9310_v39, %v9912_v17  ;;  %v1969_v13 = vadd.f32 %v9323_v6, %v9913_v25  ;;  %v9916_v25 = vld [vmem:[#allocation7_spill] sm:$0xff] }
 0x188   : > { %7874 = vmatprep.mubr.bf16.mxu1 %v7053_v60  ;;  %v5247_v1 = vsel %vm8390_vm13, %v5242_v10, %v5246_v41  ;;  %v5919_v21 = vsel %vm8384_vm12, %v5917_v8, %v5918_v49  ;;  %v5259_v32 = vshrl.u32 %v4958_v54, 16  ;;  %v5262_v55 = vshll.u32 %v4958_v54, 16  ;;  %v4961_v8 = vld [vmem:[#allocation2 + $0xb4] sm:$0xf] }
 0x189   : > { %9911 = vst [vmem:[#allocation4_spill] sm:$0xff] %v9407_v9  ;;  %v9413_v11 = vpop.f32.mrf.mxu1  ;;  %v5257_v39 = vsel %vm8390_vm13, %v5252_v16, %v5256_v53  ;;  %v7110_v3 = vcombine.low %v5916_v29, %v5919_v21  ;;  %v9422_v6 = vadd.f32 %v9296_v40, %v1971_v56  ;;  %v9425_v27 = vadd.f32 %v9317_v19, %v1969_v13 }
 0x18a   : > { %v7054_v49 = vcombine.low %v5247_v1, %v5257_v39  ;;  %v5261_v45 = vrot.slane %v5259_v32, 4  ;;  %v5264_v37 = vrot.slane %v5262_v55, 5  ;;  %v5268_v54 = vshll.u32 %v4959_v12, 16  ;;  %v4962_v1 = vld [vmem:[#allocation2 + $0xb8] sm:$0xf] }
 0x18b   : > { %9914 = vst [vmem:[#allocation5_spill] sm:$0xff] %v9422_v6  ;;  %9915 = vst [vmem:[#allocation6_spill] sm:$0xff] %v9425_v27  ;;  %v9427_v57 = vpop.f32.mrf.mxu0  ;;  %v9429_v41 = vpop.f32.mrf.mxu1  ;;  %7923 = vmatmul.mubr.bf16.gmra.mxu0 %v7110_v3  ;;  %v5272_v60 = vshrl.u32 %v4959_v12, 16  ;;  %v5278_v10 = vshll.u32 %v4960_v14, 16  ;;  %v7079_v53 = vrot.slane %v5776_v36, 9  ;;  %v5922_v29 = vrot.slane %v5777_v31, 5 }
 0x18c   : > { %7875 = vmatmul.mubr.bf16.gmra.mxu1 %v7054_v49  ;;  %v5265_v19 = vor.u32 %v5264_v37, %v5261_v45  ;;  %v5270_v17 = vrot.slane %v5268_v54, 5  ;;  %v5925_v56 = vrot.slane %v5778_v38, 5  ;;  %v1974_v13 = vadd.f32 %v9334_v4, %v9916_v25  ;;  %v4963_v55 = vld [vmem:[#allocation2 + $0xbc] sm:$0x1]  ;;  %v5779_v45 = vld [vmem:[#allocation2 + $0xb4] sm:$0xe] }
 0x18d   : > { %v9431_v40 = vpop.f32.mrf.mxu0  ;;  %v9433_v16 = vpop.f32.mrf.mxu1  ;;  %v5274_v21 = vrot.slane %v5272_v60, 4  ;;  %v5280_v32 = vrot.slane %v5278_v10, 5  ;;  %v5923_v12 = vsel %vm8384_vm12, %v7079_v53, %v5922_v29  ;;  %v5924_v14 = vrot.slane %v5922_v29, 4  ;;  %v5780_v10 = vld [vmem:[#allocation2 + $0xb8] sm:$0xf] }
 0x18e   : > { %v5266_v39 = vrot.slane %v5265_v19, 4  ;;  %v9444_v3 = vadd.f32 %v9330_v63, %v1974_v13  ;;  %v5283_v38 = vshrl.u32 %v4961_v8, 16  ;;  %v5286_v49 = vshll.u32 %v4961_v8, 16  ;;  %v5781_v53 = vld [vmem:[#allocation2 + $0xbc] sm:$0x1] }
 0x18f   : > { %v9439_v36 = vpop.f32.mrf.mxu0  ;;  %v9441_v31 = vpop.f32.mrf.mxu1  ;;  %v5275_v4 = vor.u32 %v5274_v21, %v5270_v17  ;;  %v5926_v37 = vsel %vm8384_vm12, %v5924_v14, %v5925_v56  ;;  %v5292_v54 = vshll.u32 %v4962_v1, 16  ;;  %v5296_v60 = vshrl.u32 %v4962_v1, 16 }
 0x190   : > { %9917 = vst [vmem:[#allocation7_spill] sm:$0xff] %v9444_v3  ;;  %v5271_v19 = vsel %vm8390_vm13, %v5266_v39, %v5270_v17  ;;  %v7111_v63 = vcombine.low %v5923_v12, %v5926_v37  ;;  %v5285_v13 = vrot.slane %v5283_v38, 4  ;;  %v5288_v3 = vrot.slane %v5286_v49, 5  ;;  %v9918_v39 = vld [vmem:[#allocation8_spill] sm:$0xff]  ;;  %v4964_v49 = vld [vmem:[#allocation2 + $0xc0] sm:$0xf] }
 0x191   : > { %v9448_v29 = vpop.f32.mrf.mxu0  ;;  %v9450_v25 = vpop.f32.mrf.mxu1  ;;  %v5276_v8 = vrot.slane %v5275_v4, 4  ;;  %v5294_v27 = vrot.slane %v5292_v54, 5  ;;  %v5298_v21 = vrot.slane %v5296_v60, 4  ;;  %v5302_v6 = vshll.u32 %v4963_v55, 16 }
 0x192   : > { %7926 = vmatprep.mubr.bf16.mxu0 %v7111_v63  ;;  %v5289_v1 = vor.u32 %v5288_v3, %v5285_v13  ;;  %v7080_v14 = vrot.slane %v5779_v45, 9  ;;  %v5929_v52 = vrot.slane %v5780_v10, 5  ;;  %v5932_v2 = vrot.slane %v5781_v53, 5  ;;  %v9921_v53 = vld [vmem:[#allocation10_spill] sm:$0xff]  ;;  %v4965_v63 = vld [vmem:[#allocation2 + $0xc4] sm:$0xf] }
 0x193   : > { %v9454_v9 = vpop.f32.mrf.mxu0  ;;  %v9456_v56 = vpop.f32.mrf.mxu1  ;;  %v5281_v51 = vsel %vm8390_vm13, %v5276_v8, %v5280_v32  ;;  %v5299_v17 = vor.u32 %v5298_v21, %v5294_v27  ;;  %v5304_v12 = vrot.slane %v5302_v6, 5  ;;  %v1972_v38 = vadd.f32 %v9340_v61, %v9918_v39  ;;  %v9920_v32 = vld [vmem:[#allocation9_spill] sm:$0xff]  ;;  %v4966_v13 = vld [vmem:[#allocation2 + $0xc8] sm:$0x1] }
 0x194   : > { %v7055_v37 = vcombine.low %v5271_v19, %v5281_v51  ;;  %v5290_v54 = vrot.slane %v5289_v1, 4  ;;  %v5930_v3 = vsel %vm8384_vm12, %v7080_v14, %v5929_v52  ;;  %v5931_v45 = vrot.slane %v5929_v52, 4  ;;  %v5782_v1 = vld [vmem:[#allocation2 + $0xc0] sm:$0xe] }
 0x195   : > { %v9462_v4 = vpop.f32.mrf.mxu0  ;;  %v9464_v55 = vpop.f32.mrf.mxu1  ;;  %v5300_v60 = vrot.slane %v5299_v17, 4  ;;  %v9469_v10 = vadd.f32 %v9336_v48, %v1972_v38  ;;  %v1975_v6 = vadd.f32 %v9352_v23, %v9920_v32  ;;  %v1973_v61 = vadd.f32 %v9371_v30, %v9921_v53  ;;  %v5783_v23 = vld [vmem:[#allocation2 + $0xc4] sm:$0xf]  ;;  %v5784_v38 = vld [vmem:[#allocation2 + $0xc8] sm:$0x1] }
 0x196   : > { %7878 = vmatprep.mubr.bf16.mxu1 %v7055_v37  ;;  %v5295_v52 = vsel %vm8390_vm13, %v5290_v54, %v5294_v27  ;;  %v5933_v48 = vsel %vm8384_vm12, %v5931_v45, %v5932_v2  ;;  %v5307_v19 = vshrl.u32 %v4964_v49, 16  ;;  %v5310_v21 = vshll.u32 %v4964_v49, 16 }
 0x197   : > { %9919 = vst [vmem:[#allocation8_spill] sm:$0xff] %v9469_v10  ;;  %v9475_v8 = vpop.f32.mrf.mxu0  ;;  %v9477_v51 = vpop.f32.mrf.mxu1  ;;  %v5305_v30 = vsel %vm8390_vm13, %v5300_v60, %v5304_v12  ;;  %v7112_v14 = vcombine.low %v5930_v3, %v5933_v48  ;;  %v9486_v17 = vadd.f32 %v9342_v15, %v1975_v6  ;;  %v9489_v39 = vadd.f32 %v9354_v24, %v1973_v61  ;;  %v4967_v60 = vld [vmem:[#allocation2 + $0xcc] sm:$0xf] }
 0x198   : > { %v7056_v2 = vcombine.low %v5295_v52, %v5305_v30  ;;  %v5309_v54 = vrot.slane %v5307_v19, 4  ;;  %v5312_v49 = vrot.slane %v5310_v21, 5  ;;  %v5316_v45 = vshll.u32 %v4965_v63, 16  ;;  %v4968_v19 = vld [vmem:[#allocation2 + $0xd0] sm:$0xf] }
 0x199   : > { %9922 = vst [vmem:[#allocation9_spill] sm:$0xff] %v9486_v17  ;;  %9923 = vst [vmem:[#allocation10_spill] sm:$0xff] %v9489_v39  ;;  %v9491_v37 = vpop.f32.mrf.mxu0  ;;  %v9493_v27 = vpop.f32.mrf.mxu1  ;;  %7927 = vmatmul.mubr.bf16.gmra.mxu0 %v7112_v14  ;;  %v5320_v32 = vshrl.u32 %v4965_v63, 16  ;;  %v5326_v53 = vshll.u32 %v4966_v13, 16  ;;  %v7081_v12 = vrot.slane %v5782_v1, 9  ;;  %v5936_v3 = vrot.slane %v5783_v23, 5 }
 0x19a   : > { %7879 = vmatmul.mubr.bf16.gmra.mxu1 %v7056_v2  ;;  %v5313_v24 = vor.u32 %v5312_v49, %v5309_v54  ;;  %v5318_v61 = vrot.slane %v5316_v45, 5  ;;  %v5939_v48 = vrot.slane %v5784_v38, 5  ;;  %v9924_v39 = vld [vmem:[#allocation11_spill] sm:$0xff]  ;;  %v5331_v38 = vshrl.u32 %v4967_v60, 16  ;;  %v5785_v49 = vld [vmem:[#allocation2 + $0xcc] sm:$0xe] }
 0x19b   : > { %v9497_v6 = vpop.f32.mrf.mxu1  ;;  %v1978_v52 = vadd.f32 %v9379_v20, %v9924_v39  ;;  %v5322_v21 = vrot.slane %v5320_v32, 4  ;;  %v5328_v30 = vrot.slane %v5326_v53, 5  ;;  %v5937_v63 = vsel %vm8384_vm12, %v7081_v12, %v5936_v3  ;;  %v4969_v1 = vld [vmem:[#allocation2 + $0xd4] sm:$0x1]  ;;  %v5786_v53 = vld [vmem:[#allocation2 + $0xd0] sm:$0xf] }
 0x19c   : > { %v9495_v15 = vpop.f32.mrf.mxu0  ;;  %v5938_v13 = vrot.slane %v5936_v3, 4  ;;  %v5314_v17 = vrot.slane %v5313_v24, 4  ;;  %v5334_v54 = vshll.u32 %v4967_v60, 16  ;;  %v5340_v45 = vshll.u32 %v4968_v19, 16  ;;  %v5787_v12 = vld [vmem:[#allocation2 + $0xd4] sm:$0x1] }
 0x19d   : > { %v9505_v14 = vpop.f32.mrf.mxu1  ;;  %v9508_v2 = vadd.f32 %v9373_v26, %v1978_v52  ;;  %v5323_v20 = vor.u32 %v5322_v21, %v5318_v61  ;;  %v5344_v32 = vshrl.u32 %v4968_v19, 16  ;;  %v5333_v52 = vrot.slane %v5331_v38, 4 }
 0x19e   : > { %v9503_v23 = vpop.f32.mrf.mxu0  ;;  %v5940_v39 = vsel %vm8384_vm12, %v5938_v13, %v5939_v48  ;;  %v5319_v24 = vsel %vm8390_vm13, %v5314_v17, %v5318_v61  ;;  %v5342_v22 = vrot.slane %v5340_v45, 5  ;;  %v5350_v28 = vshll.u32 %v4969_v1, 16  ;;  %v9927_v61 = vld [vmem:[#allocation12_spill] sm:$0xff] }
 0x19f   : > { %9925 = vst [vmem:[#allocation11_spill] sm:$0xff] %v9508_v2  ;;  %v9514_v10 = vpop.f32.mrf.mxu1  ;;  %v7113_v26 = vcombine.low %v5937_v63, %v5940_v39  ;;  %v5336_v2 = vrot.slane %v5334_v54, 5  ;;  %v5324_v60 = vrot.slane %v5323_v20, 4  ;;  %v5346_v21 = vrot.slane %v5344_v32, 4 }
 0x1a0   : > { %v9512_v3 = vpop.f32.mrf.mxu0  ;;  %v7082_v13 = vrot.slane %v5785_v49, 9  ;;  %v5943_v58 = vrot.slane %v5786_v53, 5  ;;  %v5352_v17 = vrot.slane %v5350_v28, 5  ;;  %v1976_v63 = vadd.f32 %v9388_v43, %v9927_v61  ;;  %v9928_v49 = vld [vmem:[#allocation13_spill] sm:$0xff] }
 0x1a1   : > { %9926 = vst [vmem:[#allocation32_spill] sm:$0xff] %v9512_v3  ;;  %v7676_v48 = vpop.f32.mrf.mxu1  ;;  %7930 = vmatprep.mubr.bf16.mxu0 %v7113_v26  ;;  %v5337_v19 = vor.u32 %v5336_v2, %v5333_v52  ;;  %v5946_v3 = vrot.slane %v5787_v12, 5  ;;  %v5329_v59 = vsel %vm8390_vm13, %v5324_v60, %v5328_v30  ;;  %v5347_v34 = vor.u32 %v5346_v21, %v5342_v22  ;;  %v9929_v30 = vld [vmem:[#allocation14_spill] sm:$0xff] }
 0x1a2   : > { %v9518_v46 = vpop.f32.mrf.mxu0  ;;  %v7057_v54 = vcombine.low %v5319_v24, %v5329_v59  ;;  %v5944_v1 = vsel %vm8384_vm12, %v7082_v13, %v5943_v58  ;;  %v5945_v39 = vrot.slane %v5943_v58, 4  ;;  %v9527_v2 = vadd.f32 %v9381_v35, %v1976_v63  ;;  %v9930_v58 = vld [vmem:[#allocation15_spill] sm:$0xff]  ;;  %v9931_v35 = vld [vmem:[#allocation16_spill] sm:$0xff]  ;;  %v9933_v21 = vld [vmem:[#allocation18_spill] sm:$0xff] }
 0x1a3   : > { %v2916_v38 = vpop.f32.mrf.mxu1  ;;  %v5338_v20 = vrot.slane %v5337_v19, 4  ;;  %v5348_v45 = vrot.slane %v5347_v34, 4  ;;  %v1979_v32 = vadd.f32 %v9394_v44, %v9928_v49  ;;  %v1977_v28 = vadd.f32 %v9400_v0, %v9929_v30  ;;  %v9934_v19 = vld [vmem:[#allocation19_spill] sm:$0xff]  ;;  %v9935_v13 = vld [vmem:[#allocation20_spill] sm:$0xff]  ;;  %v9940_v49 = vld [vmem:[#allocation25_spill] sm:$0xff] }
 0x1a4   : > { %7882 = vmatprep.mubr.bf16.mxu1 %v7057_v54  ;;  %v5947_v43 = vsel %vm8384_vm12, %v5945_v39, %v5946_v3  ;;  %v2997_v34 = vadd.f32 %v9413_v11, %v9930_v58  ;;  %v2995_v24 = vadd.f32 %v9429_v41, %v9931_v35  ;;  %v9932_v41 = vld [vmem:[#allocation17_spill] sm:$0xff] }
 0x1a5   : > { %v7677_v12 = vpop.f32.mrf.mxu1  ;;  %v5343_v59 = vsel %vm8390_vm13, %v5338_v20, %v5342_v22  ;;  %v5353_v44 = vsel %vm8390_vm13, %v5348_v45, %v5352_v17  ;;  %v7114_v26 = vcombine.low %v5944_v1, %v5947_v43  ;;  %v9544_v0 = vadd.f32 %v9390_v7, %v1979_v32  ;;  %v9937_v20 = vld [vmem:[#allocation22_spill] sm:$0xff]  ;;  %v9943_v43 = vld [vmem:[#allocation27_spill] sm:$0xff] }
 0x1a6   : > { %v7724_v53 = vpop.f32.mrf.mxu0  ;;  %v9547_v52 = vadd.f32 %v9402_v18, %v1977_v28  ;;  %v7058_v33 = vcombine.low %v5343_v59, %v5353_v44  ;;  %v9550_v3 = vadd.f32 %v9427_v57, %v2997_v34  ;;  %v9553_v11 = vadd.f32 %v9431_v40, %v2995_v24  ;;  %v9942_v59 = vld [vmem:[#allocation26_spill] sm:$0xff]  ;;  %v9944_v34 = vld [vmem:[#allocation28_spill] sm:$0xff] }
 0x1a7   : > { %v2919_v60 = vpop.f32.mrf.mxu1  ;;  %v2998_v42 = vadd.f32 %v9433_v16, %v9932_v41  ;;  %7931 = vmatmul.mubr.bf16.gmra.mxu0 %v7114_v26  ;;  %v2996_v7 = vadd.f32 %v9441_v31, %v9933_v21  ;;  %v3001_v18 = vadd.f32 %v9450_v25, %v9934_v19  ;;  %v2999_v17 = vadd.f32 %v9456_v56, %v9935_v13  ;;  %v9936_v16 = vld [vmem:[#allocation21_spill] sm:$0xff]  ;;  %v9946_v41 = vld [vmem:[#allocation30_spill] sm:$0xff]  ;;  %v9948_v13 = vld [vmem:[#allocation4_spill] sm:$0xff] }
 0x1a8   : > { %v3734_v22 = vpop.f32.mrf.mxu0  ;;  %v3002_v57 = vadd.f32 %v9464_v55, %v9142_v47  ;;  %7883 = vmatmul.mubr.bf16.gmra.mxu1 %v7058_v33  ;;  %v3000_v54 = vadd.f32 %v9477_v51, %v9936_v16  ;;  %v3005_v31 = vadd.f32 %v9493_v27, %v9937_v20  ;;  %v3003_v25 = vadd.f32 %v9497_v6, %v9222_v5  ;;  %v9939_v6 = vld [vmem:[#allocation24_spill] sm:$0xff]  ;;  %v9945_v26 = vld [vmem:[#allocation29_spill] sm:$0xff] }
 0x1a9   : > { %v7680_v63 = vpop.f32.mrf.mxu1  ;;  %v9566_v40 = vadd.f32 %v9439_v36, %v2998_v42  ;;  %v9575_v56 = vadd.f32 %v9448_v29, %v2996_v7  ;;  %v9578_v47 = vadd.f32 %v9454_v9, %v3001_v18  ;;  %v9581_v55 = vadd.f32 %v9462_v4, %v2999_v17  ;;  %v9938_v4 = vld [vmem:[#allocation23_spill] sm:$0xff]  ;;  %v9941_v28 = vld [vmem:[#allocation32_spill] sm:$0xff] }
 0x1aa   : > { %v7725_v61 = vpop.f32.mrf.mxu0  ;;  %v9584_v36 = vadd.f32 %v9475_v8, %v3002_v57  ;;  %v9587_v39 = vadd.f32 %v9491_v37, %v3000_v54  ;;  %v9590_v27 = vadd.f32 %v9495_v15, %v3005_v31  ;;  %v9593_v5 = vadd.f32 %v9503_v23, %v3003_v25  ;;  %v9950_v31 = vld [vmem:[#allocation6_spill] sm:$0xff] }
 0x1ab   : > { %v2932_v51 = vpop.f32.mrf.mxu1  ;;  %v3006_v9 = vadd.f32 %v9505_v14, %v9240_v62  ;;  %v3004_v29 = vadd.f32 %v9514_v10, %v9243_v50  ;;  %v3009_v8 = vadd.f32 %v7676_v48, %v9938_v4  ;;  %v3007_v45 = vadd.f32 %v2916_v38, %v9939_v6 }
 0x1ac   : > { %v3737_v1 = vpop.f32.mrf.mxu0  ;;  %v3010_v32 = vadd.f32 %v7677_v12, %v9940_v49  ;;  %v3008_v23 = vadd.f32 %v2919_v60, %v9942_v59  ;;  %v3013_v58 = vadd.f32 %v7680_v63, %v9943_v43  ;;  %v3011_v62 = vadd.f32 %v2932_v51, %v9944_v34  ;;  %v9952_v49 = vld [vmem:[#allocation8_spill] sm:$0xff]  ;;  %v9953_v59 = vld [vmem:[#allocation9_spill] sm:$0xff] }
 0x1ad   : > { %v7681_v30 = vpop.f32.mrf.mxu1  ;;  %v9603_v15 = vadd.f32 %v9941_v28, %v3006_v9  ;;  %v9609_v14 = vadd.f32 %v9518_v46, %v3004_v29  ;;  %v9611_v50 = vadd.f32 %v7724_v53, %v3009_v8  ;;  %v9613_v10 = vadd.f32 %v3734_v22, %v3007_v45  ;;  %v9947_v22 = vld [vmem:[#allocation31_spill] sm:$0xff] }
 0x1ae   : > { %v7728_v37 = vpop.f32.mrf.mxu0  ;;  %v9615_v48 = vadd.f32 %v7725_v61, %v3010_v32  ;;  %v9617_v35 = vadd.f32 %v3737_v1, %v3008_v23  ;;  %v3014_v60 = vadd.f32 %v7681_v30, %v9945_v26  ;;  %v9949_v61 = vld [vmem:[#allocation5_spill] sm:$0xff]  ;;  %v9951_v29 = vld [vmem:[#allocation7_spill] sm:$0xff] }
 0x1af   : > { %v2935_v12 = vpop.f32.mrf.mxu1  ;;  %v9619_v24 = vadd.f32 %v7728_v37, %v3013_v58  ;;  %v9954_v58 = vld [vmem:[#allocation10_spill] sm:$0xff] }
 0x1b0   : > { %v3750_v38 = vpop.f32.mrf.mxu0  ;;  %v3012_v46 = vadd.f32 %v2935_v12, %v9946_v41 }
 0x1b1   : > { %v9621_v44 = vadd.f32 %v3750_v38, %v3011_v62  ;;  %v7684_v42 = vpop.f32.mrf.mxu1 }
 0x1b2   : > { %v7729_v33 = vpop.f32.mrf.mxu0  ;;  %v3017_v21 = vadd.f32 %v7684_v42, %v9947_v22  ;;  %v9955_v22 = vld [vmem:[#allocation11_spill] sm:$0xff] }
 0x1b3   : > { %v9625_v53 = vadd.f32 %v7729_v33, %v3014_v60  ;;  %v2948_v19 = vpop.f32.mrf.mxu1 }
 0x1b4   : > { %v3753_v7 = vpop.f32.mrf.mxu0  ;;  %v3015_v17 = vadd.f32 %v2948_v19, %v9948_v13 }
 0x1b5   : > { %v9628_v18 = vadd.f32 %v3753_v7, %v3012_v46  ;;  %v7685_v57 = vpop.f32.mrf.mxu1 }
 0x1b6   : > { %v3018_v63 = vadd.f32 %v7685_v57, %v9949_v61  ;;  %v7732_v16 = vpop.f32.mrf.mxu0 }
 0x1b7   : > { %v2951_v54 = vpop.f32.mrf.mxu1  ;;  %v9632_v20 = vadd.f32 %v7732_v16, %v3017_v21 }
 0x1b8   : > { %v3016_v25 = vadd.f32 %v2951_v54, %v9950_v31  ;;  %v3766_v1 = vpop.f32.mrf.mxu0 }
 0x1b9   : > { %v7688_v51 = vpop.f32.mrf.mxu1  ;;  %v9635_v9 = vadd.f32 %v3766_v1, %v3015_v17 }
 0x1ba   : > { %v3021_v4 = vadd.f32 %v7688_v51, %v9951_v29  ;;  %v7733_v8 = vpop.f32.mrf.mxu0 }
 0x1bb   : > { %v2964_v6 = vpop.f32.mrf.mxu1  ;;  %v9638_v45 = vadd.f32 %v7733_v8, %v3018_v63 }
 0x1bc   : > { %v3019_v32 = vadd.f32 %v2964_v6, %v9952_v49  ;;  %v3769_v37 = vpop.f32.mrf.mxu0 }
 0x1bd   : > { %v7689_v30 = vpop.f32.mrf.mxu1  ;;  %v9641_v28 = vadd.f32 %v3769_v37, %v3016_v25 }
 0x1be   : > { %v3022_v23 = vadd.f32 %v7689_v30, %v9953_v59  ;;  %v7736_v62 = vpop.f32.mrf.mxu0 }
 0x1bf   : > { %v2967_v43 = vpop.f32.mrf.mxu1  ;;  %v9645_v38 = vadd.f32 %v7736_v62, %v3021_v4 }
 0x1c0   : > { %v3020_v34 = vadd.f32 %v2967_v43, %v9954_v58  ;;  %v3782_v12 = vpop.f32.mrf.mxu0 }
 0x1c1   : > { %v9647_v26 = vadd.f32 %v3782_v12, %v3019_v32 }
 0x1c2   : > { %v7737_v60 = vpop.f32.mrf.mxu0 }
 0x1c3   : > { %v9649_v33 = vadd.f32 %v7737_v60, %v3022_v23 }
 0x1c4   : > { %v3785_v41 = vpop.f32.mrf.mxu0 }
 0x1c5   : > { %v9651_v46 = vadd.f32 %v3785_v41, %v3020_v34 }
 0x1c9   : > { %v7692_v42 = vpop.f32.mrf.mxu1 }
 0x1ca   : > { %v3025_v21 = vadd.f32 %v7692_v42, %v9955_v22 }
 0x1cb   : > { %v2980_v7 = vpop.f32.mrf.mxu1 }
 0x1cc   : > { %v3023_v19 = vadd.f32 %v2980_v7, %v9527_v2 }
 0x1cd   : > { %v7693_v13 = vpop.f32.mrf.mxu1 }
 0x1ce   : > { %v3026_v17 = vadd.f32 %v7693_v13, %v9544_v0 }
 0x1cf   : > { %v2983_v57 = vpop.f32.mrf.mxu1 }
 0x1d0   : > { %v3024_v61 = vadd.f32 %v2983_v57, %v9547_v52 }
 0x1d1   : > { %v7760_v63 = vpop.f32.mrf.mxu1 }
 0x1d2   : > { %v4409_v16 = vadd.f32 %v7760_v63, %v9550_v3 }
 0x1d3   : > { %v4280_v31 = vpop.f32.mrf.mxu1 }
 0x1d4   : > { %v4407_v1 = vadd.f32 %v4280_v31, %v9553_v11 }
 0x1d5   : > { %v7740_v54 = vpop.f32.mrf.mxu0  ;;  %v9661_v29 = vpop.f32.mrf.mxu1 }
 0x1d6   : > { %v9658_v25 = vadd.f32 %v7740_v54, %v3025_v21 }
 0x1d7   : > { %v3798_v51 = vpop.f32.mrf.mxu0  ;;  %v9665_v8 = vpop.f32.mrf.mxu1 }
 0x1d8   : > { %v9663_v4 = vadd.f32 %v3798_v51, %v3023_v19 }
 0x1d9   : > { %v7741_v2 = vpop.f32.mrf.mxu0  ;;  %v7764_v6 = vpop.f32.mrf.mxu1 }
 0x1da   : > { %v9667_v0 = vadd.f32 %v7741_v2, %v3026_v17  ;;  %v4413_v3 = vadd.f32 %v7764_v6, %v9578_v47 }
 0x1db   : > { %v3801_v52 = vpop.f32.mrf.mxu0  ;;  %v4296_v37 = vpop.f32.mrf.mxu1 }
 0x1dc   : > { %v9669_v49 = vadd.f32 %v3801_v52, %v3024_v61  ;;  %v4411_v11 = vadd.f32 %v4296_v37, %v9581_v55 }
 0x1dd   : > { %v7808_v32 = vpop.f32.mrf.mxu0  ;;  %v9675_v23 = vpop.f32.mrf.mxu1 }
 0x1de   : > { %v9672_v30 = vadd.f32 %v7808_v32, %v4409_v16 }
 0x1df   : > { %v4731_v59 = vpop.f32.mrf.mxu0  ;;  %v9681_v34 = vpop.f32.mrf.mxu1 }
 0x1e0   : > { %v9677_v43 = vadd.f32 %v4731_v59, %v4407_v1 }
 0x1e1   : > { %v9679_v58 = vpop.f32.mrf.mxu0  ;;  %v7768_v12 = vpop.f32.mrf.mxu1 }
 0x1e2   : > { %v4417_v47 = vadd.f32 %v7768_v12, %v9590_v27 }
 0x1e3   : > { %v9683_v62 = vpop.f32.mrf.mxu0  ;;  %v4312_v41 = vpop.f32.mrf.mxu1 }
 0x1e4   : > { %v4415_v55 = vadd.f32 %v4312_v41, %v9593_v5 }
 0x1e5   : > { %v7812_v60 = vpop.f32.mrf.mxu0  ;;  %v9689_v21 = vpop.f32.mrf.mxu1 }
 0x1e6   : > { %v9686_v42 = vadd.f32 %v7812_v60, %v4413_v3 }
 0x1e7   : > { %v4747_v22 = vpop.f32.mrf.mxu0  ;;  %v9695_v13 = vpop.f32.mrf.mxu1 }
 0x1e8   : > { %v9691_v7 = vadd.f32 %v4747_v22, %v4411_v11 }
 0x1e9   : > { %v9693_v19 = vpop.f32.mrf.mxu0 }
 0x1eb   : > { %v9697_v17 = vpop.f32.mrf.mxu0  ;;  %v7772_v57 = vpop.f32.mrf.mxu1 }
 0x1ec   : > { %v4421_v27 = vadd.f32 %v7772_v57, %v9611_v50 }
 0x1ed   : > { %v7816_v61 = vpop.f32.mrf.mxu0  ;;  %v4328_v63 = vpop.f32.mrf.mxu1 }
 0x1ee   : > { %v9700_v16 = vadd.f32 %v7816_v61, %v4417_v47  ;;  %v4419_v5 = vadd.f32 %v4328_v63, %v9613_v10 }
 0x1ef   : > { %v4763_v54 = vpop.f32.mrf.mxu0  ;;  %v9703_v31 = vpop.f32.mrf.mxu1 }
 0x1f0   : > { %v9705_v1 = vadd.f32 %v4763_v54, %v4415_v55 }
 0x1f1   : > { %v9707_v51 = vpop.f32.mrf.mxu0  ;;  %v9709_v2 = vpop.f32.mrf.mxu1 }
 0x1f3   : > { %v9711_v52 = vpop.f32.mrf.mxu0 }
 0x1f4   : > { %v7776_v6 = vpop.f32.mrf.mxu1 }
 0x1f5   : > { %v4425_v50 = vadd.f32 %v7776_v6, %v9619_v24  ;;  %v7820_v3 = vpop.f32.mrf.mxu0 }
 0x1f6   : > { %v4344_v32 = vpop.f32.mrf.mxu1  ;;  %v9714_v37 = vadd.f32 %v7820_v3, %v4421_v27 }
 0x1f7   : > { %v4423_v10 = vadd.f32 %v4344_v32, %v9621_v44  ;;  %v4779_v11 = vpop.f32.mrf.mxu0 }
 0x1f8   : > { %v9717_v59 = vpop.f32.mrf.mxu1  ;;  %v9719_v12 = vadd.f32 %v4779_v11, %v4419_v5 }
 0x1f9   : > { %v9721_v47 = vpop.f32.mrf.mxu0 }
 0x1fa   : > { %v9723_v60 = vpop.f32.mrf.mxu1 }
 0x1fb   : > { %v9725_v41 = vpop.f32.mrf.mxu0 }
 0x1fc   : > { %v7780_v55 = vpop.f32.mrf.mxu1 }
 0x1fd   : > { %v4429_v24 = vadd.f32 %v7780_v55, %v9632_v20  ;;  %v7824_v22 = vpop.f32.mrf.mxu0 }
 0x1fe   : > { %v4360_v57 = vpop.f32.mrf.mxu1  ;;  %v9728_v27 = vadd.f32 %v7824_v22, %v4425_v50 }
 0x1ff   : > { %v4427_v44 = vadd.f32 %v4360_v57, %v9635_v9  ;;  %v4795_v61 = vpop.f32.mrf.mxu0 }
 0x200   : > { %9956 = vst [vmem:[#allocation12_spill] sm:$0xff] %v9728_v27  ;;  %v7781_v63 = vpop.f32.mrf.mxu1  ;;  %v9731_v54 = vadd.f32 %v4795_v61, %v4423_v10 }
 0x201   : > { %v4430_v5 = vadd.f32 %v7781_v63, %v9638_v45  ;;  %v9734_v6 = vpop.f32.mrf.mxu0 }
 0x202   : > { %9957 = vst [vmem:[#allocation13_spill] sm:$0xff] %v9734_v6  ;;  %v4363_v3 = vpop.f32.mrf.mxu1 }
 0x203   : > { %v4428_v32 = vadd.f32 %v4363_v3, %v9641_v28  ;;  %v9737_v11 = vpop.f32.mrf.mxu0 }
 0x204   : > { %9958 = vst [vmem:[#allocation14_spill] sm:$0xff] %v9737_v11  ;;  %v7784_v20 = vpop.f32.mrf.mxu1 }
 0x205   : > { %v4433_v55 = vadd.f32 %v7784_v20, %v9645_v38  ;;  %v7828_v50 = vpop.f32.mrf.mxu0 }
 0x206   : > { %v4376_v22 = vpop.f32.mrf.mxu1  ;;  %v9740_v27 = vadd.f32 %v7828_v50, %v4429_v24 }
 0x207   : > { %v4431_v9 = vadd.f32 %v4376_v22, %v9647_v26  ;;  %v4811_v10 = vpop.f32.mrf.mxu0 }
 0x208   : > { %v7785_v57 = vpop.f32.mrf.mxu1  ;;  %v9743_v61 = vadd.f32 %v4811_v10, %v4427_v44 }
 0x209   : > { %v4434_v45 = vadd.f32 %v7785_v57, %v9649_v33  ;;  %v7829_v63 = vpop.f32.mrf.mxu0 }
 0x20a   : > { %v4379_v6 = vpop.f32.mrf.mxu1  ;;  %v9746_v28 = vadd.f32 %v7829_v63, %v4430_v5 }
 0x20b   : > { %v4432_v3 = vadd.f32 %v4379_v6, %v9651_v46  ;;  %v4814_v11 = vpop.f32.mrf.mxu0 }
 0x20c   : > { %v9749_v20 = vadd.f32 %v4814_v11, %v4428_v32 }
 0x20d   : > { %v7832_v50 = vpop.f32.mrf.mxu0 }
 0x20e   : > { %v7788_v38 = vpop.f32.mrf.mxu1  ;;  %v9752_v22 = vadd.f32 %v7832_v50, %v4433_v55 }
 0x20f   : > { %v4437_v24 = vadd.f32 %v7788_v38, %v9658_v25  ;;  %v4827_v10 = vpop.f32.mrf.mxu0 }
 0x210   : > { %v4392_v26 = vpop.f32.mrf.mxu1  ;;  %9959 = vst [vmem:[#allocation15_spill] sm:$0xff] %v9752_v22  ;;  %v9755_v57 = vadd.f32 %v4827_v10, %v4431_v9  ;;  %v4410_v9 = vadd.f32 %v9661_v29, %v9566_v40 }
 0x211   : > { %v4435_v44 = vadd.f32 %v4392_v26, %v9663_v4  ;;  %v7833_v63 = vpop.f32.mrf.mxu0 }
 0x212   : > { %v7789_v33 = vpop.f32.mrf.mxu1  ;;  %v9758_v6 = vadd.f32 %v7833_v63, %v4434_v45 }
 0x213   : > { %v4438_v5 = vadd.f32 %v7789_v33, %v9667_v0  ;;  %v4830_v11 = vpop.f32.mrf.mxu0 }
 0x214   : > { %v4395_v46 = vpop.f32.mrf.mxu1  ;;  %v9761_v38 = vadd.f32 %v4830_v11, %v4432_v3 }
 0x215   : > { %v4436_v32 = vadd.f32 %v4395_v46, %v9669_v49  ;;  %v7836_v55 = vpop.f32.mrf.mxu0  ;;  %v4408_v49 = vadd.f32 %v9665_v8, %v9575_v56  ;;  %v4861_v46 = vadd.f32 %v9679_v58, %v4410_v9  ;;  %v4414_v56 = vadd.f32 %v9675_v23, %v9584_v36 }
 0x216   : > { %v7856_v25 = vpop.f32.mrf.mxu1  ;;  %v9763_v22 = vadd.f32 %v7836_v55, %v4437_v24 }
 0x217   : > { %v4843_v4 = vpop.f32.mrf.mxu0  ;;  %v4859_v40 = vadd.f32 %v9683_v62, %v4408_v49  ;;  %v5678_v29 = vadd.f32 %v7856_v25, %v9672_v30  ;;  %v4412_v62 = vadd.f32 %v9681_v34, %v9587_v39 }
 0x218   : > { %v5549_v50 = vpop.f32.mrf.mxu1  ;;  %v9767_v0 = vadd.f32 %v4843_v4, %v4435_v44 }
 0x219   : > { %v7837_v10 = vpop.f32.mrf.mxu0  ;;  %v5676_v44 = vadd.f32 %v5549_v50, %v9677_v43 }
 0x21a   : > { %v7857_v26 = vpop.f32.mrf.mxu1  ;;  %v9771_v33 = vadd.f32 %v7837_v10, %v4438_v5 }
 0x21b   : > { %v4846_v3 = vpop.f32.mrf.mxu0  ;;  %v5679_v4 = vadd.f32 %v7857_v26, %v4861_v46  ;;  %v4863_v46 = vadd.f32 %v9697_v17, %v4412_v62 }
 0x21c   : > { %v5552_v45 = vpop.f32.mrf.mxu1  ;;  %9960 = vst [vmem:[#allocation16_spill] sm:$0xff] %v9771_v33  ;;  %v9774_v24 = vadd.f32 %v4846_v3, %v4436_v32 }
 0x21d   : > { %v5677_v10 = vadd.f32 %v5552_v45, %v4859_v40 }
 0x21e   : > { %v7860_v63 = vpop.f32.mrf.mxu1  ;;  %9961 = vst [vmem:[#allocation17_spill] sm:$0xff] %v9774_v24  ;;  %v4865_v24 = vadd.f32 %v9693_v19, %v4414_v56 }
 0x21f   : > { %v7904_v11 = vpop.f32.mrf.mxu0  ;;  %v5682_v50 = vadd.f32 %v7860_v63, %v9686_v42  ;;  %v4416_v63 = vadd.f32 %v9695_v13, %v9609_v14 }
 0x220   : > { %v5565_v55 = vpop.f32.mrf.mxu1  ;;  %v6272_v32 = vadd.f32 %v7904_v11, %v5678_v29  ;;  %v4418_v11 = vadd.f32 %v9689_v21, %v9603_v15 }
 0x221   : > { %v6143_v8 = vpop.f32.mrf.mxu0  ;;  %v5680_v25 = vadd.f32 %v5565_v55, %v9691_v7  ;;  %v4867_v13 = vadd.f32 %v9711_v52, %v4416_v63 }
 0x222   : > { %v7861_v5 = vpop.f32.mrf.mxu1  ;;  %v6270_v9 = vadd.f32 %v6143_v8, %v5676_v44  ;;  %v6565_v44 = vmul.f32 %v6272_v32, %v6272_v32  ;;  %v4869_v15 = vadd.f32 %v9707_v51, %v4418_v11 }
 0x223   : > { %v7905_v33 = vpop.f32.mrf.mxu0  ;;  %v5683_v26 = vadd.f32 %v7861_v5, %v4865_v24 }
 0x224   : > { %v5568_v58 = vpop.f32.mrf.mxu1  ;;  %v6273_v3 = vadd.f32 %v7905_v33, %v5679_v4  ;;  %v6563_v39 = vmul.f32 %v6270_v9, %v6270_v9 }
 0x225   : > { %v6146_v36 = vpop.f32.mrf.mxu0  ;;  %v5681_v56 = vadd.f32 %v5568_v58, %v4863_v46 }
 0x226   : > { %v7864_v30 = vpop.f32.mrf.mxu1  ;;  %v7199_v23 = vpack.c.bf16 %v6273_v3, %v6272_v32  ;;  %v6271_v43 = vadd.f32 %v6146_v36, %v5677_v10  ;;  %v6566_v24 = vmul.f32 %v6273_v3, %v6273_v3 }
 0x228   : > { %v7908_v19 = vpop.f32.mrf.mxu0  ;;  %v5581_v45 = vpop.f32.mrf.mxu1  ;;  %7271 = vst [vmem:[%s9789_s24 + $0x8] sm:$0xff] %v7199_v23   ;;  %v7194_v34 = vpack.c.bf16 %v6271_v43, %v6270_v9  ;;  %v6526_v49 = vadd.f32 %v6271_v43, %v6270_v9  ;;  %v6564_v33 = vmul.f32 %v6271_v43, %v6271_v43 }
 0x229   : > { %v6276_v5 = vadd.f32 %v7908_v19, %v5682_v50  ;;  %v5684_v14 = vadd.f32 %v5581_v45, %v9705_v1 }
 0x22a   : > { %v6159_v40 = vpop.f32.mrf.mxu0  ;;  %v7865_v29 = vpop.f32.mrf.mxu1  ;;  %7195 = vst [vmem:[%s9789_s24] sm:$0xff] %v7194_v34   ;;  %v6527_v7 = vadd.f32 %v6526_v49, %v6272_v32  ;;  %v6595_v55 = vadd.f32 %v6564_v33, %v6563_v39  ;;  %v4422_v49 = vadd.f32 %v9703_v31, %v9615_v48  ;;  %v4420_v33 = vadd.f32 %v9709_v2, %v9617_v35 }
 0x22b   : > { %v6274_v42 = vadd.f32 %v6159_v40, %v5680_v25  ;;  %v5687_v50 = vadd.f32 %v7865_v29, %v4869_v15  ;;  %v6569_v1 = vmul.f32 %v6276_v5, %v6276_v5 }
 0x22c   : > { %v7909_v4 = vpop.f32.mrf.mxu0  ;;  %v6596_v8 = vadd.f32 %v6595_v55, %v6565_v44  ;;  %v6528_v17 = vadd.f32 %v6527_v7, %v6273_v3  ;;  %v5584_v9 = vpop.f32.mrf.mxu1  ;;  %v5686_v3 = vadd.f32 %v7864_v30, %v9700_v16  ;;  %v4873_v48 = vadd.f32 %v9721_v47, %v4422_v49 }
 0x22d   : > { %v6277_v10 = vadd.f32 %v7909_v4, %v5683_v26  ;;  %v6567_v36 = vmul.f32 %v6274_v42, %v6274_v42  ;;  %v5685_v46 = vadd.f32 %v5584_v9, %v4867_v13  ;;  %v4871_v35 = vadd.f32 %v9725_v41, %v4420_v33 }
 0x22e   : > { %v6162_v21 = vpop.f32.mrf.mxu0  ;;  %v6529_v62 = vadd.f32 %v6528_v17, %v6274_v42  ;;  %v6597_v32 = vadd.f32 %v6596_v8, %v6566_v24 }
 0x22f   : > { %v7209_v23 = vpack.c.bf16 %v6277_v10, %v6276_v5  ;;  %v6275_v43 = vadd.f32 %v6162_v21, %v5681_v56  ;;  %v6570_v44 = vmul.f32 %v6277_v10, %v6277_v10 }
 0x230   : > { %v7912_v25 = vpop.f32.mrf.mxu0  ;;  %v6598_v58 = vadd.f32 %v6597_v32, %v6567_v36 }
 0x231   : > { %7273 = vst [vmem:[%s9789_s24 + $0x18] sm:$0xff] %v7209_v23   ;;  %v7204_v19 = vpack.c.bf16 %v6275_v43, %v6274_v42  ;;  %v6530_v51 = vadd.f32 %v6529_v62, %v6275_v43  ;;  %v6568_v26 = vmul.f32 %v6275_v43, %v6275_v43  ;;  %v7868_v34 = vpop.f32.mrf.mxu1  ;;  %v6280_v30 = vadd.f32 %v7912_v25, %v5686_v3 }
 0x232   : > { %v6175_v39 = vpop.f32.mrf.mxu0 }
 0x233   : > { %7272 = vst [vmem:[%s9789_s24 + $0x10] sm:$0xff] %v7204_v19   ;;  %v6531_v52 = vadd.f32 %v6530_v51, %v6276_v5  ;;  %v6599_v45 = vadd.f32 %v6598_v58, %v6568_v26  ;;  %v6278_v11 = vadd.f32 %v6175_v39, %v5684_v14  ;;  %v5597_v16 = vpop.f32.mrf.mxu1  ;;  %v6573_v32 = vmul.f32 %v6280_v30, %v6280_v30 }
 0x234   : > { %v7913_v40 = vpop.f32.mrf.mxu0  ;;  %v5688_v5 = vadd.f32 %v5597_v16, %v9719_v12  ;;  %v4424_v51 = vadd.f32 %v9723_v60, %v9628_v18  ;;  %v9963_v18 = vld [vmem:[#allocation14_spill] sm:$0xff] }
 0x235   : > { %v6281_v29 = vadd.f32 %v7913_v40, %v5687_v50  ;;  %v6600_v7 = vadd.f32 %v6599_v45, %v6569_v1  ;;  %v6532_v55 = vadd.f32 %v6531_v52, %v6277_v10  ;;  %v7869_v63 = vpop.f32.mrf.mxu1  ;;  %v6571_v4 = vmul.f32 %v6278_v11, %v6278_v11 }
 0x236   : > { %v6178_v42 = vpop.f32.mrf.mxu0  ;;  %v5690_v10 = vadd.f32 %v7868_v34, %v9714_v37  ;;  %v5691_v9 = vadd.f32 %v7869_v63, %v4873_v48  ;;  %v4426_v37 = vadd.f32 %v9717_v59, %v9625_v53  ;;  %v9962_v59 = vld [vmem:[#allocation13_spill] sm:$0xff]  ;;  %v4875_v60 = vadd.f32 %v9963_v18, %v4424_v51 }
 0x237   : > { %v7219_v31 = vpack.c.bf16 %v6281_v29, %v6280_v30  ;;  %v6279_v2 = vadd.f32 %v6178_v42, %v5685_v46  ;;  %v6533_v24 = vadd.f32 %v6532_v55, %v6278_v11  ;;  %v6601_v56 = vadd.f32 %v6600_v7, %v6570_v44  ;;  %v5600_v17 = vpop.f32.mrf.mxu1  ;;  %v9964_v44 = vld [vmem:[#allocation12_spill] sm:$0xff] }
 0x238   : > { %v7916_v8 = vpop.f32.mrf.mxu0  ;;  %v5689_v41 = vadd.f32 %v5600_v17, %v4871_v35  ;;  %v6574_v58 = vmul.f32 %v6281_v29, %v6281_v29 }
 0x239   : > { %7275 = vst [vmem:[%s9789_s24 + $0x28] sm:$0xff] %v7219_v31   ;;  %v7214_v15 = vpack.c.bf16 %v6279_v2, %v6278_v11  ;;  %v6572_v21 = vmul.f32 %v6279_v2, %v6279_v2  ;;  %v6602_v62 = vadd.f32 %v6601_v56, %v6571_v4  ;;  %v6534_v47 = vadd.f32 %v6533_v24, %v6279_v2 }
 0x23a   : > { %v6191_v36 = vpop.f32.mrf.mxu0  ;;  %v6284_v13 = vadd.f32 %v7916_v8, %v5690_v10 }
 0x23b   : > { %7274 = vst [vmem:[%s9789_s24 + $0x20] sm:$0xff] %v7214_v15   ;;  %v6535_v23 = vadd.f32 %v6534_v47, %v6280_v30  ;;  %v6603_v43 = vadd.f32 %v6602_v62, %v6572_v21  ;;  %v6282_v25 = vadd.f32 %v6191_v36, %v5688_v5 }
 0x23c   : > { %v7917_v14 = vpop.f32.mrf.mxu0  ;;  %v6577_v42 = vmul.f32 %v6284_v13, %v6284_v13 }
 0x23d   : > { %v6285_v12 = vadd.f32 %v7917_v14, %v5691_v9  ;;  %v6604_v3 = vadd.f32 %v6603_v43, %v6573_v32  ;;  %v6536_v50 = vadd.f32 %v6535_v23, %v6281_v29  ;;  %v6575_v33 = vmul.f32 %v6282_v25, %v6282_v25 }
 0x23e   : > { %v6194_v19 = vpop.f32.mrf.mxu0  ;;  %v7872_v34 = vpop.f32.mrf.mxu1  ;;  %v4877_v29 = vadd.f32 %v9962_v59, %v4426_v37 }
 0x23f   : > { %v7229_v26 = vpack.c.bf16 %v6285_v12, %v6284_v13  ;;  %v6283_v39 = vadd.f32 %v6194_v19, %v5689_v41  ;;  %v6537_v49 = vadd.f32 %v6536_v50, %v6282_v25  ;;  %v6605_v46 = vadd.f32 %v6604_v3, %v6574_v58 }
 0x240   : > { %v7920_v1 = vpop.f32.mrf.mxu0  ;;  %v5613_v11 = vpop.f32.mrf.mxu1  ;;  %v5694_v7 = vadd.f32 %v7872_v34, %v9964_v44  ;;  %v6578_v4 = vmul.f32 %v6285_v12, %v6285_v12 }
 0x241   : > { %7277 = vst [vmem:[%s9789_s24 + $0x38] sm:$0xff] %v7229_v26   ;;  %v7224_v52 = vpack.c.bf16 %v6283_v39, %v6282_v25  ;;  %v6576_v45 = vmul.f32 %v6283_v39, %v6283_v39  ;;  %v6606_v40 = vadd.f32 %v6605_v46, %v6575_v33  ;;  %v6538_v16 = vadd.f32 %v6537_v49, %v6283_v39 }
 0x242   : > { %v5692_v30 = vadd.f32 %v5613_v11, %v9731_v54  ;;  %v6207_v53 = vpop.f32.mrf.mxu0  ;;  %v7873_v55 = vpop.f32.mrf.mxu1  ;;  %v6288_v5 = vadd.f32 %v7920_v1, %v5694_v7 }
 0x243   : > { %7276 = vst [vmem:[%s9789_s24 + $0x30] sm:$0xff] %v7224_v52   ;;  %v6539_v63 = vadd.f32 %v6538_v16, %v6284_v13  ;;  %v6607_v48 = vadd.f32 %v6606_v40, %v6576_v45  ;;  %v5695_v2 = vadd.f32 %v7873_v55, %v4877_v29 }
 0x244   : > { %v6286_v35 = vadd.f32 %v6207_v53, %v5692_v30  ;;  %v7921_v31 = vpop.f32.mrf.mxu0  ;;  %v5616_v24 = vpop.f32.mrf.mxu1  ;;  %v6581_v43 = vmul.f32 %v6288_v5, %v6288_v5 }
 0x245   : > { %v6608_v56 = vadd.f32 %v6607_v48, %v6577_v42  ;;  %v6540_v54 = vadd.f32 %v6539_v63, %v6285_v12  ;;  %v5693_v8 = vadd.f32 %v5616_v24, %v4875_v60  ;;  %v6289_v17 = vadd.f32 %v7921_v31, %v5695_v2  ;;  %v9965_v31 = vld [vmem:[#allocation15_spill] sm:$0xff] }
 0x246   : > { %v6210_v15 = vpop.f32.mrf.mxu0  ;;  %v6579_v10 = vmul.f32 %v6286_v35, %v6286_v35 }
 0x247   : > { %v6541_v21 = vadd.f32 %v6540_v54, %v6286_v35  ;;  %v6609_v9 = vadd.f32 %v6608_v56, %v6578_v4  ;;  %v6287_v62 = vadd.f32 %v6210_v15, %v5693_v8  ;;  %v7239_v47 = vpack.c.bf16 %v6289_v17, %v6288_v5 }
 0x248   : > { %v6582_v58 = vmul.f32 %v6289_v17, %v6289_v17 }
 0x249   : > { %v6610_v36 = vadd.f32 %v6609_v9, %v6579_v10  ;;  %v7234_v41 = vpack.c.bf16 %v6287_v62, %v6286_v35  ;;  %v6542_v32 = vadd.f32 %v6541_v21, %v6287_v62  ;;  %v6580_v23 = vmul.f32 %v6287_v62, %v6287_v62  ;;  %7279 = vst [vmem:[%s9789_s24 + $0x48] sm:$0xff] %v7239_v47  }
 0x24b   : > { %7278 = vst [vmem:[%s9789_s24 + $0x40] sm:$0xff] %v7234_v41   ;;  %v6543_v25 = vadd.f32 %v6542_v32, %v6288_v5  ;;  %v6611_v14 = vadd.f32 %v6610_v36, %v6580_v23  ;;  %v7924_v13 = vpop.f32.mrf.mxu0 }
 0x24c   : > { %v7876_v12 = vpop.f32.mrf.mxu1 }
 0x24d   : > { %v6612_v3 = vadd.f32 %v6611_v14, %v6581_v43  ;;  %v6223_v50 = vpop.f32.mrf.mxu0  ;;  %v6544_v19 = vadd.f32 %v6543_v25, %v6289_v17  ;;  %v5698_v37 = vadd.f32 %v7876_v12, %v9740_v27 }
 0x24e   : > { %v5629_v51 = vpop.f32.mrf.mxu1 }
 0x24f   : > { %v5696_v26 = vadd.f32 %v5629_v51, %v9743_v61  ;;  %v6613_v39 = vadd.f32 %v6612_v3, %v6582_v58  ;;  %v7925_v49 = vpop.f32.mrf.mxu0  ;;  %v6292_v1 = vadd.f32 %v7924_v13, %v5698_v37 }
 0x250   : > { %v7877_v34 = vpop.f32.mrf.mxu1 }
 0x251   : > { %v6290_v33 = vadd.f32 %v6223_v50, %v5696_v26  ;;  %v5699_v46 = vadd.f32 %v7877_v34, %v9746_v28  ;;  %v6226_v30 = vpop.f32.mrf.mxu0  ;;  %v6585_v60 = vmul.f32 %v6292_v1, %v6292_v1 }
 0x252   : > { %v5632_v52 = vpop.f32.mrf.mxu1 }
 0x253   : > { %v6545_v45 = vadd.f32 %v6544_v19, %v6290_v33  ;;  %v6583_v11 = vmul.f32 %v6290_v33, %v6290_v33  ;;  %v6293_v40 = vadd.f32 %v7925_v49, %v5699_v46  ;;  %v5697_v16 = vadd.f32 %v5632_v52, %v9749_v20 }
 0x255   : > { %v6614_v27 = vadd.f32 %v6613_v39, %v6583_v11  ;;  %v7249_v53 = vpack.c.bf16 %v6293_v40, %v6292_v1  ;;  %v6291_v59 = vadd.f32 %v6226_v30, %v5697_v16  ;;  %v6586_v42 = vmul.f32 %v6293_v40, %v6293_v40  ;;  %v9967_v16 = vld [vmem:[#allocation17_spill] sm:$0xff] }
 0x257   : > { %7281 = vst [vmem:[%s9789_s24 + $0x58] sm:$0xff] %v7249_v53   ;;  %v7244_v61 = vpack.c.bf16 %v6291_v59, %v6290_v33  ;;  %v6546_v29 = vadd.f32 %v6545_v45, %v6291_v59  ;;  %v6584_v18 = vmul.f32 %v6291_v59, %v6291_v59  ;;  %v9966_v33 = vld [vmem:[#allocation16_spill] sm:$0xff] }
 0x259   : > { %7280 = vst [vmem:[%s9789_s24 + $0x50] sm:$0xff] %v7244_v61   ;;  %v6547_v44 = vadd.f32 %v6546_v29, %v6292_v1  ;;  %v6615_v28 = vadd.f32 %v6614_v27, %v6584_v18  ;;  %v7928_v7 = vpop.f32.mrf.mxu0 }
 0x25a   : > { %v7880_v55 = vpop.f32.mrf.mxu1 }
 0x25b   : > { %v6616_v63 = vadd.f32 %v6615_v28, %v6585_v60  ;;  %v6239_v48 = vpop.f32.mrf.mxu0  ;;  %v6548_v35 = vadd.f32 %v6547_v44, %v6293_v40  ;;  %v5702_v20 = vadd.f32 %v7880_v55, %v9965_v31 }
 0x25c   : > { %v5645_v2 = vpop.f32.mrf.mxu1 }
 0x25d   : > { %v5700_v24 = vadd.f32 %v5645_v2, %v9755_v57  ;;  %v6617_v4 = vadd.f32 %v6616_v63, %v6586_v42  ;;  %v7929_v54 = vpop.f32.mrf.mxu0  ;;  %v6296_v17 = vadd.f32 %v7928_v7, %v5702_v20 }
 0x25e   : > { %v7881_v56 = vpop.f32.mrf.mxu1 }
 0x25f   : > { %v6294_v8 = vadd.f32 %v6239_v48, %v5700_v24  ;;  %v5703_v5 = vadd.f32 %v7881_v56, %v9758_v6  ;;  %v6242_v47 = vpop.f32.mrf.mxu0  ;;  %v6589_v25 = vmul.f32 %v6296_v17, %v6296_v17 }
 0x260   : > { %v5648_v15 = vpop.f32.mrf.mxu1 }
 0x261   : > { %v6549_v21 = vadd.f32 %v6548_v35, %v6294_v8  ;;  %v6587_v10 = vmul.f32 %v6294_v8, %v6294_v8  ;;  %v6297_v9 = vadd.f32 %v7929_v54, %v5703_v5  ;;  %v5701_v62 = vadd.f32 %v5648_v15, %v9761_v38 }
 0x263   : > { %v6618_v36 = vadd.f32 %v6617_v4, %v6587_v10  ;;  %v7259_v41 = vpack.c.bf16 %v6297_v9, %v6296_v17  ;;  %v6295_v32 = vadd.f32 %v6242_v47, %v5701_v62  ;;  %v6590_v58 = vmul.f32 %v6297_v9, %v6297_v9 }
 0x265   : > { %7283 = vst [vmem:[%s9789_s24 + $0x68] sm:$0xff] %v7259_v41   ;;  %v7254_v57 = vpack.c.bf16 %v6295_v32, %v6294_v8  ;;  %v6550_v23 = vadd.f32 %v6549_v21, %v6295_v32  ;;  %v6588_v43 = vmul.f32 %v6295_v32, %v6295_v32 }
 0x267   : > { %7282 = vst [vmem:[%s9789_s24 + $0x60] sm:$0xff] %v7254_v57   ;;  %v6551_v14 = vadd.f32 %v6550_v23, %v6296_v17  ;;  %v6619_v6 = vadd.f32 %v6618_v36, %v6588_v43  ;;  %v7932_v13 = vpop.f32.mrf.mxu0 }
 0x268   : > { %v7884_v12 = vpop.f32.mrf.mxu1 }
 0x269   : > { %v6620_v3 = vadd.f32 %v6619_v6, %v6589_v25  ;;  %v6255_v50 = vpop.f32.mrf.mxu0  ;;  %v6552_v19 = vadd.f32 %v6551_v14, %v6297_v9  ;;  %v5706_v38 = vadd.f32 %v7884_v12, %v9763_v22 }
 0x26a   : > { %v5661_v37 = vpop.f32.mrf.mxu1 }
 0x26b   : > { %v5704_v51 = vadd.f32 %v5661_v37, %v9767_v0  ;;  %v6621_v26 = vadd.f32 %v6620_v3, %v6590_v58  ;;  %v7933_v34 = vpop.f32.mrf.mxu0  ;;  %v6300_v1 = vadd.f32 %v7932_v13, %v5706_v38 }
 0x26c   : > { %v7885_v39 = vpop.f32.mrf.mxu1 }
 0x26d   : > { %v6298_v49 = vadd.f32 %v6255_v50, %v5704_v51  ;;  %v5707_v46 = vadd.f32 %v7885_v39, %v9966_v33  ;;  %v6258_v27 = vpop.f32.mrf.mxu0  ;;  %v6593_v18 = vmul.f32 %v6300_v1, %v6300_v1 }
 0x26e   : > { %v5664_v52 = vpop.f32.mrf.mxu1 }
 0x26f   : > { %v6553_v45 = vadd.f32 %v6552_v19, %v6298_v49  ;;  %v6591_v11 = vmul.f32 %v6298_v49, %v6298_v49  ;;  %v6301_v40 = vadd.f32 %v7933_v34, %v5707_v46  ;;  %v5705_v30 = vadd.f32 %v5664_v52, %v9967_v16 }
 0x271   : > { %v6622_v22 = vadd.f32 %v6621_v26, %v6591_v11  ;;  %v7269_v53 = vpack.c.bf16 %v6301_v40, %v6300_v1  ;;  %v6299_v59 = vadd.f32 %v6258_v27, %v5705_v30  ;;  %v6594_v28 = vmul.f32 %v6301_v40, %v6301_v40 }
 0x273   : > { %7285 = vst [vmem:[%s9789_s24 + $0x78] sm:$0xff] %v7269_v53   ;;  %v7264_v0 = vpack.c.bf16 %v6299_v59, %v6298_v49  ;;  %v6554_v61 = vadd.f32 %v6553_v45, %v6299_v59  ;;  %v6592_v29 = vmul.f32 %v6299_v59, %v6299_v59 }
 0x275   : > { %7284 = vst [vmem:[%s9789_s24 + $0x70] sm:$0xff] %v7264_v0   ;;  %v6555_v60 = vadd.f32 %v6554_v61, %v6300_v1  ;;  %v6623_v44 = vadd.f32 %v6622_v22, %v6592_v29 }
 0x277   : > { %v6556_v7 = vadd.f32 %v6555_v60, %v6301_v40  ;;  %v6624_v55 = vadd.f32 %v6623_v44, %v6593_v18 }
 0x279   : > { %v6557_v42 = vrot.slane %v6556_v7, 4  ;;  %v6625_v63 = vadd.f32 %v6624_v55, %v6594_v28 }
 0x27b   : > { %v6558_v48 = vadd.f32 %v6557_v42, %v6556_v7  ;;  %v6626_v35 = vrot.slane %v6625_v63, 4 }
 0x27d   : > { %v6559_v31 = vrot.slane %v6558_v48, 2  ;;  %v6627_v20 = vadd.f32 %v6626_v35, %v6625_v63 }
 0x27f   : > { %v6560_v2 = vadd.f32 %v6559_v31, %v6558_v48  ;;  %v6628_v24 = vrot.slane %v6627_v20, 2 }
 0x281   : > { %v6561_v4 = vrot.slane %v6560_v2, 1  ;;  %v6629_v56 = vadd.f32 %v6628_v24, %v6627_v20 }
 0x283   : > { %v6630_v54 = vrot.slane %v6629_v56, 1  ;;  %v6562_v8 = vadd.f32 %v6561_v4, %v6560_v2 }
 0x285   : > { %v6631_v5 = vadd.f32 %v6630_v54, %v6629_v56 }
 0x287   : > { %v6633_v17 = vsel %vm600_vm4, %v6562_v8, %v6631_v5 }
 0x288   : > { %6634 = vst [vmem:[%s181_s27] sm:$0x3] %v6633_v17 }
 0x289 PF: > { %s14_s12 = sadd.s32 1, %s8085_s12  }
 0x28a   : > { %p11_p4 = scmp.ge.s32.totalorder %s14_s12, 4  }
 0x28c   :  { %13 = sbr.rel (!%p11_p4) target bundleno = 1 (0x1), region = 80 }

// kernel: residual_block.4
= control target key start
LH: loop header
LB: loop body
LE: loop exit
PB: predicated region body
PF: predicated region fallthrough
CT: control target
= control target key end

     0   :  { %s8559_s18 = smov 0   ;;  %s10695_s0 = inlined_call_operand.vmem [shape: bf16[2,16,16,128], index: 0, kind: input, shape index: {}]   ;;  %s10696_s1 = inlined_call_operand.vmem [shape: f32[1,128], index: 1, kind: input, shape index: {}]   ;;  %s10697_s2 = inlined_call_operand.vmem [shape: f32[1,128], index: 2, kind: input, shape index: {}]   ;;  %s10698_s3 = inlined_call_operand.vmem [shape: bf16[9,128,128], index: 3, kind: input, shape index: {}]   ;;  %s10699_s4 = inlined_call_operand.vmem [shape: bf16[2,16,16,128], index: 4, kind: output, shape index: {0}]   ;;  %s10700_s5 = inlined_call_operand.vmem [shape: f32[2,2,128], index: 5, kind: output, shape index: {1}]  }
   0x1 LB: > { %s7013_s19 = sadd.s32 4294967295, %s8526_s18   ;;  %p7017_p0 = scmp.ge.s32.totalorder %s8526_s18, 1  ;;  %s8526_s18 = sphi %s8559_s18, %s16_s18  }
   0x2   : > { %p190_p1 = scmp.lt.s32.totalorder %s8526_s18, 3 }
   0x4   : > { %p191_p2 = pnand %p7017_p0, %p190_p1 }
   0x6   : > { %194 = sbr.rel (%p191_p2) target bundleno = 659 (0x293), region = 36 }
   0xb   : > { %v8396_v0 = vld [vmem:[%s10698_s3 + $0x38] sm:$0xff]   ;;  %v8573_v1 = vld [vmem:[%s10698_s3 + $0x30] sm:$0xff]   ;;  %v8528_v2 = vmov 0   ;;  %p222_p3 = scmp.lt.s32.totalorder %s7013_s19, 1  ;;  %v8398_v3 = vld [vmem:[%s10698_s3 + $0x28] sm:$0xff]   ;;  %vm885_vm0 = vcmask 1043456  }
   0xc   : > { %237 = vst [vmem:[#allocation2] sm:$0xf] %v8528_v2  ;;  %238 = vst [vmem:[#allocation2 + $0x4] sm:$0xf] %v8528_v2  ;;  %7939 = vmatprep.subr.bf16.mxu0 %v8396_v0  ;;  %8371 = vmatprep.subr.bf16.mxu1 %v8396_v0  ;;  %v8399_v4 = vld [vmem:[%s10698_s3 + $0x20] sm:$0xff]   ;;  %v8400_v12 = vld [vmem:[%s10698_s3 + $0x18] sm:$0xff]  }
   0xd   : > { %239 = vst [vmem:[#allocation2 + $0x8] sm:$0x1] %v8528_v2  ;;  %240 = vst [vmem:[#allocation2 + $0xc] sm:$0xf] %v8528_v2  ;;  %7940 = vmatpush3.bf16.msra.mxu0 %v8396_v0  ;;  %8379 = vmatpush3.bf16.msra.mxu1 %v8396_v0  ;;  %s10872_s19 = smov (!%p222_p3, %s7013_s19), 1  ;;  %v8401_v26 = vld [vmem:[%s10698_s3 + $0x10] sm:$0xff]  }
   0xe   : > { %241 = vst [vmem:[#allocation2 + $0x10] sm:$0xf] %v8528_v2  ;;  %242 = vst [vmem:[#allocation2 + $0x14] sm:$0x1] %v8528_v2  ;;  %7941 = vmatprep.subr.bf16.mxu0 %v8573_v1  ;;  %8372 = vmatprep.subr.bf16.mxu1 %v8573_v1  ;;  %s7483_s26 = sshll.u32 %s10872_s19, 7  ;;  %vm892_vm4 = vcmask 1040384  }
   0xf   : > { %243 = vst [vmem:[#allocation2 + $0x18] sm:$0xf] %v8528_v2  ;;  %244 = vst [vmem:[#allocation2 + $0x1c] sm:$0xf] %v8528_v2  ;;  %s8592_s29 = scalar_lea.vmem %s10695_s0, %s7483_s26  ;;  %v8603_v7 = vld [vmem:[%s10696_s1] ss:$0 sm:$0xff] }
  0x10   : > { %245 = vst [vmem:[#allocation2 + $0x20] sm:$0x1] %v8528_v2  ;;  %246 = vst [vmem:[#allocation2 + $0x24] sm:$0xf] %v8528_v2  ;;  %v7699_v6 = vld [vmem:[%s8592_s29 + $0x38] sm:$0xff]   ;;  %v7550_v11 = vld [vmem:[%s8592_s29] sm:$0xff]  }
  0x11   : > { %247 = vst [vmem:[#allocation2 + $0x28] sm:$0xf] %v8528_v2  ;;  %248 = vst [vmem:[#allocation2 + $0x2c] sm:$0x1] %v8528_v2  ;;  %7942 = vmatpush3.bf16.msra.mxu0 %v8573_v1  ;;  %8380 = vmatpush3.bf16.msra.mxu1 %v8573_v1  ;;  %v7579_v8 = vunpack.c.l.bf16 %v7699_v6  ;;  %v7580_v9 = vunpack.c.h.bf16 %v7699_v6  ;;  %v8608_v10 = vld [vmem:[%s10697_s2] ss:$0 sm:$0xff]  ;;  %v7551_v15 = vunpack.c.l.bf16 %v7550_v11  ;;  %v7552_v16 = vunpack.c.h.bf16 %v7550_v11 }
  0x12   : > { %249 = vst [vmem:[#allocation2 + $0x30] sm:$0xf] %v8528_v2  ;;  %250 = vst [vmem:[#allocation2 + $0x34] sm:$0xf] %v8528_v2  ;;  %7943 = vmatprep.subr.bf16.mxu0 %v8398_v3  ;;  %8373 = vmatprep.subr.bf16.mxu1 %v8398_v3  ;;  %v7700_v17 = vld [vmem:[%s8592_s29 + $0x40] sm:$0xff]   ;;  %v7693_v33 = vld [vmem:[%s8592_s29 + $0x8] sm:$0xff]  }
  0x13   : > { %251 = vst [vmem:[#allocation2 + $0x38] sm:$0x1] %v8528_v2  ;;  %252 = vst [vmem:[#allocation2 + $0x3c] sm:$0xf] %v8528_v2  ;;  %v8404_v5 = vld [vmem:[#allocation2] sm:$0xff]   ;;  %v376_v13 = vmul.f32 %v7579_v8, %v8603_v7  ;;  %v377_v14 = vmul.f32 %v7580_v9, %v8603_v7  ;;  %v7583_v18 = vunpack.c.l.bf16 %v7700_v17  ;;  %v7584_v19 = vunpack.c.h.bf16 %v7700_v17  ;;  %v8402_v42 = vld [vmem:[%s10698_s3 + $0x8] sm:$0xff]  }
  0x14   : > { %253 = vst [vmem:[#allocation2 + $0x40] sm:$0xf] %v8528_v2  ;;  %254 = vst [vmem:[#allocation2 + $0x44] sm:$0x1] %v8528_v2  ;;  %7955 = vmatprep.mubr.bf16.mxu0 %v8404_v5  ;;  %vm561_vm1 = vsmask.f32 256  ;;  %v362_v22 = vmul.f32 %v7551_v15, %v8603_v7  ;;  %v363_v23 = vmul.f32 %v7552_v16, %v8603_v7  ;;  %v7555_v40 = vunpack.c.l.bf16 %v7693_v33 }
  0x15   : > { %255 = vst [vmem:[#allocation2 + $0x48] sm:$0xf] %v8528_v2  ;;  %256 = vst [vmem:[#allocation2 + $0x4c] sm:$0xf] %v8528_v2  ;;  %7944 = vmatpush3.bf16.msra.mxu0 %v8398_v3  ;;  %8381 = vmatpush3.bf16.msra.mxu1 %v8398_v3  ;;  %vm562_vm2 = vsmask.f32 4368  ;;  %v415_v20 = vadd.f32 %v8608_v10, %v376_v13  ;;  %v416_v21 = vadd.f32 %v8608_v10, %v377_v14  ;;  %v7556_v41 = vunpack.c.h.bf16 %v7693_v33 }
  0x16   : > { %257 = vst [vmem:[#allocation2 + $0x50] sm:$0x1] %v8528_v2  ;;  %258 = vst [vmem:[#allocation2 + $0x54] sm:$0xf] %v8528_v2  ;;  %7945 = vmatprep.subr.bf16.mxu0 %v8399_v4  ;;  %8374 = vmatprep.subr.bf16.mxu1 %v8399_v4  ;;  %vm886_vm3 = vsmask.f32 7938  ;;  %v378_v24 = vmul.f32 %v7583_v18, %v8603_v7  ;;  %v379_v25 = vmul.f32 %v7584_v19, %v8603_v7 }
  0x17   : > { %259 = vst [vmem:[#allocation2 + $0x58] sm:$0xf] %v8528_v2  ;;  %260 = vst [vmem:[#allocation2 + $0x5c] sm:$0x1] %v8528_v2  ;;  %v447_v27 = vmax.f32 %v415_v20, 0.0  ;;  %v448_v28 = vmax.f32 %v416_v21, 0.0  ;;  %v401_v29 = vadd.f32 %v8608_v10, %v362_v22  ;;  %v402_v30 = vadd.f32 %v8608_v10, %v363_v23 }
  0x18   : > { %261 = vst [vmem:[#allocation2 + $0x60] sm:$0xf] %v8528_v2  ;;  %262 = vst [vmem:[#allocation2 + $0x64] sm:$0xf] %v8528_v2  ;;  %v417_v31 = vadd.f32 %v8608_v10, %v378_v24  ;;  %v418_v32 = vadd.f32 %v8608_v10, %v379_v25  ;;  %v8403_v51 = vld [vmem:[%s10698_s3] sm:$0xff]   ;;  %v364_v55 = vmul.f32 %v7555_v40, %v8603_v7  ;;  %v7701_v16 = vld [vmem:[%s8592_s29 + $0x48] sm:$0xff]  }
  0x19   : > { %263 = vst [vmem:[#allocation2 + $0x68] sm:$0x1] %v8528_v2  ;;  %264 = vst [vmem:[#allocation2 + $0x6c] sm:$0xf] %v8528_v2  ;;  %7946 = vmatpush3.bf16.msra.mxu0 %v8399_v4  ;;  %8382 = vmatpush3.bf16.msra.mxu1 %v8399_v4  ;;  %v7499_v34 = vpack.c.bf16 %v447_v27, %v447_v27  ;;  %v7500_v35 = vpack.c.bf16 %v448_v28, %v448_v28  ;;  %v433_v36 = vmax.f32 %v401_v29, 0.0  ;;  %v8671_v23 = vld [vmem:[%s10698_s3 + $0x78] sm:$0xff]  }
  0x1a   : > { %265 = vst [vmem:[#allocation2 + $0x70] sm:$0xf] %v8528_v2  ;;  %266 = vst [vmem:[#allocation2 + $0x74] sm:$0x1] %v8528_v2  ;;  %7947 = vmatprep.subr.bf16.mxu0 %v8400_v12  ;;  %8375 = vmatprep.subr.bf16.mxu1 %v8400_v12  ;;  %v434_v37 = vmax.f32 %v402_v30, 0.0  ;;  %v449_v38 = vmax.f32 %v417_v31, 0.0  ;;  %v365_v56 = vmul.f32 %v7556_v41, %v8603_v7  ;;  %v7587_v31 = vunpack.c.l.bf16 %v7701_v16 }
  0x1b   : > { %267 = vst [vmem:[#allocation2 + $0x78] sm:$0xf] %v8528_v2  ;;  %268 = vst [vmem:[#allocation2 + $0x7c] sm:$0xf] %v8528_v2  ;;  %v450_v39 = vmax.f32 %v418_v32, 0.0  ;;  %v684_v43 = vshrl.u32 %v7499_v34, 16  ;;  %v7485_v47 = vpack.c.bf16 %v433_v36, %v433_v36  ;;  %v403_v25 = vadd.f32 %v8608_v10, %v364_v55 }
  0x1c   : > { %269 = vst [vmem:[#allocation2 + $0x80] sm:$0x1] %v8528_v2  ;;  %270 = vst [vmem:[#allocation2 + $0x84] sm:$0xf] %v8528_v2  ;;  %v687_v44 = vshll.u32 %v7499_v34, 16  ;;  %v692_v45 = vshrl.u32 %v7500_v35, 16  ;;  %v7486_v48 = vpack.c.bf16 %v434_v37, %v434_v37  ;;  %v7501_v49 = vpack.c.bf16 %v449_v38, %v449_v38 }
  0x1d   : > { %271 = vst [vmem:[#allocation2 + $0x88] sm:$0xf] %v8528_v2  ;;  %272 = vst [vmem:[#allocation2 + $0x8c] sm:$0x1] %v8528_v2  ;;  %7948 = vmatpush3.bf16.msra.mxu0 %v8400_v12  ;;  %8383 = vmatpush3.bf16.msra.mxu1 %v8400_v12  ;;  %v695_v46 = vshll.u32 %v7500_v35, 16  ;;  %v7502_v50 = vpack.c.bf16 %v450_v39, %v450_v39  ;;  %v686_v53 = vrot.slane %v684_v43, 7  ;;  %v7588_v40 = vunpack.c.h.bf16 %v7701_v16 }
  0x1e   : > { %273 = vst [vmem:[#allocation2 + $0x90] sm:$0xf] %v8528_v2  ;;  %274 = vst [vmem:[#allocation2 + $0x94] sm:$0xf] %v8528_v2  ;;  %7949 = vmatprep.subr.bf16.mxu0 %v8401_v26  ;;  %8376 = vmatprep.subr.bf16.mxu1 %v8401_v26  ;;  %v8643_v54 = vrot.slane %v692_v45, 7  ;;  %v565_v59 = vshrl.u32 %v7485_v47, 16  ;;  %v380_v41 = vmul.f32 %v7587_v31, %v8603_v7 }
  0x1f   : > { %275 = vst [vmem:[#allocation2 + $0x98] sm:$0x1] %v8528_v2  ;;  %276 = vst [vmem:[#allocation2 + $0x9c] sm:$0xf] %v8528_v2  ;;  %v939_v58 = vld [vmem:[#allocation2 + $0x60] sm:$0xf]  ;;  %v689_v63 = vor.u32 %v687_v44, %v686_v53 }
  0x20   : > { %277 = vst [vmem:[#allocation2 + $0xa0] sm:$0xf] %v8528_v2  ;;  %278 = vst [vmem:[#allocation2 + $0xa4] sm:$0x1] %v8528_v2  ;;  %v568_v60 = vshll.u32 %v7485_v47, 16  ;;  %v573_v61 = vshrl.u32 %v7486_v48, 16  ;;  %v697_v1 = vor.u32 %v695_v46, %v8643_v54 }
  0x21   : > { %279 = vst [vmem:[#allocation2 + $0xa8] sm:$0xf] %v8528_v2  ;;  %280 = vst [vmem:[#allocation2 + $0xac] sm:$0xf] %v8528_v2  ;;  %7950 = vmatpush3.bf16.msra.mxu0 %v8401_v26  ;;  %8384 = vmatpush3.bf16.msra.mxu1 %v8401_v26  ;;  %v576_v62 = vshll.u32 %v7486_v48, 16  ;;  %v690_v0 = vrot.slane %v686_v53, 4  ;;  %v404_v26 = vadd.f32 %v8608_v10, %v365_v56 }
  0x22   : > { %281 = vst [vmem:[#allocation2 + $0xb0] sm:$0x1] %v8528_v2  ;;  %282 = vst [vmem:[#allocation2 + $0xb4] sm:$0xf] %v8528_v2  ;;  %7951 = vmatprep.subr.bf16.mxu0 %v8402_v42  ;;  %8377 = vmatprep.subr.bf16.mxu1 %v8402_v42  ;;  %v888_v3 = vld [vmem:[#allocation2 + $0xc] sm:$0xf]  ;;  %v381_v48 = vmul.f32 %v7588_v40, %v8603_v7 }
  0x23   : > { %283 = vst [vmem:[#allocation2 + $0xb8] sm:$0xf] %v8528_v2  ;;  %284 = vst [vmem:[#allocation2 + $0xbc] sm:$0x1] %v8528_v2  ;;  %v894_v4 = vld [vmem:[#allocation2 + $0x14] sm:$0x1] }
  0x24   : > { %285 = vst [vmem:[#allocation2 + $0xc0] sm:$0xf] %v8528_v2  ;;  %286 = vst [vmem:[#allocation2 + $0xc4] sm:$0xf] %v8528_v2  ;;  %v567_v5 = vrot.slane %v565_v59, 7  ;;  %v575_v6 = vrot.slane %v573_v61, 7 }
  0x25   : > { %287 = vst [vmem:[#allocation2 + $0xc8] sm:$0x1] %v8528_v2  ;;  %288 = vst [vmem:[#allocation2 + $0xcc] sm:$0xf] %v8528_v2  ;;  %v701_v8 = vshrl.u32 %v7501_v49, 16  ;;  %v704_v9 = vshll.u32 %v7501_v49, 16  ;;  %7952 = vmatpush3.bf16.msra.mxu0 %v8402_v42  ;;  %8385 = vmatpush3.bf16.msra.mxu1 %v8402_v42  ;;  %v419_v49 = vadd.f32 %v8608_v10, %v380_v41 }
  0x26   : > { %289 = vst [vmem:[#allocation2 + $0xd0] sm:$0xf] %v8528_v2  ;;  %290 = vst [vmem:[#allocation2 + $0xd4] sm:$0x1] %v8528_v2  ;;  %v699_v2 = vrot.slane %v8643_v54, 4  ;;  %v709_v14 = vshrl.u32 %v7502_v50, 16  ;;  %v570_v17 = vor.u32 %v568_v60, %v567_v5  ;;  %v578_v19 = vor.u32 %v576_v62, %v575_v6  ;;  %7953 = vmatprep.subr.bf16.mxu0 %v8403_v51 }
  0x27   : > { %vm8639_vm5 = vmor %vm561_vm1, %vm562_vm2  ;;  %v712_v15 = vshll.u32 %v7502_v50, 16  ;;  %v571_v18 = vrot.slane %v567_v5, 4  ;;  %v580_v20 = vrot.slane %v575_v6, 4  ;;  %8378 = vmatprep.subr.bf16.mxu1 %v8403_v51  ;;  %v703_v21 = vrot.slane %v701_v8, 7  ;;  %v8676_v24 = vld [vmem:[%s10698_s3 + $0xb8] sm:$0xff]   ;;  %v7694_v32 = vld [vmem:[%s8592_s29 + $0x10] sm:$0xff]  }
  0x28   : > { %vm8649_vm6 = vmand %vm885_vm0, %vm886_vm3  ;;  %v698_v11 = vsel %vm8639_vm5, %v690_v0, %v697_v1  ;;  %v8666_v22 = vrot.slane %v709_v14, 7  ;;  %v946_v30 = vld [vmem:[#allocation2 + $0x6c] sm:$0xf]  ;;  %v7702_v37 = vld [vmem:[%s8592_s29 + $0x50] sm:$0xff]   ;;  %v435_v38 = vmax.f32 %v403_v25, 0.0  ;;  %v436_v39 = vmax.f32 %v404_v26, 0.0 }
  0x29   : > { %vm8659_vm7 = vmand %vm892_vm4, %vm561_vm1  ;;  %v940_v13 = vsel %vm8649_vm6, %v689_v63, %v939_v58  ;;  %942 = vst [vmem:[#allocation2 + $0x64] sm:$0xf] %v698_v11  ;;  %v579_v27 = vsel %vm8639_vm5, %v571_v18, %v578_v19  ;;  %v889_v28 = vsel %vm8649_vm6, %v570_v17, %v888_v3  ;;  %v706_v33 = vor.u32 %v704_v9, %v703_v21  ;;  %v8411_v62 = vld [vmem:[%s10698_s3 + $0xb0] sm:$0xff]   ;;  %v8416_v40 = vld [vmem:[%s10698_s3 + $0x68] sm:$0xff]  }
  0x2a   : > { %941 = vst [vmem:[#allocation2 + $0x60] sm:$0xf] %v940_v13  ;;  %v895_v29 = vsel %vm8659_vm7, %v580_v20, %v894_v4  ;;  %890 = vst [vmem:[#allocation2 + $0xc] sm:$0xf] %v889_v28  ;;  %v707_v34 = vrot.slane %v703_v21, 4  ;;  %v714_v35 = vor.u32 %v712_v15, %v8666_v22  ;;  %v716_v36 = vrot.slane %v8666_v22, 4  ;;  %7954 = vmatpush3.bf16.msra.mxu0 %v8403_v51 }
  0x2b   : > { %891 = vst [vmem:[#allocation2 + $0x10] sm:$0xf] %v579_v27  ;;  %896 = vst [vmem:[#allocation2 + $0x14] sm:$0x1] %v895_v29  ;;  %8386 = vmatpush3.bf16.msra.mxu1 %v8403_v51  ;;  %v947_v43 = vsel %vm8649_vm6, %v706_v33, %v946_v30  ;;  %8035 = vmatprep.subr.bf16.mxu0 %v8676_v24  ;;  %v7559_v44 = vunpack.c.l.bf16 %v7694_v32  ;;  %v7560_v45 = vunpack.c.h.bf16 %v7694_v32  ;;  %v7591_v55 = vunpack.c.l.bf16 %v7702_v37  ;;  %v8708_v4 = vld [vmem:[%s8592_s29 + $0x18] sm:$0xff]   ;;  %v8410_v17 = vld [vmem:[%s10698_s3 + $0x70] sm:$0xff]  }
  0x2c   : > { %v715_v42 = vsel %vm8639_vm5, %v707_v34, %v714_v35  ;;  %7987 = vmatprep.subr.bf16.mxu1 %v8671_v23  ;;  %948 = vst [vmem:[#allocation2 + $0x6c] sm:$0xf] %v947_v43  ;;  %v7487_v46 = vpack.c.bf16 %v435_v38, %v435_v38  ;;  %v7488_v47 = vpack.c.bf16 %v436_v39, %v436_v39  ;;  %v7592_v56 = vunpack.c.h.bf16 %v7702_v37  ;;  %v897_v13 = vld [vmem:[#allocation2 + $0x18] sm:$0xf]  ;;  %v8417_v34 = vld [vmem:[%s10698_s3 + $0xa8] sm:$0xff]  }
  0x2d   : > { %949 = vst [vmem:[#allocation2 + $0x70] sm:$0xf] %v715_v42  ;;  %v366_v51 = vmul.f32 %v7559_v44, %v8603_v7  ;;  %v367_v53 = vmul.f32 %v7560_v45, %v8603_v7  ;;  %v420_v63 = vadd.f32 %v8608_v10, %v381_v48  ;;  %v451_v0 = vmax.f32 %v419_v49, 0.0  ;;  %v953_v38 = vld [vmem:[#allocation2 + $0x78] sm:$0xf] }
  0x2e   : > { %v582_v58 = vshrl.u32 %v7487_v46, 16  ;;  %v585_v59 = vshll.u32 %v7487_v46, 16  ;;  %v590_v60 = vshrl.u32 %v7488_v47, 16  ;;  %v593_v61 = vshll.u32 %v7488_v47, 16  ;;  %v904_v45 = vld [vmem:[#allocation2 + $0x24] sm:$0xf] }
  0x2f   : > { %v405_v1 = vadd.f32 %v8608_v10, %v366_v51  ;;  %v406_v3 = vadd.f32 %v8608_v10, %v367_v53  ;;  %v382_v8 = vmul.f32 %v7591_v55, %v8603_v7  ;;  %v383_v9 = vmul.f32 %v7592_v56, %v8603_v7  ;;  %v8419_v46 = vld [vmem:[%s10698_s3 + $0xa0] sm:$0xff]   ;;  %v7703_v51 = vld [vmem:[%s8592_s29 + $0x58] sm:$0xff]  }
  0x30   : > { %v584_v6 = vrot.slane %v582_v58, 7  ;;  %v8712_v11 = vrot.slane %v590_v60, 7  ;;  %v452_v14 = vmax.f32 %v420_v63, 0.0  ;;  %v7503_v15 = vpack.c.bf16 %v451_v0, %v451_v0 }
  0x31   : > { %v8405_v50 = vld [vmem:[#allocation2 + $0x60] sm:$0xff]   ;;  %v437_v16 = vmax.f32 %v405_v1, 0.0  ;;  %v438_v20 = vmax.f32 %v406_v3, 0.0  ;;  %v7563_v21 = vunpack.c.l.bf16 %v8708_v4  ;;  %v421_v29 = vadd.f32 %v8608_v10, %v382_v8 }
  0x32   : > { %7971 = vmatprep.mubr.bf16.mxu1 %v8405_v50  ;;  %v8406_v5 = vld [vmem:[#allocation2 + $0xc] sm:$0xff]   ;;  %v587_v18 = vor.u32 %v585_v59, %v584_v6  ;;  %v588_v19 = vrot.slane %v584_v6, 4  ;;  %v595_v26 = vor.u32 %v593_v61, %v8712_v11  ;;  %v7504_v27 = vpack.c.bf16 %v452_v14, %v452_v14  ;;  %v8418_v8 = vld [vmem:[%s10698_s3 + $0x60] sm:$0xff]  }
  0x33   : > { %7956 = vmatmul.mubr.bf16.vlgmr.msra.gmra.mxu0 %v8406_v5  ;;  %v7489_v28 = vpack.c.bf16 %v437_v16, %v437_v16  ;;  %v718_v31 = vshrl.u32 %v7503_v15, 16  ;;  %v721_v32 = vshll.u32 %v7503_v15, 16  ;;  %v7490_v33 = vpack.c.bf16 %v438_v20, %v438_v20 }
  0x34   : > { %v8407_v25 = vld [vmem:[#allocation2 + $0x6c] sm:$0xff]   ;;  %8036 = vmatpush3.bf16.msra.mxu0 %v8676_v24  ;;  %v898_v30 = vsel %vm8649_vm6, %v587_v18, %v897_v13  ;;  %v596_v24 = vsel %vm8639_vm5, %v588_v19, %v595_v26  ;;  %v726_v35 = vshrl.u32 %v7504_v27, 16  ;;  %v729_v37 = vshll.u32 %v7504_v27, 16  ;;  %v8425_v27 = vld [vmem:[%s10698_s3 + $0x98] sm:$0xff]  }
  0x35   : > { %8037 = vmatprep.subr.bf16.mxu0 %v8411_v62  ;;  %7972 = vmatmul.mubr.bf16.vlgmr.msra.gmra.mxu1 %v8407_v25  ;;  %899 = vst [vmem:[#allocation2 + $0x18] sm:$0xf] %v898_v30  ;;  %v599_v39 = vshrl.u32 %v7489_v28, 16  ;;  %900 = vst [vmem:[#allocation2 + $0x1c] sm:$0xf] %v596_v24  ;;  %v720_v41 = vrot.slane %v718_v31, 7  ;;  %v422_v49 = vadd.f32 %v8608_v10, %v383_v9  ;;  %v7564_v56 = vunpack.c.h.bf16 %v8708_v4 }
  0x36   : > { %7988 = vmatpush3.bf16.msra.mxu1 %v8671_v23  ;;  %v602_v42 = vshll.u32 %v7489_v28, 16  ;;  %v607_v43 = vshrl.u32 %v7490_v33, 16  ;;  %v610_v44 = vshll.u32 %v7490_v33, 16  ;;  %v8735_v47 = vrot.slane %v726_v35, 7  ;;  %v960_v31 = vld [vmem:[#allocation2 + $0x84] sm:$0xf] }
  0x37   : > { %7989 = vmatprep.subr.bf16.mxu1 %v8410_v17  ;;  %v601_v48 = vrot.slane %v599_v39, 7  ;;  %v453_v50 = vmax.f32 %v421_v29, 0.0  ;;  %v723_v23 = vor.u32 %v721_v32, %v720_v41  ;;  %v724_v53 = vrot.slane %v720_v41, 4  ;;  %v8424_v24 = vld [vmem:[%s10698_s3 + $0x58] sm:$0xff]   ;;  %v8427_v35 = vld [vmem:[%s10698_s3 + $0x90] sm:$0xff]  }
  0x38   : > { %8038 = vmatpush3.bf16.msra.mxu0 %v8411_v62  ;;  %v8739_v55 = vrot.slane %v607_v43, 7  ;;  %v597_v58 = vrot.slane %v8712_v11, 4  ;;  %v731_v59 = vor.u32 %v729_v37, %v8735_v47  ;;  %v733_v62 = vrot.slane %v8735_v47, 4 }
  0x39   : > { %8039 = vmatprep.subr.bf16.mxu0 %v8417_v34  ;;  %v604_v60 = vor.u32 %v602_v42, %v601_v48  ;;  %v605_v61 = vrot.slane %v601_v48, 4  ;;  %v954_v63 = vsel %vm8649_vm6, %v723_v23, %v953_v38  ;;  %v454_v1 = vmax.f32 %v422_v49, 0.0 }
  0x3a   : > { %7990 = vmatpush3.bf16.msra.mxu1 %v8410_v17  ;;  %v612_v0 = vor.u32 %v610_v44, %v8739_v55  ;;  %v732_v3 = vsel %vm8639_vm5, %v724_v53, %v731_v59  ;;  %955 = vst [vmem:[#allocation2 + $0x78] sm:$0xf] %v954_v63  ;;  %v7505_v6 = vpack.c.bf16 %v453_v50, %v453_v50  ;;  %v7595_v9 = vunpack.c.l.bf16 %v7703_v51  ;;  %v8762_v17 = vld [vmem:[%s8592_s29 + $0x20] sm:$0xff]  }
  0x3b   : > { %v905_v5 = vsel %vm8649_vm6, %v604_v60, %v904_v45  ;;  %7991 = vmatprep.subr.bf16.mxu1 %v8416_v40  ;;  %956 = vst [vmem:[#allocation2 + $0x7c] sm:$0xf] %v732_v3  ;;  %v7506_v14 = vpack.c.bf16 %v454_v1, %v454_v1  ;;  %v368_v15 = vmul.f32 %v7563_v21, %v8603_v7  ;;  %v7596_v25 = vunpack.c.h.bf16 %v7703_v51  ;;  %v8426_v51 = vld [vmem:[%s10698_s3 + $0x50] sm:$0xff]  }
  0x3c   : > { %8040 = vmatpush3.bf16.msra.mxu0 %v8417_v34  ;;  %v613_v13 = vsel %vm8639_vm5, %v605_v61, %v612_v0  ;;  %906 = vst [vmem:[#allocation2 + $0x24] sm:$0xf] %v905_v5  ;;  %v369_v16 = vmul.f32 %v7564_v56, %v8603_v7  ;;  %v8412_v18 = vld [vmem:[#allocation2 + $0x18] sm:$0xff]   ;;  %v735_v19 = vshrl.u32 %v7505_v6, 16  ;;  %v738_v20 = vshll.u32 %v7505_v6, 16 }
  0x3d   : > { %8041 = vmatprep.subr.bf16.mxu0 %v8419_v46  ;;  %907 = vst [vmem:[#allocation2 + $0x28] sm:$0xf] %v613_v13  ;;  %v384_v26 = vmul.f32 %v7595_v9, %v8603_v7  ;;  %v743_v28 = vshrl.u32 %v7506_v14, 16  ;;  %v746_v29 = vshll.u32 %v7506_v14, 16  ;;  %v407_v4 = vadd.f32 %v8608_v10, %v368_v15  ;;  %7959 = vmatprep.mubr.bf16.mxu0 %v8412_v18  ;;  %v7704_v9 = vld [vmem:[%s8592_s29 + $0x60] sm:$0xff]   ;;  %v8433_v13 = vld [vmem:[%s10698_s3 + $0x88] sm:$0xff]  }
  0x3e   : > { %7992 = vmatpush3.bf16.msra.mxu1 %v8416_v40  ;;  %v408_v21 = vadd.f32 %v8608_v10, %v369_v16  ;;  %v737_v30 = vrot.slane %v735_v19, 7  ;;  %v385_v32 = vmul.f32 %v7596_v25, %v8603_v7  ;;  %v7567_v34 = vunpack.c.l.bf16 %v8762_v17  ;;  %v911_v16 = vld [vmem:[#allocation2 + $0x30] sm:$0xf] }
  0x3f   : > { %7993 = vmatprep.subr.bf16.mxu1 %v8418_v8  ;;  %v423_v33 = vadd.f32 %v8608_v10, %v384_v26  ;;  %v614_v37 = vrot.slane %v8739_v55, 4  ;;  %v8780_v38 = vrot.slane %v743_v28, 7  ;;  %v439_v39 = vmax.f32 %v407_v4, 0.0  ;;  %v2309_v55 = vld [vmem:[#allocation2 + $0x14] sm:$0x1] }
  0x40   : > { %8042 = vmatpush3.bf16.msra.mxu0 %v8419_v46  ;;  %v440_v40 = vmax.f32 %v408_v21, 0.0  ;;  %v740_v41 = vor.u32 %v738_v20, %v737_v30  ;;  %v741_v42 = vrot.slane %v737_v30, 4  ;;  %v424_v43 = vadd.f32 %v8608_v10, %v385_v32  ;;  %v967_v21 = vld [vmem:[#allocation2 + $0x90] sm:$0xf] }
  0x41   : > { %v455_v44 = vmax.f32 %v423_v33, 0.0  ;;  %8043 = vmatprep.subr.bf16.mxu0 %v8425_v27  ;;  %v748_v45 = vor.u32 %v746_v29, %v8780_v38  ;;  %v7491_v48 = vpack.c.bf16 %v439_v39, %v439_v39  ;;  %v7568_v50 = vunpack.c.h.bf16 %v8762_v17  ;;  %v8435_v39 = vld [vmem:[%s10698_s3 + $0x80] sm:$0xff]  }
  0x42   : > { %7994 = vmatpush3.bf16.msra.mxu1 %v8418_v8  ;;  %v7492_v49 = vpack.c.bf16 %v440_v40, %v440_v40  ;;  %v8413_v46 = vld [vmem:[#allocation2 + $0x78] sm:$0xff]   ;;  %v961_v23 = vsel %vm8649_vm6, %v740_v41, %v960_v31  ;;  %v456_v53 = vmax.f32 %v424_v43, 0.0  ;;  %v370_v59 = vmul.f32 %v7567_v34, %v8603_v7  ;;  %v8818_v43 = vld [vmem:[%s8592_s29 + $0x68] sm:$0xff]  }
  0x43   : > { %v7507_v56 = vpack.c.bf16 %v455_v44, %v455_v44  ;;  %7995 = vmatprep.subr.bf16.mxu1 %v8424_v24  ;;  %v749_v61 = vsel %vm8639_vm5, %v741_v42, %v748_v45  ;;  %962 = vst [vmem:[#allocation2 + $0x84] sm:$0xf] %v961_v23  ;;  %v616_v63 = vshrl.u32 %v7491_v48, 16  ;;  %v619_v0 = vshll.u32 %v7491_v48, 16  ;;  %7975 = vmatprep.mubr.bf16.mxu1 %v8413_v46  ;;  %v8434_v44 = vld [vmem:[%s10698_s3 + $0x40] sm:$0xff]  }
  0x44   : > { %v8414_v60 = vld [vmem:[#allocation2 + $0x24] sm:$0xff]   ;;  %v624_v1 = vshrl.u32 %v7492_v49, 16  ;;  %8044 = vmatpush3.bf16.msra.mxu0 %v8425_v27  ;;  %963 = vst [vmem:[#allocation2 + $0x88] sm:$0xf] %v749_v61  ;;  %v627_v3 = vshll.u32 %v7492_v49, 16  ;;  %v7508_v5 = vpack.c.bf16 %v456_v53, %v456_v53  ;;  %v371_v17 = vmul.f32 %v7568_v50, %v8603_v7 }
  0x45   : > { %v752_v6 = vshrl.u32 %v7507_v56, 16  ;;  %v755_v8 = vshll.u32 %v7507_v56, 16  ;;  %8045 = vmatprep.subr.bf16.mxu0 %v8427_v35  ;;  %7960 = vmatmul.mubr.bf16.gmra.mxu0 %v8414_v60  ;;  %v618_v14 = vrot.slane %v616_v63, 7  ;;  %v409_v18 = vadd.f32 %v8608_v10, %v370_v59  ;;  %v8432_v27 = vld [vmem:[%s10698_s3 + $0x48] sm:$0xff]  }
  0x46   : > { %v8797_v15 = vrot.slane %v624_v1, 7  ;;  %7996 = vmatpush3.bf16.msra.mxu1 %v8424_v24  ;;  %v750_v19 = vrot.slane %v8780_v38, 4  ;;  %v760_v25 = vshrl.u32 %v7508_v5, 16  ;;  %v763_v26 = vshll.u32 %v7508_v5, 16  ;;  %v7697_v24 = vld [vmem:[%s8592_s29 + $0x28] sm:$0xff]  }
  0x47   : > { %v754_v20 = vrot.slane %v752_v6, 7  ;;  %7997 = vmatprep.subr.bf16.mxu1 %v8426_v51  ;;  %v621_v28 = vor.u32 %v619_v0, %v618_v14  ;;  %v622_v29 = vrot.slane %v618_v14, 4  ;;  %v7599_v30 = vunpack.c.l.bf16 %v7704_v9  ;;  %v8835_v0 = vld [vmem:[%s10698_s3 + $0x138] sm:$0xff]  }
  0x48   : > { %v629_v4 = vor.u32 %v627_v3, %v8797_v15  ;;  %8046 = vmatpush3.bf16.msra.mxu0 %v8427_v35  ;;  %v8806_v33 = vrot.slane %v760_v25, 7  ;;  %v410_v34 = vadd.f32 %v8608_v10, %v371_v17  ;;  %v441_v42 = vmax.f32 %v409_v18, 0.0  ;;  %v8845_v25 = vld [vmem:[%s10698_s3 + $0xf8] sm:$0xff]  }
  0x49   : > { %v757_v31 = vor.u32 %v755_v8, %v754_v20  ;;  %v758_v32 = vrot.slane %v754_v20, 4  ;;  %8047 = vmatprep.subr.bf16.mxu0 %v8433_v13  ;;  %v912_v41 = vsel %vm8649_vm6, %v621_v28, %v911_v16  ;;  %v7600_v35 = vunpack.c.h.bf16 %v7704_v9  ;;  %v918_v28 = vld [vmem:[#allocation2 + $0x3c] sm:$0xf] }
  0x4a   : > { %v630_v40 = vsel %vm8639_vm5, %v622_v29, %v629_v4  ;;  %7998 = vmatpush3.bf16.msra.mxu1 %v8426_v51  ;;  %v631_v45 = vrot.slane %v8797_v15, 4  ;;  %913 = vst [vmem:[#allocation2 + $0x30] sm:$0xf] %v912_v41  ;;  %v765_v48 = vor.u32 %v763_v26, %v8806_v33  ;;  %v442_v50 = vmax.f32 %v410_v34, 0.0 }
  0x4b   : > { %914 = vst [vmem:[#allocation2 + $0x34] sm:$0xf] %v630_v40  ;;  %v968_v49 = vsel %vm8649_vm6, %v757_v31, %v967_v21  ;;  %7999 = vmatprep.subr.bf16.mxu1 %v8432_v27  ;;  %v8415_v46 = vld [vmem:[#allocation2 + $0x84] sm:$0xff]   ;;  %v7493_v51 = vpack.c.bf16 %v441_v42, %v441_v42  ;;  %v386_v23 = vmul.f32 %v7599_v30, %v8603_v7  ;;  %v7571_v56 = vunpack.c.l.bf16 %v7697_v24 }
  0x4c   : > { %969 = vst [vmem:[#allocation2 + $0x90] sm:$0xf] %v968_v49  ;;  %v387_v53 = vmul.f32 %v7600_v35, %v8603_v7  ;;  %8048 = vmatpush3.bf16.msra.mxu0 %v8433_v13  ;;  %v766_v59 = vsel %vm8639_vm5, %v758_v32, %v765_v48  ;;  %v7494_v60 = vpack.c.bf16 %v442_v50, %v442_v50  ;;  %v7572_v61 = vunpack.c.h.bf16 %v7697_v24 }
  0x4d   : > { %v7603_v63 = vunpack.c.l.bf16 %v8818_v43  ;;  %8049 = vmatprep.subr.bf16.mxu0 %v8435_v39  ;;  %7976 = vmatmul.mubr.bf16.gmra.mxu1 %v8415_v46  ;;  %970 = vst [vmem:[#allocation2 + $0x94] sm:$0xf] %v766_v59  ;;  %v633_v1 = vshrl.u32 %v7493_v51, 16  ;;  %v636_v3 = vshll.u32 %v7493_v51, 16  ;;  %v425_v5 = vadd.f32 %v8608_v10, %v386_v23 }
  0x4e   : > { %v426_v6 = vadd.f32 %v8608_v10, %v387_v53  ;;  %v641_v8 = vshrl.u32 %v7494_v60, 16  ;;  %v644_v9 = vshll.u32 %v7494_v60, 16  ;;  %v372_v13 = vmul.f32 %v7571_v56, %v8603_v7  ;;  %8000 = vmatpush3.bf16.msra.mxu1 %v8432_v27  ;;  %v974_v56 = vld [vmem:[#allocation2 + $0x9c] sm:$0xf] }
  0x4f   : > { %v373_v14 = vmul.f32 %v7572_v61, %v8603_v7  ;;  %v635_v16 = vrot.slane %v633_v1, 7  ;;  %v457_v17 = vmax.f32 %v425_v5, 0.0  ;;  %v7604_v20 = vunpack.c.h.bf16 %v8818_v43  ;;  %8001 = vmatprep.subr.bf16.mxu1 %v8434_v44  ;;  %v7698_v61 = vld [vmem:[%s8592_s29 + $0x30] sm:$0xff]  }
  0x50   : > { %v458_v18 = vmax.f32 %v426_v6, 0.0  ;;  %8050 = vmatpush3.bf16.msra.mxu0 %v8435_v39  ;;  %v8847_v26 = vrot.slane %v641_v8, 7  ;;  %v411_v29 = vadd.f32 %v8608_v10, %v372_v13  ;;  %v388_v27 = vmul.f32 %v7603_v63, %v8603_v7 }
  0x51   : > { %v412_v4 = vadd.f32 %v8608_v10, %v373_v14  ;;  %8131 = vmatprep.subr.bf16.mxu0 %v8835_v0  ;;  %v638_v30 = vor.u32 %v636_v3, %v635_v16  ;;  %v639_v31 = vrot.slane %v635_v16, 4  ;;  %v7509_v32 = vpack.c.bf16 %v457_v17, %v457_v17 }
  0x52   : > { %v8420_v21 = vld [vmem:[#allocation2 + $0x30] sm:$0xff]   ;;  %v7510_v34 = vpack.c.bf16 %v458_v18, %v458_v18  ;;  %v767_v24 = vrot.slane %v8806_v33, 4  ;;  %v646_v39 = vor.u32 %v644_v9, %v8847_v26  ;;  %v443_v40 = vmax.f32 %v411_v29, 0.0  ;;  %8002 = vmatpush3.bf16.msra.mxu1 %v8434_v44  ;;  %v925_v29 = vld [vmem:[#allocation2 + $0x48] sm:$0xf] }
  0x53   : > { %v444_v41 = vmax.f32 %v412_v4, 0.0  ;;  %7963 = vmatprep.mubr.bf16.mxu0 %v8420_v21  ;;  %v919_v42 = vsel %vm8649_vm6, %v638_v30, %v918_v28  ;;  %v769_v35 = vshrl.u32 %v7509_v32, 16  ;;  %v772_v43 = vshll.u32 %v7509_v32, 16  ;;  %8083 = vmatprep.subr.bf16.mxu1 %v8845_v25  ;;  %v7706_v21 = vld [vmem:[%s8592_s29 + $0x70] sm:$0xff]  }
  0x54   : > { %v777_v48 = vshrl.u32 %v7510_v34, 16  ;;  %v8421_v49 = vld [vmem:[#allocation2 + $0x90] sm:$0xff]   ;;  %v647_v50 = vsel %vm8639_vm5, %v639_v31, %v646_v39  ;;  %920 = vst [vmem:[#allocation2 + $0x3c] sm:$0xf] %v919_v42  ;;  %v780_v46 = vshll.u32 %v7510_v34, 16  ;;  %v7495_v51 = vpack.c.bf16 %v443_v40, %v443_v40 }
  0x55   : > { %v7496_v23 = vpack.c.bf16 %v444_v41, %v444_v41  ;;  %921 = vst [vmem:[#allocation2 + $0x40] sm:$0xf] %v647_v50  ;;  %v771_v44 = vrot.slane %v769_v35, 7  ;;  %v389_v59 = vmul.f32 %v7604_v20, %v8603_v7  ;;  %v427_v60 = vadd.f32 %v8608_v10, %v388_v27  ;;  %7979 = vmatprep.mubr.bf16.mxu1 %v8421_v49 }
  0x56   : > { %v8860_v53 = vrot.slane %v777_v48, 7  ;;  %v650_v63 = vshrl.u32 %v7495_v51, 16  ;;  %v653_v1 = vshll.u32 %v7495_v51, 16  ;;  %v648_v6 = vrot.slane %v8847_v26, 4 }
  0x57   : > { %v658_v3 = vshrl.u32 %v7496_v23, 16  ;;  %v661_v5 = vshll.u32 %v7496_v23, 16  ;;  %v774_v8 = vor.u32 %v772_v43, %v771_v44  ;;  %v775_v9 = vrot.slane %v771_v44, 4 }
  0x58   : > { %v782_v13 = vor.u32 %v780_v46, %v8860_v53  ;;  %v652_v14 = vrot.slane %v650_v63, 7  ;;  %v428_v17 = vadd.f32 %v8608_v10, %v389_v59  ;;  %v459_v18 = vmax.f32 %v427_v60, 0.0  ;;  %v8516_v60 = vld [vmem:[%s10696_s1] ss:$0 sm:$0xff] }
  0x59   : > { %v8867_v16 = vrot.slane %v658_v3, 7  ;;  %v975_v28 = vsel %vm8649_vm6, %v774_v8, %v974_v56  ;;  %v7575_v4 = vunpack.c.l.bf16 %v7698_v61  ;;  %v7576_v27 = vunpack.c.h.bf16 %v7698_v61  ;;  %v8884_v56 = vld [vmem:[#allocation2] sm:$0xf] }
  0x5a   : > { %v783_v20 = vsel %vm8639_vm5, %v775_v9, %v782_v13  ;;  %v784_v30 = vrot.slane %v8860_v53, 4  ;;  %976 = vst [vmem:[#allocation2 + $0x9c] sm:$0xf] %v975_v28  ;;  %v655_v31 = vor.u32 %v653_v1, %v652_v14  ;;  %v656_v32 = vrot.slane %v652_v14, 4  ;;  %v901_v1 = vld [vmem:[#allocation2 + $0x20] sm:$0x1] }
  0x5b   : > { %977 = vst [vmem:[#allocation2 + $0xa0] sm:$0xf] %v783_v20  ;;  %v663_v34 = vor.u32 %v661_v5, %v8867_v16  ;;  %v460_v39 = vmax.f32 %v428_v17, 0.0  ;;  %v7511_v40 = vpack.c.bf16 %v459_v18, %v459_v18  ;;  %v374_v41 = vmul.f32 %v7575_v4, %v8603_v7  ;;  %v981_v13 = vld [vmem:[#allocation2 + $0xa8] sm:$0xf] }
  0x5c   : > { %v375_v42 = vmul.f32 %v7576_v27, %v8603_v7  ;;  %v8422_v35 = vld [vmem:[#allocation2 + $0x3c] sm:$0xff]   ;;  %v926_v48 = vsel %vm8649_vm6, %v655_v31, %v925_v29  ;;  %v7607_v49 = vunpack.c.l.bf16 %v7706_v21  ;;  %v7608_v50 = vunpack.c.h.bf16 %v7706_v21 }
  0x5d   : > { %v664_v43 = vsel %vm8639_vm5, %v656_v32, %v663_v34  ;;  %927 = vst [vmem:[#allocation2 + $0x48] sm:$0xf] %v926_v48  ;;  %v7512_v46 = vpack.c.bf16 %v460_v39, %v460_v39  ;;  %v786_v51 = vshrl.u32 %v7511_v40, 16  ;;  %v789_v23 = vshll.u32 %v7511_v40, 16  ;;  %7964 = vmatmul.mubr.bf16.gmra.mxu0 %v8422_v35  ;;  %v8517_v17 = vld [vmem:[%s10697_s2] ss:$0 sm:$0xff] }
  0x5e   : > { %928 = vst [vmem:[#allocation2 + $0x4c] sm:$0xf] %v664_v43  ;;  %v413_v44 = vadd.f32 %v8608_v10, %v374_v41  ;;  %v665_v7 = vrot.slane %v8867_v16, 4  ;;  %v414_v59 = vadd.f32 %v8608_v10, %v375_v42  ;;  %v390_v61 = vmul.f32 %v8516_v60, %v7607_v49 }
  0x5f   : > { %v391_v63 = vmul.f32 %v8516_v60, %v7608_v50  ;;  %v788_v3 = vrot.slane %v786_v51, 7  ;;  %v794_v5 = vshrl.u32 %v7512_v46, 16  ;;  %v797_v8 = vshll.u32 %v7512_v46, 16  ;;  %v932_v60 = vld [vmem:[#allocation2 + $0x54] sm:$0xf] }
  0x60   : > { %v445_v9 = vmax.f32 %v413_v44, 0.0  ;;  %v446_v14 = vmax.f32 %v414_v59, 0.0  ;;  %v429_v18 = vadd.f32 %v8517_v17, %v390_v61  ;;  %v1535_v10 = vshrl.u32 %v8884_v56, 16 }
  0x61   : > { %v430_v20 = vadd.f32 %v8517_v17, %v391_v63  ;;  %vm2400_vm8 = vcmask 1042432   ;;  %vm2401_vm9 = vcmask 1046532   ;;  %v791_v29 = vor.u32 %v789_v23, %v788_v3  ;;  %v1484_v23 = vld [vmem:[#allocation2 + $0x4] sm:$0xf]  ;;  %v2304_v17 = vld [vmem:[#allocation2] sm:$0xe] }
  0x62   : > { %v8423_v28 = vld [vmem:[#allocation2 + $0x9c] sm:$0xff]   ;;  %v792_v4 = vrot.slane %v788_v3, 4  ;;  %v7497_v27 = vpack.c.bf16 %v445_v9, %v445_v9  ;;  %vm1531_vm10 = vsmask.f32 3328  ;;  %vm1532_vm11 = vsmask.f32 7440  ;;  %vm8922_vm12 = vmor %vm2400_vm8, %vm2401_vm9 }
  0x63   : > { %v902_v21 = vsel %vm8659_vm7, %v597_v58, %v901_v1  ;;  %v8899_v31 = vrot.slane %v794_v5, 7  ;;  %v7498_v32 = vpack.c.bf16 %v446_v14, %v446_v14  ;;  %v461_v34 = vmax.f32 %v429_v18, 0.0  ;;  %7980 = vmatmul.mubr.bf16.gmra.mxu1 %v8423_v28  ;;  %v1485_v14 = vld [vmem:[#allocation2 + $0x8] sm:$0x1]  ;;  %v2305_v28 = vld [vmem:[#allocation2 + $0x4] sm:$0xf]  ;;  %vm8932_vm13 = vmor %vm1531_vm10, %vm1532_vm11 }
  0x64   : > { %v462_v39 = vmax.f32 %v430_v20, 0.0  ;;  %903 = vst [vmem:[#allocation2 + $0x20] sm:$0x1] %v902_v21  ;;  %v982_v40 = vsel %vm8649_vm6, %v791_v29, %v981_v13  ;;  %v667_v41 = vshrl.u32 %v7497_v27, 16  ;;  %v670_v42 = vshll.u32 %v7497_v27, 16 }
  0x65   : > { %v1537_v35 = vrot.slane %v1535_v10, 4  ;;  %v8428_v43 = vld [vmem:[#allocation2 + $0x48] sm:$0xff]   ;;  %v799_v48 = vor.u32 %v797_v8, %v8899_v31  ;;  %v801_v11 = vrot.slane %v8899_v31, 4  ;;  %983 = vst [vmem:[#allocation2 + $0xa8] sm:$0xf] %v982_v40  ;;  %v7513_v58 = vpack.c.bf16 %v461_v34, %v461_v34 }
  0x66   : > { %v7514_v49 = vpack.c.bf16 %v462_v39, %v462_v39  ;;  %v669_v50 = vrot.slane %v667_v41, 7  ;;  %v675_v46 = vshrl.u32 %v7498_v32, 16  ;;  %v678_v51 = vshll.u32 %v7498_v32, 16  ;;  %7967 = vmatprep.mubr.bf16.mxu0 %v8428_v43  ;;  %v988_v13 = vld [vmem:[#allocation2 + $0xb4] sm:$0xf] }
  0x67   : > { %v1538_v44 = vshll.u32 %v8884_v56, 16  ;;  %v800_v59 = vsel %vm8639_vm5, %v792_v4, %v799_v48  ;;  %v803_v61 = vshrl.u32 %v7513_v58, 16  ;;  %v806_v63 = vshll.u32 %v7513_v58, 16  ;;  %v2306_v32 = vld [vmem:[#allocation2 + $0x8] sm:$0x1] }
  0x68   : > { %v811_v1 = vshrl.u32 %v7514_v49, 16  ;;  %984 = vst [vmem:[#allocation2 + $0xac] sm:$0xf] %v800_v59  ;;  %v672_v3 = vor.u32 %v670_v42, %v669_v50  ;;  %v673_v5 = vrot.slane %v669_v50, 4  ;;  %v8908_v8 = vrot.slane %v675_v46, 7 }
  0x69   : > { %v814_v9 = vshll.u32 %v7514_v49, 16  ;;  %v805_v18 = vrot.slane %v803_v61, 7  ;;  %v1540_v56 = vrot.slane %v1538_v44, 5  ;;  %v1544_v10 = vshll.u32 %v1484_v23, 16  ;;  %v1486_v34 = vld [vmem:[#allocation2 + $0xc] sm:$0xf] }
  0x6a   : > { %v8910_v20 = vrot.slane %v811_v1, 7  ;;  %v680_v29 = vor.u32 %v678_v51, %v8908_v8  ;;  %v682_v4 = vrot.slane %v8908_v8, 4  ;;  %v933_v27 = vsel %vm8649_vm6, %v672_v3, %v932_v60  ;;  %v908_v46 = vld [vmem:[#allocation2 + $0x2c] sm:$0x1]  ;;  %v1487_v60 = vld [vmem:[#allocation2 + $0x10] sm:$0xf] }
  0x6b   : > { %v1548_v21 = vshrl.u32 %v1484_v23, 16  ;;  %934 = vst [vmem:[#allocation2 + $0x54] sm:$0xf] %v933_v27  ;;  %v808_v39 = vor.u32 %v806_v63, %v805_v18  ;;  %v809_v40 = vrot.slane %v805_v18, 4  ;;  %v1541_v48 = vor.u32 %v1540_v56, %v1537_v35  ;;  %v1488_v61 = vld [vmem:[#allocation2 + $0x14] sm:$0x1] }
  0x6c   : > { %v816_v41 = vor.u32 %v814_v9, %v8910_v20  ;;  %v818_v42 = vrot.slane %v8910_v20, 4  ;;  %v681_v43 = vsel %vm8639_vm5, %v673_v5, %v680_v29  ;;  %v1546_v58 = vrot.slane %v1544_v10, 5  ;;  %v2307_v9 = vld [vmem:[#allocation2 + $0xc] sm:$0xe]  ;;  %v2308_v29 = vld [vmem:[#allocation2 + $0x10] sm:$0xf] }
  0x6d   : > { %v1550_v49 = vrot.slane %v1548_v21, 4  ;;  %935 = vst [vmem:[#allocation2 + $0x58] sm:$0xf] %v681_v43  ;;  %v989_v23 = vsel %vm8649_vm6, %v808_v39, %v988_v13  ;;  %v1554_v44 = vshll.u32 %v1485_v14, 16  ;;  %v7121_v59 = vrot.slane %v2304_v17, 9 }
  0x6e   : > { %v817_v51 = vsel %vm8639_vm5, %v809_v40, %v816_v41  ;;  %990 = vst [vmem:[#allocation2 + $0xb4] sm:$0xf] %v989_v23  ;;  %v1542_v63 = vrot.slane %v1541_v48, 4  ;;  %v2405_v3 = vrot.slane %v2305_v28, 5  ;;  %v2408_v5 = vrot.slane %v2306_v32, 5 }
  0x6f   : > { %991 = vst [vmem:[#allocation2 + $0xb8] sm:$0xf] %v817_v51  ;;  %v1551_v1 = vor.u32 %v1550_v49, %v1546_v58  ;;  %v8429_v18 = vld [vmem:[#allocation2 + $0xa8] sm:$0xff]   ;;  %v1556_v56 = vrot.slane %v1554_v44, 5  ;;  %v1559_v13 = vshrl.u32 %v1486_v34, 16  ;;  %v1562_v10 = vshll.u32 %v1486_v34, 16 }
  0x70   : > { %v909_v14 = vsel %vm8659_vm7, %v614_v37, %v908_v46  ;;  %v1547_v17 = vsel %vm8932_vm13, %v1542_v63, %v1546_v58  ;;  %v2406_v21 = vsel %vm8922_vm12, %v7121_v59, %v2405_v3  ;;  %v2407_v28 = vrot.slane %v2405_v3, 4  ;;  %v915_v32 = vld [vmem:[#allocation2 + $0x38] sm:$0x1]  ;;  %v922_v39 = vld [vmem:[#allocation2 + $0x44] sm:$0x1]  ;;  %7983 = vmatprep.mubr.bf16.mxu1 %v8429_v18 }
  0x71   : > { %v1552_v27 = vrot.slane %v1551_v1, 4  ;;  %910 = vst [vmem:[#allocation2 + $0x2c] sm:$0x1] %v909_v14  ;;  %v1561_v40 = vrot.slane %v1559_v13, 4  ;;  %v1564_v34 = vrot.slane %v1562_v10, 5  ;;  %v1568_v41 = vshll.u32 %v1487_v60, 16 }
  0x72   : > { %v1572_v43 = vshrl.u32 %v1487_v60, 16  ;;  %v929_v48 = vld [vmem:[#allocation2 + $0x50] sm:$0x1]  ;;  %v2409_v58 = vsel %vm8922_vm12, %v2407_v28, %v2408_v5  ;;  %v1578_v49 = vshll.u32 %v1488_v61, 16  ;;  %v7122_v46 = vrot.slane %v2307_v9, 9 }
  0x73   : > { %v1557_v37 = vsel %vm8932_vm13, %v1552_v27, %v1556_v56  ;;  %v1489_v51 = vld [vmem:[#allocation2 + $0x18] sm:$0xf]  ;;  %v936_v23 = vld [vmem:[#allocation2 + $0x5c] sm:$0x1]  ;;  %v7153_v59 = vcombine.low %v2406_v21, %v2409_v58  ;;  %v1565_v63 = vor.u32 %v1564_v34, %v1561_v40  ;;  %v1570_v1 = vrot.slane %v1568_v41, 5 }
  0x74   : > { %v7097_v44 = vcombine.low %v1547_v17, %v1557_v37  ;;  %v1490_v3 = vld [vmem:[#allocation2 + $0x1c] sm:$0xf]  ;;  %v1491_v18 = vld [vmem:[#allocation2 + $0x20] sm:$0x1]  ;;  %v8430_v13 = vld [vmem:[#allocation2 + $0x54] sm:$0xff]   ;;  %v1574_v60 = vrot.slane %v1572_v43, 4  ;;  %v916_v56 = vsel %vm8659_vm7, %v631_v45, %v915_v32  ;;  %v923_v9 = vsel %vm8659_vm7, %v648_v6, %v922_v39 }
  0x75   : > { %v1580_v10 = vrot.slane %v1578_v49, 5  ;;  %v2412_v14 = vrot.slane %v2308_v29, 5  ;;  %v1566_v61 = vrot.slane %v1565_v63, 4  ;;  %917 = vst [vmem:[#allocation2 + $0x38] sm:$0x1] %v916_v56  ;;  %v930_v17 = vsel %vm8659_vm7, %v665_v7, %v929_v48  ;;  %7968 = vmatmul.mubr.bf16.gmra.mxu0 %v8430_v13  ;;  %v8439_v56 = vld [vmem:[%s10698_s3 + $0x130] sm:$0xff]  }
  0x76   : > { %v8431_v5 = vld [vmem:[#allocation2 + $0xb4] sm:$0xff]   ;;  %v937_v15 = vsel %vm8659_vm7, %v682_v4, %v936_v23  ;;  %v1575_v45 = vor.u32 %v1574_v60, %v1570_v1  ;;  %v2415_v26 = vrot.slane %v2309_v55, 5  ;;  %v2311_v28 = vld [vmem:[#allocation2 + $0x1c] sm:$0xf]  ;;  %924 = vst [vmem:[#allocation2 + $0x44] sm:$0x1] %v923_v9  ;;  %8051 = vmatprep.mubr.bf16.mxu0 %v7153_v59 }
  0x77   : > { %v2413_v29 = vsel %vm8922_vm12, %v7122_v46, %v2412_v14  ;;  %v2414_v27 = vrot.slane %v2412_v14, 4  ;;  %v2310_v21 = vld [vmem:[#allocation2 + $0x18] sm:$0xe]  ;;  %931 = vst [vmem:[#allocation2 + $0x50] sm:$0x1] %v930_v17  ;;  %7984 = vmatmul.mubr.bf16.gmra.mxu1 %v8431_v5  ;;  %v1571_v6 = vsel %vm8932_vm13, %v1566_v61, %v1570_v1  ;;  %v1583_v16 = vshrl.u32 %v1489_v51, 16 }
  0x78   : > { %938 = vst [vmem:[#allocation2 + $0x5c] sm:$0x1] %v937_v15  ;;  %v1586_v7 = vshll.u32 %v1489_v51, 16  ;;  %v1592_v8 = vshll.u32 %v1490_v3, 16  ;;  %v1492_v4 = vld [vmem:[#allocation2 + $0x24] sm:$0xf]  ;;  %8003 = vmatprep.mubr.bf16.mxu1 %v7097_v44 }
  0x79   : > { %v1576_v32 = vrot.slane %v1575_v45, 4  ;;  %v2416_v39 = vsel %vm8922_vm12, %v2414_v27, %v2415_v26  ;;  %v1596_v40 = vshrl.u32 %v1490_v3, 16  ;;  %v1602_v34 = vshll.u32 %v1491_v18, 16  ;;  %v2312_v41 = vld [vmem:[#allocation2 + $0x20] sm:$0x1]  ;;  %v8438_v15 = vld [vmem:[%s10698_s3 + $0xf0] sm:$0xff]  }
  0x7a   : > { %v7154_v43 = vcombine.low %v2413_v29, %v2416_v39  ;;  %v1585_v55 = vrot.slane %v1583_v16, 4  ;;  %v1588_v48 = vrot.slane %v1586_v7, 5  ;;  %v1594_v37 = vrot.slane %v1592_v8, 5  ;;  %v1493_v58 = vld [vmem:[#allocation2 + $0x28] sm:$0xf] }
  0x7b   : > { %v1581_v49 = vsel %vm8932_vm13, %v1576_v32, %v1580_v10  ;;  %v1598_v46 = vrot.slane %v1596_v40, 4  ;;  %v1604_v51 = vrot.slane %v1602_v34, 5  ;;  %v7123_v23 = vrot.slane %v2310_v21, 9  ;;  %v1494_v60 = vld [vmem:[#allocation2 + $0x2c] sm:$0x1] }
  0x7c   : > { %v7098_v59 = vcombine.low %v1571_v6, %v1581_v49  ;;  %v1589_v44 = vor.u32 %v1588_v48, %v1585_v55  ;;  %v2419_v63 = vrot.slane %v2311_v28, 5  ;;  %v2422_v1 = vrot.slane %v2312_v41, 5  ;;  %v2313_v17 = vld [vmem:[#allocation2 + $0x24] sm:$0xe]  ;;  %v2314_v21 = vld [vmem:[#allocation2 + $0x28] sm:$0xf] }
  0x7d   : > { %v1599_v13 = vor.u32 %v1598_v46, %v1594_v37  ;;  %v1607_v3 = vshrl.u32 %v1492_v4, 16  ;;  %v1610_v18 = vshll.u32 %v1492_v4, 16  ;;  %v1616_v14 = vshll.u32 %v1493_v58, 16  ;;  %8052 = vmatmul.mubr.bf16.vlgmr.msra.gmra.mxu0 %v7154_v43  ;;  %v2315_v8 = vld [vmem:[#allocation2 + $0x2c] sm:$0x1] }
  0x7e   : > { %v1590_v5 = vrot.slane %v1589_v44, 4  ;;  %v2420_v10 = vsel %vm8922_vm12, %v7123_v23, %v2419_v63  ;;  %v2421_v61 = vrot.slane %v2419_v63, 4  ;;  %v1620_v9 = vshrl.u32 %v1493_v58, 16  ;;  %8132 = vmatpush3.bf16.msra.mxu0 %v8835_v0  ;;  %v1495_v4 = vld [vmem:[#allocation2 + $0x30] sm:$0xf]  ;;  %v8440_v41 = vld [vmem:[%s10698_s3 + $0xe8] sm:$0xff]  }
  0x7f   : > { %v1600_v45 = vrot.slane %v1599_v13, 4  ;;  %v1609_v29 = vrot.slane %v1607_v3, 4  ;;  %v1612_v27 = vrot.slane %v1610_v18, 5  ;;  %v1618_v26 = vrot.slane %v1616_v14, 5  ;;  %8004 = vmatmul.mubr.bf16.vlgmr.msra.gmra.mxu1 %v7098_v59  ;;  %8133 = vmatprep.subr.bf16.mxu0 %v8439_v56  ;;  %v1496_v0 = vld [vmem:[#allocation2 + $0x34] sm:$0xf] }
  0x80   : > { %v1595_v28 = vsel %vm8932_vm13, %v1590_v5, %v1594_v37  ;;  %v2423_v6 = vsel %vm8922_vm12, %v2421_v61, %v2422_v1  ;;  %v1622_v16 = vrot.slane %v1620_v9, 4  ;;  %v1626_v7 = vshll.u32 %v1494_v60, 16  ;;  %8084 = vmatpush3.bf16.msra.mxu1 %v8845_v25  ;;  %v8441_v43 = vld [vmem:[%s10698_s3 + $0x128] sm:$0xff]   ;;  %v1497_v58 = vld [vmem:[#allocation2 + $0x38] sm:$0x1] }
  0x81   : > { %v1605_v32 = vsel %vm8932_vm13, %v1600_v45, %v1604_v51  ;;  %v7155_v39 = vcombine.low %v2420_v10, %v2423_v6  ;;  %v1613_v40 = vor.u32 %v1612_v27, %v1609_v29  ;;  %v7124_v34 = vrot.slane %v2313_v17, 9  ;;  %8085 = vmatprep.subr.bf16.mxu1 %v8438_v15  ;;  %v2316_v59 = vld [vmem:[#allocation2 + $0x30] sm:$0xe]  ;;  %v2317_v60 = vld [vmem:[#allocation2 + $0x34] sm:$0xf]  ;;  %v8443_v29 = vld [vmem:[%s10698_s3 + $0x120] sm:$0xff]  }
  0x82   : > { %v7099_v55 = vcombine.low %v1595_v28, %v1605_v32  ;;  %v1623_v48 = vor.u32 %v1622_v16, %v1618_v26  ;;  %v1628_v37 = vrot.slane %v1626_v7, 5  ;;  %v2426_v25 = vrot.slane %v2314_v21, 5  ;;  %8134 = vmatpush3.bf16.msra.mxu0 %v8439_v56  ;;  %v2318_v10 = vld [vmem:[#allocation2 + $0x38] sm:$0x1]  ;;  %v1498_v56 = vld [vmem:[#allocation2 + $0x3c] sm:$0xf] }
  0x83   : > { %8055 = vmatprep.mubr.bf16.mxu0 %v7155_v39  ;;  %v1614_v49 = vrot.slane %v1613_v40, 4  ;;  %v2429_v46 = vrot.slane %v2315_v8, 5  ;;  %v1631_v51 = vshrl.u32 %v1495_v4, 16  ;;  %v1634_v23 = vshll.u32 %v1495_v4, 16  ;;  %8135 = vmatprep.subr.bf16.mxu0 %v8441_v43  ;;  %v1499_v28 = vld [vmem:[#allocation2 + $0x40] sm:$0xf] }
  0x84   : > { %8007 = vmatprep.mubr.bf16.mxu1 %v7099_v55  ;;  %v1624_v44 = vrot.slane %v1623_v48, 4  ;;  %v2427_v63 = vsel %vm8922_vm12, %v7124_v34, %v2426_v25  ;;  %v2428_v1 = vrot.slane %v2426_v25, 4  ;;  %v1640_v13 = vshll.u32 %v1496_v0, 16  ;;  %8086 = vmatpush3.bf16.msra.mxu1 %v8438_v15  ;;  %v8442_v6 = vld [vmem:[%s10698_s3 + $0xe0] sm:$0xff]   ;;  %v2319_v32 = vld [vmem:[#allocation2 + $0x3c] sm:$0xe] }
  0x85   : > { %v1619_v3 = vsel %vm8932_vm13, %v1614_v49, %v1618_v26  ;;  %v1633_v18 = vrot.slane %v1631_v51, 4  ;;  %v1636_v14 = vrot.slane %v1634_v23, 5  ;;  %v1644_v5 = vshrl.u32 %v1496_v0, 16  ;;  %8087 = vmatprep.subr.bf16.mxu1 %v8440_v41  ;;  %v1500_v34 = vld [vmem:[#allocation2 + $0x44] sm:$0x1] }
  0x86   : > { %v1629_v61 = vsel %vm8932_vm13, %v1624_v44, %v1628_v37  ;;  %v2430_v9 = vsel %vm8922_vm12, %v2428_v1, %v2429_v46  ;;  %v1642_v17 = vrot.slane %v1640_v13, 5  ;;  %v1650_v45 = vshll.u32 %v1497_v58, 16  ;;  %8136 = vmatpush3.bf16.msra.mxu0 %v8441_v43  ;;  %v2320_v48 = vld [vmem:[#allocation2 + $0x40] sm:$0xf]  ;;  %v8445_v37 = vld [vmem:[%s10698_s3 + $0x118] sm:$0xff]  }
  0x87   : > { %v7100_v15 = vcombine.low %v1619_v3, %v1629_v61  ;;  %v7156_v27 = vcombine.low %v2427_v63, %v2430_v9  ;;  %v1637_v26 = vor.u32 %v1636_v14, %v1633_v18  ;;  %v1646_v21 = vrot.slane %v1644_v5, 4  ;;  %v1501_v43 = vld [vmem:[#allocation2 + $0x48] sm:$0xf]  ;;  %8137 = vmatprep.subr.bf16.mxu0 %v8443_v29  ;;  %v2321_v63 = vld [vmem:[#allocation2 + $0x44] sm:$0x1]  ;;  %v8444_v13 = vld [vmem:[%s10698_s3 + $0xd8] sm:$0xff]  }
  0x88   : > { %v1652_v16 = vrot.slane %v1650_v45, 5  ;;  %v7125_v7 = vrot.slane %v2316_v59, 9  ;;  %v2433_v8 = vrot.slane %v2317_v60, 5  ;;  %v2436_v4 = vrot.slane %v2318_v10, 5  ;;  %8088 = vmatpush3.bf16.msra.mxu1 %v8440_v41  ;;  %v1502_v1 = vld [vmem:[#allocation2 + $0x4c] sm:$0xf] }
  0x89   : > { %8008 = vmatmul.mubr.bf16.gmra.mxu1 %v7100_v15  ;;  %8056 = vmatmul.mubr.bf16.gmra.mxu0 %v7156_v27  ;;  %v1638_v39 = vrot.slane %v1637_v26, 4  ;;  %v1647_v40 = vor.u32 %v1646_v21, %v1642_v17  ;;  %v1655_v0 = vshrl.u32 %v1498_v56, 16  ;;  %v1658_v55 = vshll.u32 %v1498_v56, 16  ;;  %v8447_v9 = vld [vmem:[%s10698_s3 + $0x110] sm:$0xff]  }
  0x8a   : > { %v2434_v25 = vsel %vm8922_vm12, %v7125_v7, %v2433_v8  ;;  %v2435_v58 = vrot.slane %v2433_v8, 4  ;;  %v1664_v49 = vshll.u32 %v1499_v28, 16  ;;  %v1668_v46 = vshrl.u32 %v1499_v28, 16  ;;  %8089 = vmatprep.subr.bf16.mxu1 %v8442_v6  ;;  %8138 = vmatpush3.bf16.msra.mxu0 %v8443_v29  ;;  %v8446_v29 = vld [vmem:[%s10698_s3 + $0xd0] sm:$0xff]   ;;  %v2322_v7 = vld [vmem:[#allocation2 + $0x48] sm:$0xe] }
  0x8b   : > { %v1643_v51 = vsel %vm8932_vm13, %v1638_v39, %v1642_v17  ;;  %v1648_v23 = vrot.slane %v1647_v40, 4  ;;  %v1657_v59 = vrot.slane %v1655_v0, 4  ;;  %v1660_v44 = vrot.slane %v1658_v55, 5  ;;  %8139 = vmatprep.subr.bf16.mxu0 %v8445_v37  ;;  %v1503_v21 = vld [vmem:[#allocation2 + $0x50] sm:$0x1] }
  0x8c   : > { %v2437_v60 = vsel %vm8922_vm12, %v2435_v58, %v2436_v4  ;;  %v1666_v3 = vrot.slane %v1664_v49, 5  ;;  %v1670_v41 = vrot.slane %v1668_v46, 4  ;;  %v1674_v18 = vshll.u32 %v1500_v34, 16  ;;  %8090 = vmatpush3.bf16.msra.mxu1 %v8442_v6  ;;  %v2323_v6 = vld [vmem:[#allocation2 + $0x4c] sm:$0xf] }
  0x8d   : > { %v1653_v14 = vsel %vm8932_vm13, %v1648_v23, %v1652_v16  ;;  %v7157_v5 = vcombine.low %v2434_v25, %v2437_v60  ;;  %v1661_v10 = vor.u32 %v1660_v44, %v1657_v59  ;;  %v7126_v61 = vrot.slane %v2319_v32, 9  ;;  %8091 = vmatprep.subr.bf16.mxu1 %v8444_v13  ;;  %v3352_v20 = vld [vmem:[#allocation2 + $0x10] sm:$0xf] }
  0x8e   : > { %v7101_v17 = vcombine.low %v1643_v51, %v1653_v14  ;;  %v1671_v45 = vor.u32 %v1670_v41, %v1666_v3  ;;  %v1676_v56 = vrot.slane %v1674_v18, 5  ;;  %v2440_v15 = vrot.slane %v2320_v48, 5  ;;  %8140 = vmatpush3.bf16.msra.mxu0 %v8445_v37  ;;  %v2324_v48 = vld [vmem:[#allocation2 + $0x50] sm:$0x1]  ;;  %v8449_v37 = vld [vmem:[%s10698_s3 + $0x108] sm:$0xff]  }
  0x8f   : > { %8059 = vmatprep.mubr.bf16.mxu0 %v7157_v5  ;;  %v1662_v27 = vrot.slane %v1661_v10, 4  ;;  %v2443_v26 = vrot.slane %v2321_v63, 5  ;;  %v1679_v28 = vshrl.u32 %v1501_v43, 16  ;;  %v1682_v16 = vshll.u32 %v1501_v43, 16  ;;  %8141 = vmatprep.subr.bf16.mxu0 %v8447_v9  ;;  %v1504_v43 = vld [vmem:[#allocation2 + $0x54] sm:$0xf] }
  0x90   : > { %8011 = vmatprep.mubr.bf16.mxu1 %v7101_v17  ;;  %v1672_v8 = vrot.slane %v1671_v45, 4  ;;  %v2441_v4 = vsel %vm8922_vm12, %v7126_v61, %v2440_v15  ;;  %v2442_v32 = vrot.slane %v2440_v15, 4  ;;  %v1688_v39 = vshll.u32 %v1502_v1, 16  ;;  %8092 = vmatpush3.bf16.msra.mxu1 %v8444_v13  ;;  %v1505_v63 = vld [vmem:[#allocation2 + $0x58] sm:$0xf] }
  0x91   : > { %v1667_v40 = vsel %vm8932_vm13, %v1662_v27, %v1666_v3  ;;  %v1681_v34 = vrot.slane %v1679_v28, 4  ;;  %v1684_v0 = vrot.slane %v1682_v16, 5  ;;  %v1692_v55 = vshrl.u32 %v1502_v1, 16  ;;  %8093 = vmatprep.subr.bf16.mxu1 %v8446_v29  ;;  %v8448_v1 = vld [vmem:[%s10698_s3 + $0xc8] sm:$0xff]   ;;  %v2325_v14 = vld [vmem:[#allocation2 + $0x54] sm:$0xe] }
  0x92   : > { %v1677_v25 = vsel %vm8932_vm13, %v1672_v8, %v1676_v56  ;;  %v2444_v58 = vsel %vm8922_vm12, %v2442_v32, %v2443_v26  ;;  %v1690_v49 = vrot.slane %v1688_v39, 5  ;;  %v1698_v46 = vshll.u32 %v1503_v21, 16  ;;  %8142 = vmatpush3.bf16.msra.mxu0 %v8447_v9  ;;  %v1506_v10 = vld [vmem:[#allocation2 + $0x5c] sm:$0x1]  ;;  %v2326_v45 = vld [vmem:[#allocation2 + $0x58] sm:$0xf] }
  0x93   : > { %v7102_v51 = vcombine.low %v1667_v40, %v1677_v25  ;;  %v7158_v23 = vcombine.low %v2441_v4, %v2444_v58  ;;  %v1685_v59 = vor.u32 %v1684_v0, %v1681_v34  ;;  %v1694_v44 = vrot.slane %v1692_v55, 4  ;;  %v8451_v56 = vld [vmem:[%s10698_s3 + $0x100] sm:$0xff]   ;;  %v2327_v28 = vld [vmem:[#allocation2 + $0x5c] sm:$0x1]  ;;  %v943_v9 = vld [vmem:[#allocation2 + $0x68] sm:$0x1]  ;;  %8143 = vmatprep.subr.bf16.mxu0 %v8449_v37 }
  0x94   : > { %v1700_v60 = vrot.slane %v1698_v46, 5  ;;  %v7127_v3 = vrot.slane %v2322_v7, 9  ;;  %v2447_v41 = vrot.slane %v2323_v6, 5  ;;  %v2450_v18 = vrot.slane %v2324_v48, 5  ;;  %v1507_v16 = vld [vmem:[#allocation2 + $0x60] sm:$0xf]  ;;  %8094 = vmatpush3.bf16.msra.mxu1 %v8446_v29 }
  0x95   : > { %8012 = vmatmul.mubr.bf16.gmra.mxu1 %v7102_v51  ;;  %8060 = vmatmul.mubr.bf16.gmra.mxu0 %v7158_v23  ;;  %v1686_v13 = vrot.slane %v1685_v59, 4  ;;  %v1695_v5 = vor.u32 %v1694_v44, %v1690_v49  ;;  %v1703_v61 = vshrl.u32 %v1504_v43, 16  ;;  %v1706_v17 = vshll.u32 %v1504_v43, 16  ;;  %v8450_v39 = vld [vmem:[%s10698_s3 + $0xc0] sm:$0xff]  }
  0x96   : > { %v2448_v15 = vsel %vm8922_vm12, %v7127_v3, %v2447_v41  ;;  %v2449_v27 = vrot.slane %v2447_v41, 4  ;;  %v1712_v26 = vshll.u32 %v1505_v63, 16  ;;  %v1716_v21 = vshrl.u32 %v1505_v63, 16  ;;  %8095 = vmatprep.subr.bf16.mxu1 %v8448_v1  ;;  %v1508_v55 = vld [vmem:[#allocation2 + $0x64] sm:$0xf]  ;;  %8144 = vmatpush3.bf16.msra.mxu0 %v8449_v37 }
  0x97   : > { %v1691_v7 = vsel %vm8932_vm13, %v1686_v13, %v1690_v49  ;;  %v1696_v8 = vrot.slane %v1695_v5, 4  ;;  %v1705_v4 = vrot.slane %v1703_v61, 4  ;;  %v1708_v32 = vrot.slane %v1706_v17, 5  ;;  %8145 = vmatprep.subr.bf16.mxu0 %v8451_v56  ;;  %v9059_v49 = vld [vmem:[%s10698_s3 + $0x1b8] sm:$0xff]   ;;  %v2328_v59 = vld [vmem:[#allocation2 + $0x60] sm:$0xe] }
  0x98   : > { %v2451_v6 = vsel %vm8922_vm12, %v2449_v27, %v2450_v18  ;;  %v1714_v40 = vrot.slane %v1712_v26, 5  ;;  %v1718_v34 = vrot.slane %v1716_v21, 4  ;;  %v1722_v0 = vshll.u32 %v1506_v10, 16  ;;  %8096 = vmatpush3.bf16.msra.mxu1 %v8448_v1  ;;  %v2329_v3 = vld [vmem:[#allocation2 + $0x64] sm:$0xf]  ;;  %v9068_v18 = vld [vmem:[%s10698_s3 + $0x178] sm:$0xff]  }
  0x99   : > { %v1701_v29 = vsel %vm8932_vm13, %v1696_v8, %v1700_v60  ;;  %v7159_v48 = vcombine.low %v2448_v15, %v2451_v6  ;;  %v1709_v25 = vor.u32 %v1708_v32, %v1705_v4  ;;  %v7128_v58 = vrot.slane %v2325_v14, 9  ;;  %v950_v41 = vld [vmem:[#allocation2 + $0x74] sm:$0x1]  ;;  %8097 = vmatprep.subr.bf16.mxu1 %v8450_v39  ;;  %v1510_v5 = vld [vmem:[#allocation2 + $0x6c] sm:$0xf] }
  0x9a   : > { %v7103_v46 = vcombine.low %v1691_v7, %v1701_v29  ;;  %v1719_v43 = vor.u32 %v1718_v34, %v1714_v40  ;;  %v1724_v51 = vrot.slane %v1722_v0, 5  ;;  %v2454_v23 = vrot.slane %v2326_v45, 5  ;;  %8146 = vmatpush3.bf16.msra.mxu0 %v8451_v56  ;;  %v1511_v21 = vld [vmem:[#allocation2 + $0x70] sm:$0xf]  ;;  %v957_v7 = vld [vmem:[#allocation2 + $0x80] sm:$0x1] }
  0x9b   : > { %8063 = vmatprep.mubr.bf16.mxu0 %v7159_v48  ;;  %v1710_v37 = vrot.slane %v1709_v25, 4  ;;  %v2457_v44 = vrot.slane %v2327_v28, 5  ;;  %v944_v63 = vsel %vm8659_vm7, %v699_v2, %v943_v9  ;;  %v1727_v60 = vshrl.u32 %v1507_v16, 16  ;;  %8227 = vmatprep.subr.bf16.mxu0 %v9059_v49  ;;  %v964_v8 = vld [vmem:[#allocation2 + $0x8c] sm:$0x1] }
  0x9c   : > { %8015 = vmatprep.mubr.bf16.mxu1 %v7103_v46  ;;  %v1720_v14 = vrot.slane %v1719_v43, 4  ;;  %v2455_v1 = vsel %vm8922_vm12, %v7128_v58, %v2454_v23  ;;  %v2456_v13 = vrot.slane %v2454_v23, 4  ;;  %945 = vst [vmem:[#allocation2 + $0x68] sm:$0x1] %v944_v63  ;;  %v1730_v54 = vshll.u32 %v1507_v16, 16  ;;  %8098 = vmatpush3.bf16.msra.mxu1 %v8450_v39 }
  0x9d   : > { %v1715_v2 = vsel %vm8932_vm13, %v1710_v37, %v1714_v40  ;;  %v1729_v10 = vrot.slane %v1727_v60, 4  ;;  %v1736_v61 = vshll.u32 %v1508_v55, 16  ;;  %v1740_v17 = vshrl.u32 %v1508_v55, 16  ;;  %8179 = vmatprep.subr.bf16.mxu1 %v9068_v18  ;;  %v2331_v34 = vld [vmem:[#allocation2 + $0x6c] sm:$0xe] }
  0x9e   : > { %v1725_v45 = vsel %vm8932_vm13, %v1720_v14, %v1724_v51  ;;  %v2458_v15 = vsel %vm8922_vm12, %v2456_v13, %v2457_v44  ;;  %v1732_v27 = vrot.slane %v1730_v54, 5  ;;  %v7129_v26 = vrot.slane %v2328_v59, 9  ;;  %v2332_v0 = vld [vmem:[#allocation2 + $0x70] sm:$0xf]  ;;  %v1513_v25 = vld [vmem:[#allocation2 + $0x78] sm:$0xf] }
  0x9f   : > { %v7104_v28 = vcombine.low %v1715_v2, %v1725_v45  ;;  %v7160_v56 = vcombine.low %v2455_v1, %v2458_v15  ;;  %v1738_v9 = vrot.slane %v1736_v61, 5  ;;  %v1742_v16 = vrot.slane %v1740_v17, 4  ;;  %v971_v63 = vld [vmem:[#allocation2 + $0x98] sm:$0x1] }
  0xa0   : > { %v1733_v4 = vor.u32 %v1732_v27, %v1729_v10  ;;  %v2461_v32 = vrot.slane %v2329_v3, 5  ;;  %v951_v6 = vsel %vm8659_vm7, %v716_v36, %v950_v41  ;;  %v1751_v40 = vshrl.u32 %v1510_v5, 16  ;;  %v2334_v10 = vld [vmem:[#allocation2 + $0x78] sm:$0xe]  ;;  %v978_v27 = vld [vmem:[#allocation2 + $0xa4] sm:$0x1] }
  0xa1   : > { %8016 = vmatmul.mubr.bf16.gmra.mxu1 %v7104_v28  ;;  %8064 = vmatmul.mubr.bf16.gmra.mxu0 %v7160_v56  ;;  %v1743_v39 = vor.u32 %v1742_v16, %v1738_v9  ;;  %952 = vst [vmem:[#allocation2 + $0x74] sm:$0x1] %v951_v6  ;;  %v1754_v55 = vshll.u32 %v1510_v5, 16  ;;  %v1760_v29 = vshll.u32 %v1511_v21, 16  ;;  %v1764_v48 = vshrl.u32 %v1511_v21, 16 }
  0xa2   : > { %v1734_v58 = vrot.slane %v1733_v4, 4  ;;  %v2462_v46 = vsel %vm8922_vm12, %v7129_v26, %v2461_v32  ;;  %v2463_v43 = vrot.slane %v2461_v32, 4  ;;  %v1753_v22 = vrot.slane %v1751_v40, 4  ;;  %v1514_v5 = vld [vmem:[#allocation2 + $0x7c] sm:$0xf] }
  0xa3   : > { %v1509_v51 = vld [vmem:[#allocation2 + $0x68] sm:$0x1]  ;;  %v1744_v23 = vrot.slane %v1743_v39, 4  ;;  %v1756_v59 = vrot.slane %v1754_v55, 5  ;;  %v958_v37 = vsel %vm8659_vm7, %v733_v62, %v957_v7  ;;  %v965_v44 = vsel %vm8659_vm7, %v750_v19, %v964_v8  ;;  %v985_v26 = vld [vmem:[#allocation2 + $0xb0] sm:$0x1] }
  0xa4   : > { %v2330_v36 = vld [vmem:[#allocation2 + $0x68] sm:$0x1]  ;;  %v1739_v60 = vsel %vm8932_vm13, %v1734_v58, %v1738_v9  ;;  %v1746_v3 = vshll.u32 %v1509_v51, 16  ;;  %v1762_v14 = vrot.slane %v1760_v29, 5  ;;  %959 = vst [vmem:[#allocation2 + $0x80] sm:$0x1] %v958_v37  ;;  %v972_v7 = vsel %vm8659_vm7, %v767_v24, %v971_v63 }
  0xa5   : > { %v2464_v41 = vrot.slane %v2330_v36, 5  ;;  %966 = vst [vmem:[#allocation2 + $0x8c] sm:$0x1] %v965_v44  ;;  %v1757_v1 = vor.u32 %v1756_v59, %v1753_v22  ;;  %v1766_v13 = vrot.slane %v1764_v48, 4  ;;  %v7130_v47 = vrot.slane %v2331_v34, 9 }
  0xa6   : > { %v2468_v54 = vrot.slane %v2332_v0, 5  ;;  %v1748_v62 = vrot.slane %v1746_v3, 5  ;;  %v1775_v2 = vshrl.u32 %v1513_v25, 16  ;;  %v1778_v19 = vshll.u32 %v1513_v25, 16  ;;  %973 = vst [vmem:[#allocation2 + $0x98] sm:$0x1] %v972_v7 }
  0xa7   : > { %v2465_v38 = vsel %vm8922_vm12, %v2463_v43, %v2464_v41  ;;  %v1758_v17 = vrot.slane %v1757_v1, 4  ;;  %v1767_v45 = vor.u32 %v1766_v13, %v1762_v14  ;;  %v1784_v0 = vshll.u32 %v1514_v5, 16  ;;  %v2335_v55 = vld [vmem:[#allocation2 + $0x7c] sm:$0xf]  ;;  %v1517_v37 = vld [vmem:[#allocation2 + $0x88] sm:$0xf] }
  0xa8   : > { %v7161_v61 = vcombine.low %v2462_v46, %v2465_v38  ;;  %v2469_v15 = vsel %vm8922_vm12, %v7130_v47, %v2468_v54  ;;  %v1749_v21 = vsel %vm8932_vm13, %v1744_v23, %v1748_v62  ;;  %v1512_v28 = vld [vmem:[#allocation2 + $0x74] sm:$0x1]  ;;  %v2470_v9 = vrot.slane %v2468_v54, 4  ;;  %v1516_v23 = vld [vmem:[#allocation2 + $0x84] sm:$0xf] }
  0xa9   : > { %v2333_v56 = vld [vmem:[#allocation2 + $0x74] sm:$0x1]  ;;  %v1777_v16 = vrot.slane %v1775_v2, 4  ;;  %v7105_v8 = vcombine.low %v1739_v60, %v1749_v21  ;;  %v1763_v4 = vsel %vm8932_vm13, %v1758_v17, %v1762_v14  ;;  %v1768_v32 = vrot.slane %v1767_v45, 4  ;;  %v2337_v3 = vld [vmem:[#allocation2 + $0x84] sm:$0xe] }
  0xaa   : > { %8067 = vmatprep.mubr.bf16.mxu0 %v7161_v61  ;;  %v1770_v6 = vshll.u32 %v1512_v28, 16  ;;  %v2471_v40 = vrot.slane %v2333_v56, 5  ;;  %v1780_v34 = vrot.slane %v1778_v19, 5  ;;  %v1788_v39 = vshrl.u32 %v1514_v5, 16  ;;  %v2338_v47 = vld [vmem:[#allocation2 + $0x88] sm:$0xf] }
  0xab   : > { %8019 = vmatprep.mubr.bf16.mxu1 %v7105_v8  ;;  %v1515_v48 = vld [vmem:[#allocation2 + $0x80] sm:$0x1]  ;;  %v7131_v25 = vrot.slane %v2334_v10, 9  ;;  %v979_v24 = vsel %vm8659_vm7, %v784_v30, %v978_v27  ;;  %v986_v58 = vsel %vm8659_vm7, %v801_v11, %v985_v26  ;;  %v1786_v22 = vrot.slane %v1784_v0, 5  ;;  %v1519_v54 = vld [vmem:[#allocation2 + $0x90] sm:$0xf] }
  0xac   : > { %v1772_v29 = vrot.slane %v1770_v6, 5  ;;  %v2336_v33 = vld [vmem:[#allocation2 + $0x80] sm:$0x1]  ;;  %v2472_v46 = vsel %vm8922_vm12, %v2470_v9, %v2471_v40  ;;  %v1781_v43 = vor.u32 %v1780_v34, %v1777_v16  ;;  %v1790_v51 = vrot.slane %v1788_v39, 4  ;;  %980 = vst [vmem:[#allocation2 + $0xa4] sm:$0x1] %v979_v24 }
  0xad   : > { %987 = vst [vmem:[#allocation2 + $0xb0] sm:$0x1] %v986_v58  ;;  %v7162_v36 = vcombine.low %v2469_v15, %v2472_v46  ;;  %v1794_v59 = vshll.u32 %v1515_v48, 16  ;;  %v2475_v30 = vrot.slane %v2335_v55, 5  ;;  %v1518_v31 = vld [vmem:[#allocation2 + $0x8c] sm:$0x1] }
  0xae   : > { %v1773_v53 = vsel %vm8932_vm13, %v1768_v32, %v1772_v29  ;;  %v1782_v63 = vrot.slane %v1781_v43, 4  ;;  %v1791_v11 = vor.u32 %v1790_v51, %v1786_v22  ;;  %v2478_v60 = vrot.slane %v2336_v33, 5  ;;  %v1520_v19 = vld [vmem:[#allocation2 + $0x94] sm:$0xf]  ;;  %v2339_v15 = vld [vmem:[#allocation2 + $0x8c] sm:$0x1] }
  0xaf   : > { %v7106_v44 = vcombine.low %v1763_v4, %v1773_v53  ;;  %8068 = vmatmul.mubr.bf16.gmra.mxu0 %v7162_v36  ;;  %v1796_v41 = vrot.slane %v1794_v59, 5  ;;  %v2476_v14 = vsel %vm8922_vm12, %v7131_v25, %v2475_v30  ;;  %v2477_v1 = vrot.slane %v2475_v30, 4  ;;  %v2340_v40 = vld [vmem:[#allocation2 + $0x90] sm:$0xe]  ;;  %v1521_v0 = vld [vmem:[#allocation2 + $0x98] sm:$0x1] }
  0xb0   : > { %v1799_v13 = vshrl.u32 %v1516_v23, 16  ;;  %v1787_v5 = vsel %vm8932_vm13, %v1782_v63, %v1786_v22  ;;  %v1792_v62 = vrot.slane %v1791_v11, 4  ;;  %v1802_v38 = vshll.u32 %v1516_v23, 16  ;;  %v2341_v48 = vld [vmem:[#allocation2 + $0x94] sm:$0xf] }
  0xb1   : > { %8020 = vmatmul.mubr.bf16.gmra.mxu1 %v7106_v44  ;;  %v1808_v2 = vshll.u32 %v1517_v37, 16  ;;  %v2479_v10 = vsel %vm8922_vm12, %v2477_v1, %v2478_v60  ;;  %v1812_v17 = vshrl.u32 %v1517_v37, 16  ;;  %v1818_v45 = vshll.u32 %v1518_v31, 16  ;;  %v2342_v46 = vld [vmem:[#allocation2 + $0x98] sm:$0x1] }
  0xb2   : > { %v1801_v61 = vrot.slane %v1799_v13, 4  ;;  %v1797_v27 = vsel %vm8932_vm13, %v1792_v62, %v1796_v41  ;;  %v7163_v26 = vcombine.low %v2476_v14, %v2479_v10  ;;  %v1804_v21 = vrot.slane %v1802_v38, 5  ;;  %v1522_v37 = vld [vmem:[#allocation2 + $0x9c] sm:$0xf]  ;;  %v1523_v60 = vld [vmem:[#allocation2 + $0xa0] sm:$0xf] }
  0xb3   : > { %v1810_v28 = vrot.slane %v1808_v2, 5  ;;  %v7107_v56 = vcombine.low %v1787_v5, %v1797_v27  ;;  %v1814_v9 = vrot.slane %v1812_v17, 4  ;;  %v1820_v16 = vrot.slane %v1818_v45, 5  ;;  %v2343_v13 = vld [vmem:[#allocation2 + $0x9c] sm:$0xe] }
  0xb4   : > { %v7132_v7 = vrot.slane %v2337_v3, 9  ;;  %8071 = vmatprep.mubr.bf16.mxu0 %v7163_v26  ;;  %v1805_v8 = vor.u32 %v1804_v21, %v1801_v61  ;;  %v2482_v4 = vrot.slane %v2338_v47, 5  ;;  %v2485_v32 = vrot.slane %v2339_v15, 5  ;;  %v1524_v5 = vld [vmem:[#allocation2 + $0xa4] sm:$0x1] }
  0xb5   : > { %v1823_v6 = vshrl.u32 %v1519_v54, 16  ;;  %8023 = vmatprep.mubr.bf16.mxu1 %v7107_v56  ;;  %v1815_v34 = vor.u32 %v1814_v9, %v1810_v28  ;;  %v1826_v39 = vshll.u32 %v1519_v54, 16  ;;  %v1832_v55 = vshll.u32 %v1520_v19, 16  ;;  %v2344_v2 = vld [vmem:[#allocation2 + $0xa0] sm:$0xf] }
  0xb6   : > { %v1836_v29 = vshrl.u32 %v1520_v19, 16  ;;  %v1806_v33 = vrot.slane %v1805_v8, 4  ;;  %v2483_v25 = vsel %vm8922_vm12, %v7132_v7, %v2482_v4  ;;  %v2484_v24 = vrot.slane %v2482_v4, 4  ;;  %v1525_v19 = vld [vmem:[#allocation2 + $0xa8] sm:$0xf] }
  0xb7   : > { %v1825_v58 = vrot.slane %v1823_v6, 4  ;;  %v1816_v43 = vrot.slane %v1815_v34, 4  ;;  %v1828_v22 = vrot.slane %v1826_v39, 5  ;;  %v1834_v51 = vrot.slane %v1832_v55, 5  ;;  %v2345_v15 = vld [vmem:[#allocation2 + $0xa4] sm:$0x1] }
  0xb8   : > { %v1838_v23 = vrot.slane %v1836_v29, 4  ;;  %v1811_v53 = vsel %vm8932_vm13, %v1806_v33, %v1810_v28  ;;  %v2486_v36 = vsel %vm8922_vm12, %v2484_v24, %v2485_v32  ;;  %v1842_v59 = vshll.u32 %v1521_v0, 16  ;;  %v1526_v27 = vld [vmem:[#allocation2 + $0xac] sm:$0xf]  ;;  %v2346_v29 = vld [vmem:[#allocation2 + $0xa8] sm:$0xe] }
  0xb9   : > { %v7133_v30 = vrot.slane %v2340_v40, 9  ;;  %v1821_v31 = vsel %vm8932_vm13, %v1816_v43, %v1820_v16  ;;  %v7164_v44 = vcombine.low %v2483_v25, %v2486_v36  ;;  %v1829_v63 = vor.u32 %v1828_v22, %v1825_v58  ;;  %v1527_v25 = vld [vmem:[#allocation2 + $0xb0] sm:$0x1]  ;;  %v992_v43 = vld [vmem:[#allocation2 + $0xbc] sm:$0x1] }
  0xba   : > { %v1839_v11 = vor.u32 %v1838_v23, %v1834_v51  ;;  %v7108_v3 = vcombine.low %v1811_v53, %v1821_v31  ;;  %v1844_v41 = vrot.slane %v1842_v59, 5  ;;  %v2489_v14 = vrot.slane %v2341_v48, 5  ;;  %v2348_v36 = vld [vmem:[#allocation2 + $0xb0] sm:$0x1] }
  0xbb   : > { %v2492_v1 = vrot.slane %v2342_v46, 5  ;;  %8072 = vmatmul.mubr.bf16.gmra.mxu0 %v7164_v44  ;;  %v1830_v47 = vrot.slane %v1829_v63, 4  ;;  %v1847_v62 = vshrl.u32 %v1522_v37, 16  ;;  %v1850_v38 = vshll.u32 %v1522_v37, 16  ;;  %v2347_v46 = vld [vmem:[#allocation2 + $0xac] sm:$0xf] }
  0xbc   : > { %v1840_v54 = vrot.slane %v1839_v11, 4  ;;  %8024 = vmatmul.mubr.bf16.gmra.mxu1 %v7108_v3  ;;  %v2490_v10 = vsel %vm8922_vm12, %v7133_v30, %v2489_v14  ;;  %v2491_v61 = vrot.slane %v2489_v14, 4  ;;  %v1856_v17 = vshll.u32 %v1523_v60, 16  ;;  %v1528_v3 = vld [vmem:[#allocation2 + $0xb4] sm:$0xf] }
  0xbd   : > { %v1860_v45 = vshrl.u32 %v1523_v60, 16  ;;  %v1835_v26 = vsel %vm8932_vm13, %v1830_v47, %v1834_v51  ;;  %v1849_v28 = vrot.slane %v1847_v62, 4  ;;  %v1852_v56 = vrot.slane %v1850_v38, 5  ;;  %v1529_v47 = vld [vmem:[#allocation2 + $0xb8] sm:$0xf] }
  0xbe   : > { %v1845_v21 = vsel %vm8932_vm13, %v1840_v54, %v1844_v41  ;;  %v2493_v16 = vsel %vm8922_vm12, %v2491_v61, %v2492_v1  ;;  %v1858_v7 = vrot.slane %v1856_v17, 5  ;;  %v1866_v6 = vshll.u32 %v1524_v5, 16  ;;  %v2349_v54 = vld [vmem:[#allocation2 + $0xb4] sm:$0xe] }
  0xbf   : > { %v7109_v9 = vcombine.low %v1835_v26, %v1845_v21  ;;  %v1862_v8 = vrot.slane %v1860_v45, 4  ;;  %v7165_v4 = vcombine.low %v2490_v10, %v2493_v16  ;;  %v1853_v32 = vor.u32 %v1852_v56, %v1849_v28 }
  0xc0   : > { %v7134_v40 = vrot.slane %v2343_v13, 9  ;;  %v2496_v0 = vrot.slane %v2344_v2, 5  ;;  %v2499_v39 = vrot.slane %v2345_v15, 5  ;;  %v1871_v55 = vshrl.u32 %v1525_v19, 16  ;;  %v3351_v15 = vld [vmem:[#allocation2 + $0xc] sm:$0xf] }
  0xc1   : > { %8027 = vmatprep.mubr.bf16.mxu1 %v7109_v9  ;;  %v1863_v34 = vor.u32 %v1862_v8, %v1858_v7  ;;  %8075 = vmatprep.mubr.bf16.mxu0 %v7165_v4  ;;  %v1854_v48 = vrot.slane %v1853_v32, 4  ;;  %v1868_v33 = vrot.slane %v1866_v6, 5  ;;  %v1874_v24 = vshll.u32 %v1525_v19, 16  ;;  %v2350_v19 = vld [vmem:[#allocation2 + $0xb8] sm:$0xf] }
  0xc2   : > { %v1880_v58 = vshll.u32 %v1526_v27, 16  ;;  %v2497_v51 = vsel %vm8922_vm12, %v7134_v40, %v2496_v0  ;;  %v2498_v23 = vrot.slane %v2496_v0, 4  ;;  %v1873_v53 = vrot.slane %v1871_v55, 4 }
  0xc3   : > { %v1864_v22 = vrot.slane %v1863_v34, 4  ;;  %v1859_v59 = vsel %vm8932_vm13, %v1854_v48, %v1858_v7  ;;  %v1876_v30 = vrot.slane %v1874_v24, 5  ;;  %v1884_v31 = vshrl.u32 %v1526_v27, 16  ;;  %v3353_v48 = vld [vmem:[#allocation2 + $0x14] sm:$0x1] }
  0xc4   : > { %v1882_v37 = vrot.slane %v1880_v58, 5  ;;  %v2500_v63 = vsel %vm8922_vm12, %v2498_v23, %v2499_v39  ;;  %v1890_v11 = vshll.u32 %v1527_v25, 16  ;;  %v7135_v60 = vrot.slane %v2346_v29, 9  ;;  %v9165_v39 = vld [vmem:[%s8592_s29 + $0x78] sm:$0xff]   ;;  %s10618_s29 = scalar_lea.vmem %s10699_s4, %s7483_s26  ;;  %s7022_s26 = sshll.u32 %s10872_s19, 1 }
  0xc5   : > { %v1869_v44 = vsel %vm8932_vm13, %v1864_v22, %v1868_v33  ;;  %v7166_v14 = vcombine.low %v2497_v51, %v2500_v63  ;;  %v1877_v1 = vor.u32 %v1876_v30, %v1873_v53  ;;  %v1886_v13 = vrot.slane %v1884_v31, 4  ;;  %v3354_v24 = vld [vmem:[#allocation2 + $0x18] sm:$0xf]  ;;  %s235_s9 = scalar_lea.vmem %s10700_s5, %s7022_s26 }
  0xc6   : > { %v7110_v41 = vcombine.low %v1859_v59, %v1869_v44  ;;  %v1892_v5 = vrot.slane %v1890_v11, 5  ;;  %v2503_v62 = vrot.slane %v2347_v46, 5  ;;  %v2506_v38 = vrot.slane %v2348_v36, 5 }
  0xc7   : > { %v993_v2 = vsel %vm8659_vm7, %v818_v42, %v992_v43  ;;  %8076 = vmatmul.mubr.bf16.gmra.mxu0 %v7166_v14  ;;  %v1878_v10 = vrot.slane %v1877_v1, 4  ;;  %v1887_v61 = vor.u32 %v1886_v13, %v1882_v37  ;;  %v1895_v17 = vshrl.u32 %v1528_v3, 16 }
  0xc8   : > { %8028 = vmatmul.mubr.bf16.gmra.mxu1 %v7110_v41  ;;  %994 = vst [vmem:[#allocation2 + $0xbc] sm:$0x1] %v993_v2  ;;  %v1898_v45 = vshll.u32 %v1528_v3, 16  ;;  %v2504_v27 = vsel %vm8922_vm12, %v7135_v60, %v2503_v62  ;;  %v2505_v26 = vrot.slane %v2503_v62, 4  ;;  %v1904_v21 = vshll.u32 %v1529_v47, 16 }
  0xc9   : > { %v1908_v28 = vshrl.u32 %v1529_v47, 16  ;;  %v1883_v42 = vsel %vm8932_vm13, %v1878_v10, %v1882_v37  ;;  %v1888_v56 = vrot.slane %v1887_v61, 4  ;;  %v1897_v9 = vrot.slane %v1895_v17, 4  ;;  %v3355_v41 = vld [vmem:[#allocation2 + $0x1c] sm:$0xf] }
  0xca   : > { %v1900_v16 = vrot.slane %v1898_v45, 5  ;;  %v2507_v7 = vsel %vm8922_vm12, %v2505_v26, %v2506_v38  ;;  %v1906_v8 = vrot.slane %v1904_v21, 5  ;;  %v7136_v32 = vrot.slane %v2349_v54, 9  ;;  %v3356_v54 = vld [vmem:[#allocation2 + $0x20] sm:$0x1]  ;;  %v8452_v45 = vld [vmem:[#allocation2 + $0xc] sm:$0xff]  }
  0xcb   : > { %v1910_v4 = vrot.slane %v1908_v28, 4  ;;  %v1893_v6 = vsel %vm8932_vm13, %v1888_v56, %v1892_v5  ;;  %v7167_v40 = vcombine.low %v2504_v27, %v2507_v7  ;;  %v2510_v0 = vrot.slane %v2350_v19, 5  ;;  %v3357_v62 = vld [vmem:[#allocation2 + $0x24] sm:$0xf]  ;;  %v3358_v61 = vld [vmem:[#allocation2 + $0x28] sm:$0xf] }
  0xcc   : > { %v1901_v34 = vor.u32 %v1900_v16, %v1897_v9  ;;  %v7111_v55 = vcombine.low %v1883_v42, %v1893_v6  ;;  %v3400_v33 = vshrl.u32 %v3351_v15, 16  ;;  %v3403_v25 = vshll.u32 %v3351_v15, 16  ;;  %v3359_v21 = vld [vmem:[#allocation2 + $0x2c] sm:$0x1] }
  0xcd   : > { %v1911_v29 = vor.u32 %v1910_v4, %v1906_v8  ;;  %8079 = vmatprep.mubr.bf16.mxu0 %v7167_v40  ;;  %v2511_v46 = vsel %vm8922_vm12, %v7136_v32, %v2510_v0  ;;  %v2512_v43 = vrot.slane %v2510_v0, 4  ;;  %v3409_v22 = vshll.u32 %v3352_v20, 16 }
  0xce   : > { %v1902_v58 = vrot.slane %v1901_v34, 4  ;;  %8031 = vmatprep.mubr.bf16.mxu1 %v7111_v55  ;;  %v3402_v36 = vrot.slane %v3400_v33, 4  ;;  %v7611_v59 = vunpack.c.l.bf16 %v9165_v39  ;;  %v7612_v30 = vunpack.c.h.bf16 %v9165_v39 }
  0xcf   : > { %v1530_v51 = vld [vmem:[#allocation2 + $0xbc] sm:$0x1]  ;;  %v1912_v23 = vrot.slane %v1911_v29, 4  ;;  %v3405_v63 = vrot.slane %v3403_v25, 5  ;;  %v3411_v11 = vrot.slane %v3409_v22, 5  ;;  %v3413_v60 = vshrl.u32 %v3352_v20, 16 }
  0xd0   : > { %v2351_v53 = vld [vmem:[#allocation2 + $0xbc] sm:$0x1]  ;;  %v1907_v37 = vsel %vm8932_vm13, %v1902_v58, %v1906_v8  ;;  %v1914_v31 = vshll.u32 %v1530_v51, 16  ;;  %v3419_v3 = vshll.u32 %v3353_v48, 16  ;;  %v3424_v14 = vshrl.u32 %v3354_v24, 16 }
  0xd1   : > { %v2513_v44 = vrot.slane %v2351_v53, 5  ;;  %v3406_v47 = vor.u32 %v3405_v63, %v3402_v36  ;;  %v3427_v5 = vshll.u32 %v3354_v24, 16  ;;  %v3415_v2 = vrot.slane %v3413_v60, 4  ;;  %v3360_v48 = vld [vmem:[#allocation2 + $0x30] sm:$0xf]  ;;  %v8453_v36 = vld [vmem:[#allocation2 + $0x18] sm:$0xff]  }
  0xd2   : > { %v1916_v1 = vrot.slane %v1914_v31, 5  ;;  %v3421_v19 = vrot.slane %v3419_v3, 5  ;;  %v3426_v10 = vrot.slane %v3424_v14, 4  ;;  %v3433_v26 = vshll.u32 %v3355_v41, 16  ;;  %v3362_v53 = vld [vmem:[#allocation2 + $0x38] sm:$0x1] }
  0xd3   : > { %v2514_v13 = vsel %vm8922_vm12, %v2512_v43, %v2513_v44  ;;  %v3407_v15 = vrot.slane %v3406_v47, 4  ;;  %v3429_v27 = vrot.slane %v3427_v5, 5  ;;  %v3416_v20 = vor.u32 %v3415_v2, %v3411_v11  ;;  %v8456_v60 = vld [vmem:[#allocation2 + $0x24] sm:$0xff]  }
  0xd4   : > { %v7168_v38 = vcombine.low %v2511_v46, %v2514_v13  ;;  %v1917_v17 = vsel %vm8932_vm13, %v1912_v23, %v1916_v1  ;;  %v3437_v42 = vshrl.u32 %v3355_v41, 16  ;;  %v3443_v56 = vshll.u32 %v3356_v54, 16  ;;  %v3361_v46 = vld [vmem:[#allocation2 + $0x34] sm:$0xf]  ;;  %v3364_v13 = vld [vmem:[#allocation2 + $0x40] sm:$0xf] }
  0xd5   : > { %v7112_v28 = vcombine.low %v1907_v37, %v1917_v17  ;;  %v3412_v9 = vsel %vm8932_vm13, %v3407_v15, %v3411_v11  ;;  %v3430_v16 = vor.u32 %v3429_v27, %v3426_v10  ;;  %v3435_v7 = vrot.slane %v3433_v26, 5  ;;  %v3363_v11 = vld [vmem:[#allocation2 + $0x3c] sm:$0xf]  ;;  %v3365_v2 = vld [vmem:[#allocation2 + $0x44] sm:$0x1] }
  0xd6   : > { %8080 = vmatmul.mubr.bf16.gmra.mxu0 %v7168_v38  ;;  %v3448_v8 = vshrl.u32 %v3357_v62, 16  ;;  %v3417_v4 = vrot.slane %v3416_v20, 4  ;;  %v3439_v32 = vrot.slane %v3437_v42, 4  ;;  %v3445_v6 = vrot.slane %v3443_v56, 5  ;;  %v8458_v38 = vld [vmem:[%s10698_s3 + $0x170] sm:$0xff]   ;;  %v9196_v20 = vld [vmem:[%s10698_s3 + $0x168] sm:$0xff]  }
  0xd7   : > { %8032 = vmatmul.mubr.bf16.gmra.mxu1 %v7112_v28  ;;  %v3451_v40 = vshll.u32 %v3357_v62, 16  ;;  %v3431_v34 = vrot.slane %v3430_v16, 4  ;;  %v3457_v55 = vshll.u32 %v3358_v61, 16  ;;  %v3461_v29 = vshrl.u32 %v3358_v61, 16  ;;  %v3366_v15 = vld [vmem:[#allocation2 + $0x48] sm:$0xf] }
  0xd8   : > { %8099 = vmatprep.mubr.bf16.mxu1 %v8452_v45  ;;  %v3450_v0 = vrot.slane %v3448_v8, 4  ;;  %v3422_v33 = vsel %vm8932_vm13, %v3417_v4, %v3421_v19  ;;  %v3440_v25 = vor.u32 %v3439_v32, %v3435_v7  ;;  %v3467_v58 = vshll.u32 %v3359_v21, 16  ;;  %v8459_v45 = vld [vmem:[%s10698_s3 + $0x1b0] sm:$0xff]  }
  0xd9   : > { %v3453_v24 = vrot.slane %v3451_v40, 5  ;;  %v7233_v43 = vcombine.low %v3412_v9, %v3422_v33  ;;  %v3436_v22 = vsel %vm8932_vm13, %v3431_v34, %v3435_v7  ;;  %v3459_v51 = vrot.slane %v3457_v55, 5  ;;  %v8463_v7 = vld [vmem:[%s10698_s3 + $0x1a8] sm:$0xff]   ;;  %v8457_v4 = vld [vmem:[#allocation2 + $0x30] sm:$0xff]  }
  0xda   : > { %v3463_v23 = vrot.slane %v3461_v29, 4  ;;  %v3441_v37 = vrot.slane %v3440_v25, 4  ;;  %v3469_v44 = vrot.slane %v3467_v58, 5  ;;  %v3472_v63 = vshrl.u32 %v3360_v48, 16  ;;  %v3367_v34 = vld [vmem:[#allocation2 + $0x4c] sm:$0xf] }
  0xdb   : > { %v3454_v31 = vor.u32 %v3453_v24, %v3450_v0  ;;  %8147 = vmatprep.mubr.bf16.mxu0 %v7233_v43  ;;  %v3475_v41 = vshll.u32 %v3360_v48, 16  ;;  %v3481_v14 = vshll.u32 %v3361_v46, 16  ;;  %v3485_v1 = vshrl.u32 %v3361_v46, 16  ;;  %v8460_v0 = vld [vmem:[#allocation2 + $0x3c] sm:$0xff]   ;;  %v3368_v33 = vld [vmem:[#allocation2 + $0x50] sm:$0x1] }
  0xdc   : > { %v3464_v3 = vor.u32 %v3463_v23, %v3459_v51  ;;  %v3446_v47 = vsel %vm8932_vm13, %v3441_v37, %v3445_v6  ;;  %v3474_v5 = vrot.slane %v3472_v63, 4  ;;  %v3491_v62 = vshll.u32 %v3362_v53, 16  ;;  %v3369_v46 = vld [vmem:[#allocation2 + $0x54] sm:$0xf]  ;;  %v8466_v63 = vld [vmem:[%s10698_s3 + $0x160] sm:$0xff]  }
  0xdd   : > { %v3455_v54 = vrot.slane %v3454_v31, 4  ;;  %v7234_v19 = vcombine.low %v3436_v22, %v3446_v47  ;;  %v3477_v61 = vrot.slane %v3475_v41, 5  ;;  %v3483_v17 = vrot.slane %v3481_v14, 5  ;;  %v3371_v14 = vld [vmem:[#allocation2 + $0x5c] sm:$0x1] }
  0xde   : > { %v3465_v10 = vrot.slane %v3464_v3, 4  ;;  %v3487_v26 = vrot.slane %v3485_v1, 4  ;;  %v3493_v21 = vrot.slane %v3491_v62, 5  ;;  %v3496_v28 = vshrl.u32 %v3363_v11, 16  ;;  %v3372_v1 = vld [vmem:[#allocation2 + $0x60] sm:$0xf] }
  0xdf   : > { %8100 = vmatmul.mubr.bf16.vlgmr.msra.gmra.mxu1 %v8453_v36  ;;  %v3460_v27 = vsel %vm8932_vm13, %v3455_v54, %v3459_v51  ;;  %8148 = vmatmul.mubr.bf16.vlgmr.msra.gmra.mxu0 %v7234_v19  ;;  %v3478_v56 = vor.u32 %v3477_v61, %v3474_v5  ;;  %v3499_v9 = vshll.u32 %v3363_v11, 16  ;;  %v3505_v16 = vshll.u32 %v3364_v13, 16 }
  0xe0   : > { %8180 = vmatpush3.bf16.msra.mxu1 %v9068_v18  ;;  %v3470_v42 = vsel %vm8932_vm13, %v3465_v10, %v3469_v44  ;;  %8228 = vmatpush3.bf16.msra.mxu0 %v9059_v49  ;;  %v3488_v32 = vor.u32 %v3487_v26, %v3483_v17  ;;  %v3498_v6 = vrot.slane %v3496_v28, 4  ;;  %v3509_v40 = vshrl.u32 %v3364_v13, 16  ;;  %v3370_v44 = vld [vmem:[#allocation2 + $0x58] sm:$0xf]  ;;  %v8467_v13 = vld [vmem:[%s10698_s3 + $0x1a0] sm:$0xff]  }
  0xe1   : > { %8103 = vmatprep.mubr.bf16.mxu1 %v8456_v60  ;;  %v7235_v8 = vcombine.low %v3460_v27, %v3470_v42  ;;  %v3479_v18 = vrot.slane %v3478_v56, 4  ;;  %8181 = vmatprep.subr.bf16.mxu1 %v8458_v38  ;;  %v3501_v55 = vrot.slane %v3499_v9, 5  ;;  %v3507_v29 = vrot.slane %v3505_v16, 5  ;;  %v8461_v16 = vld [vmem:[#allocation2 + $0x48] sm:$0xff]  }
  0xe2   : > { %8229 = vmatprep.subr.bf16.mxu0 %v8459_v45  ;;  %v3515_v48 = vshll.u32 %v3365_v2, 16  ;;  %v3489_v25 = vrot.slane %v3488_v32, 4  ;;  %v3511_v24 = vrot.slane %v3509_v40, 4  ;;  %v3520_v58 = vshrl.u32 %v3366_v15, 16 }
  0xe3   : > { %8151 = vmatprep.mubr.bf16.mxu0 %v7235_v8  ;;  %v3523_v49 = vshll.u32 %v3366_v15, 16  ;;  %v3484_v43 = vsel %vm8932_vm13, %v3479_v18, %v3483_v17  ;;  %v3502_v22 = vor.u32 %v3501_v55, %v3498_v6  ;;  %v3529_v23 = vshll.u32 %v3367_v34, 16  ;;  %v8470_v17 = vld [vmem:[%s10698_s3 + $0x158] sm:$0xff]  }
  0xe4   : > { %8182 = vmatpush3.bf16.msra.mxu1 %v8458_v38  ;;  %v3517_v51 = vrot.slane %v3515_v48, 5  ;;  %v3494_v53 = vsel %vm8932_vm13, %v3489_v25, %v3493_v21  ;;  %8230 = vmatpush3.bf16.msra.mxu0 %v8459_v45  ;;  %v3512_v36 = vor.u32 %v3511_v24, %v3507_v29  ;;  %v3522_v37 = vrot.slane %v3520_v58, 4  ;;  %v3373_v38 = vld [vmem:[#allocation2 + $0x64] sm:$0xf]  ;;  %v8471_v21 = vld [vmem:[%s10698_s3 + $0x198] sm:$0xff]  }
  0xe5   : > { %v3525_v31 = vrot.slane %v3523_v49, 5  ;;  %8183 = vmatprep.subr.bf16.mxu1 %v9196_v20  ;;  %v7236_v11 = vcombine.low %v3484_v43, %v3494_v53  ;;  %v3503_v60 = vrot.slane %v3502_v22, 4  ;;  %v3531_v3 = vrot.slane %v3529_v23, 5  ;;  %8231 = vmatprep.subr.bf16.mxu0 %v8463_v7  ;;  %v8464_v6 = vld [vmem:[#allocation2 + $0x54] sm:$0xff]   ;;  %v3375_v25 = vld [vmem:[#allocation2 + $0x6c] sm:$0xf] }
  0xe6   : > { %v3533_v41 = vshrl.u32 %v3367_v34, 16  ;;  %v3513_v47 = vrot.slane %v3512_v36, 4  ;;  %v3539_v5 = vshll.u32 %v3368_v33, 16  ;;  %v3544_v62 = vshrl.u32 %v3369_v46, 16  ;;  %v3374_v34 = vld [vmem:[#allocation2 + $0x68] sm:$0x1] }
  0xe7   : > { %8104 = vmatmul.mubr.bf16.gmra.mxu1 %v8457_v4  ;;  %v3526_v54 = vor.u32 %v3525_v31, %v3522_v37  ;;  %8152 = vmatmul.mubr.bf16.gmra.mxu0 %v7236_v11  ;;  %v3508_v2 = vsel %vm8932_vm13, %v3503_v60, %v3507_v29  ;;  %v3547_v10 = vshll.u32 %v3369_v46, 16  ;;  %v3553_v61 = vshll.u32 %v3370_v44, 16  ;;  %v3376_v43 = vld [vmem:[#allocation2 + $0x70] sm:$0xf]  ;;  %v3377_v37 = vld [vmem:[#allocation2 + $0x74] sm:$0x1] }
  0xe8   : > { %8107 = vmatprep.mubr.bf16.mxu1 %v8460_v0  ;;  %v3535_v19 = vrot.slane %v3533_v41, 4  ;;  %v3518_v45 = vsel %vm8932_vm13, %v3513_v47, %v3517_v51  ;;  %v3541_v27 = vrot.slane %v3539_v5, 5  ;;  %8184 = vmatpush3.bf16.msra.mxu1 %v9196_v20  ;;  %v3546_v26 = vrot.slane %v3544_v62, 4  ;;  %v8474_v22 = vld [vmem:[%s10698_s3 + $0x150] sm:$0xff]  }
  0xe9   : > { %v3527_v15 = vrot.slane %v3526_v54, 4  ;;  %8232 = vmatpush3.bf16.msra.mxu0 %v8463_v7  ;;  %v7237_v28 = vcombine.low %v3508_v2, %v3518_v45  ;;  %v3549_v56 = vrot.slane %v3547_v10, 5  ;;  %v9227_v9 = vrot.slane %v3553_v61, 5  ;;  %8185 = vmatprep.subr.bf16.mxu1 %v8466_v63  ;;  %v8475_v31 = vld [vmem:[%s10698_s3 + $0x190] sm:$0xff]   ;;  %v8478_v54 = vld [vmem:[%s10698_s3 + $0x148] sm:$0xff]  }
  0xea   : > { %v3536_v42 = vor.u32 %v3535_v19, %v3531_v3  ;;  %8233 = vmatprep.subr.bf16.mxu0 %v8467_v13  ;;  %v3557_v4 = vshrl.u32 %v3370_v44, 16  ;;  %v3563_v32 = vshll.u32 %v3371_v14, 16  ;;  %v3568_v20 = vshrl.u32 %v3372_v1, 16  ;;  %v8465_v14 = vld [vmem:[#allocation2 + $0x60] sm:$0xff]   ;;  %v8468_v62 = vld [vmem:[#allocation2 + $0x6c] sm:$0xff]  }
  0xeb   : > { %v3532_v8 = vsel %vm8932_vm13, %v3527_v15, %v3531_v3  ;;  %8155 = vmatprep.mubr.bf16.mxu0 %v7237_v28  ;;  %v3550_v40 = vor.u32 %v3549_v56, %v3546_v26  ;;  %v3571_v18 = vshll.u32 %v3372_v1, 16  ;;  %v3577_v0 = vshll.u32 %v3373_v38, 16  ;;  %v3378_v3 = vld [vmem:[#allocation2 + $0x78] sm:$0xf] }
  0xec   : > { %v3537_v7 = vrot.slane %v3536_v42, 4  ;;  %v3559_v55 = vrot.slane %v3557_v4, 4  ;;  %v3565_v29 = vrot.slane %v3563_v32, 5  ;;  %v3570_v48 = vrot.slane %v3568_v20, 4  ;;  %8186 = vmatpush3.bf16.msra.mxu1 %v8466_v63 }
  0xed   : > { %v3581_v33 = vshrl.u32 %v3373_v38, 16  ;;  %8234 = vmatpush3.bf16.msra.mxu0 %v8467_v13  ;;  %v3551_v58 = vrot.slane %v3550_v40, 4  ;;  %v3573_v49 = vrot.slane %v3571_v18, 5  ;;  %v3579_v46 = vrot.slane %v3577_v0, 5  ;;  %8187 = vmatprep.subr.bf16.mxu1 %v8470_v17  ;;  %v3382_v0 = vld [vmem:[#allocation2 + $0x88] sm:$0xf] }
  0xee   : > { %v3542_v24 = vsel %vm8932_vm13, %v3537_v7, %v3541_v27  ;;  %8235 = vmatprep.subr.bf16.mxu0 %v8471_v21  ;;  %v3560_v23 = vor.u32 %v3559_v55, %v9227_v9  ;;  %v3587_v36 = vshll.u32 %v3374_v34, 16  ;;  %v3592_v11 = vshrl.u32 %v3375_v25, 16  ;;  %v3379_v27 = vld [vmem:[#allocation2 + $0x7c] sm:$0xf]  ;;  %v8483_v7 = vld [vmem:[%s10698_s3 + $0x180] sm:$0xff]  }
  0xef   : > { %8108 = vmatmul.mubr.bf16.gmra.mxu1 %v8461_v16  ;;  %v7238_v51 = vcombine.low %v3532_v8, %v3542_v24  ;;  %v3583_v53 = vrot.slane %v3581_v33, 4  ;;  %v3556_v44 = vsel %vm8932_vm13, %v3551_v58, %v9227_v9  ;;  %v3574_v63 = vor.u32 %v3573_v49, %v3570_v48  ;;  %v3381_v9 = vld [vmem:[#allocation2 + $0x84] sm:$0xf] }
  0xf0   : > { %8111 = vmatprep.mubr.bf16.mxu1 %v8464_v6  ;;  %v3595_v60 = vshll.u32 %v3375_v25, 16  ;;  %v3561_v41 = vrot.slane %v3560_v23, 4  ;;  %v3589_v13 = vrot.slane %v3587_v36, 5  ;;  %v3601_v47 = vshll.u32 %v3376_v43, 16  ;;  %8188 = vmatpush3.bf16.msra.mxu1 %v8470_v17  ;;  %v8479_v17 = vld [vmem:[%s10698_s3 + $0x188] sm:$0xff]   ;;  %v8482_v16 = vld [vmem:[%s10698_s3 + $0x140] sm:$0xff]  }
  0xf1   : > { %8156 = vmatmul.mubr.bf16.gmra.mxu0 %v7238_v51  ;;  %v3584_v1 = vor.u32 %v3583_v53, %v3579_v46  ;;  %v3575_v5 = vrot.slane %v3574_v63, 4  ;;  %v3594_v38 = vrot.slane %v3592_v11, 4  ;;  %v3605_v19 = vshrl.u32 %v3376_v43, 16  ;;  %8189 = vmatprep.subr.bf16.mxu1 %v8474_v22  ;;  %v3383_v25 = vld [vmem:[#allocation2 + $0x8c] sm:$0x1]  ;;  %v8472_v63 = vld [vmem:[#allocation2 + $0x84] sm:$0xff]  }
  0xf2   : > { %v3597_v2 = vrot.slane %v3595_v60, 5  ;;  %8236 = vmatpush3.bf16.msra.mxu0 %v8471_v21  ;;  %v3566_v10 = vsel %vm8932_vm13, %v3561_v41, %v3565_v29  ;;  %v3603_v45 = vrot.slane %v3601_v47, 5  ;;  %v3611_v15 = vshll.u32 %v3377_v37, 16  ;;  %v3380_v21 = vld [vmem:[#allocation2 + $0x80] sm:$0x1]  ;;  %v9273_v41 = vld [vmem:[%s10698_s3 + $0x238] sm:$0xff]  }
  0xf3   : > { %v3585_v61 = vrot.slane %v3584_v1, 4  ;;  %8237 = vmatprep.subr.bf16.mxu0 %v8475_v31  ;;  %v7239_v26 = vcombine.low %v3556_v44, %v3566_v10  ;;  %v3580_v28 = vsel %vm8932_vm13, %v3575_v5, %v3579_v46  ;;  %v3607_v56 = vrot.slane %v3605_v19, 4  ;;  %v3384_v43 = vld [vmem:[#allocation2 + $0x90] sm:$0xf]  ;;  %v3385_v37 = vld [vmem:[#allocation2 + $0x94] sm:$0xf] }
  0xf4   : > { %v3598_v42 = vor.u32 %v3597_v2, %v3594_v38  ;;  %v3613_v4 = vrot.slane %v3611_v15, 5  ;;  %v3616_v32 = vshrl.u32 %v3378_v3, 16  ;;  %v3619_v20 = vshll.u32 %v3378_v3, 16  ;;  %8190 = vmatpush3.bf16.msra.mxu1 %v8474_v22  ;;  %v8469_v22 = vld [vmem:[#allocation2 + $0x78] sm:$0xff]  }
  0xf5   : > { %v3590_v8 = vsel %vm8932_vm13, %v3585_v61, %v3589_v13  ;;  %8159 = vmatprep.mubr.bf16.mxu0 %v7239_v26  ;;  %v3608_v34 = vor.u32 %v3607_v56, %v3603_v45  ;;  %v3625_v18 = vshll.u32 %v3379_v27, 16  ;;  %v3629_v48 = vshrl.u32 %v3379_v27, 16  ;;  %8191 = vmatprep.subr.bf16.mxu1 %v8478_v54  ;;  %v3386_v61 = vld [vmem:[#allocation2 + $0x98] sm:$0x1] }
  0xf6   : > { %v7240_v6 = vcombine.low %v3580_v28, %v3590_v8  ;;  %v3599_v40 = vrot.slane %v3598_v42, 4  ;;  %8238 = vmatpush3.bf16.msra.mxu0 %v8475_v31  ;;  %v3618_v55 = vrot.slane %v3616_v32, 4  ;;  %v3621_v29 = vrot.slane %v3619_v20, 5  ;;  %v9266_v31 = vld [vmem:[%s10698_s3 + $0x1f8] sm:$0xff]   ;;  %v3388_v8 = vld [vmem:[#allocation2 + $0xa0] sm:$0xf] }
  0xf7   : > { %8112 = vmatmul.mubr.bf16.gmra.mxu1 %v8465_v14  ;;  %v3635_v33 = vshll.u32 %v3380_v21, 16  ;;  %v3609_v58 = vrot.slane %v3608_v34, 4  ;;  %v3627_v49 = vrot.slane %v3625_v18, 5  ;;  %v3640_v46 = vshrl.u32 %v3381_v9, 16  ;;  %8239 = vmatprep.subr.bf16.mxu0 %v8479_v17  ;;  %v3387_v28 = vld [vmem:[#allocation2 + $0x9c] sm:$0xf] }
  0xf8   : > { %8115 = vmatprep.mubr.bf16.mxu1 %v8468_v62  ;;  %v3604_v24 = vsel %vm8932_vm13, %v3599_v40, %v3603_v45  ;;  %v3622_v51 = vor.u32 %v3621_v29, %v3618_v55  ;;  %v3631_v23 = vrot.slane %v3629_v48, 4  ;;  %v3643_v36 = vshll.u32 %v3381_v9, 16  ;;  %8192 = vmatpush3.bf16.msra.mxu1 %v8478_v54  ;;  %v3389_v18 = vld [vmem:[#allocation2 + $0xa4] sm:$0x1]  ;;  %v8476_v48 = vld [vmem:[#allocation2 + $0x9c] sm:$0xff]  }
  0xf9   : > { %8160 = vmatmul.mubr.bf16.gmra.mxu0 %v7240_v6  ;;  %v3637_v53 = vrot.slane %v3635_v33, 5  ;;  %v3614_v44 = vsel %vm8932_vm13, %v3609_v58, %v3613_v4  ;;  %v3642_v11 = vrot.slane %v3640_v46, 4  ;;  %v3649_v60 = vshll.u32 %v3382_v0, 16  ;;  %8193 = vmatprep.subr.bf16.mxu1 %v8482_v16  ;;  %v8473_v6 = vld [vmem:[#allocation2 + $0x90] sm:$0xff]  }
  0xfa   : > { %v3653_v3 = vshrl.u32 %v3382_v0, 16  ;;  %8240 = vmatpush3.bf16.msra.mxu0 %v8479_v17  ;;  %v7241_v14 = vcombine.low %v3604_v24, %v3614_v44  ;;  %v3623_v1 = vrot.slane %v3622_v51, 4  ;;  %v3632_v13 = vor.u32 %v3631_v23, %v3627_v49  ;;  %v3390_v24 = vld [vmem:[#allocation2 + $0xa8] sm:$0xf]  ;;  %v3393_v44 = vld [vmem:[#allocation2 + $0xb4] sm:$0xf] }
  0xfb   : > { %v3645_v47 = vrot.slane %v3643_v36, 5  ;;  %8241 = vmatprep.subr.bf16.mxu0 %v8483_v7  ;;  %v3651_v54 = vrot.slane %v3649_v60, 5  ;;  %v3659_v62 = vshll.u32 %v3383_v25, 16  ;;  %v3664_v38 = vshrl.u32 %v3384_v43, 16 }
  0xfc   : > { %v3655_v5 = vrot.slane %v3653_v3, 4  ;;  %8163 = vmatprep.mubr.bf16.mxu0 %v7241_v14  ;;  %v3628_v2 = vsel %vm8932_vm13, %v3623_v1, %v3627_v49  ;;  %v3633_v19 = vrot.slane %v3632_v13, 4  ;;  %v3667_v45 = vshll.u32 %v3384_v43, 16  ;;  %8194 = vmatpush3.bf16.msra.mxu1 %v8482_v16  ;;  %v3394_v14 = vld [vmem:[#allocation2 + $0xb8] sm:$0xf] }
  0xfd   : > { %v3646_v10 = vor.u32 %v3645_v47, %v3642_v11  ;;  %v3661_v27 = vrot.slane %v3659_v62, 5  ;;  %v3666_v17 = vrot.slane %v3664_v38, 4  ;;  %v3673_v26 = vshll.u32 %v3385_v37, 16  ;;  %8275 = vmatprep.subr.bf16.mxu1 %v9266_v31 }
  0xfe   : > { %v3656_v15 = vor.u32 %v3655_v5, %v3651_v54  ;;  %8242 = vmatpush3.bf16.msra.mxu0 %v8483_v7  ;;  %v3638_v42 = vsel %vm8932_vm13, %v3633_v19, %v3637_v53  ;;  %v3669_v21 = vrot.slane %v3667_v45, 5  ;;  %v3677_v9 = vshrl.u32 %v3385_v37, 16  ;;  %v3392_v37 = vld [vmem:[#allocation2 + $0xb0] sm:$0x1] }
  0xff   : > { %8116 = vmatmul.mubr.bf16.gmra.mxu1 %v8469_v22  ;;  %v3647_v56 = vrot.slane %v3646_v10, 4  ;;  %8323 = vmatprep.subr.bf16.mxu0 %v9273_v41  ;;  %v7242_v4 = vcombine.low %v3628_v2, %v3638_v42  ;;  %v3675_v32 = vrot.slane %v3673_v26, 5  ;;  %v3683_v20 = vshll.u32 %v3386_v61, 16  ;;  %v3391_v22 = vld [vmem:[#allocation2 + $0xac] sm:$0xf]  ;;  %v9291_v42 = vpop.f32.mrf.mxu1 }
 0x100   : > { %8119 = vmatprep.mubr.bf16.mxu1 %v8472_v63  ;;  %v3657_v16 = vrot.slane %v3656_v15, 4  ;;  %v3670_v40 = vor.u32 %v3669_v21, %v3666_v17  ;;  %v3679_v34 = vrot.slane %v3677_v9, 4  ;;  %v3688_v0 = vshrl.u32 %v3387_v28, 16  ;;  %v9289_v15 = vpop.f32.mrf.mxu0  ;;  %10716 = vst [vmem:[#allocation4_spill] sm:$0xff] %v9291_v42  ;;  %v3395_v9 = vld [vmem:[#allocation2 + $0xbc] sm:$0x1] }
 0x101   : > { %v3652_v7 = vsel %vm8932_vm13, %v3647_v56, %v3651_v54  ;;  %8164 = vmatmul.mubr.bf16.gmra.mxu0 %v7242_v4  ;;  %v3685_v29 = vrot.slane %v3683_v20, 5  ;;  %v3691_v33 = vshll.u32 %v3387_v28, 16  ;;  %v3697_v25 = vshll.u32 %v3388_v8, 16  ;;  %v9504_v42 = vld [vmem:[#allocation2 + $0x90] sm:$0xe] }
 0x102   : > { %v3662_v55 = vsel %vm8932_vm13, %v3657_v16, %v3661_v27  ;;  %v3671_v49 = vrot.slane %v3670_v40, 4  ;;  %v3680_v46 = vor.u32 %v3679_v34, %v3675_v32  ;;  %v3690_v43 = vrot.slane %v3688_v0, 4  ;;  %v8477_v16 = vld [vmem:[#allocation2 + $0xa8] sm:$0xff]   ;;  %v8480_v34 = vld [vmem:[#allocation2 + $0xb4] sm:$0xff]  }
 0x103   : > { %v7243_v58 = vcombine.low %v3652_v7, %v3662_v55  ;;  %v3693_v51 = vrot.slane %v3691_v33, 5  ;;  %v3699_v23 = vrot.slane %v3697_v25, 5  ;;  %v3701_v53 = vshrl.u32 %v3388_v8, 16 }
 0x104   : > { %v3707_v36 = vshll.u32 %v3389_v18, 16  ;;  %v3676_v63 = vsel %vm8932_vm13, %v3671_v49, %v3675_v32  ;;  %v3681_v11 = vrot.slane %v3680_v46, 4  ;;  %v3712_v60 = vshrl.u32 %v3390_v24, 16 }
 0x105   : > { %8167 = vmatprep.mubr.bf16.mxu0 %v7243_v58  ;;  %v3715_v3 = vshll.u32 %v3390_v24, 16  ;;  %v3694_v1 = vor.u32 %v3693_v51, %v3690_v43  ;;  %v3703_v13 = vrot.slane %v3701_v53, 4  ;;  %v3721_v54 = vshll.u32 %v3391_v22, 16  ;;  %v9301_v58 = vpop.f32.mrf.mxu1  ;;  %v8518_v43 = vld [vmem:[%s10696_s1] ss:$0 sm:$0xff] }
 0x106   : > { %v3709_v47 = vrot.slane %v3707_v36, 5  ;;  %v3686_v5 = vsel %vm8932_vm13, %v3681_v11, %v3685_v29  ;;  %v3714_v62 = vrot.slane %v3712_v60, 4  ;;  %v3725_v2 = vshrl.u32 %v3391_v22, 16  ;;  %v9297_v29 = vpop.f32.mrf.mxu0  ;;  %10717 = vst [vmem:[#allocation5_spill] sm:$0xff] %v9301_v58 }
 0x107   : > { %8120 = vmatmul.mubr.bf16.gmra.mxu1 %v8473_v6  ;;  %v3717_v38 = vrot.slane %v3715_v3, 5  ;;  %v7244_v19 = vcombine.low %v3676_v63, %v3686_v5  ;;  %v3695_v10 = vrot.slane %v3694_v1, 4  ;;  %v3704_v61 = vor.u32 %v3703_v13, %v3699_v23  ;;  %v8519_v63 = vld [vmem:[%s10697_s2] ss:$0 sm:$0xff]  ;;  %v9317_v39 = vpop.f32.mrf.mxu1  ;;  %v9321_v1 = vld [vmem:[#allocation2 + $0x10] sm:$0xf] }
 0x108   : > { %8123 = vmatprep.mubr.bf16.mxu1 %v8476_v48  ;;  %v3723_v45 = vrot.slane %v3721_v54, 5  ;;  %v3727_v17 = vrot.slane %v3725_v2, 4  ;;  %v3731_v26 = vshll.u32 %v3392_v37, 16  ;;  %v3736_v28 = vshrl.u32 %v3393_v44, 16  ;;  %v9315_v60 = vpop.f32.mrf.mxu0  ;;  %10718 = vst [vmem:[#allocation6_spill] sm:$0xff] %v9317_v39 }
 0x109   : > { %v3718_v27 = vor.u32 %v3717_v38, %v3714_v62  ;;  %8168 = vmatmul.mubr.bf16.gmra.mxu0 %v7244_v19  ;;  %v3700_v56 = vsel %vm8932_vm13, %v3695_v10, %v3699_v23  ;;  %v3705_v21 = vrot.slane %v3704_v61, 4  ;;  %v3739_v8 = vshll.u32 %v3393_v44, 16  ;;  %v9327_v2 = vld [vmem:[#allocation2 + $0xc] sm:$0xe]  ;;  %v9330_v10 = vpop.f32.mrf.mxu1 }
 0x10a   : > { %v3745_v4 = vshll.u32 %v3394_v14, 16  ;;  %v3728_v20 = vor.u32 %v3727_v17, %v3723_v45  ;;  %v3733_v7 = vrot.slane %v3731_v26, 5  ;;  %v3738_v6 = vrot.slane %v3736_v28, 4  ;;  %v9325_v5 = vpop.f32.mrf.mxu0  ;;  %10719 = vst [vmem:[#allocation7_spill] sm:$0xff] %v9330_v10  ;;  %v9334_v17 = vld [vmem:[#allocation2 + $0x28] sm:$0xf] }
 0x10b   : > { %v3719_v32 = vrot.slane %v3718_v27, 4  ;;  %v3710_v40 = vsel %vm8932_vm13, %v3705_v21, %v3709_v47  ;;  %v3741_v18 = vrot.slane %v3739_v8, 5  ;;  %v3749_v55 = vshrl.u32 %v3394_v14, 16  ;;  %v9332_v27 = vld [vmem:[#allocation2 + $0x1c] sm:$0xf] }
 0x10c   : > { %v3747_v0 = vrot.slane %v3745_v4, 5  ;;  %v7245_v48 = vcombine.low %v3700_v56, %v3710_v40  ;;  %v3729_v25 = vrot.slane %v3728_v20, 4  ;;  %v3755_v24 = vshll.u32 %v3395_v9, 16  ;;  %v995_v56 = vld [vmem:[#allocation2 + $0xc0] sm:$0xf] }
 0x10d   : > { %v3724_v33 = vsel %vm8932_vm13, %v3719_v32, %v3723_v45  ;;  %v3742_v49 = vor.u32 %v3741_v18, %v3738_v6  ;;  %v3751_v46 = vrot.slane %v3749_v55, 4  ;;  %v392_v22 = vmul.f32 %v8518_v43, %v7611_v59  ;;  %v4171_v21 = vld [vmem:[#allocation2 + $0x14] sm:$0x1]  ;;  %v9336_v9 = vld [vmem:[#allocation2 + $0x18] sm:$0xe]  ;;  %v9346_v6 = vpop.f32.mrf.mxu0 }
 0x10e   : > { %v393_v51 = vmul.f32 %v8518_v43, %v7612_v30  ;;  %8171 = vmatprep.mubr.bf16.mxu0 %v7245_v48  ;;  %v3734_v23 = vsel %vm8932_vm13, %v3729_v25, %v3733_v7  ;;  %v3757_v53 = vrot.slane %v3755_v24, 5  ;;  %v4267_v19 = vrot.slane %v9321_v1, 5  ;;  %v9338_v8 = vld [vmem:[#allocation2 + $0x20] sm:$0x1]  ;;  %v9340_v4 = vld [vmem:[#allocation2 + $0x34] sm:$0xf]  ;;  %v9358_v25 = vpop.f32.mrf.mxu1 }
 0x10f   : > { %8124 = vmatmul.mubr.bf16.gmra.mxu1 %v8477_v16  ;;  %v7246_v36 = vcombine.low %v3724_v33, %v3734_v23  ;;  %v3743_v37 = vrot.slane %v3742_v49, 4  ;;  %v3752_v44 = vor.u32 %v3751_v46, %v3747_v0  ;;  %v431_v11 = vadd.f32 %v8519_v63, %v392_v22  ;;  %v9342_v16 = vld [vmem:[#allocation2 + $0x40] sm:$0xf]  ;;  %v999_v20 = vld [vmem:[#allocation2 + $0xc8] sm:$0x1]  ;;  %10720 = vst [vmem:[#allocation8_spill] sm:$0xff] %v9358_v25 }
 0x110   : > { %8127 = vmatprep.mubr.bf16.mxu1 %v8480_v34  ;;  %v432_v59 = vadd.f32 %v8519_v63, %v393_v51  ;;  %v9344_v7 = vld [vmem:[#allocation2 + $0x24] sm:$0xe]  ;;  %v7257_v34 = vrot.slane %v9327_v2, 9  ;;  %v4269_v18 = vrot.slane %v4267_v19, 4  ;;  %v9352_v55 = vld [vmem:[#allocation2 + $0x2c] sm:$0x1] }
 0x111   : > { %8172 = vmatmul.mubr.bf16.gmra.mxu0 %v7246_v36  ;;  %v3748_v30 = vsel %vm8932_vm13, %v3743_v37, %v3747_v0  ;;  %v3753_v3 = vrot.slane %v3752_v44, 4  ;;  %v463_v14 = vmax.f32 %v431_v11, 0.0  ;;  %v4274_v0 = vrot.slane %v9332_v27, 5  ;;  %v9354_v48 = vld [vmem:[#allocation2 + $0x30] sm:$0xe] }
 0x112   : > { %v464_v13 = vmax.f32 %v432_v59, 0.0  ;;  %v9356_v33 = vld [vmem:[#allocation2 + $0x38] sm:$0x1]  ;;  %v4281_v46 = vrot.slane %v9334_v17, 5  ;;  %v9361_v43 = vld [vmem:[#allocation2 + $0x3c] sm:$0xe] }
 0x113   : > { %v3758_v47 = vsel %vm8932_vm13, %v3753_v3, %v3757_v53  ;;  %v7515_v54 = vpack.c.bf16 %v463_v14, %v463_v14  ;;  %v9363_v22 = vld [vmem:[#allocation2 + $0x4c] sm:$0xf]  ;;  %v10703_v53 = vrot.slane %v9340_v4, 5  ;;  %v10701_v36 = vrot.slane %v9342_v16, 5  ;;  %v9371_v59 = vld [vmem:[#allocation2 + $0x44] sm:$0x1] }
 0x114   : > { %v7247_v62 = vcombine.low %v3748_v30, %v3758_v47  ;;  %v7516_v38 = vpack.c.bf16 %v464_v13, %v464_v13  ;;  %v4270_v44 = vrot.slane %v4171_v21, 5  ;;  %v7258_v63 = vrot.slane %v9336_v9, 9  ;;  %v9373_v30 = vld [vmem:[#allocation2 + $0x48] sm:$0xe]  ;;  %v9375_v3 = vld [vmem:[#allocation2 + $0x50] sm:$0x1]  ;;  %v9379_v13 = vpop.f32.mrf.mxu0 }
 0x115   : > { %v820_v61 = vshrl.u32 %v7515_v54, 16  ;;  %v823_v45 = vshll.u32 %v7515_v54, 16  ;;  %v4277_v11 = vrot.slane %v9338_v8, 5  ;;  %v9377_v14 = vld [vmem:[#allocation2 + $0x54] sm:$0xe]  ;;  %v4276_v54 = vrot.slane %v4274_v0, 4 }
 0x116   : > { %8175 = vmatprep.mubr.bf16.mxu0 %v7247_v62  ;;  %v828_v26 = vshrl.u32 %v7516_v38, 16  ;;  %v831_v28 = vshll.u32 %v7516_v38, 16  ;;  %v7259_v62 = vrot.slane %v9344_v7, 9  ;;  %v9386_v38 = vld [vmem:[#allocation2 + $0x58] sm:$0xf]  ;;  %v4284_v52 = vrot.slane %v9352_v55, 5 }
 0x117   : > { %v822_v32 = vrot.slane %v820_v61, 7  ;;  %v9388_v2 = vld [vmem:[#allocation2 + $0x5c] sm:$0x1]  ;;  %v9390_v61 = vpop.f32.mrf.mxu1  ;;  %v9406_v21 = vrot.slane %v10701_v36, 4  ;;  %v10702_v9 = vrot.slane %v9363_v22, 5  ;;  %v10704_v1 = vrot.slane %v9386_v38, 5 }
 0x118   : > { %v830_v40 = vrot.slane %v828_v26, 7  ;;  %10721 = vst [vmem:[#allocation9_spill] sm:$0xff] %v9390_v61  ;;  %v9397_v26 = vld [vmem:[#allocation2 + $0x60] sm:$0xe]  ;;  %v9409_v8 = vld [vmem:[#allocation2 + $0x64] sm:$0xf] }
 0x119   : > { %v825_v24 = vor.u32 %v823_v45, %v822_v32  ;;  %v826_v49 = vrot.slane %v822_v32, 4  ;;  %v4283_v45 = vrot.slane %v4281_v46, 4  ;;  %v4268_v32 = vsel %vm8922_vm12, %v7257_v34, %v4267_v19  ;;  %v9417_v7 = vld [vmem:[#allocation2 + $0x70] sm:$0xf]  ;;  %v9429_v34 = vld [vmem:[#allocation2 + $0x68] sm:$0x1] }
 0x11a   : > { %v833_v51 = vor.u32 %v831_v28, %v830_v40  ;;  %v835_v23 = vrot.slane %v830_v40, 4  ;;  %v9401_v28 = vrot.slane %v10703_v53, 4  ;;  %v9419_v40 = vpop.f32.mrf.mxu0  ;;  %v9443_v19 = vld [vmem:[#allocation2 + $0x74] sm:$0x1]  ;;  %v9486_v25 = vld [vmem:[#allocation2 + $0x8c] sm:$0x1] }
 0x11b   : > { %v996_v37 = vsel %vm8649_vm6, %v825_v24, %v995_v56  ;;  %v9460_v24 = vrot.slane %v10704_v1, 4  ;;  %v10731_v58 = vrot.slane %v9356_v33, 5  ;;  %v10733_v33 = vrot.slane %v9342_v16, 5 }
 0x11c   : > { %v834_v47 = vsel %vm8639_vm5, %v826_v49, %v833_v51  ;;  %997 = vst [vmem:[#allocation2 + $0xc0] sm:$0xf] %v996_v37  ;;  %v1000_v57 = vsel %vm8659_vm7, %v835_v23, %v999_v20  ;;  %v4271_v20 = vsel %vm8922_vm12, %v4269_v18, %v4270_v44  ;;  %v9425_v23 = vpop.f32.mrf.mxu1  ;;  %v9431_v18 = vld [vmem:[#allocation2 + $0x7c] sm:$0xf]  ;;  %v9435_v37 = vrot.slane %v10702_v9, 4  ;;  %v9446_v56 = vpop.f32.mrf.mxu0 }
 0x11d   : > { %998 = vst [vmem:[#allocation2 + $0xc4] sm:$0xf] %v834_v47  ;;  %1001 = vst [vmem:[#allocation2 + $0xc8] sm:$0x1] %v1000_v57  ;;  %v9438_v47 = vld [vmem:[#allocation2 + $0x6c] sm:$0xe]  ;;  %v7289_v51 = vcombine.low %v4268_v32, %v4271_v20  ;;  %v4275_v49 = vsel %vm8922_vm12, %v7258_v63, %v4274_v0  ;;  %v4278_v44 = vsel %vm8922_vm12, %v4276_v54, %v4277_v11 }
 0x11e   : > { %10722 = vst [vmem:[#allocation10_spill] sm:$0xff] %v9425_v23  ;;  %v4282_v32 = vsel %vm8922_vm12, %v7259_v62, %v4281_v46  ;;  %v4285_v0 = vsel %vm8922_vm12, %v4283_v45, %v4284_v52  ;;  %v9456_v63 = vpop.f32.mrf.mxu1  ;;  %v9462_v23 = vld [vmem:[#allocation2 + $0x78] sm:$0xe]  ;;  %v9465_v54 = vld [vmem:[#allocation2 + $0x80] sm:$0x1]  ;;  %v9471_v1 = vpop.f32.mrf.mxu0  ;;  %v7290_v62 = vcombine.low %v4275_v49, %v4278_v44 }
 0x11f   : > { %10723 = vst [vmem:[#allocation11_spill] sm:$0xff] %v9456_v63  ;;  %v9469_v63 = vld [vmem:[#allocation2 + $0x88] sm:$0xf]  ;;  %v7291_v49 = vcombine.low %v4282_v32, %v4285_v0  ;;  %v9498_v44 = vld [vmem:[#allocation2 + $0x94] sm:$0xf]  ;;  %v10729_v32 = vrot.slane %v9340_v4, 5 }
 0x120   : > { %v10730_v0 = vrot.slane %v9354_v48, 9  ;;  %v10705_v48 = vrot.slane %v9498_v44, 5 }
 0x123   : > { %v3396_v57 = vld [vmem:[#allocation2 + $0xc0] sm:$0xf] }
 0x124   : > { %v8481_v36 = vld [vmem:[#allocation2 + $0xc0] sm:$0xff]   ;;  %v3760_v12 = vshrl.u32 %v3396_v57, 16  ;;  %v3398_v20 = vld [vmem:[#allocation2 + $0xc8] sm:$0x1]  ;;  %v3763_v27 = vshll.u32 %v3396_v57, 16 }
 0x125   : > { %v3397_v9 = vld [vmem:[#allocation2 + $0xc4] sm:$0xf]  ;;  %8128 = vmatmul.mubr.bf16.gmra.mxu1 %v8481_v36  ;;  %v3779_v11 = vshll.u32 %v3398_v20, 16  ;;  %v10724_v36 = vrot.slane %v9409_v8, 5  ;;  %v10725_v20 = vrot.slane %v9417_v7, 5 }
 0x126   : > { %v3769_v53 = vshll.u32 %v3397_v9, 16  ;;  %v3773_v55 = vshrl.u32 %v3397_v9, 16  ;;  %v3762_v17 = vrot.slane %v3760_v12, 4  ;;  %v3765_v45 = vrot.slane %v3763_v27, 5  ;;  %8195 = vmatprep.mubr.bf16.mxu1 %v7289_v51 }
 0x127   : > { %v3781_v61 = vrot.slane %v3779_v11, 5  ;;  %v9475_v12 = vrot.slane %v10724_v36, 4  ;;  %v9479_v46 = vrot.slane %v10725_v20, 4  ;;  %v8490_v11 = vld [vmem:[%s10698_s3 + $0x1f0] sm:$0xff]   ;;  %v10727_v20 = vrot.slane %v9431_v18, 5 }
 0x128   : > { %v3771_v52 = vrot.slane %v3769_v53, 5  ;;  %v3775_v57 = vrot.slane %v3773_v55, 4  ;;  %v9482_v53 = vld [vmem:[#allocation2 + $0x84] sm:$0xe]  ;;  %v9484_v55 = vpop.f32.mrf.mxu1  ;;  %v3766_v51 = vor.u32 %v3765_v45, %v3762_v17  ;;  %v8484_v45 = vld [vmem:[#allocation2 + $0x18] sm:$0xff]   ;;  %v4292_v36 = vsel %vm8922_vm12, %v9401_v28, %v10731_v58 }
 0x129   : > { %10726 = vst [vmem:[#allocation12_spill] sm:$0xff] %v9484_v55  ;;  %v9494_v10 = vrot.slane %v10727_v20, 4  ;;  %v10734_v58 = vrot.slane %v9361_v43, 9  ;;  %v7268_v43 = vrot.slane %v9504_v42, 9  ;;  %v10740_v42 = vrot.slane %v9386_v38, 5  ;;  %v8485_v38 = vld [vmem:[#allocation2 + $0x24] sm:$0xff]  }
 0x12a   : > { %v3776_v9 = vor.u32 %v3775_v57, %v3771_v52  ;;  %v3767_v55 = vrot.slane %v3766_v51, 4  ;;  %v9500_v57 = vpop.f32.mrf.mxu0  ;;  %v9506_v20 = vpop.f32.mrf.mxu1  ;;  %v4289_v51 = vsel %vm8922_vm12, %v10730_v0, %v10729_v32 }
 0x12b   : > { %10728 = vst [vmem:[#allocation13_spill] sm:$0xff] %v9506_v20  ;;  %v4296_v28 = vsel %vm8922_vm12, %v10734_v58, %v10733_v33  ;;  %v7292_v32 = vcombine.low %v4289_v51, %v4292_v36  ;;  %v10738_v33 = vrot.slane %v9373_v30, 9  ;;  %v10741_v36 = vrot.slane %v9377_v14, 9  ;;  %v9587_v51 = vld [vmem:[#allocation2 + $0xac] sm:$0xf]  ;;  %v9594_v14 = vld [vmem:[%s10698_s3 + $0x1e0] sm:$0xff]  }
 0x12c   : > { %v3777_v17 = vrot.slane %v3776_v9, 4  ;;  %v3772_v27 = vsel %vm8932_vm13, %v3767_v55, %v3771_v52  ;;  %v8494_v52 = vld [vmem:[%s10698_s3 + $0x1e8] sm:$0xff]   ;;  %v9528_v55 = vld [vmem:[#allocation2 + $0x98] sm:$0x1]  ;;  %v9553_v0 = vpop.f32.mrf.mxu1  ;;  %v10742_v30 = vrot.slane %v9388_v2, 5  ;;  %v4346_v2 = vrot.slane %v10705_v48, 4 }
 0x12d   : > { %8196 = vmatmul.mubr.bf16.vlgmr.msra.gmra.mxu1 %v7290_v62  ;;  %v9538_v62 = vld [vmem:[#allocation2 + $0x9c] sm:$0xe]  ;;  %10736 = vst [vmem:[#allocation14_spill] sm:$0xff] %v9553_v0  ;;  %v4347_v58 = vrot.slane %v9528_v55, 5  ;;  %v10746_v55 = vrot.slane %v9429_v34, 5  ;;  %v10748_v48 = vrot.slane %v9438_v47, 9 }
 0x12e   : > { %v3782_v9 = vsel %vm8932_vm13, %v3777_v17, %v3781_v61  ;;  %v10732_v61 = vrot.slane %v9469_v63, 5  ;;  %8276 = vmatpush3.bf16.msra.mxu1 %v9266_v31  ;;  %8199 = vmatprep.mubr.bf16.mxu1 %v7291_v49  ;;  %v9542_v17 = vld [vmem:[#allocation2 + $0xa4] sm:$0x1]  ;;  %v10735_v31 = vrot.slane %v9371_v59, 5  ;;  %v10739_v59 = vrot.slane %v9375_v3, 5 }
 0x12f   : > { %v7248_v39 = vcombine.low %v3772_v27, %v3782_v9  ;;  %v9540_v27 = vld [vmem:[#allocation2 + $0xa0] sm:$0xf]  ;;  %v9544_v9 = vpop.f32.mrf.mxu0  ;;  %8277 = vmatprep.subr.bf16.mxu1 %v8490_v11  ;;  %v9585_v3 = vld [vmem:[#allocation2 + $0xa8] sm:$0xe]  ;;  %v10749_v34 = vrot.slane %v9443_v19, 5  ;;  %v10751_v47 = vrot.slane %v9462_v23, 9 }
 0x130   : > { %v4339_v4 = vrot.slane %v10732_v61, 4  ;;  %v4299_v16 = vsel %vm8922_vm12, %v9406_v21, %v10735_v31  ;;  %v4351_v49 = vrot.slane %v9540_v27, 5  ;;  %v10737_v61 = vrot.slane %v9363_v22, 5  ;;  %v8488_v31 = vld [vmem:[#allocation2 + $0x30] sm:$0xff]   ;;  %v9672_v23 = vld [vmem:[%s10698_s3 + $0x1d8] sm:$0xff]  }
 0x131   : > { %8176 = vmatmul.mubr.bf16.gmra.mxu0 %v7248_v39  ;;  %v9568_v21 = vsel %vm8922_vm12, %v9435_v37, %v10739_v59  ;;  %v9576_v22 = vsel %vm8922_vm12, %v10741_v36, %v10740_v42  ;;  %v9589_v37 = vld [vmem:[#allocation2 + $0xb0] sm:$0x1]  ;;  %v4358_v27 = vrot.slane %v9587_v51, 5  ;;  %v4354_v59 = vrot.slane %v9542_v17, 5  ;;  %v9602_v42 = vpop.f32.mrf.mxu0 }
 0x132   : > { %8243 = vmatprep.mubr.bf16.mxu0 %v8484_v45  ;;  %v9561_v39 = vsel %vm8922_vm12, %v10738_v33, %v10737_v61  ;;  %v9583_v45 = vsel %vm8922_vm12, %v9460_v24, %v10742_v30  ;;  %v7269_v24 = vrot.slane %v9538_v62, 9  ;;  %8278 = vmatpush3.bf16.msra.mxu1 %v8490_v11  ;;  %v7293_v61 = vcombine.low %v4296_v28, %v4299_v16  ;;  %v9607_v36 = vld [vmem:[%s10698_s3 + $0x230] sm:$0xff]   ;;  %v9613_v11 = vpop.f32.mrf.mxu1  ;;  %v9642_v28 = vld [vmem:[#allocation2 + $0xb8] sm:$0xf] }
 0x133   : > { %v4353_v33 = vrot.slane %v4351_v49, 4  ;;  %8279 = vmatprep.subr.bf16.mxu1 %v8494_v52  ;;  %v7270_v62 = vrot.slane %v9585_v3, 9  ;;  %v4361_v30 = vrot.slane %v9589_v37, 5  ;;  %10743 = vst [vmem:[#allocation15_spill] sm:$0xff] %v9613_v11  ;;  %v10744_v17 = vrot.slane %v9409_v8, 5 }
 0x134   : > { %v10745_v16 = vrot.slane %v9397_v26, 9  ;;  %v9630_v3 = vsel %vm8922_vm12, %v9475_v12, %v10746_v55  ;;  %v10747_v37 = vrot.slane %v9417_v7, 5  ;;  %v9640_v26 = vld [vmem:[#allocation2 + $0xb4] sm:$0xe]  ;;  %v9649_v12 = vsel %vm8922_vm12, %v9479_v46, %v10749_v34  ;;  %v9760_v11 = vld [vmem:[#allocation2 + $0x18] sm:$0xe] }
 0x135   : > { %8200 = vmatmul.mubr.bf16.gmra.mxu1 %v7292_v32  ;;  %v10750_v7 = vrot.slane %v9431_v18, 5  ;;  %v4360_v55 = vrot.slane %v4358_v27, 4  ;;  %v4365_v32 = vrot.slane %v9642_v28, 5  ;;  %v10752_v19 = vrot.slane %v9465_v54, 5  ;;  %v9689_v28 = vpop.f32.mrf.mxu0 }
 0x136   : > { %v9623_v51 = vsel %vm8922_vm12, %v10745_v16, %v10744_v17  ;;  %v9638_v8 = vsel %vm8922_vm12, %v10748_v48, %v10747_v37  ;;  %v9659_v17 = vld [vmem:[#allocation2 + $0xbc] sm:$0x1]  ;;  %8203 = vmatprep.mubr.bf16.mxu1 %v7293_v61  ;;  %8280 = vmatpush3.bf16.msra.mxu1 %v8494_v52  ;;  %v10753_v18 = vrot.slane %v9469_v63, 5  ;;  %v10754_v16 = vrot.slane %v9482_v53, 9  ;;  %10756 = vst [vmem:[#allocation16_spill] sm:$0xff] %v9689_v28  ;;  %v9694_v63 = vld [vmem:[%s10698_s3 + $0x228] sm:$0xff]  }
 0x137   : > { %v9657_v48 = vsel %vm8922_vm12, %v10751_v47, %v10750_v7  ;;  %v9667_v46 = vsel %vm8922_vm12, %v9494_v10, %v10752_v19  ;;  %v10755_v54 = vrot.slane %v9486_v25, 5  ;;  %v7271_v10 = vrot.slane %v9640_v26, 9  ;;  %v4214_v37 = vld [vmem:[#allocation2 + $0xc0] sm:$0xe]  ;;  %8281 = vmatprep.subr.bf16.mxu1 %v9594_v14  ;;  %v9708_v34 = vpop.f32.mrf.mxu1  ;;  %v4215_v7 = vld [vmem:[#allocation2 + $0xc4] sm:$0xf]  ;;  %v9719_v19 = vpop.f32.mrf.mxu0 }
 0x138   : > { %v9680_v61 = vsel %vm8922_vm12, %v10754_v16, %v10753_v18  ;;  %v10757_v53 = vrot.slane %v9498_v44, 5  ;;  %v4367_v26 = vrot.slane %v4365_v32, 4  ;;  %10758 = vst [vmem:[#allocation17_spill] sm:$0xff] %v9708_v34  ;;  %v4216_v47 = vld [vmem:[#allocation2 + $0xc8] sm:$0x1]  ;;  %v9713_v44 = vsel %vm8922_vm12, %v7269_v24, %v4351_v49  ;;  %10759 = vst [vmem:[#allocation18_spill] sm:$0xff] %v9719_v19 }
 0x139   : > { %v9686_v52 = vsel %vm8922_vm12, %v4339_v4, %v10755_v54  ;;  %8244 = vmatmul.mubr.bf16.vlgmr.msra.gmra.mxu0 %v8485_v38  ;;  %v9705_v4 = vsel %vm8922_vm12, %v4346_v2, %v4347_v58  ;;  %v4368_v38 = vrot.slane %v9659_v17, 5  ;;  %v7272_v2 = vrot.slane %v4214_v37, 9  ;;  %v8489_v17 = vld [vmem:[#allocation2 + $0x3c] sm:$0xff]   ;;  %v9729_v49 = vld [vmem:[%s10698_s3 + $0x1d0] sm:$0xff]  }
 0x13a   : > { %v9701_v25 = vsel %vm8922_vm12, %v7268_v43, %v10757_v53  ;;  %8324 = vmatpush3.bf16.msra.mxu0 %v9273_v41  ;;  %8247 = vmatprep.mubr.bf16.mxu0 %v8488_v31  ;;  %v9717_v43 = vsel %vm8922_vm12, %v4353_v33, %v4354_v59  ;;  %v4372_v58 = vrot.slane %v4215_v7, 5  ;;  %v9733_v24 = vsel %vm8922_vm12, %v7270_v62, %v4358_v27  ;;  %v9739_v33 = vpop.f32.mrf.mxu1  ;;  %v9746_v53 = vpop.f32.mrf.mxu0  ;;  %v5214_v27 = vld [vmem:[#allocation2 + $0x18] sm:$0xf]  ;;  %v5216_v7 = vld [vmem:[#allocation2 + $0x20] sm:$0x1] }
 0x13b   : > { %8325 = vmatprep.subr.bf16.mxu0 %v9607_v36  ;;  %v9737_v31 = vsel %vm8922_vm12, %v4360_v55, %v4361_v30  ;;  %10760 = vst [vmem:[#allocation19_spill] sm:$0xff] %v9739_v33  ;;  %8282 = vmatpush3.bf16.msra.mxu1 %v9594_v14  ;;  %v4375_v37 = vrot.slane %v4216_v47, 5  ;;  %10761 = vst [vmem:[#allocation20_spill] sm:$0xff] %v9746_v53  ;;  %v5215_v55 = vld [vmem:[#allocation2 + $0x1c] sm:$0xf]  ;;  %v5263_v59 = vshrl.u32 %v5214_v27, 16 }
 0x13c   : > { %v4374_v54 = vrot.slane %v4372_v58, 4  ;;  %8283 = vmatprep.subr.bf16.mxu1 %v9672_v23  ;;  %v9753_v14 = vpop.f32.mrf.mxu1  ;;  %v5266_v41 = vshll.u32 %v5214_v27, 16  ;;  %v8492_v47 = vld [vmem:[#allocation2 + $0x48] sm:$0xff]   ;;  %v9758_v18 = vpop.f32.mrf.mxu0  ;;  %v5272_v33 = vshll.u32 %v5215_v55, 16  ;;  %v5276_v34 = vshrl.u32 %v5215_v55, 16  ;;  %v8493_v19 = vld [vmem:[#allocation2 + $0x54] sm:$0xff]  }
 0x13d   : > { %10762 = vst [vmem:[#allocation21_spill] sm:$0xff] %v9753_v14  ;;  %10763 = vst [vmem:[#allocation22_spill] sm:$0xff] %v9758_v18  ;;  %v5282_v62 = vshll.u32 %v5216_v7, 16  ;;  %v10764_v30 = vcombine.low %v9561_v39, %v9568_v21  ;;  %v9771_v27 = vsel %vm8922_vm12, %v7271_v10, %v4365_v32  ;;  %v9775_v55 = vsel %vm8922_vm12, %v4367_v26, %v4368_v38  ;;  %v6033_v39 = vld [vmem:[#allocation2 + $0x1c] sm:$0xf] }
 0x13e   : > { %8326 = vmatpush3.bf16.msra.mxu0 %v9607_v36  ;;  %v8499_v36 = vld [vmem:[%s10698_s3 + $0x220] sm:$0xff]   ;;  %v9777_v7 = vpop.f32.mrf.mxu1  ;;  %v5265_v16 = vrot.slane %v5263_v59, 4  ;;  %v5268_v18 = vrot.slane %v5266_v41, 5  ;;  %v10766_v21 = vcombine.low %v9576_v22, %v9583_v45  ;;  %v9789_v32 = vsel %vm8922_vm12, %v4374_v54, %v4375_v37  ;;  %v8053_v41 = vpop.f32.mrf.mxu0  ;;  %v8510_v22 = vld [vmem:[%s10698_s3 + $0x1c8] sm:$0xff]  }
 0x13f   : > { %8204 = vmatmul.mubr.bf16.gmra.mxu1 %v10764_v30  ;;  %8327 = vmatprep.subr.bf16.mxu0 %v9694_v63  ;;  %10765 = vst [vmem:[#allocation23_spill] sm:$0xff] %v9777_v7  ;;  %v9785_v30 = vsel %vm8922_vm12, %v7272_v2, %v4372_v58  ;;  %v9791_v10 = vrot.slane %v5272_v33, 5  ;;  %v5278_v26 = vrot.slane %v5276_v34, 4  ;;  %v6034_v38 = vld [vmem:[#allocation2 + $0x20] sm:$0x1]  ;;  %v7393_v2 = vrot.slane %v9760_v11, 9 }
 0x140   : > { %8207 = vmatprep.mubr.bf16.mxu1 %v10766_v21  ;;  %8284 = vmatpush3.bf16.msra.mxu1 %v9672_v23  ;;  %v5217_v59 = vld [vmem:[#allocation2 + $0x24] sm:$0xf]  ;;  %v5269_v45 = vor.u32 %v5268_v18, %v5265_v16  ;;  %v9797_v23 = vrot.slane %v5282_v62, 5  ;;  %v6130_v58 = vrot.slane %v6033_v39, 5  ;;  %v8005_v54 = vpop.f32.mrf.mxu1  ;;  %v5218_v33 = vld [vmem:[#allocation2 + $0x28] sm:$0xf]  ;;  %v2710_v62 = vpop.f32.mrf.mxu0 }
 0x141   : > { %8248 = vmatmul.mubr.bf16.gmra.mxu0 %v8489_v17  ;;  %8285 = vmatprep.subr.bf16.mxu1 %v9729_v49  ;;  %v8503_v34 = vld [vmem:[%s10698_s3 + $0x218] sm:$0xff]   ;;  %v5279_v17 = vor.u32 %v5278_v26, %v9791_v10  ;;  %v2242_v37 = vadd.f32 %v8005_v54, %v9289_v15  ;;  %v5219_v21 = vld [vmem:[#allocation2 + $0x2c] sm:$0x1]  ;;  %v5287_v18 = vshrl.u32 %v5217_v59, 16  ;;  %v5290_v16 = vshll.u32 %v5217_v59, 16 }
 0x142   : > { %8251 = vmatprep.mubr.bf16.mxu0 %v8492_v47  ;;  %8328 = vmatpush3.bf16.msra.mxu0 %v9694_v63  ;;  %v9806_v11 = vrot.slane %v5269_v45, 4  ;;  %v6132_v39 = vrot.slane %v6130_v58, 4  ;;  %v6133_v7 = vrot.slane %v6034_v38, 5  ;;  %v5296_v47 = vshll.u32 %v5218_v33, 16  ;;  %v6035_v14 = vld [vmem:[#allocation2 + $0x24] sm:$0xe]  ;;  %v2113_v63 = vpop.f32.mrf.mxu1  ;;  %v8054_v54 = vpop.f32.mrf.mxu0 }
 0x143   : > { %8329 = vmatprep.subr.bf16.mxu0 %v8499_v36  ;;  %v5280_v0 = vrot.slane %v5279_v17, 4  ;;  %v9809_v20 = vadd.f32 %v8053_v41, %v2242_v37  ;;  %v5289_v26 = vrot.slane %v5287_v18, 4  ;;  %v5292_v53 = vrot.slane %v5290_v16, 5  ;;  %v6036_v15 = vld [vmem:[#allocation2 + $0x28] sm:$0xf]  ;;  %v8514_v45 = vld [vmem:[%s10698_s3 + $0x1c0] sm:$0xff]  }
 0x144   : > { %8286 = vmatpush3.bf16.msra.mxu1 %v9729_v49  ;;  %v9818_v49 = vrot.slane %v5296_v47, 5  ;;  %v5300_v41 = vshrl.u32 %v5218_v33, 16  ;;  %v6037_v17 = vld [vmem:[#allocation2 + $0x2c] sm:$0x1]  ;;  %v8006_v37 = vpop.f32.mrf.mxu1  ;;  %v8496_v18 = vld [vmem:[#allocation2 + $0x60] sm:$0xff]   ;;  %v5275_v16 = vsel %vm8932_vm13, %v9806_v11, %v9791_v10  ;;  %v9826_v59 = vsel %vm8922_vm12, %v7393_v2, %v6130_v58  ;;  %v2713_v28 = vpop.f32.mrf.mxu0 }
 0x145   : > { %10767 = vst [vmem:[#allocation24_spill] sm:$0xff] %v9809_v20  ;;  %8287 = vmatprep.subr.bf16.mxu1 %v8510_v22  ;;  %v5293_v38 = vor.u32 %v5292_v53, %v5289_v26  ;;  %v5306_v20 = vshll.u32 %v5219_v21, 16  ;;  %v10768_v47 = vcombine.low %v9623_v51, %v9630_v3  ;;  %v9836_v33 = vsel %vm8922_vm12, %v6132_v39, %v6133_v7  ;;  %v5220_v53 = vld [vmem:[#allocation2 + $0x30] sm:$0xf] }
 0x146   : > { %8330 = vmatpush3.bf16.msra.mxu0 %v8499_v36  ;;  %v8507_v36 = vld [vmem:[%s10698_s3 + $0x210] sm:$0xff]   ;;  %v5302_v10 = vrot.slane %v5300_v41, 4  ;;  %v7394_v11 = vrot.slane %v6035_v14, 9  ;;  %v6137_v2 = vrot.slane %v6036_v15, 5  ;;  %v2116_v58 = vpop.f32.mrf.mxu1  ;;  %v10769_v21 = vcombine.low %v9638_v8, %v9649_v12 }
 0x147   : > { %8208 = vmatmul.mubr.bf16.gmra.mxu1 %v10768_v47  ;;  %8331 = vmatprep.subr.bf16.mxu0 %v8503_v34  ;;  %v5285_v51 = vsel %vm8932_vm13, %v5280_v0, %v9797_v23  ;;  %v9844_v3 = vrot.slane %v5293_v38, 4  ;;  %v6140_v26 = vrot.slane %v6037_v17, 5  ;;  %v2240_v7 = vadd.f32 %v2113_v63, %v9297_v29  ;;  %v5221_v12 = vld [vmem:[#allocation2 + $0x34] sm:$0xf] }
 0x148   : > { %8211 = vmatprep.mubr.bf16.mxu1 %v10769_v21  ;;  %8288 = vmatpush3.bf16.msra.mxu1 %v8510_v22  ;;  %v5303_v14 = vor.u32 %v5302_v10, %v9818_v49  ;;  %v9848_v39 = vrot.slane %v5306_v20, 5  ;;  %v6139_v15 = vrot.slane %v6137_v2, 4  ;;  %v2243_v8 = vadd.f32 %v8006_v37, %v9315_v60  ;;  %v8511_v60 = vld [vmem:[%s10698_s3 + $0x208] sm:$0xff]   ;;  %v6039_v17 = vld [vmem:[#allocation2 + $0x34] sm:$0xf] }
 0x149   : > { %8252 = vmatmul.mubr.bf16.gmra.mxu0 %v8493_v19  ;;  %8289 = vmatprep.subr.bf16.mxu1 %v8514_v45  ;;  %v9853_v0 = vsel %vm8922_vm12, %v7394_v11, %v6137_v2  ;;  %v9855_v22 = vadd.f32 %v2710_v62, %v2240_v7  ;;  %v2241_v29 = vadd.f32 %v2116_v58, %v9325_v5  ;;  %v5222_v19 = vld [vmem:[#allocation2 + $0x38] sm:$0x1]  ;;  %v5311_v23 = vshrl.u32 %v5220_v53, 16  ;;  %v8009_v63 = vpop.f32.mrf.mxu1  ;;  %v8057_v38 = vpop.f32.mrf.mxu0  ;;  %v6038_v10 = vld [vmem:[#allocation2 + $0x30] sm:$0xe] }
 0x14a   : > { %8255 = vmatprep.mubr.bf16.mxu0 %v8496_v18  ;;  %8332 = vmatpush3.bf16.msra.mxu0 %v8503_v34  ;;  %v5304_v20 = vrot.slane %v5303_v14, 4  ;;  %v9863_v34 = vsel %vm8922_vm12, %v6139_v15, %v6140_v26  ;;  %v9865_v41 = vadd.f32 %v8054_v54, %v2243_v8  ;;  %v5314_v62 = vshll.u32 %v5220_v53, 16  ;;  %v6040_v11 = vld [vmem:[#allocation2 + $0x38] sm:$0x1]  ;;  %v8497_v21 = vld [vmem:[#allocation2 + $0x6c] sm:$0xff]  }
 0x14b   : > { %10770 = vst [vmem:[#allocation25_spill] sm:$0xff] %v9855_v22  ;;  %8333 = vmatprep.subr.bf16.mxu0 %v8507_v36  ;;  %v9867_v5 = vcombine.low %v5275_v16, %v5285_v51  ;;  %v5313_v18 = vrot.slane %v5311_v23, 4  ;;  %v5320_v47 = vshll.u32 %v5221_v12, 16  ;;  %v9871_v2 = vpop.f32.mrf.mxu1  ;;  %v9873_v58 = vpop.f32.mrf.mxu0  ;;  %v5299_v54 = vsel %vm8932_vm13, %v9844_v3, %v9818_v49  ;;  %v5223_v51 = vld [vmem:[#allocation2 + $0x3c] sm:$0xf] }
 0x14c   : > { %10771 = vst [vmem:[#allocation26_spill] sm:$0xff] %v9865_v41  ;;  %8290 = vmatpush3.bf16.msra.mxu1 %v8514_v45  ;;  %v5316_v45 = vrot.slane %v5314_v62, 5  ;;  %v5324_v16 = vshrl.u32 %v5221_v12, 16  ;;  %v5330_v53 = vshll.u32 %v5222_v19, 16  ;;  %v8500_v26 = vld [vmem:[#allocation2 + $0x78] sm:$0xff]   ;;  %v9881_v14 = vadd.f32 %v2713_v28, %v2241_v29 }
 0x14d   : > { %v9883_v15 = vrot.slane %v5320_v47, 5  ;;  %v6144_v8 = vrot.slane %v6039_v17, 5  ;;  %v5224_v23 = vld [vmem:[#allocation2 + $0x40] sm:$0xf]  ;;  %v8010_v37 = vpop.f32.mrf.mxu1  ;;  %v9885_v41 = vpop.f32.mrf.mxu0  ;;  %v10773_v49 = vcombine.low %v9657_v48, %v9667_v46  ;;  %v5309_v28 = vsel %vm8932_vm13, %v5304_v20, %v9848_v39  ;;  %v5225_v19 = vld [vmem:[#allocation2 + $0x44] sm:$0x1] }
 0x14e   : > { %8334 = vmatpush3.bf16.msra.mxu0 %v8507_v36  ;;  %10772 = vst [vmem:[#allocation27_spill] sm:$0xff] %v9881_v14  ;;  %v8515_v36 = vld [vmem:[%s10698_s3 + $0x200] sm:$0xff]   ;;  %v5317_v3 = vor.u32 %v5316_v45, %v5313_v18  ;;  %v5326_v12 = vrot.slane %v5324_v16, 4  ;;  %v7395_v29 = vrot.slane %v6038_v10, 9  ;;  %v10774_v62 = vcombine.low %v9680_v61, %v9686_v52 }
 0x14f   : > { %8212 = vmatmul.mubr.bf16.gmra.mxu1 %v10773_v49  ;;  %8335 = vmatprep.subr.bf16.mxu0 %v8511_v60  ;;  %v6146_v17 = vrot.slane %v6144_v8, 4  ;;  %v6147_v48 = vrot.slane %v6040_v11, 5  ;;  %v2246_v46 = vadd.f32 %v8009_v63, %v9346_v6  ;;  %v5335_v47 = vshrl.u32 %v5223_v51, 16  ;;  %v6041_v49 = vld [vmem:[#allocation2 + $0x3c] sm:$0xe]  ;;  %v2132_v11 = vpop.f32.mrf.mxu1  ;;  %v9903_v16 = vpop.f32.mrf.mxu0 }
 0x150   : > { %8215 = vmatprep.mubr.bf16.mxu1 %v10774_v62  ;;  %v5327_v7 = vor.u32 %v5326_v12, %v9883_v15  ;;  %v5332_v14 = vrot.slane %v5330_v53, 5  ;;  %v5338_v22 = vshll.u32 %v5223_v51, 16  ;;  %v5344_v39 = vshll.u32 %v5224_v23, 16  ;;  %v6042_v20 = vld [vmem:[#allocation2 + $0x40] sm:$0xf] }
 0x151   : > { %8256 = vmatmul.mubr.bf16.gmra.mxu0 %v8497_v21  ;;  %v5318_v18 = vrot.slane %v5317_v3, 4  ;;  %v9901_v10 = vadd.f32 %v8057_v38, %v2246_v46  ;;  %v5337_v61 = vrot.slane %v5335_v47, 4  ;;  %v5348_v52 = vshrl.u32 %v5224_v23, 16  ;;  %v6043_v45 = vld [vmem:[#allocation2 + $0x44] sm:$0x1] }
 0x152   : > { %8259 = vmatprep.mubr.bf16.mxu0 %v8500_v26  ;;  %8336 = vmatpush3.bf16.msra.mxu0 %v8511_v60  ;;  %v9905_v6 = vcombine.low %v5299_v54, %v5309_v28  ;;  %v5328_v63 = vrot.slane %v5327_v7, 4  ;;  %v9909_v21 = vsel %vm8922_vm12, %v7395_v29, %v6144_v8  ;;  %v5340_v53 = vrot.slane %v5338_v22, 5  ;;  %v8501_v23 = vld [vmem:[#allocation2 + $0x84] sm:$0xff]   ;;  %v8504_v7 = vld [vmem:[#allocation2 + $0x90] sm:$0xff]  }
 0x153   : > { %8337 = vmatprep.subr.bf16.mxu0 %v8515_v36  ;;  %v9913_v60 = vsel %vm8922_vm12, %v6146_v17, %v6147_v48  ;;  %v9915_v38 = vrot.slane %v5344_v39, 5  ;;  %v5350_v51 = vrot.slane %v5348_v52, 4  ;;  %v5354_v26 = vshll.u32 %v5225_v19, 16  ;;  %v5226_v28 = vld [vmem:[#allocation2 + $0x48] sm:$0xf] }
 0x154   : > { %v5341_v3 = vor.u32 %v5340_v53, %v5337_v61  ;;  %v7396_v12 = vrot.slane %v6041_v49, 9  ;;  %v6151_v62 = vrot.slane %v6042_v20, 5  ;;  %v6154_v54 = vrot.slane %v6043_v45, 5  ;;  %v6045_v52 = vld [vmem:[#allocation2 + $0x4c] sm:$0xf] }
 0x155   : > { %v5323_v22 = vsel %vm8932_vm13, %v5318_v18, %v9883_v15  ;;  %v5333_v8 = vsel %vm8932_vm13, %v5328_v63, %v5332_v14  ;;  %v5351_v29 = vor.u32 %v5350_v51, %v9915_v38  ;;  %v2244_v19 = vadd.f32 %v9871_v2, %v9379_v13  ;;  %v8013_v17 = vpop.f32.mrf.mxu1  ;;  %v8061_v48 = vpop.f32.mrf.mxu0 }
 0x156   : > { %8338 = vmatpush3.bf16.msra.mxu0 %v8515_v36  ;;  %v10775_v46 = vcombine.low %v9701_v25, %v9705_v4  ;;  %v9928_v47 = vrot.slane %v5341_v3, 4  ;;  %v9930_v36 = vrot.slane %v5354_v26, 5  ;;  %v6153_v49 = vrot.slane %v6151_v62, 4  ;;  %v5227_v25 = vld [vmem:[#allocation2 + $0x4c] sm:$0xf] }
 0x157   : > { %v2247_v15 = vadd.f32 %v8010_v37, %v9419_v40  ;;  %v10776_v14 = vcombine.low %v9713_v44, %v9717_v43  ;;  %v7427_v13 = vcombine.low %v9909_v21, %v9913_v60  ;;  %v5352_v2 = vrot.slane %v5351_v29, 4  ;;  %v5228_v4 = vld [vmem:[#allocation2 + $0x50] sm:$0x1]  ;;  %v9941_v18 = vpop.f32.mrf.mxu1  ;;  %v9943_v61 = vpop.f32.mrf.mxu0 }
 0x158   : > { %8216 = vmatmul.mubr.bf16.gmra.mxu1 %v10775_v46  ;;  %v9939_v39 = vadd.f32 %v9873_v58, %v2244_v19  ;;  %v5359_v20 = vshrl.u32 %v5226_v28, 16  ;;  %v9947_v40 = vsel %vm8922_vm12, %v7396_v12, %v6151_v62  ;;  %v9951_v44 = vsel %vm8922_vm12, %v6153_v49, %v6154_v54  ;;  %v6044_v58 = vld [vmem:[#allocation2 + $0x48] sm:$0xe]  ;;  %v6046_v26 = vld [vmem:[#allocation2 + $0x50] sm:$0x1] }
 0x159   : > { %8219 = vmatprep.mubr.bf16.mxu1 %v10776_v14  ;;  %8260 = vmatmul.mubr.bf16.gmra.mxu0 %v8501_v23  ;;  %v9954_v43 = vadd.f32 %v9885_v41, %v2247_v15  ;;  %v5362_v37 = vshll.u32 %v5226_v28, 16  ;;  %v9956_v45 = vcombine.low %v5323_v22, %v5333_v8  ;;  %v5347_v63 = vsel %vm8932_vm13, %v9928_v47, %v9915_v38  ;;  %v9963_v23 = vpop.f32.mrf.mxu1  ;;  %v9965_v3 = vpop.f32.mrf.mxu0  ;;  %v5229_v28 = vld [vmem:[#allocation2 + $0x54] sm:$0xf]  ;;  %v5230_v47 = vld [vmem:[#allocation2 + $0x58] sm:$0xf]  ;;  %v8508_v49 = vld [vmem:[#allocation2 + $0xa8] sm:$0xff]  }
 0x15a   : > { %8263 = vmatprep.mubr.bf16.mxu0 %v8504_v7  ;;  %v2245_v53 = vadd.f32 %v2132_v11, %v9446_v56  ;;  %v5361_v51 = vrot.slane %v5359_v20, 4  ;;  %v5357_v41 = vsel %vm8932_vm13, %v5352_v2, %v9930_v36  ;;  %v5368_v62 = vshll.u32 %v5227_v25, 16  ;;  %v8505_v11 = vld [vmem:[#allocation2 + $0x9c] sm:$0xff]  }
 0x15b   : > { %v5364_v12 = vrot.slane %v5362_v37, 5  ;;  %v5372_v54 = vshrl.u32 %v5227_v25, 16  ;;  %v5378_v38 = vshll.u32 %v5228_v4, 16  ;;  %v7397_v22 = vrot.slane %v6044_v58, 9  ;;  %v9978_v25 = vpop.f32.mrf.mxu1  ;;  %v9980_v4 = vpop.f32.mrf.mxu0 }
 0x15c   : > { %v6158_v56 = vrot.slane %v6045_v52, 5  ;;  %v9972_v29 = vrot.slane %v5368_v62, 5  ;;  %v2250_v46 = vadd.f32 %v8013_v17, %v9471_v1  ;;  %v9976_v36 = vadd.f32 %v9903_v16, %v2245_v53  ;;  %v5231_v17 = vld [vmem:[#allocation2 + $0x5c] sm:$0x1]  ;;  %v6047_v16 = vld [vmem:[#allocation2 + $0x54] sm:$0xe] }
 0x15d   : > { %v5365_v8 = vor.u32 %v5364_v12, %v5361_v51  ;;  %v5374_v19 = vrot.slane %v5372_v54, 4  ;;  %v6161_v14 = vrot.slane %v6046_v26, 5  ;;  %v5383_v2 = vshrl.u32 %v5229_v28, 16  ;;  %v6048_v54 = vld [vmem:[#allocation2 + $0x58] sm:$0xf] }
 0x15e   : > { %v6160_v15 = vrot.slane %v6158_v56, 4  ;;  %v10777_v20 = vcombine.low %v9733_v24, %v9737_v31  ;;  %v9986_v1 = vadd.f32 %v8061_v48, %v2250_v46  ;;  %v5386_v52 = vshll.u32 %v5229_v28, 16  ;;  %v6049_v28 = vld [vmem:[#allocation2 + $0x5c] sm:$0x1] }
 0x15f   : > { %v5366_v37 = vrot.slane %v5365_v8, 4  ;;  %v5375_v58 = vor.u32 %v5374_v19, %v9972_v29  ;;  %v10778_v53 = vcombine.low %v9771_v27, %v9775_v55  ;;  %v5380_v51 = vrot.slane %v5378_v38, 5 }
 0x160   : > { %8220 = vmatmul.mubr.bf16.gmra.mxu1 %v10777_v20  ;;  %v5385_v26 = vrot.slane %v5383_v2, 4  ;;  %v5392_v12 = vshll.u32 %v5230_v47, 16  ;;  %v5396_v62 = vshrl.u32 %v5230_v47, 16  ;;  %v9991_v24 = vcombine.low %v5347_v63, %v5357_v41  ;;  %v8509_v2 = vld [vmem:[#allocation2 + $0xb4] sm:$0xff]  }
 0x161   : > { %8223 = vmatprep.mubr.bf16.mxu1 %v10778_v53  ;;  %8264 = vmatmul.mubr.bf16.gmra.mxu0 %v8505_v11  ;;  %v5376_v31 = vrot.slane %v5375_v58, 4  ;;  %v9995_v48 = vsel %vm8922_vm12, %v7397_v22, %v6158_v56  ;;  %v5388_v8 = vrot.slane %v5386_v52, 5  ;;  %v9999_v27 = vsel %vm8922_vm12, %v6160_v15, %v6161_v14  ;;  %v8017_v46 = vpop.f32.mrf.mxu1  ;;  %v10001_v47 = vpop.f32.mrf.mxu0  ;;  %v5232_v11 = vld [vmem:[#allocation2 + $0x60] sm:$0xf] }
 0x162   : > { %8267 = vmatprep.mubr.bf16.mxu0 %v8508_v49  ;;  %v5394_v55 = vrot.slane %v5392_v12, 5  ;;  %v5398_v38 = vrot.slane %v5396_v62, 4  ;;  %v5402_v19 = vshll.u32 %v5231_v17, 16  ;;  %v5371_v63 = vsel %vm8932_vm13, %v5366_v37, %v9972_v29  ;;  %v8512_v17 = vld [vmem:[#allocation2 + $0xc0] sm:$0xff]  }
 0x163   : > { %v5389_v41 = vor.u32 %v5388_v8, %v5385_v26  ;;  %v7398_v22 = vrot.slane %v6047_v16, 9  ;;  %v6165_v56 = vrot.slane %v6048_v54, 5  ;;  %v5381_v49 = vsel %vm8932_vm13, %v5376_v31, %v5380_v51  ;;  %v10010_v58 = vpop.f32.mrf.mxu0  ;;  %v5233_v37 = vld [vmem:[#allocation2 + $0x64] sm:$0xf]  ;;  %v10014_v16 = vpop.f32.mrf.mxu1  ;;  %v6050_v54 = vld [vmem:[#allocation2 + $0x60] sm:$0xe] }
 0x164   : > { %v5399_v15 = vor.u32 %v5398_v38, %v5394_v55  ;;  %v6168_v14 = vrot.slane %v6049_v28, 5  ;;  %v2248_v20 = vadd.f32 %v9941_v18, %v9500_v57  ;;  %v5404_v53 = vrot.slane %v5402_v19, 5  ;;  %v5234_v57 = vld [vmem:[#allocation2 + $0x68] sm:$0x1]  ;;  %v6051_v38 = vld [vmem:[#allocation2 + $0x64] sm:$0xf] }
 0x165   : > { %v5390_v52 = vrot.slane %v5389_v41, 4  ;;  %v6167_v12 = vrot.slane %v6165_v56, 4  ;;  %v2251_v29 = vadd.f32 %v9963_v23, %v9544_v9  ;;  %v5407_v18 = vshrl.u32 %v5232_v11, 16  ;;  %v10044_v41 = vpop.f32.mrf.mxu0  ;;  %v5238_v51 = vld [vmem:[#allocation2 + $0x78] sm:$0xf] }
 0x166   : > { %v5400_v26 = vrot.slane %v5399_v15, 4  ;;  %v10019_v62 = vadd.f32 %v9943_v61, %v2248_v20  ;;  %v10779_v31 = vcombine.low %v9785_v30, %v9789_v32  ;;  %v10024_v8 = vcombine.low %v5371_v63, %v5381_v49  ;;  %v6052_v61 = vld [vmem:[#allocation2 + $0x68] sm:$0x1] }
 0x167   : > { %v10028_v9 = vsel %vm8922_vm12, %v7398_v22, %v6165_v56  ;;  %v10031_v23 = vadd.f32 %v9965_v3, %v2251_v29  ;;  %v5410_v28 = vshll.u32 %v5232_v11, 16  ;;  %v5395_v19 = vsel %vm8932_vm13, %v5390_v52, %v5394_v55  ;;  %v5235_v11 = vld [vmem:[#allocation2 + $0x6c] sm:$0xf]  ;;  %v8018_v55 = vpop.f32.mrf.mxu1 }
 0x168   : > { %8224 = vmatmul.mubr.bf16.gmra.mxu1 %v10779_v31  ;;  %v10038_v30 = vsel %vm8922_vm12, %v6167_v12, %v6168_v14  ;;  %v10042_v32 = vadd.f32 %v9978_v25, %v9602_v42  ;;  %v5409_v63 = vrot.slane %v5407_v18, 4  ;;  %v5405_v3 = vsel %vm8932_vm13, %v5400_v26, %v5404_v53  ;;  %v10780_v12 = vld [vmem:[#allocation16_spill] sm:$0xff]  ;;  %v8513_v18 = vld [vmem:[#allocation2 + $0xcc] sm:$0xff]   ;;  %v5237_v26 = vld [vmem:[#allocation2 + $0x74] sm:$0x1] }
 0x169   : > { %8291 = vmatprep.mubr.bf16.mxu1 %v9867_v5  ;;  %8268 = vmatmul.mubr.bf16.gmra.mxu0 %v8509_v2  ;;  %v5412_v22 = vrot.slane %v5410_v28, 5  ;;  %v5416_v5 = vshll.u32 %v5233_v37, 16  ;;  %v5420_v56 = vshrl.u32 %v5233_v37, 16  ;;  %v5426_v49 = vshll.u32 %v5234_v57, 16  ;;  %v5236_v2 = vld [vmem:[#allocation2 + $0x70] sm:$0xf]  ;;  %v10055_v57 = vpop.f32.mrf.mxu0 }
 0x16a   : > { %8271 = vmatprep.mubr.bf16.mxu0 %v8512_v17  ;;  %v7399_v15 = vrot.slane %v6050_v54, 9  ;;  %v6172_v14 = vrot.slane %v6051_v38, 5  ;;  %v6175_v20 = vrot.slane %v6052_v61, 5  ;;  %v2254_v29 = vadd.f32 %v8017_v46, %v10780_v12  ;;  %v6053_v46 = vld [vmem:[#allocation2 + $0x6c] sm:$0xe] }
 0x16b   : > { %v5413_v52 = vor.u32 %v5412_v22, %v5409_v63  ;;  %v10048_v42 = vrot.slane %v5416_v5, 5  ;;  %v5422_v25 = vrot.slane %v5420_v56, 4  ;;  %v10051_v31 = vcombine.low %v5395_v19, %v5405_v3  ;;  %v6054_v63 = vld [vmem:[#allocation2 + $0x70] sm:$0xf]  ;;  %v10061_v22 = vpop.f32.mrf.mxu1  ;;  %v6055_v12 = vld [vmem:[#allocation2 + $0x74] sm:$0x1] }
 0x16c   : > { %v6174_v37 = vrot.slane %v6172_v14, 4  ;;  %v5431_v17 = vshrl.u32 %v5235_v11, 16  ;;  %v10059_v38 = vadd.f32 %v10001_v47, %v2254_v29  ;;  %v5434_v61 = vshll.u32 %v5235_v11, 16 }
 0x16d   : > { %v5414_v54 = vrot.slane %v5413_v52, 4  ;;  %v5423_v28 = vor.u32 %v5422_v25, %v10048_v42  ;;  %v5428_v19 = vrot.slane %v5426_v49, 5  ;;  %v5440_v5 = vshll.u32 %v5236_v2, 16 }
 0x16e   : > { %v5433_v3 = vrot.slane %v5431_v17, 4  ;;  %v5444_v56 = vshrl.u32 %v5236_v2, 16  ;;  %v10066_v52 = vsel %vm8922_vm12, %v7399_v15, %v6172_v14  ;;  %v10070_v47 = vsel %vm8922_vm12, %v6174_v37, %v6175_v20 }
 0x16f   : > { %v5424_v53 = vrot.slane %v5423_v28, 4  ;;  %v5436_v11 = vrot.slane %v5434_v61, 5  ;;  %v5442_v25 = vrot.slane %v5440_v5, 5  ;;  %v5450_v29 = vshll.u32 %v5237_v26, 16  ;;  %v10073_v2 = vpop.f32.mrf.mxu0 }
 0x170   : > { %8292 = vmatmul.mubr.bf16.vlgmr.msra.gmra.mxu1 %v9905_v6  ;;  %v5446_v49 = vrot.slane %v5444_v56, 4  ;;  %v7400_v17 = vrot.slane %v6053_v46, 9  ;;  %v5419_v6 = vsel %vm8932_vm13, %v5414_v54, %v10048_v42  ;;  %v6179_v14 = vrot.slane %v6054_v63, 5  ;;  %v10782_v46 = vld [vmem:[#allocation18_spill] sm:$0xff] }
 0x171   : > { %8295 = vmatprep.mubr.bf16.mxu1 %v9956_v45  ;;  %8272 = vmatmul.mubr.bf16.gmra.mxu0 %v8513_v18  ;;  %v5437_v15 = vor.u32 %v5436_v11, %v5433_v3  ;;  %v6182_v28 = vrot.slane %v6055_v12, 5  ;;  %v8021_v20 = vpop.f32.mrf.mxu1  ;;  %v10781_v37 = vcombine.low %v9826_v59, %v9836_v33  ;;  %v5429_v45 = vsel %vm8932_vm13, %v5424_v53, %v5428_v19  ;;  %v10085_v5 = vpop.f32.mrf.mxu0  ;;  %v10783_v3 = vld [vmem:[#allocation20_spill] sm:$0xff] }
 0x172   : > { %v5447_v26 = vor.u32 %v5446_v49, %v5442_v25  ;;  %v5452_v61 = vrot.slane %v5450_v29, 5  ;;  %v2252_v18 = vadd.f32 %v10014_v16, %v10782_v46  ;;  %v10089_v54 = vsel %vm8922_vm12, %v7400_v17, %v6179_v14  ;;  %v5239_v59 = vld [vmem:[#allocation2 + $0x7c] sm:$0xf]  ;;  %v5240_v16 = vld [vmem:[#allocation2 + $0x80] sm:$0x1] }
 0x173   : > { %8339 = vmatprep.mubr.bf16.mxu0 %v10781_v37  ;;  %v5438_v42 = vrot.slane %v5437_v15, 4  ;;  %v6181_v63 = vrot.slane %v6179_v14, 4  ;;  %v2255_v56 = vadd.f32 %v8018_v55, %v10783_v3  ;;  %v10092_v33 = vpop.f32.mrf.mxu1  ;;  %v5455_v11 = vshrl.u32 %v5238_v51, 16  ;;  %v6056_v49 = vld [vmem:[#allocation2 + $0x78] sm:$0xe]  ;;  %v10099_v29 = vpop.f32.mrf.mxu0 }
 0x174   : > { %v5448_v19 = vrot.slane %v5447_v26, 4  ;;  %v10097_v12 = vadd.f32 %v10010_v58, %v2252_v18  ;;  %v5458_v14 = vshll.u32 %v5238_v51, 16  ;;  %v6057_v37 = vld [vmem:[#allocation2 + $0x7c] sm:$0xf]  ;;  %v6058_v26 = vld [vmem:[#allocation2 + $0x80] sm:$0x1]  ;;  %v7375_v46 = vcombine.low %v5419_v6, %v5429_v45 }
 0x175   : > { %v5443_v17 = vsel %vm8932_vm13, %v5438_v42, %v5442_v25  ;;  %v10105_v55 = vsel %vm8922_vm12, %v6181_v63, %v6182_v28  ;;  %v10108_v15 = vadd.f32 %v10044_v41, %v2255_v56  ;;  %v10110_v58 = vpop.f32.mrf.mxu1  ;;  %v5457_v25 = vrot.slane %v5455_v11, 4  ;;  %v5241_v51 = vld [vmem:[#allocation2 + $0x84] sm:$0xf]  ;;  %v10120_v7 = vpop.f32.mrf.mxu0 }
 0x176   : > { %v5453_v18 = vsel %vm8932_vm13, %v5448_v19, %v5452_v61  ;;  %v5460_v42 = vrot.slane %v5458_v14, 5  ;;  %v5464_v41 = vshll.u32 %v5239_v59, 16  ;;  %v5468_v63 = vshrl.u32 %v5239_v59, 16 }
 0x177   : > { %v10117_v28 = vcombine.low %v5443_v17, %v5453_v18  ;;  %v5474_v56 = vshll.u32 %v5240_v16, 16  ;;  %v7401_v53 = vrot.slane %v6056_v49, 9  ;;  %v6186_v6 = vrot.slane %v6057_v37, 5  ;;  %v10785_v17 = vld [vmem:[#allocation4_spill] sm:$0xff]  ;;  %v5242_v18 = vld [vmem:[#allocation2 + $0x88] sm:$0xf]  ;;  %v2180_v59 = vpop.f32.mrf.mxu1 }
 0x178   : > { %8296 = vmatmul.mubr.bf16.gmra.mxu1 %v9991_v24  ;;  %v6189_v45 = vrot.slane %v6058_v26, 5  ;;  %v10784_v61 = vcombine.low %v9853_v0, %v9863_v34  ;;  %v5461_v19 = vor.u32 %v5460_v42, %v5457_v25  ;;  %v5466_v24 = vrot.slane %v5464_v41, 5  ;;  %v5243_v37 = vld [vmem:[#allocation2 + $0x8c] sm:$0x1]  ;;  %v6059_v42 = vld [vmem:[#allocation2 + $0x84] sm:$0xe] }
 0x179   : > { %8299 = vmatprep.mubr.bf16.mxu1 %v10024_v8  ;;  %v5470_v11 = vrot.slane %v5468_v63, 4  ;;  %v2258_v14 = vadd.f32 %v8021_v20, %v10785_v17  ;;  %v5476_v8 = vrot.slane %v5474_v56, 5  ;;  %v10131_v16 = vsel %vm8922_vm12, %v7401_v53, %v6186_v6  ;;  %v6060_v41 = vld [vmem:[#allocation2 + $0x88] sm:$0xf]  ;;  %v6061_v53 = vld [vmem:[#allocation2 + $0x8c] sm:$0x1] }
 0x17a   : > { %8340 = vmatmul.mubr.bf16.vlgmr.msra.gmra.mxu0 %v10784_v61  ;;  %v6188_v49 = vrot.slane %v6186_v6, 4  ;;  %v5479_v0 = vshrl.u32 %v5241_v51, 16  ;;  %v5462_v34 = vrot.slane %v5461_v19, 4  ;;  %v5482_v20 = vshll.u32 %v5241_v51, 16 }
 0x17b   : > { %8343 = vmatprep.mubr.bf16.mxu0 %v7427_v13  ;;  %v5471_v26 = vor.u32 %v5470_v11, %v5466_v24  ;;  %v10134_v25 = vadd.f32 %v10073_v2, %v2258_v14  ;;  %v5488_v13 = vshll.u32 %v5242_v18, 16  ;;  %v5492_v63 = vshrl.u32 %v5242_v18, 16  ;;  %v10140_v56 = vpop.f32.mrf.mxu0 }
 0x17c   : > { %v10138_v21 = vsel %vm8922_vm12, %v6188_v49, %v6189_v45  ;;  %v5481_v60 = vrot.slane %v5479_v0, 4  ;;  %v5467_v6 = vsel %vm8932_vm13, %v5462_v34, %v5466_v24  ;;  %v5484_v51 = vrot.slane %v5482_v20, 5  ;;  %v8025_v19 = vpop.f32.mrf.mxu1  ;;  %v5244_v34 = vld [vmem:[#allocation2 + $0x90] sm:$0xf] }
 0x17d   : > { %v5472_v61 = vrot.slane %v5471_v26, 4  ;;  %v5490_v11 = vrot.slane %v5488_v13, 5  ;;  %v5494_v17 = vrot.slane %v5492_v63, 4  ;;  %v5498_v14 = vshll.u32 %v5243_v37, 16  ;;  %v10146_v49 = vpop.f32.mrf.mxu0  ;;  %v10786_v63 = vld [vmem:[#allocation5_spill] sm:$0xff] }
 0x17e   : > { %v7402_v45 = vrot.slane %v6059_v42, 9  ;;  %v5485_v0 = vor.u32 %v5484_v51, %v5481_v60  ;;  %v6193_v3 = vrot.slane %v6060_v41, 5  ;;  %v6196_v24 = vrot.slane %v6061_v53, 5  ;;  %v10151_v26 = vpop.f32.mrf.mxu1  ;;  %v10788_v53 = vld [vmem:[#allocation6_spill] sm:$0xff] }
 0x17f   : > { %v5477_v18 = vsel %vm8932_vm13, %v5472_v61, %v5476_v8  ;;  %v5495_v2 = vor.u32 %v5494_v17, %v5490_v11  ;;  %v5500_v13 = vrot.slane %v5498_v14, 5  ;;  %v2256_v37 = vadd.f32 %v10092_v33, %v10786_v63  ;;  %v10155_v42 = vpop.f32.mrf.mxu0  ;;  %v5246_v14 = vld [vmem:[#allocation2 + $0x98] sm:$0x1] }
 0x180   : > { %8300 = vmatmul.mubr.bf16.gmra.mxu1 %v10051_v31  ;;  %v7377_v20 = vcombine.low %v5467_v6, %v5477_v18  ;;  %v10787_v31 = vcombine.low %v9947_v40, %v9951_v44  ;;  %v5486_v8 = vrot.slane %v5485_v0, 4  ;;  %v10162_v41 = vsel %vm8922_vm12, %v7402_v45, %v6193_v3  ;;  %v5245_v6 = vld [vmem:[#allocation2 + $0x94] sm:$0xf]  ;;  %v10166_v61 = vpop.f32.mrf.mxu1  ;;  %v6062_v18 = vld [vmem:[#allocation2 + $0x90] sm:$0xe] }
 0x181   : > { %8303 = vmatprep.mubr.bf16.mxu1 %v7375_v46  ;;  %v6195_v60 = vrot.slane %v6193_v3, 4  ;;  %v2259_v46 = vadd.f32 %v10110_v58, %v10788_v53  ;;  %v10789_v33 = vcombine.low %v9995_v48, %v9999_v27  ;;  %v5496_v51 = vrot.slane %v5495_v2, 4  ;;  %v10790_v44 = vld [vmem:[#allocation7_spill] sm:$0xff]  ;;  %v6064_v2 = vld [vmem:[#allocation2 + $0x98] sm:$0x1] }
 0x182   : > { %8344 = vmatmul.mubr.bf16.gmra.mxu0 %v10787_v31  ;;  %v10172_v40 = vadd.f32 %v10085_v5, %v2256_v37  ;;  %v2257_v17 = vadd.f32 %v2180_v59, %v10790_v44  ;;  %v5503_v45 = vshrl.u32 %v5244_v34, 16  ;;  %v5491_v3 = vsel %vm8932_vm13, %v5486_v8, %v5490_v11  ;;  %v6063_v27 = vld [vmem:[#allocation2 + $0x94] sm:$0xf]  ;;  %v10191_v37 = vpop.f32.mrf.mxu1  ;;  %v5248_v59 = vld [vmem:[#allocation2 + $0xa0] sm:$0xf] }
 0x183   : > { %8347 = vmatprep.mubr.bf16.mxu0 %v10789_v33  ;;  %v10179_v58 = vsel %vm8922_vm12, %v6195_v60, %v6196_v24  ;;  %v10182_v0 = vadd.f32 %v10099_v29, %v2259_v46  ;;  %v5506_v48 = vshll.u32 %v5244_v34, 16  ;;  %v5501_v5 = vsel %vm8932_vm13, %v5496_v51, %v5500_v13  ;;  %v10193_v24 = vpop.f32.mrf.mxu0  ;;  %v5247_v60 = vld [vmem:[#allocation2 + $0x9c] sm:$0xf] }
 0x184   : > { %v10189_v63 = vadd.f32 %v10120_v7, %v2257_v17  ;;  %v5505_v11 = vrot.slane %v5503_v45, 4  ;;  %v7378_v31 = vcombine.low %v5491_v3, %v5501_v5  ;;  %v5512_v8 = vshll.u32 %v5245_v6, 16  ;;  %v10792_v17 = vld [vmem:[#allocation8_spill] sm:$0xff] }
 0x185   : > { %v5508_v29 = vrot.slane %v5506_v48, 5  ;;  %v5516_v34 = vshrl.u32 %v5245_v6, 16  ;;  %v5522_v53 = vshll.u32 %v5246_v14, 16  ;;  %v7403_v46 = vrot.slane %v6062_v18, 9  ;;  %v5249_v48 = vld [vmem:[#allocation2 + $0xa4] sm:$0x1] }
 0x186   : > { %10791 = vst [vmem:[#allocation16_spill] sm:$0xff] %v10189_v63  ;;  %v6200_v33 = vrot.slane %v6063_v27, 5  ;;  %v6203_v13 = vrot.slane %v6064_v2, 5  ;;  %v5514_v44 = vrot.slane %v5512_v8, 5  ;;  %v2262_v45 = vadd.f32 %v8025_v19, %v10792_v17 }
 0x187   : > { %v5509_v51 = vor.u32 %v5508_v29, %v5505_v11  ;;  %v5518_v7 = vrot.slane %v5516_v34, 4  ;;  %v5524_v63 = vrot.slane %v5522_v53, 5  ;;  %v5527_v14 = vshrl.u32 %v5247_v60, 16  ;;  %v10203_v27 = vpop.f32.mrf.mxu0  ;;  %v6065_v11 = vld [vmem:[#allocation2 + $0x9c] sm:$0xe] }
 0x188   : > { %8304 = vmatmul.mubr.bf16.gmra.mxu1 %v10117_v28  ;;  %v10199_v3 = vsel %vm8922_vm12, %v7403_v46, %v6200_v33  ;;  %v6202_v6 = vrot.slane %v6200_v33, 4  ;;  %v10201_v18 = vpop.f32.mrf.mxu1  ;;  %v10793_v28 = vcombine.low %v10028_v9, %v10038_v30  ;;  %v5530_v5 = vshll.u32 %v5247_v60, 16  ;;  %v6066_v29 = vld [vmem:[#allocation2 + $0xa0] sm:$0xf]  ;;  %v6067_v30 = vld [vmem:[#allocation2 + $0xa4] sm:$0x1] }
 0x189   : > { %8307 = vmatprep.mubr.bf16.mxu1 %v7377_v20  ;;  %v5510_v2 = vrot.slane %v5509_v51, 4  ;;  %v5519_v19 = vor.u32 %v5518_v7, %v5514_v44  ;;  %v10209_v20 = vadd.f32 %v10140_v56, %v2262_v45  ;;  %v10795_v8 = vcombine.low %v10066_v52, %v10070_v47  ;;  %v10218_v33 = vpop.f32.mrf.mxu0  ;;  %v10796_v51 = vld [vmem:[#allocation9_spill] sm:$0xff] }
 0x18a   : > { %8348 = vmatmul.mubr.bf16.gmra.mxu0 %v10793_v28  ;;  %v10216_v34 = vsel %vm8922_vm12, %v6202_v6, %v6203_v13  ;;  %v5529_v53 = vrot.slane %v5527_v14, 4  ;;  %v5536_v46 = vshll.u32 %v5248_v59, 16  ;;  %v5540_v9 = vshrl.u32 %v5248_v59, 16  ;;  %v10224_v52 = vpop.f32.mrf.mxu1 }
 0x18b   : > { %10794 = vst [vmem:[#allocation18_spill] sm:$0xff] %v10209_v20  ;;  %8351 = vmatprep.mubr.bf16.mxu0 %v10795_v8  ;;  %v5515_v56 = vsel %vm8932_vm13, %v5510_v2, %v5514_v44  ;;  %v5520_v60 = vrot.slane %v5519_v19, 4  ;;  %v5532_v7 = vrot.slane %v5530_v5, 5  ;;  %v5546_v13 = vshll.u32 %v5249_v48, 16  ;;  %v5250_v8 = vld [vmem:[#allocation2 + $0xa8] sm:$0xf]  ;;  %v10228_v20 = vpop.f32.mrf.mxu0 }
 0x18c   : > { %v5538_v47 = vrot.slane %v5536_v46, 5  ;;  %v5542_v17 = vrot.slane %v5540_v9, 4  ;;  %v7404_v45 = vrot.slane %v6065_v11, 9  ;;  %v6207_v14 = vrot.slane %v6066_v29, 5  ;;  %v10238_v9 = vpop.f32.mrf.mxu1 }
 0x18d   : > { %v5525_v59 = vsel %vm8932_vm13, %v5520_v60, %v5524_v63  ;;  %v5533_v6 = vor.u32 %v5532_v7, %v5529_v53  ;;  %v6210_v28 = vrot.slane %v6067_v30, 5  ;;  %v5548_v19 = vrot.slane %v5546_v13, 5  ;;  %v10797_v63 = vld [vmem:[#allocation10_spill] sm:$0xff]  ;;  %v10799_v60 = vld [vmem:[#allocation11_spill] sm:$0xff] }
 0x18e   : > { %v7379_v44 = vcombine.low %v5515_v56, %v5525_v59  ;;  %v5543_v2 = vor.u32 %v5542_v17, %v5538_v47  ;;  %v2260_v5 = vadd.f32 %v10151_v26, %v10796_v51  ;;  %v10234_v48 = vsel %vm8922_vm12, %v7404_v45, %v6207_v14  ;;  %v5251_v53 = vld [vmem:[#allocation2 + $0xac] sm:$0xf]  ;;  %v6068_v7 = vld [vmem:[#allocation2 + $0xa8] sm:$0xe] }
 0x18f   : > { %v5534_v46 = vrot.slane %v5533_v6, 4  ;;  %v6209_v11 = vrot.slane %v6207_v14, 4  ;;  %v2263_v29 = vadd.f32 %v10166_v61, %v10797_v63  ;;  %v2261_v26 = vadd.f32 %v10191_v37, %v10799_v60  ;;  %v6069_v59 = vld [vmem:[#allocation2 + $0xac] sm:$0xf]  ;;  %v6070_v37 = vld [vmem:[#allocation2 + $0xb0] sm:$0x1]  ;;  %v10257_v6 = vpop.f32.mrf.mxu0 }
 0x190   : > { %8308 = vmatmul.mubr.bf16.gmra.mxu1 %v7378_v31  ;;  %v5544_v30 = vrot.slane %v5543_v2, 4  ;;  %v10241_v56 = vadd.f32 %v10146_v49, %v2260_v5  ;;  %v5252_v31 = vld [vmem:[#allocation2 + $0xb0] sm:$0x1]  ;;  %v5551_v51 = vshrl.u32 %v5250_v8, 16  ;;  %v10800_v17 = vcombine.low %v10089_v54, %v10105_v55  ;;  %v5253_v5 = vld [vmem:[#allocation2 + $0xb4] sm:$0xf] }
 0x191   : > { %8311 = vmatprep.mubr.bf16.mxu1 %v7379_v44  ;;  %v5539_v61 = vsel %vm8932_vm13, %v5534_v46, %v5538_v47  ;;  %v10252_v13 = vsel %vm8922_vm12, %v6209_v11, %v6210_v28  ;;  %v10255_v49 = vadd.f32 %v10155_v42, %v2263_v29  ;;  %v5554_v45 = vshll.u32 %v5250_v8, 16  ;;  %v2212_v46 = vpop.f32.mrf.mxu1 }
 0x192   : > { %10798 = vst [vmem:[#allocation20_spill] sm:$0xff] %v10241_v56  ;;  %8352 = vmatmul.mubr.bf16.gmra.mxu0 %v10800_v17  ;;  %v10802_v14 = vcombine.low %v10131_v16, %v10138_v21  ;;  %v5549_v54 = vsel %vm8932_vm13, %v5544_v30, %v5548_v19  ;;  %v10267_v47 = vadd.f32 %v10193_v24, %v2261_v26  ;;  %v5553_v42 = vrot.slane %v5551_v51, 4  ;;  %v10804_v30 = vld [vmem:[#allocation12_spill] sm:$0xff] }
 0x193   : > { %10801 = vst [vmem:[#allocation4_spill] sm:$0xff] %v10255_v49  ;;  %v7380_v28 = vcombine.low %v5539_v61, %v5549_v54  ;;  %v5556_v8 = vrot.slane %v5554_v45, 5  ;;  %v5560_v44 = vshll.u32 %v5251_v53, 16  ;;  %v5564_v2 = vshrl.u32 %v5251_v53, 16  ;;  %v5255_v61 = vld [vmem:[#allocation2 + $0xbc] sm:$0x1] }
 0x194   : > { %8355 = vmatprep.mubr.bf16.mxu0 %v10802_v14  ;;  %10803 = vst [vmem:[#allocation5_spill] sm:$0xff] %v10267_v47  ;;  %v5570_v11 = vshll.u32 %v5252_v31, 16  ;;  %v7405_v63 = vrot.slane %v6068_v7, 9  ;;  %v6214_v16 = vrot.slane %v6069_v59, 5  ;;  %v6217_v21 = vrot.slane %v6070_v37, 5 }
 0x195   : > { %v5557_v29 = vor.u32 %v5556_v8, %v5553_v42  ;;  %v5562_v60 = vrot.slane %v5560_v44, 5  ;;  %v5566_v19 = vrot.slane %v5564_v2, 4  ;;  %v2266_v17 = vadd.f32 %v10201_v18, %v10804_v30  ;;  %v5254_v14 = vld [vmem:[#allocation2 + $0xb8] sm:$0xf]  ;;  %v6071_v54 = vld [vmem:[#allocation2 + $0xb4] sm:$0xe] }
 0x196   : > { %v10271_v24 = vpop.f32.mrf.mxu0  ;;  %v5572_v26 = vrot.slane %v5570_v11, 5  ;;  %v10275_v51 = vsel %vm8922_vm12, %v7405_v63, %v6214_v16  ;;  %v6216_v53 = vrot.slane %v6214_v16, 4  ;;  %v5575_v31 = vshrl.u32 %v5253_v5, 16  ;;  %v6072_v18 = vld [vmem:[#allocation2 + $0xb8] sm:$0xf] }
 0x197   : > { %v5558_v7 = vrot.slane %v5557_v29, 4  ;;  %v5567_v45 = vor.u32 %v5566_v19, %v5562_v60  ;;  %v10278_v59 = vadd.f32 %v10203_v27, %v2266_v17  ;;  %v5578_v37 = vshll.u32 %v5253_v5, 16  ;;  %v10280_v42 = vpop.f32.mrf.mxu1  ;;  %v6073_v16 = vld [vmem:[#allocation2 + $0xbc] sm:$0x1] }
 0x198   : > { %8312 = vmatmul.mubr.bf16.gmra.mxu1 %v7380_v28  ;;  %v10282_v8 = vpop.f32.mrf.mxu0  ;;  %v6218_v44 = vsel %vm8922_vm12, %v6216_v53, %v6217_v21  ;;  %v5577_v2 = vrot.slane %v5575_v31, 4  ;;  %v5584_v11 = vshll.u32 %v5254_v14, 16  ;;  %v5588_v63 = vshrl.u32 %v5254_v14, 16 }
 0x199   : > { %10805 = vst [vmem:[#allocation6_spill] sm:$0xff] %v10278_v59  ;;  %v10806_v28 = vcombine.low %v10162_v41, %v10179_v58  ;;  %v5563_v27 = vsel %vm8932_vm13, %v5558_v7, %v5562_v60  ;;  %v5568_v5 = vrot.slane %v5567_v45, 4  ;;  %v7437_v29 = vcombine.low %v10275_v51, %v6218_v44  ;;  %v10292_v30 = vpop.f32.mrf.mxu1  ;;  %v5256_v51 = vld [vmem:[#allocation2 + $0xc0] sm:$0xf] }
 0x19a   : > { %v5580_v19 = vrot.slane %v5578_v37, 5  ;;  %v10294_v17 = vpop.f32.mrf.mxu0  ;;  %v10807_v21 = vcombine.low %v10199_v3, %v10216_v34  ;;  %v5586_v14 = vrot.slane %v5584_v11, 5  ;;  %v5590_v53 = vrot.slane %v5588_v63, 4  ;;  %v10808_v59 = vld [vmem:[#allocation13_spill] sm:$0xff] }
 0x19b   : > { %8356 = vmatmul.mubr.bf16.gmra.mxu0 %v10806_v28  ;;  %v5594_v31 = vshll.u32 %v5255_v61, 16  ;;  %v7406_v41 = vrot.slane %v6071_v54, 9  ;;  %v5573_v58 = vsel %vm8932_vm13, %v5568_v5, %v5572_v26  ;;  %v6221_v7 = vrot.slane %v6072_v18, 5  ;;  %v10301_v37 = vpop.f32.mrf.mxu1  ;;  %v10809_v54 = vld [vmem:[#allocation14_spill] sm:$0xff] }
 0x19c   : > { %8359 = vmatprep.mubr.bf16.mxu0 %v10807_v21  ;;  %v5581_v60 = vor.u32 %v5580_v19, %v5577_v2  ;;  %v6224_v45 = vrot.slane %v6073_v16, 5  ;;  %v7381_v44 = vcombine.low %v5563_v27, %v5573_v58  ;;  %v5591_v28 = vor.u32 %v5590_v53, %v5586_v14  ;;  %v10305_v34 = vpop.f32.mrf.mxu0  ;;  %v5257_v2 = vld [vmem:[#allocation2 + $0xc4] sm:$0xf]  ;;  %v5258_v5 = vld [vmem:[#allocation2 + $0xc8] sm:$0x1] }
 0x19d   : > { %v5596_v55 = vrot.slane %v5594_v31, 5  ;;  %v2264_v3 = vadd.f32 %v10224_v52, %v10808_v59  ;;  %v10309_v61 = vsel %vm8922_vm12, %v7406_v41, %v6221_v7  ;;  %v6223_v26 = vrot.slane %v6221_v7, 4  ;;  %v10313_v63 = vpop.f32.mrf.mxu1  ;;  %v10811_v52 = vld [vmem:[#allocation15_spill] sm:$0xff]  ;;  %v6074_v21 = vld [vmem:[#allocation2 + $0xc0] sm:$0xe] }
 0x19e   : > { %v5582_v11 = vrot.slane %v5581_v60, 4  ;;  %v2267_v18 = vadd.f32 %v10238_v9, %v10809_v54  ;;  %8315 = vmatprep.mubr.bf16.mxu1 %v7381_v44  ;;  %v5592_v16 = vrot.slane %v5591_v28, 4  ;;  %v2265_v59 = vadd.f32 %v2212_v46, %v10811_v52  ;;  %v6075_v58 = vld [vmem:[#allocation2 + $0xc4] sm:$0xf]  ;;  %v6076_v60 = vld [vmem:[#allocation2 + $0xc8] sm:$0x1] }
 0x19f   : > { %v10316_v27 = vadd.f32 %v10218_v33, %v2264_v3  ;;  %v5599_v19 = vshrl.u32 %v5256_v51, 16  ;;  %v6225_v31 = vsel %vm8922_vm12, %v6223_v26, %v6224_v45  ;;  %v5602_v41 = vshll.u32 %v5256_v51, 16  ;;  %v10326_v7 = vpop.f32.mrf.mxu1  ;;  %v10334_v28 = vpop.f32.mrf.mxu0  ;;  %v5259_v26 = vld [vmem:[#allocation2 + $0xcc] sm:$0xf] }
 0x1a0   : > { %v5587_v53 = vsel %vm8932_vm13, %v5582_v11, %v5586_v14  ;;  %v10324_v9 = vadd.f32 %v10228_v20, %v2267_v18  ;;  %v5597_v33 = vsel %vm8932_vm13, %v5592_v16, %v5596_v55  ;;  %v7438_v46 = vcombine.low %v10309_v61, %v6225_v31 }
 0x1a1   : > { %10810 = vst [vmem:[#allocation7_spill] sm:$0xff] %v10316_v27  ;;  %v10332_v44 = vadd.f32 %v10257_v6, %v2265_v59  ;;  %v5601_v14 = vrot.slane %v5599_v19, 4  ;;  %v10814_v20 = vcombine.low %v10234_v48, %v10252_v13  ;;  %v7382_v45 = vcombine.low %v5587_v53, %v5597_v33  ;;  %v10339_v54 = vpop.f32.mrf.mxu1  ;;  %v10341_v16 = vpop.f32.mrf.mxu0  ;;  %v10815_v48 = vld [vmem:[#allocation17_spill] sm:$0xff]  ;;  %v5260_v53 = vld [vmem:[#allocation2 + $0xd0] sm:$0xf] }
 0x1a2   : > { %10812 = vst [vmem:[#allocation8_spill] sm:$0xff] %v10324_v9  ;;  %v5604_v51 = vrot.slane %v5602_v41, 5  ;;  %v5608_v3 = vshll.u32 %v5257_v2, 16  ;;  %v5612_v11 = vshrl.u32 %v5257_v2, 16  ;;  %v5618_v55 = vshll.u32 %v5258_v5, 16 }
 0x1a3   : > { %10813 = vst [vmem:[#allocation9_spill] sm:$0xff] %v10332_v44  ;;  %8360 = vmatmul.mubr.bf16.gmra.mxu0 %v10814_v20  ;;  %v7407_v61 = vrot.slane %v6074_v21, 9  ;;  %v6228_v18 = vrot.slane %v6075_v58, 5  ;;  %v6231_v6 = vrot.slane %v6076_v60, 5  ;;  %8316 = vmatmul.mubr.bf16.gmra.mxu1 %v7382_v45  ;;  %v2270_v13 = vadd.f32 %v10280_v42, %v10815_v48  ;;  %v10345_v31 = vpop.f32.mrf.mxu1  ;;  %v5261_v21 = vld [vmem:[#allocation2 + $0xd4] sm:$0x1]  ;;  %v10349_v58 = vpop.f32.mrf.mxu0 }
 0x1a4   : > { %8363 = vmatprep.mubr.bf16.mxu0 %v7437_v29  ;;  %v5605_v52 = vor.u32 %v5604_v51, %v5601_v14  ;;  %v5610_v59 = vrot.slane %v5608_v3, 5  ;;  %v5614_v19 = vrot.slane %v5612_v11, 4  ;;  %v5620_v2 = vrot.slane %v5618_v55, 5  ;;  %v6077_v45 = vld [vmem:[#allocation2 + $0xcc] sm:$0xe] }
 0x1a5   : > { %v6229_v29 = vsel %vm8922_vm12, %v7407_v61, %v6228_v18  ;;  %v6230_v5 = vrot.slane %v6228_v18, 4  ;;  %v5623_v41 = vshrl.u32 %v5259_v26, 16  ;;  %v10352_v14 = vadd.f32 %v10271_v24, %v2270_v13  ;;  %v6078_v42 = vld [vmem:[#allocation2 + $0xd0] sm:$0xf]  ;;  %v3163_v51 = vpop.f32.mrf.mxu1  ;;  %v6079_v18 = vld [vmem:[#allocation2 + $0xd4] sm:$0x1]  ;;  %v3981_v48 = vpop.f32.mrf.mxu0 }
 0x1a6   : > { %v5606_v60 = vrot.slane %v5605_v52, 4  ;;  %v5615_v33 = vor.u32 %v5614_v19, %v5610_v59  ;;  %v5626_v20 = vshll.u32 %v5259_v26, 16  ;;  %v5632_v55 = vshll.u32 %v5260_v53, 16 }
 0x1a7   : > { %10816 = vst [vmem:[#allocation10_spill] sm:$0xff] %v10352_v14  ;;  %v6232_v3 = vsel %vm8922_vm12, %v6230_v5, %v6231_v6  ;;  %v5625_v11 = vrot.slane %v5623_v41, 4  ;;  %v5636_v61 = vshrl.u32 %v5260_v53, 16  ;;  %v8105_v24 = vpop.f32.mrf.mxu1  ;;  %v5642_v14 = vshll.u32 %v5261_v21, 16  ;;  %v8153_v47 = vpop.f32.mrf.mxu0 }
 0x1a8   : > { %v5611_v44 = vsel %vm8932_vm13, %v5606_v60, %v5610_v59  ;;  %v5616_v52 = vrot.slane %v5615_v33, 4  ;;  %v7439_v19 = vcombine.low %v6229_v29, %v6232_v3  ;;  %v5628_v9 = vrot.slane %v5626_v20, 5  ;;  %v10817_v29 = vld [vmem:[#allocation19_spill] sm:$0xff] }
 0x1a9   : > { %v5634_v13 = vrot.slane %v5632_v55, 5  ;;  %v5638_v26 = vrot.slane %v5636_v61, 4  ;;  %v7408_v27 = vrot.slane %v6077_v45, 9  ;;  %v6235_v53 = vrot.slane %v6078_v42, 5  ;;  %v3176_v49 = vpop.f32.mrf.mxu1  ;;  %v3994_v20 = vpop.f32.mrf.mxu0  ;;  %v10818_v45 = vld [vmem:[#allocation21_spill] sm:$0xff]  ;;  %v10820_v55 = vld [vmem:[#allocation24_spill] sm:$0xff] }
 0x1aa   : > { %v5621_v6 = vsel %vm8932_vm13, %v5616_v52, %v5620_v2  ;;  %v5629_v5 = vor.u32 %v5628_v9, %v5625_v11  ;;  %v6238_v41 = vrot.slane %v6079_v18, 5  ;;  %v5644_v60 = vrot.slane %v5642_v14, 5  ;;  %v10819_v11 = vld [vmem:[#allocation23_spill] sm:$0xff] }
 0x1ab   : > { %8364 = vmatmul.mubr.bf16.gmra.mxu0 %v7438_v46  ;;  %v7383_v56 = vcombine.low %v5611_v44, %v5621_v6  ;;  %v5639_v59 = vor.u32 %v5638_v26, %v5634_v13  ;;  %v2268_v33 = vadd.f32 %v10292_v30, %v10817_v29  ;;  %v6236_v21 = vsel %vm8922_vm12, %v7408_v27, %v6235_v53  ;;  %v8106_v9 = vpop.f32.mrf.mxu1  ;;  %v8154_v61 = vpop.f32.mrf.mxu0 }
 0x1ac   : > { %8367 = vmatprep.mubr.bf16.mxu0 %v7439_v19  ;;  %v5630_v3 = vrot.slane %v5629_v5, 4  ;;  %v6237_v46 = vrot.slane %v6235_v53, 4  ;;  %v2271_v2 = vadd.f32 %v10301_v37, %v10818_v45  ;;  %v2269_v14 = vadd.f32 %v10313_v63, %v10819_v11 }
 0x1ad   : > { %8319 = vmatprep.mubr.bf16.mxu1 %v7383_v56  ;;  %v5640_v42 = vrot.slane %v5639_v59, 4  ;;  %v10367_v44 = vadd.f32 %v10282_v8, %v2268_v33  ;;  %v3289_v30 = vadd.f32 %v10326_v7, %v10820_v55  ;;  %v10821_v56 = vld [vmem:[#allocation25_spill] sm:$0xff]  ;;  %v3179_v52 = vpop.f32.mrf.mxu1  ;;  %v3293_v35 = vadd.f32 %v8105_v24, %v9901_v10 }
 0x1ae   : > { %v5635_v27 = vsel %vm8932_vm13, %v5630_v3, %v5634_v13  ;;  %v6239_v18 = vsel %vm8922_vm12, %v6237_v46, %v6238_v41  ;;  %v10378_v37 = vadd.f32 %v10294_v17, %v2271_v2  ;;  %v3287_v8 = vadd.f32 %v10339_v54, %v10821_v56  ;;  %v3997_v13 = vpop.f32.mrf.mxu0  ;;  %v10822_v17 = vld [vmem:[#allocation26_spill] sm:$0xff]  ;;  %v10823_v54 = vld [vmem:[#allocation27_spill] sm:$0xff] }
 0x1af   : > { %v5645_v63 = vsel %vm8932_vm13, %v5640_v42, %v5644_v60  ;;  %v7440_v19 = vcombine.low %v6236_v21, %v6239_v18  ;;  %v10385_v7 = vadd.f32 %v10305_v34, %v2269_v14  ;;  %v10388_v26 = vadd.f32 %v10334_v28, %v3289_v30  ;;  %v8109_v41 = vpop.f32.mrf.mxu1 }
 0x1b0   : > { %v7384_v50 = vcombine.low %v5635_v27, %v5645_v63  ;;  %v10391_v6 = vadd.f32 %v10341_v16, %v3287_v8  ;;  %v3290_v5 = vadd.f32 %v10345_v31, %v10822_v17  ;;  %v3288_v53 = vadd.f32 %v3163_v51, %v10823_v54 }
 0x1b1   : > { %v3291_v59 = vadd.f32 %v3176_v49, %v9939_v39  ;;  %v3294_v34 = vadd.f32 %v8106_v9, %v9954_v43  ;;  %v3292_v28 = vadd.f32 %v3179_v52, %v9976_v36  ;;  %v3297_v31 = vadd.f32 %v8109_v41, %v9986_v1  ;;  %v8157_v29 = vpop.f32.mrf.mxu0  ;;  %v3192_v51 = vpop.f32.mrf.mxu1  ;;  %v10824_v9 = vld [vmem:[#allocation22_spill] sm:$0xff] }
 0x1b2   : > { %8320 = vmatmul.mubr.bf16.gmra.mxu1 %v7384_v50  ;;  %v10401_v60 = vadd.f32 %v10349_v58, %v3290_v5  ;;  %v10403_v16 = vadd.f32 %v3981_v48, %v3288_v53  ;;  %v10406_v33 = vadd.f32 %v8153_v47, %v3293_v35  ;;  %v3295_v49 = vadd.f32 %v3192_v51, %v10019_v62 }
 0x1b3   : > { %8368 = vmatmul.mubr.bf16.gmra.mxu0 %v7440_v19  ;;  %v10408_v10 = vadd.f32 %v3994_v20, %v3291_v59  ;;  %v10410_v39 = vadd.f32 %v8154_v61, %v3294_v34  ;;  %v10412_v43 = vadd.f32 %v3997_v13, %v3292_v28  ;;  %v10414_v36 = vadd.f32 %v8157_v29, %v3297_v31  ;;  %v4010_v58 = vpop.f32.mrf.mxu0  ;;  %v8110_v24 = vpop.f32.mrf.mxu1  ;;  %v10825_v59 = vld [vmem:[#allocation16_spill] sm:$0xff]  ;;  %v10826_v29 = vld [vmem:[#allocation18_spill] sm:$0xff] }
 0x1b4   : > { %v2846_v48 = vadd.f32 %v9980_v4, %v10042_v32  ;;  %v3298_v1 = vadd.f32 %v8110_v24, %v10031_v23  ;;  %v10420_v3 = vadd.f32 %v4010_v58, %v3295_v49  ;;  %v2253_v42 = vadd.f32 %v10061_v22, %v10824_v9  ;;  %v10827_v24 = vld [vmem:[#allocation20_spill] sm:$0xff] }
 0x1b5   : > { %v8158_v47 = vpop.f32.mrf.mxu0  ;;  %v3195_v20 = vpop.f32.mrf.mxu1 }
 0x1b6   : > { %v10422_v21 = vadd.f32 %v8158_v47, %v3298_v1  ;;  %v3296_v46 = vadd.f32 %v3195_v20, %v2846_v48  ;;  %v2850_v61 = vadd.f32 %v10055_v57, %v2253_v42  ;;  %v10828_v20 = vld [vmem:[#allocation4_spill] sm:$0xff]  ;;  %v10829_v42 = vld [vmem:[#allocation5_spill] sm:$0xff] }
 0x1b7   : > { %v4013_v45 = vpop.f32.mrf.mxu0  ;;  %v8113_v2 = vpop.f32.mrf.mxu1 }
 0x1b8   : > { %v10426_v62 = vadd.f32 %v4013_v45, %v3296_v46  ;;  %v3301_v11 = vadd.f32 %v8113_v2, %v10059_v38 }
 0x1b9   : > { %v8161_v14 = vpop.f32.mrf.mxu0  ;;  %v3208_v4 = vpop.f32.mrf.mxu1 }
 0x1ba   : > { %v10429_v32 = vadd.f32 %v8161_v14, %v3301_v11  ;;  %v3299_v23 = vadd.f32 %v3208_v4, %v10097_v12 }
 0x1bb   : > { %v4026_v55 = vpop.f32.mrf.mxu0  ;;  %v8114_v30 = vpop.f32.mrf.mxu1 }
 0x1bc   : > { %v10433_v27 = vadd.f32 %v4026_v55, %v3299_v23  ;;  %v3302_v18 = vadd.f32 %v8114_v30, %v10108_v15  ;;  %v10830_v55 = vld [vmem:[#allocation6_spill] sm:$0xff] }
 0x1bd   : > { %v8162_v56 = vpop.f32.mrf.mxu0  ;;  %v3211_v22 = vpop.f32.mrf.mxu1 }
 0x1be   : > { %v10436_v8 = vadd.f32 %v8162_v56, %v3302_v18  ;;  %v3300_v52 = vadd.f32 %v3211_v22, %v2850_v61  ;;  %v10831_v22 = vld [vmem:[#allocation7_spill] sm:$0xff] }
 0x1bf   : > { %v4029_v38 = vpop.f32.mrf.mxu0  ;;  %v8117_v63 = vpop.f32.mrf.mxu1 }
 0x1c0   : > { %v10438_v19 = vadd.f32 %v4029_v38, %v3300_v52  ;;  %v3305_v13 = vadd.f32 %v8117_v63, %v10134_v25 }
 0x1c1   : > { %v3224_v12 = vpop.f32.mrf.mxu1  ;;  %v8165_v50 = vpop.f32.mrf.mxu0 }
 0x1c2   : > { %v3303_v17 = vadd.f32 %v3224_v12, %v10172_v40  ;;  %v10442_v57 = vadd.f32 %v8165_v50, %v3305_v13  ;;  %v10832_v12 = vld [vmem:[#allocation8_spill] sm:$0xff] }
 0x1c3   : > { %v8118_v5 = vpop.f32.mrf.mxu1  ;;  %v4042_v54 = vpop.f32.mrf.mxu0 }
 0x1c4   : > { %v3306_v15 = vadd.f32 %v8118_v5, %v10182_v0  ;;  %v10445_v53 = vadd.f32 %v4042_v54, %v3303_v17 }
 0x1c5   : > { %v3227_v41 = vpop.f32.mrf.mxu1  ;;  %v8166_v35 = vpop.f32.mrf.mxu0 }
 0x1c6   : > { %v3304_v34 = vadd.f32 %v3227_v41, %v10825_v59  ;;  %v10448_v28 = vadd.f32 %v8166_v35, %v3306_v15  ;;  %v10833_v15 = vld [vmem:[#allocation9_spill] sm:$0xff] }
 0x1c7   : > { %v8121_v31 = vpop.f32.mrf.mxu1  ;;  %v4045_v25 = vpop.f32.mrf.mxu0 }
 0x1c8   : > { %v3309_v51 = vadd.f32 %v8121_v31, %v10826_v29  ;;  %v10451_v49 = vadd.f32 %v4045_v25, %v3304_v34  ;;  %v10836_v25 = vld [vmem:[#allocation10_spill] sm:$0xff] }
 0x1c9   : > { %v3240_v40 = vpop.f32.mrf.mxu1  ;;  %v8169_v58 = vpop.f32.mrf.mxu0 }
 0x1ca   : > { %v3307_v48 = vadd.f32 %v3240_v40, %v10827_v24  ;;  %v10454_v1 = vadd.f32 %v8169_v58, %v3309_v51 }
 0x1cb   : > { %v8122_v0 = vpop.f32.mrf.mxu1  ;;  %v4058_v47 = vpop.f32.mrf.mxu0 }
 0x1cc   : > { %v3310_v46 = vadd.f32 %v8122_v0, %v10828_v20  ;;  %v10457_v45 = vadd.f32 %v4058_v47, %v3307_v48 }
 0x1cd   : > { %v3243_v2 = vpop.f32.mrf.mxu1  ;;  %v8170_v9 = vpop.f32.mrf.mxu0 }
 0x1ce   : > { %v3308_v11 = vadd.f32 %v3243_v2, %v10829_v42  ;;  %v10460_v14 = vadd.f32 %v8170_v9, %v3310_v46 }
 0x1cf   : > { %v8125_v4 = vpop.f32.mrf.mxu1  ;;  %v4061_v23 = vpop.f32.mrf.mxu0 }
 0x1d0   : > { %v3313_v30 = vadd.f32 %v8125_v4, %v10830_v55  ;;  %v10463_v61 = vadd.f32 %v4061_v23, %v3308_v11 }
 0x1d1   : > { %v3256_v18 = vpop.f32.mrf.mxu1  ;;  %v8173_v56 = vpop.f32.mrf.mxu0 }
 0x1d2   : > { %v3311_v52 = vadd.f32 %v3256_v18, %v10831_v22  ;;  %v10466_v38 = vadd.f32 %v8173_v56, %v3313_v30 }
 0x1d3   : > { %v8126_v63 = vpop.f32.mrf.mxu1  ;;  %v4074_v13 = vpop.f32.mrf.mxu0 }
 0x1d4   : > { %v3314_v50 = vadd.f32 %v8126_v63, %v10832_v12  ;;  %v10469_v17 = vadd.f32 %v4074_v13, %v3311_v52 }
 0x1d5   : > { %v3259_v5 = vpop.f32.mrf.mxu1  ;;  %v8174_v54 = vpop.f32.mrf.mxu0 }
 0x1d6   : > { %v3312_v41 = vadd.f32 %v3259_v5, %v10833_v15  ;;  %v10472_v35 = vadd.f32 %v8174_v54, %v3314_v50 }
 0x1d7   : > { %v4077_v59 = vpop.f32.mrf.mxu0 }
 0x1d8   : > { %10834 = vst [vmem:[#allocation11_spill] sm:$0xff] %v10472_v35  ;;  %v10474_v34 = vadd.f32 %v4077_v59, %v3312_v41 }
 0x1da   : > { %10835 = vst [vmem:[#allocation12_spill] sm:$0xff] %v10474_v34 }
 0x1e5   : > { %v8129_v31 = vpop.f32.mrf.mxu1 }
 0x1e6   : > { %v3317_v29 = vadd.f32 %v8129_v31, %v10836_v25 }
 0x1e7   : > { %v3272_v51 = vpop.f32.mrf.mxu1 }
 0x1e8   : > { %v3315_v40 = vadd.f32 %v3272_v51, %v10367_v44 }
 0x1e9   : > { %v8130_v58 = vpop.f32.mrf.mxu1 }
 0x1ea   : > { %v3318_v24 = vadd.f32 %v8130_v58, %v10378_v37 }
 0x1eb   : > { %v3275_v48 = vpop.f32.mrf.mxu1 }
 0x1ec   : > { %v3316_v0 = vadd.f32 %v3275_v48, %v10385_v7 }
 0x1ed   : > { %v8197_v47 = vpop.f32.mrf.mxu1 }
 0x1ee   : > { %v4701_v20 = vadd.f32 %v8197_v47, %v10388_v26 }
 0x1ef   : > { %v4572_v2 = vpop.f32.mrf.mxu1 }
 0x1f0   : > { %v4699_v42 = vadd.f32 %v4572_v2, %v10391_v6 }
 0x1f1   : > { %v8177_v46 = vpop.f32.mrf.mxu0  ;;  %v10484_v4 = vpop.f32.mrf.mxu1 }
 0x1f2   : > { %v10481_v9 = vadd.f32 %v8177_v46, %v3317_v29 }
 0x1f3   : > { %v4090_v11 = vpop.f32.mrf.mxu0  ;;  %v10488_v55 = vpop.f32.mrf.mxu1 }
 0x1f4   : > { %v10486_v23 = vadd.f32 %v4090_v11, %v3315_v40 }
 0x1f5   : > { %v8178_v44 = vpop.f32.mrf.mxu0  ;;  %v8201_v30 = vpop.f32.mrf.mxu1 }
 0x1f6   : > { %v10490_v37 = vadd.f32 %v8178_v44, %v3318_v24  ;;  %v4705_v26 = vadd.f32 %v8201_v30, %v10406_v33 }
 0x1f7   : > { %v4093_v7 = vpop.f32.mrf.mxu0  ;;  %v4588_v22 = vpop.f32.mrf.mxu1 }
 0x1f8   : > { %10837 = vst [vmem:[#allocation13_spill] sm:$0xff] %v10490_v37  ;;  %v10492_v18 = vadd.f32 %v4093_v7, %v3316_v0  ;;  %v4703_v6 = vadd.f32 %v4588_v22, %v10408_v10 }
 0x1f9   : > { %v8245_v56 = vpop.f32.mrf.mxu0  ;;  %v10498_v13 = vpop.f32.mrf.mxu1 }
 0x1fa   : > { %10838 = vst [vmem:[#allocation14_spill] sm:$0xff] %v10492_v18  ;;  %v10495_v52 = vadd.f32 %v8245_v56, %v4701_v20 }
 0x1fb   : > { %v5023_v63 = vpop.f32.mrf.mxu0  ;;  %v10504_v5 = vpop.f32.mrf.mxu1 }
 0x1fc   : > { %v10500_v12 = vadd.f32 %v5023_v63, %v4699_v42 }
 0x1fd   : > { %v10502_v50 = vpop.f32.mrf.mxu0 }
 0x1ff   : > { %v10506_v54 = vpop.f32.mrf.mxu0  ;;  %v8205_v15 = vpop.f32.mrf.mxu1 }
 0x200   : > { %v4709_v33 = vadd.f32 %v8205_v15, %v10414_v36 }
 0x201   : > { %v8249_v41 = vpop.f32.mrf.mxu0  ;;  %v4604_v59 = vpop.f32.mrf.mxu1 }
 0x202   : > { %v10509_v31 = vadd.f32 %v8249_v41, %v4705_v26  ;;  %v4707_v10 = vadd.f32 %v4604_v59, %v10420_v3 }
 0x203   : > { %v5039_v25 = vpop.f32.mrf.mxu0  ;;  %v10512_v29 = vpop.f32.mrf.mxu1 }
 0x204   : > { %v10514_v51 = vadd.f32 %v5039_v25, %v4703_v6 }
 0x205   : > { %v10516_v40 = vpop.f32.mrf.mxu0  ;;  %v10518_v58 = vpop.f32.mrf.mxu1 }
 0x207   : > { %v10520_v24 = vpop.f32.mrf.mxu0  ;;  %v8209_v48 = vpop.f32.mrf.mxu1 }
 0x208   : > { %v4713_v36 = vadd.f32 %v8209_v48, %v10429_v32 }
 0x209   : > { %v8253_v0 = vpop.f32.mrf.mxu0  ;;  %v4620_v47 = vpop.f32.mrf.mxu1 }
 0x20a   : > { %v10523_v20 = vadd.f32 %v8253_v0, %v4709_v33  ;;  %v4711_v3 = vadd.f32 %v4620_v47, %v10433_v27 }
 0x20b   : > { %v5055_v46 = vpop.f32.mrf.mxu0  ;;  %v10526_v2 = vpop.f32.mrf.mxu1 }
 0x20c   : > { %v10528_v42 = vadd.f32 %v5055_v46, %v4707_v10 }
 0x20d   : > { %v10530_v11 = vpop.f32.mrf.mxu0  ;;  %v10532_v44 = vpop.f32.mrf.mxu1 }
 0x20f   : > { %v10534_v7 = vpop.f32.mrf.mxu0  ;;  %v8213_v30 = vpop.f32.mrf.mxu1 }
 0x210   : > { %v4717_v32 = vadd.f32 %v8213_v30, %v10442_v57 }
 0x211   : > { %v8257_v26 = vpop.f32.mrf.mxu0  ;;  %v4636_v56 = vpop.f32.mrf.mxu1 }
 0x212   : > { %v10537_v22 = vadd.f32 %v8257_v26, %v4713_v36  ;;  %v4715_v27 = vadd.f32 %v4636_v56, %v10445_v53 }
 0x213   : > { %v5071_v6 = vpop.f32.mrf.mxu0  ;;  %v10540_v63 = vpop.f32.mrf.mxu1 }
 0x214   : > { %v10542_v15 = vadd.f32 %v5071_v6, %v4711_v3 }
 0x215   : > { %v10544_v33 = vpop.f32.mrf.mxu0  ;;  %v10546_v41 = vpop.f32.mrf.mxu1 }
 0x217   : > { %v10548_v59 = vpop.f32.mrf.mxu0 }
 0x218   : > { %v8217_v10 = vpop.f32.mrf.mxu1 }
 0x219   : > { %v4721_v57 = vadd.f32 %v8217_v10, %v10454_v1  ;;  %v8261_v25 = vpop.f32.mrf.mxu0 }
 0x21a   : > { %v4652_v48 = vpop.f32.mrf.mxu1  ;;  %v10551_v36 = vadd.f32 %v8261_v25, %v4717_v32 }
 0x21b   : > { %v4719_v53 = vadd.f32 %v4652_v48, %v10457_v45  ;;  %v5087_v0 = vpop.f32.mrf.mxu0 }
 0x21c   : > { %v10554_v47 = vpop.f32.mrf.mxu1  ;;  %v10556_v3 = vadd.f32 %v5087_v0, %v4715_v27 }
 0x21d   : > { %v10558_v46 = vpop.f32.mrf.mxu0 }
 0x21e   : > { %v10560_v30 = vpop.f32.mrf.mxu1 }
 0x21f   : > { %v10562_v26 = vpop.f32.mrf.mxu0 }
 0x220   : > { %v8221_v56 = vpop.f32.mrf.mxu1 }
 0x221   : > { %v4725_v1 = vadd.f32 %v8221_v56, %v10466_v38  ;;  %v8265_v6 = vpop.f32.mrf.mxu0 }
 0x222   : > { %v4668_v10 = vpop.f32.mrf.mxu1  ;;  %v10565_v32 = vadd.f32 %v8265_v6, %v4721_v57 }
 0x223   : > { %v4723_v45 = vadd.f32 %v4668_v10, %v10469_v17  ;;  %v5103_v25 = vpop.f32.mrf.mxu0 }
 0x224   : > { %10839 = vst [vmem:[#allocation15_spill] sm:$0xff] %v10565_v32  ;;  %v10568_v48 = vpop.f32.mrf.mxu1  ;;  %v10570_v27 = vadd.f32 %v5103_v25, %v4719_v53 }
 0x225   : > { %10840 = vst [vmem:[#allocation17_spill] sm:$0xff] %v10568_v48  ;;  %v10572_v0 = vpop.f32.mrf.mxu0 }
 0x226   : > { %10841 = vst [vmem:[#allocation19_spill] sm:$0xff] %v10570_v27  ;;  %v10574_v18 = vpop.f32.mrf.mxu1 }
 0x227   : > { %10842 = vst [vmem:[#allocation21_spill] sm:$0xff] %v10574_v18  ;;  %v10576_v37 = vpop.f32.mrf.mxu0 }
 0x228   : > { %v8225_v34 = vpop.f32.mrf.mxu1 }
 0x229   : > { %v4729_v38 = vadd.f32 %v8225_v34, %v10481_v9  ;;  %v8269_v56 = vpop.f32.mrf.mxu0 }
 0x22a   : > { %v4684_v35 = vpop.f32.mrf.mxu1  ;;  %v10579_v57 = vadd.f32 %v8269_v56, %v4725_v1 }
 0x22b   : > { %v4727_v17 = vadd.f32 %v4684_v35, %v10486_v23  ;;  %v5119_v6 = vpop.f32.mrf.mxu0  ;;  %v4702_v35 = vadd.f32 %v10484_v4, %v10401_v60 }
 0x22c   : > { %10843 = vst [vmem:[#allocation23_spill] sm:$0xff] %v10579_v57  ;;  %v10582_v10 = vpop.f32.mrf.mxu1  ;;  %v10584_v53 = vadd.f32 %v5119_v6, %v4723_v45 }
 0x22d   : > { %10844 = vst [vmem:[#allocation24_spill] sm:$0xff] %v10582_v10  ;;  %v10586_v25 = vpop.f32.mrf.mxu0 }
 0x22e   : > { %10845 = vst [vmem:[#allocation25_spill] sm:$0xff] %v10584_v53  ;;  %10846 = vst [vmem:[#allocation26_spill] sm:$0xff] %v10586_v25  ;;  %v10588_v48 = vpop.f32.mrf.mxu1  ;;  %v5153_v53 = vadd.f32 %v10502_v50, %v4702_v35 }
 0x22f   : > { %10847 = vst [vmem:[#allocation27_spill] sm:$0xff] %v10588_v48  ;;  %v10590_v18 = vpop.f32.mrf.mxu0  ;;  %v4700_v48 = vadd.f32 %v10488_v55, %v10403_v16 }
 0x230   : > { %10848 = vst [vmem:[#allocation22_spill] sm:$0xff] %v10590_v18  ;;  %v8293_v32 = vpop.f32.mrf.mxu1 }
 0x231   : > { %v8273_v27 = vpop.f32.mrf.mxu0  ;;  %v5970_v60 = vadd.f32 %v8293_v32, %v10495_v52 }
 0x232   : > { %v5841_v34 = vpop.f32.mrf.mxu1  ;;  %v10592_v9 = vadd.f32 %v8273_v27, %v4729_v38 }
 0x233   : > { %v5135_v1 = vpop.f32.mrf.mxu0  ;;  %v5968_v4 = vadd.f32 %v5841_v34, %v10500_v12 }
 0x234   : > { %10849 = vst [vmem:[#allocation16_spill] sm:$0xff] %v10592_v9  ;;  %v8294_v56 = vpop.f32.mrf.mxu1  ;;  %v10596_v23 = vadd.f32 %v5135_v1, %v4727_v17  ;;  %v5151_v9 = vadd.f32 %v10506_v54, %v4700_v48  ;;  %v4706_v1 = vadd.f32 %v10498_v13, %v10410_v39  ;;  %v4704_v54 = vadd.f32 %v10504_v5, %v10412_v43 }
 0x235   : > { %v10598_v45 = vpop.f32.mrf.mxu0  ;;  %v5971_v17 = vadd.f32 %v8294_v56, %v5153_v53 }
 0x236   : > { %10850 = vst [vmem:[#allocation18_spill] sm:$0xff] %v10596_v23  ;;  %10851 = vst [vmem:[#allocation20_spill] sm:$0xff] %v10598_v45  ;;  %v5844_v6 = vpop.f32.mrf.mxu1  ;;  %v5157_v25 = vadd.f32 %v10516_v40, %v4706_v1  ;;  %v5155_v56 = vadd.f32 %v10520_v24, %v4704_v54 }
 0x237   : > { %v10602_v10 = vpop.f32.mrf.mxu0  ;;  %v5969_v55 = vadd.f32 %v5844_v6, %v5151_v9 }
 0x238   : > { %10852 = vst [vmem:[#allocation4_spill] sm:$0xff] %v10602_v10  ;;  %v8297_v57 = vpop.f32.mrf.mxu1 }
 0x239   : > { %v5974_v48 = vadd.f32 %v8297_v57, %v10509_v31  ;;  %v4708_v57 = vadd.f32 %v10518_v58, %v10426_v62 }
 0x23a   : > { %v8341_v27 = vpop.f32.mrf.mxu0  ;;  %v5857_v38 = vpop.f32.mrf.mxu1 }
 0x23b   : > { %v6564_v18 = vadd.f32 %v8341_v27, %v5970_v60  ;;  %v5972_v32 = vadd.f32 %v5857_v38, %v10514_v51 }
 0x23c   : > { %v6435_v23 = vpop.f32.mrf.mxu0  ;;  %v8298_v16 = vpop.f32.mrf.mxu1 }
 0x23d   : > { %v6562_v50 = vadd.f32 %v6435_v23, %v5968_v4  ;;  %v4710_v23 = vadd.f32 %v10512_v29, %v10422_v21  ;;  %v6857_v60 = vmul.f32 %v6564_v18, %v6564_v18 }
 0x23e   : > { %v8342_v10 = vpop.f32.mrf.mxu0  ;;  %v5860_v45 = vpop.f32.mrf.mxu1 }
 0x23f   : > { %v6565_v35 = vadd.f32 %v8342_v10, %v5971_v17  ;;  %v5975_v10 = vadd.f32 %v8298_v16, %v5157_v25  ;;  %v6855_v43 = vmul.f32 %v6562_v50, %v6562_v50  ;;  %v5973_v17 = vadd.f32 %v5860_v45, %v5155_v56 }
 0x240   : > { %v6438_v39 = vpop.f32.mrf.mxu0  ;;  %v8301_v52 = vpop.f32.mrf.mxu1  ;;  %v5161_v21 = vadd.f32 %v10530_v11, %v4710_v23  ;;  %v5159_v45 = vadd.f32 %v10534_v7, %v4708_v57  ;;  %v4714_v56 = vadd.f32 %v10526_v2, %v10436_v8 }
 0x241   : > { %v7621_v13 = vpack.c.bf16 %v6565_v35, %v6564_v18  ;;  %v6563_v12 = vadd.f32 %v6438_v39, %v5969_v55  ;;  %v6858_v25 = vmul.f32 %v6565_v35, %v6565_v35 }
 0x242   : > { %v8345_v40 = vpop.f32.mrf.mxu0  ;;  %v5873_v53 = vpop.f32.mrf.mxu1  ;;  %v5165_v8 = vadd.f32 %v10544_v33, %v4714_v56 }
 0x243   : > { %7708 = vst [vmem:[%s10618_s29 + $0x8] sm:$0xff] %v7621_v13   ;;  %v7616_v5 = vpack.c.bf16 %v6563_v12, %v6562_v50  ;;  %v6818_v34 = vadd.f32 %v6563_v12, %v6562_v50  ;;  %v6856_v9 = vmul.f32 %v6563_v12, %v6563_v12  ;;  %v6568_v55 = vadd.f32 %v8345_v40, %v5974_v48 }
 0x244   : > { %v6451_v6 = vpop.f32.mrf.mxu0  ;;  %v8302_v27 = vpop.f32.mrf.mxu1  ;;  %v5976_v62 = vadd.f32 %v5873_v53, %v10528_v42  ;;  %v4712_v42 = vadd.f32 %v10532_v44, %v10438_v19 }
 0x245   : > { %7617 = vst [vmem:[%s10618_s29] sm:$0xff] %v7616_v5   ;;  %v6819_v51 = vadd.f32 %v6818_v34, %v6564_v18  ;;  %v6887_v38 = vadd.f32 %v6856_v9, %v6855_v43  ;;  %v6566_v31 = vadd.f32 %v6451_v6, %v5972_v32  ;;  %v5979_v40 = vadd.f32 %v8302_v27, %v5161_v21 }
 0x246   : > { %v8346_v4 = vpop.f32.mrf.mxu0  ;;  %v5876_v1 = vpop.f32.mrf.mxu1  ;;  %v6861_v23 = vmul.f32 %v6568_v55, %v6568_v55  ;;  %v5163_v19 = vadd.f32 %v10548_v59, %v4712_v42 }
 0x247   : > { %v6888_v16 = vadd.f32 %v6887_v38, %v6857_v60  ;;  %v6820_v24 = vadd.f32 %v6819_v51, %v6565_v35  ;;  %v6569_v50 = vadd.f32 %v8346_v4, %v5975_v10  ;;  %v6859_v18 = vmul.f32 %v6566_v31, %v6566_v31 }
 0x248   : > { %v6454_v29 = vpop.f32.mrf.mxu0  ;;  %v8305_v54 = vpop.f32.mrf.mxu1  ;;  %v5978_v35 = vadd.f32 %v8301_v52, %v10523_v20  ;;  %v5977_v53 = vadd.f32 %v5876_v1, %v5159_v45 }
 0x249   : > { %v6821_v39 = vadd.f32 %v6820_v24, %v6566_v31  ;;  %v6889_v13 = vadd.f32 %v6888_v16, %v6858_v25  ;;  %v7631_v12 = vpack.c.bf16 %v6569_v50, %v6568_v55  ;;  %v6567_v32 = vadd.f32 %v6454_v29, %v5973_v17 }
 0x24a   : > { %v8349_v43 = vpop.f32.mrf.mxu0  ;;  %v5889_v58 = vpop.f32.mrf.mxu1  ;;  %v6862_v38 = vmul.f32 %v6569_v50, %v6569_v50 }
 0x24b   : > { %v6890_v48 = vadd.f32 %v6889_v13, %v6859_v18  ;;  %7710 = vst [vmem:[%s10618_s29 + $0x18] sm:$0xff] %v7631_v12   ;;  %v7626_v11 = vpack.c.bf16 %v6567_v32, %v6566_v31  ;;  %v6822_v10 = vadd.f32 %v6821_v39, %v6567_v32  ;;  %v6860_v5 = vmul.f32 %v6567_v32, %v6567_v32 }
 0x24c   : > { %v6467_v34 = vpop.f32.mrf.mxu0  ;;  %v8306_v9 = vpop.f32.mrf.mxu1  ;;  %v6572_v52 = vadd.f32 %v8349_v43, %v5978_v35  ;;  %v5980_v24 = vadd.f32 %v5889_v58, %v10542_v15  ;;  %v4718_v32 = vadd.f32 %v10540_v63, %v10448_v28  ;;  %v4716_v43 = vadd.f32 %v10546_v41, %v10451_v49 }
 0x24d   : > { %7709 = vst [vmem:[%s10618_s29 + $0x10] sm:$0xff] %v7626_v11   ;;  %v6823_v7 = vadd.f32 %v6822_v10, %v6568_v55  ;;  %v6891_v6 = vadd.f32 %v6890_v48, %v6860_v5  ;;  %v6570_v60 = vadd.f32 %v6467_v34, %v5976_v62  ;;  %v5983_v18 = vadd.f32 %v8306_v9, %v5165_v8 }
 0x24e   : > { %v8350_v51 = vpop.f32.mrf.mxu0  ;;  %v5892_v20 = vpop.f32.mrf.mxu1  ;;  %v6865_v15 = vmul.f32 %v6572_v52, %v6572_v52  ;;  %v5169_v28 = vadd.f32 %v10558_v46, %v4718_v32  ;;  %v5167_v49 = vadd.f32 %v10562_v26, %v4716_v43 }
 0x24f   : > { %v6573_v27 = vadd.f32 %v8350_v51, %v5979_v40  ;;  %v6892_v31 = vadd.f32 %v6891_v6, %v6861_v23  ;;  %v6824_v57 = vadd.f32 %v6823_v7, %v6569_v50  ;;  %v6863_v1 = vmul.f32 %v6570_v60, %v6570_v60 }
 0x250   : > { %v6470_v25 = vpop.f32.mrf.mxu0  ;;  %v8309_v4 = vpop.f32.mrf.mxu1  ;;  %v5982_v50 = vadd.f32 %v8305_v54, %v10537_v22  ;;  %v5981_v62 = vadd.f32 %v5892_v20, %v5163_v19 }
 0x251   : > { %v7641_v2 = vpack.c.bf16 %v6573_v27, %v6572_v52  ;;  %v6571_v44 = vadd.f32 %v6470_v25, %v5977_v53  ;;  %v6825_v17 = vadd.f32 %v6824_v57, %v6570_v60  ;;  %v6893_v16 = vadd.f32 %v6892_v31, %v6862_v38 }
 0x252   : > { %v8353_v55 = vpop.f32.mrf.mxu0  ;;  %v5905_v21 = vpop.f32.mrf.mxu1  ;;  %v6866_v11 = vmul.f32 %v6573_v27, %v6573_v27  ;;  %v5986_v20 = vadd.f32 %v8309_v4, %v10551_v36  ;;  %v4722_v31 = vadd.f32 %v10554_v47, %v10460_v14  ;;  %v4720_v57 = vadd.f32 %v10560_v30, %v10463_v61 }
 0x253   : > { %7712 = vst [vmem:[%s10618_s29 + $0x28] sm:$0xff] %v7641_v2   ;;  %v7636_v29 = vpack.c.bf16 %v6571_v44, %v6570_v60  ;;  %v6864_v39 = vmul.f32 %v6571_v44, %v6571_v44  ;;  %v6894_v13 = vadd.f32 %v6893_v16, %v6863_v1  ;;  %v6826_v33 = vadd.f32 %v6825_v17, %v6571_v44 }
 0x254   : > { %v6483_v12 = vpop.f32.mrf.mxu0  ;;  %v8310_v59 = vpop.f32.mrf.mxu1  ;;  %v6576_v22 = vadd.f32 %v8353_v55, %v5982_v50  ;;  %v5984_v7 = vadd.f32 %v5905_v21, %v10556_v3  ;;  %v5173_v14 = vadd.f32 %v10572_v0, %v4722_v31  ;;  %v5171_v47 = vadd.f32 %v10576_v37, %v4720_v57  ;;  %v10855_v37 = vld [vmem:[#allocation11_spill] sm:$0xff]  ;;  %v10861_v31 = vld [vmem:[#allocation25_spill] sm:$0xff] }
 0x255   : > { %7711 = vst [vmem:[%s10618_s29 + $0x20] sm:$0xff] %v7636_v29   ;;  %v6827_v58 = vadd.f32 %v6826_v33, %v6572_v52  ;;  %v6895_v45 = vadd.f32 %v6894_v13, %v6864_v39  ;;  %v6574_v48 = vadd.f32 %v6483_v12, %v5980_v24  ;;  %v5987_v52 = vadd.f32 %v8310_v59, %v5169_v28  ;;  %v10854_v59 = vld [vmem:[#allocation15_spill] sm:$0xff] }
 0x256   : > { %v8354_v35 = vpop.f32.mrf.mxu0  ;;  %v5908_v40 = vpop.f32.mrf.mxu1  ;;  %v6869_v3 = vmul.f32 %v6576_v22, %v6576_v22 }
 0x257   : > { %v6577_v54 = vadd.f32 %v8354_v35, %v5983_v18  ;;  %v6896_v10 = vadd.f32 %v6895_v45, %v6865_v15  ;;  %v6828_v5 = vadd.f32 %v6827_v58, %v6573_v27  ;;  %v6867_v42 = vmul.f32 %v6574_v48, %v6574_v48  ;;  %v10853_v18 = vld [vmem:[#allocation19_spill] sm:$0xff]  ;;  %v10856_v45 = vld [vmem:[#allocation17_spill] sm:$0xff]  ;;  %v10857_v35 = vld [vmem:[#allocation12_spill] sm:$0xff] }
 0x258   : > { %v6486_v34 = vpop.f32.mrf.mxu0  ;;  %v8313_v9 = vpop.f32.mrf.mxu1  ;;  %v5985_v25 = vadd.f32 %v5908_v40, %v5167_v49  ;;  %v10858_v40 = vld [vmem:[#allocation21_spill] sm:$0xff] }
 0x259   : > { %v7651_v63 = vpack.c.bf16 %v6577_v54, %v6576_v22  ;;  %v6575_v41 = vadd.f32 %v6486_v34, %v5981_v62  ;;  %v6829_v56 = vadd.f32 %v6828_v5, %v6574_v48  ;;  %v6897_v53 = vadd.f32 %v6896_v10, %v6866_v11 }
 0x25a   : > { %v5921_v6 = vpop.f32.mrf.mxu1  ;;  %v6870_v4 = vmul.f32 %v6577_v54, %v6577_v54  ;;  %v5990_v32 = vadd.f32 %v8313_v9, %v10854_v59 }
 0x25b   : > { %v8357_v23 = vpop.f32.mrf.mxu0  ;;  %7714 = vst [vmem:[%s10618_s29 + $0x38] sm:$0xff] %v7651_v63   ;;  %v7646_v60 = vpack.c.bf16 %v6575_v41, %v6574_v48  ;;  %v6868_v51 = vmul.f32 %v6575_v41, %v6575_v41  ;;  %v6898_v27 = vadd.f32 %v6897_v53, %v6867_v42  ;;  %v6830_v46 = vadd.f32 %v6829_v56, %v6575_v41 }
 0x25c   : > { %v8314_v26 = vpop.f32.mrf.mxu1  ;;  %v6580_v17 = vadd.f32 %v8357_v23, %v5986_v20  ;;  %v5988_v13 = vadd.f32 %v5921_v6, %v10853_v18  ;;  %v4726_v48 = vadd.f32 %v10856_v45, %v10855_v37  ;;  %v10863_v18 = vld [vmem:[#allocation13_spill] sm:$0xff]  ;;  %v10866_v37 = vld [vmem:[#allocation27_spill] sm:$0xff] }
 0x25d   : > { %v6499_v38 = vpop.f32.mrf.mxu0  ;;  %7713 = vst [vmem:[%s10618_s29 + $0x30] sm:$0xff] %v7646_v60   ;;  %v6831_v8 = vadd.f32 %v6830_v46, %v6576_v22  ;;  %v6899_v19 = vadd.f32 %v6898_v27, %v6868_v51  ;;  %v5991_v43 = vadd.f32 %v8314_v26, %v5173_v14  ;;  %v4724_v22 = vadd.f32 %v10858_v40, %v10857_v35  ;;  %v10860_v60 = vld [vmem:[#allocation22_spill] sm:$0xff] }
 0x25e   : > { %v6578_v2 = vadd.f32 %v6499_v38, %v5984_v7  ;;  %v5924_v24 = vpop.f32.mrf.mxu1  ;;  %v6873_v11 = vmul.f32 %v6580_v17, %v6580_v17  ;;  %v10859_v7 = vld [vmem:[#allocation26_spill] sm:$0xff] }
 0x25f   : > { %v8358_v44 = vpop.f32.mrf.mxu0  ;;  %v6900_v1 = vadd.f32 %v6899_v19, %v6869_v3  ;;  %v6832_v16 = vadd.f32 %v6831_v8, %v6577_v54  ;;  %v5989_v54 = vadd.f32 %v5924_v24, %v5171_v47  ;;  %v5177_v6 = vadd.f32 %v10859_v7, %v4726_v48  ;;  %v10862_v19 = vld [vmem:[#allocation23_spill] sm:$0xff] }
 0x260   : > { %v6581_v36 = vadd.f32 %v8358_v44, %v5987_v52  ;;  %v6871_v29 = vmul.f32 %v6578_v2, %v6578_v2  ;;  %v5175_v51 = vadd.f32 %v10860_v60, %v4724_v22 }
 0x261   : > { %v6502_v55 = vpop.f32.mrf.mxu0  ;;  %v6833_v21 = vadd.f32 %v6832_v16, %v6578_v2  ;;  %v6901_v39 = vadd.f32 %v6900_v1, %v6870_v4 }
 0x262   : > { %v7661_v61 = vpack.c.bf16 %v6581_v36, %v6580_v17  ;;  %v6579_v30 = vadd.f32 %v6502_v55, %v5985_v25  ;;  %v6874_v41 = vmul.f32 %v6581_v36, %v6581_v36 }
 0x263   : > { %v8361_v50 = vpop.f32.mrf.mxu0  ;;  %v6902_v62 = vadd.f32 %v6901_v39, %v6871_v29  ;;  %v8317_v58 = vpop.f32.mrf.mxu1 }
 0x264   : > { %7716 = vst [vmem:[%s10618_s29 + $0x48] sm:$0xff] %v7661_v61   ;;  %v7656_v33 = vpack.c.bf16 %v6579_v30, %v6578_v2  ;;  %v6872_v12 = vmul.f32 %v6579_v30, %v6579_v30  ;;  %v6834_v15 = vadd.f32 %v6833_v21, %v6579_v30  ;;  %v6584_v9 = vadd.f32 %v8361_v50, %v5990_v32 }
 0x265   : > { %v6515_v0 = vpop.f32.mrf.mxu0  ;;  %v5937_v49 = vpop.f32.mrf.mxu1  ;;  %v5994_v2 = vadd.f32 %v8317_v58, %v10862_v19  ;;  %v10865_v58 = vld [vmem:[#allocation14_spill] sm:$0xff] }
 0x266   : > { %7715 = vst [vmem:[%s10618_s29 + $0x40] sm:$0xff] %v7656_v33   ;;  %v6835_v10 = vadd.f32 %v6834_v15, %v6580_v17  ;;  %v6903_v5 = vadd.f32 %v6902_v62, %v6872_v12  ;;  %v6582_v34 = vadd.f32 %v6515_v0, %v5988_v13  ;;  %v5992_v57 = vadd.f32 %v5937_v49, %v10861_v31  ;;  %v10864_v13 = vld [vmem:[#allocation24_spill] sm:$0xff]  ;;  %v10869_v49 = vld [vmem:[#allocation18_spill] sm:$0xff] }
 0x267   : > { %v8362_v28 = vpop.f32.mrf.mxu0  ;;  %v8318_v23 = vpop.f32.mrf.mxu1  ;;  %v6877_v16 = vmul.f32 %v6584_v9, %v6584_v9  ;;  %v4730_v33 = vadd.f32 %v10864_v13, %v10863_v18  ;;  %v4728_v45 = vadd.f32 %v10866_v37, %v10865_v58 }
 0x268   : > { %v6585_v63 = vadd.f32 %v8362_v28, %v5991_v43  ;;  %v6904_v56 = vadd.f32 %v6903_v5, %v6873_v11  ;;  %v6836_v42 = vadd.f32 %v6835_v10, %v6581_v36  ;;  %v6875_v46 = vmul.f32 %v6582_v34, %v6582_v34  ;;  %v10867_v10 = vld [vmem:[#allocation20_spill] sm:$0xff] }
 0x269   : > { %v6518_v53 = vpop.f32.mrf.mxu0  ;;  %v5940_v25 = vpop.f32.mrf.mxu1  ;;  %v5995_v44 = vadd.f32 %v8318_v23, %v5177_v6  ;;  %v5181_v5 = vadd.f32 %v10867_v10, %v4730_v33  ;;  %v10870_v23 = vld [vmem:[#allocation4_spill] sm:$0xff] }
 0x26a   : > { %v7671_v20 = vpack.c.bf16 %v6585_v63, %v6584_v9  ;;  %v6583_v52 = vadd.f32 %v6518_v53, %v5989_v54  ;;  %v6837_v27 = vadd.f32 %v6836_v42, %v6582_v34  ;;  %v6905_v38 = vadd.f32 %v6904_v56, %v6874_v41 }
 0x26b   : > { %v8365_v26 = vpop.f32.mrf.mxu0  ;;  %v5993_v1 = vadd.f32 %v5940_v25, %v5175_v51  ;;  %v6878_v21 = vmul.f32 %v6585_v63, %v6585_v63  ;;  %v5179_v7 = vadd.f32 %v10870_v23, %v4728_v45 }
 0x26c   : > { %7718 = vst [vmem:[%s10618_s29 + $0x58] sm:$0xff] %v7671_v20   ;;  %v7666_v3 = vpack.c.bf16 %v6583_v52, %v6582_v34  ;;  %v6876_v8 = vmul.f32 %v6583_v52, %v6583_v52  ;;  %v6906_v17 = vadd.f32 %v6905_v38, %v6875_v46  ;;  %v6838_v36 = vadd.f32 %v6837_v27, %v6583_v52  ;;  %v10868_v34 = vld [vmem:[#allocation16_spill] sm:$0xff] }
 0x26d   : > { %v6531_v4 = vpop.f32.mrf.mxu0  ;;  %v6588_v61 = vadd.f32 %v8365_v26, %v5994_v2 }
 0x26e   : > { %7717 = vst [vmem:[%s10618_s29 + $0x50] sm:$0xff] %v7666_v3   ;;  %v6839_v55 = vadd.f32 %v6838_v36, %v6584_v9  ;;  %v6907_v24 = vadd.f32 %v6906_v17, %v6876_v8  ;;  %v6586_v14 = vadd.f32 %v6531_v4, %v5992_v57 }
 0x26f   : > { %v8366_v47 = vpop.f32.mrf.mxu0 }
 0x270   : > { %v6589_v30 = vadd.f32 %v8366_v47, %v5995_v44  ;;  %v6908_v29 = vadd.f32 %v6907_v24, %v6877_v16  ;;  %v6840_v39 = vadd.f32 %v6839_v55, %v6585_v63  ;;  %v6879_v43 = vmul.f32 %v6586_v14, %v6586_v14 }
 0x271   : > { %v6534_v50 = vpop.f32.mrf.mxu0  ;;  %v6881_v63 = vmul.f32 %v6588_v61, %v6588_v61 }
 0x272   : > { %v7681_v12 = vpack.c.bf16 %v6589_v30, %v6588_v61  ;;  %v6587_v59 = vadd.f32 %v6534_v50, %v5993_v1  ;;  %v6841_v32 = vadd.f32 %v6840_v39, %v6586_v14  ;;  %v6909_v62 = vadd.f32 %v6908_v29, %v6878_v21  ;;  %v8321_v15 = vpop.f32.mrf.mxu1 }
 0x273   : > { %v8369_v0 = vpop.f32.mrf.mxu0  ;;  %v5998_v28 = vadd.f32 %v8321_v15, %v10868_v34  ;;  %v6882_v51 = vmul.f32 %v6589_v30, %v6589_v30 }
 0x274   : > { %7720 = vst [vmem:[%s10618_s29 + $0x68] sm:$0xff] %v7681_v12   ;;  %v7676_v48 = vpack.c.bf16 %v6587_v59, %v6586_v14  ;;  %v6880_v35 = vmul.f32 %v6587_v59, %v6587_v59  ;;  %v6910_v40 = vadd.f32 %v6909_v62, %v6879_v43  ;;  %v6842_v22 = vadd.f32 %v6841_v32, %v6587_v59  ;;  %v5953_v54 = vpop.f32.mrf.mxu1 }
 0x275   : > { %v6547_v11 = vpop.f32.mrf.mxu0  ;;  %v5996_v9 = vadd.f32 %v5953_v54, %v10869_v49  ;;  %v6592_v46 = vadd.f32 %v8369_v0, %v5998_v28 }
 0x276   : > { %7719 = vst [vmem:[%s10618_s29 + $0x60] sm:$0xff] %v7676_v48   ;;  %v6843_v41 = vadd.f32 %v6842_v22, %v6588_v61  ;;  %v6911_v56 = vadd.f32 %v6910_v40, %v6880_v35  ;;  %v8322_v42 = vpop.f32.mrf.mxu1 }
 0x277   : > { %v8370_v53 = vpop.f32.mrf.mxu0  ;;  %v6590_v6 = vadd.f32 %v6547_v11, %v5996_v9  ;;  %v5999_v60 = vadd.f32 %v8322_v42, %v5181_v5  ;;  %v6885_v4 = vmul.f32 %v6592_v46, %v6592_v46 }
 0x278   : > { %v6912_v20 = vadd.f32 %v6911_v56, %v6881_v63  ;;  %v6844_v52 = vadd.f32 %v6843_v41, %v6589_v30  ;;  %v5956_v27 = vpop.f32.mrf.mxu1 }
 0x279   : > { %v6593_v38 = vadd.f32 %v8370_v53, %v5999_v60  ;;  %v5997_v26 = vadd.f32 %v5956_v27, %v5179_v7  ;;  %v6883_v57 = vmul.f32 %v6590_v6, %v6590_v6  ;;  %v6550_v3 = vpop.f32.mrf.mxu0 }
 0x27a   : > { %v6845_v31 = vadd.f32 %v6844_v52, %v6590_v6  ;;  %v6913_v25 = vadd.f32 %v6912_v20, %v6882_v51 }
 0x27b   : > { %v7691_v8 = vpack.c.bf16 %v6593_v38, %v6592_v46  ;;  %v6591_v19 = vadd.f32 %v6550_v3, %v5997_v26  ;;  %v6886_v55 = vmul.f32 %v6593_v38, %v6593_v38 }
 0x27c   : > { %v6914_v2 = vadd.f32 %v6913_v25, %v6883_v57 }
 0x27d   : > { %7722 = vst [vmem:[%s10618_s29 + $0x78] sm:$0xff] %v7691_v8   ;;  %v7686_v44 = vpack.c.bf16 %v6591_v19, %v6590_v6  ;;  %v6846_v17 = vadd.f32 %v6845_v31, %v6591_v19  ;;  %v6884_v36 = vmul.f32 %v6591_v19, %v6591_v19 }
 0x27f   : > { %7721 = vst [vmem:[%s10618_s29 + $0x70] sm:$0xff] %v7686_v44   ;;  %v6847_v1 = vadd.f32 %v6846_v17, %v6592_v46  ;;  %v6915_v16 = vadd.f32 %v6914_v2, %v6884_v36 }
 0x281   : > { %v6848_v24 = vadd.f32 %v6847_v1, %v6593_v38  ;;  %v6916_v14 = vadd.f32 %v6915_v16, %v6885_v4 }
 0x283   : > { %v6849_v47 = vrot.slane %v6848_v24, 4  ;;  %v6917_v61 = vadd.f32 %v6916_v14, %v6886_v55 }
 0x285   : > { %v6850_v30 = vadd.f32 %v6849_v47, %v6848_v24  ;;  %v6918_v21 = vrot.slane %v6917_v61, 4 }
 0x287   : > { %v6851_v29 = vrot.slane %v6850_v30, 2  ;;  %v6919_v39 = vadd.f32 %v6918_v21, %v6917_v61 }
 0x289   : > { %v6852_v50 = vadd.f32 %v6851_v29, %v6850_v30  ;;  %v6920_v18 = vrot.slane %v6919_v39, 2 }
 0x28b   : > { %v6853_v13 = vrot.slane %v6852_v50, 1  ;;  %v6921_v33 = vadd.f32 %v6920_v18, %v6919_v39 }
 0x28d   : > { %v6922_v12 = vrot.slane %v6921_v33, 1  ;;  %v6854_v59 = vadd.f32 %v6853_v13, %v6852_v50 }
 0x28f   : > { %v6923_v32 = vadd.f32 %v6922_v12, %v6921_v33 }
 0x291   : > { %v6925_v43 = vsel %vm892_vm4, %v6854_v59, %v6923_v32 }
 0x292   : > { %6926 = vst [vmem:[%s235_s9] sm:$0x3] %v6925_v43 }
 0x293 PF: > { %s16_s18 = sadd.s32 1, %s8526_s18  }
 0x294   : > { %p13_p4 = scmp.ge.s32.totalorder %s16_s18, 4  }
 0x296   :  { %15 = sbr.rel (!%p13_p4) target bundleno = 1 (0x1), region = 88 }

</bundles_post_ra>
